<compile_context>
chip_gen: v7x
topology: tpu7x:2x2x1
jax: 0.10.0
libtpu: 0.0.40
codegen_flags: <defaults>
</compile_context>

<pallas_src>
import functools

import jax
import jax.numpy as jnp
from jax import lax
from jax.experimental import pallas as pl
from jax.experimental.pallas import tpu as pltpu


# ----------------------------------------------------------------------------
# Fused encoder kernel
# ----------------------------------------------------------------------------
def _encoder_kernel(*refs, hidden_dim, n_layers, seq_len, batch):
    """refs = (x, [wih, whh, bih, bhh] x (fwd,bwd) x n_layers, w_fc, b_fc,   # inputs
               y_out, hidden,                                                # outputs
               y_f, y_b, gxr_f, gxz_f, gxn_f, gxr_b, gxz_b, gxn_b)           # VMEM scratch

    Shapes (all float32):
      x      : (T*B, input_dim)   time-major rows (row = t*B + b)
      wih    : (3, Din_l, H)      per-gate input->hidden weights (r, z, n)
      whh    : (3, H, H)          per-gate hidden->hidden weights
      bih/bhh: (3, 1, H)
      w_fc   : (2H, H), b_fc: (1, H)
      y_out  : (T*B, 2H), hidden: (B, H)
      scratch: (T*B, H) each
    """
    H, T, B = hidden_dim, seq_len, batch
    n_in = 3 + 8 * n_layers

    x_ref = refs[0]
    wfc_ref = refs[1 + 8 * n_layers]
    bfc_ref = refs[2 + 8 * n_layers]
    y_out_ref = refs[n_in]
    hid_ref = refs[n_in + 1]
    (y_f, y_b,
     gxr_f, gxz_f, gxn_f,
     gxr_b, gxz_b, gxn_b) = refs[n_in + 2:]

    def dot(a, b):
        return jnp.dot(a, b, preferred_element_type=jnp.float32)

    def gru_cell(h, gx_r, gx_z, gx_n, whh, bhh):
        # PyTorch GRU gate order (r, z, n) and update rule.
        gh_r = dot(h, whh[0]) + bhh[0]
        gh_z = dot(h, whh[1]) + bhh[1]
        gh_n = dot(h, whh[2]) + bhh[2]
        r = jax.nn.sigmoid(gx_r + gh_r)
        z = jax.nn.sigmoid(gx_z + gh_z)
        n = jnp.tanh(gx_n + r * gh_n)
        return (1.0 - z) * n + z * h

    h_f = jnp.zeros((B, H), jnp.float32)
    h_b = jnp.zeros((B, H), jnp.float32)

    for layer in range(n_layers):
        base = 1 + 8 * layer
        wih_f = refs[base + 0][...]
        whh_f = refs[base + 1][...]
        bih_f = refs[base + 2][...]
        bhh_f = refs[base + 3][...]
        wih_b = refs[base + 4][...]
        whh_b = refs[base + 5][...]
        bih_b = refs[base + 6][...]
        bhh_b = refs[base + 7][...]

        # ---- Phase 1: hoisted input->gate projections for ALL timesteps ----
        # One well-shaped (T*B, Din) x (Din, H) matmul per gate instead of T tiny
        # matmuls on the serial critical path.
        if layer == 0:
            xin = x_ref[...]                               # (T*B, Din)

            def in_proj(w, b, g):
                return dot(xin, w[g]) + b[g]
        else:
            yf_prev = y_f[...]                             # (T*B, H) previous-layer fwd
            yb_prev = y_b[...]                             # (T*B, H) previous-layer bwd

            def in_proj(w, b, g):
                # cat(y_f, y_b) @ W  ==  y_f @ W[:H] + y_b @ W[H:]  (no concat needed)
                return dot(yf_prev, w[g, :H, :]) + dot(yb_prev, w[g, H:, :]) + b[g]

        gxr_f[...] = in_proj(wih_f, bih_f, 0)
        gxz_f[...] = in_proj(wih_f, bih_f, 1)
        gxn_f[...] = in_proj(wih_f, bih_f, 2)
        gxr_b[...] = in_proj(wih_b, bih_b, 0)
        gxz_b[...] = in_proj(wih_b, bih_b, 1)
        gxn_b[...] = in_proj(wih_b, bih_b, 2)

        # ---- Phase 2: fused forward/backward recurrence over time ----
        h_f = jnp.zeros((B, H), jnp.float32)
        h_b = jnp.zeros((B, H), jnp.float32)

        def step(t, carry):
            hf, hb = carry
            of = t * B                 # forward processes time t
            ob = (T - 1 - t) * B       # backward processes time T-1-t
            hf = gru_cell(hf,
                          gxr_f[pl.ds(of, B), :], gxz_f[pl.ds(of, B), :],
                          gxn_f[pl.ds(of, B), :], whh_f, bhh_f)
            y_f[pl.ds(of, B), :] = hf
            hb = gru_cell(hb,
                          gxr_b[pl.ds(ob, B), :], gxz_b[pl.ds(ob, B), :],
                          gxn_b[pl.ds(ob, B), :], whh_b, bhh_b)
            y_b[pl.ds(ob, B), :] = hb
            return hf, hb

        if T <= 32:
            # Fully unrolled: static offsets, full scheduler visibility across steps.
            carry = (h_f, h_b)
            for t in range(T):
                carry = step(t, carry)
            h_f, h_b = carry
        else:
            h_f, h_b = lax.fori_loop(0, T, step, (h_f, h_b))

    # ---- Outputs (last-layer fwd/bwd concatenated) + fused fc+tanh head ----
    y_out_ref[...] = jnp.concatenate([y_f[...], y_b[...]], axis=-1)     # (T*B, 2H)
    h_cat = jnp.concatenate([h_f, h_b], axis=-1)                        # (B, 2H)
    hid_ref[...] = jnp.tanh(dot(h_cat, wfc_ref[...]) + bfc_ref[...])


# ----------------------------------------------------------------------------
# Wrapper
# ----------------------------------------------------------------------------
@functools.partial(jax.jit, static_argnames=("hidden_dim", "n_layers"))
def encoder_forward(prepared_params, src, *, hidden_dim, n_layers):
    """src: (B, T, input_dim) batch-first. Returns (outputs (B,T,2H), hidden (B,H))."""
    H = hidden_dim
    B, T, Din = src.shape
    x_flat = jnp.transpose(src.astype(jnp.float32), (1, 0, 2)).reshape(T * B, Din)

    n_in = 3 + 8 * n_layers
    kernel = functools.partial(_encoder_kernel, hidden_dim=H, n_layers=n_layers,
                               seq_len=T, batch=B)
    vmem = pl.BlockSpec(memory_space=pltpu.MemorySpace.VMEM)
    y_flat, hidden = pl.pallas_call(
        kernel,
        out_shape=(jax.ShapeDtypeStruct((T * B, 2 * H), jnp.float32),
                   jax.ShapeDtypeStruct((B, H), jnp.float32)),
        in_specs=[vmem] * n_in,
        out_specs=(vmem, vmem),
        scratch_shapes=[pltpu.VMEM((T * B, H), jnp.float32)] * 8,
    )(x_flat, *prepared_params)

    outputs = y_flat.reshape(T, B, 2 * H).transpose(1, 0, 2)  # (B, T, 2H)
    return outputs, hidden


# ----------------------------------------------------------------------------
# Parameters (PyTorch layout) + one-time preparation into kernel layout
# ----------------------------------------------------------------------------
def init_encoder_params(key, input_dim, hidden_dim, n_layers):
    H = hidden_dim
    bound = 1.0 / float(H) ** 0.5
    gru_params = []
    for layer in range(n_layers):
        in_dim = input_dim if layer == 0 else 2 * H
        directions = []
        for _ in range(2):  # forward, backward
            key, k1, k2, k3, k4 = jax.random.split(key, 5)
            w_ih = jax.random.uniform(k1, (3 * H, in_dim), jnp.float32, -bound, bound)
            w_hh = jax.random.uniform(k2, (3 * H, H), jnp.float32, -bound, bound)
            b_ih = jax.random.uniform(k3, (3 * H,), jnp.float32, -bound, bound)
            b_hh = jax.random.uniform(k4, (3 * H,), jnp.float32, -bound, bound)
            directions.append((w_ih, w_hh, b_ih, b_hh))
        gru_params.append(directions)
    key, k1, k2 = jax.random.split(key, 3)
    fc_bound = 1.0 / float(2 * H) ** 0.5
    w_fc = jax.random.uniform(k1, (H, 2 * H), jnp.float32, -fc_bound, fc_bound)
    b_fc = jax.random.uniform(k2, (H,), jnp.float32, -fc_bound, fc_bound)
    return {"gru": gru_params, "fc": (w_fc, b_fc)}


def prepare_encoder_params(params, hidden_dim, n_layers):
    """One-time: transpose + per-gate split of PyTorch-layout weights for the kernel."""
    H = hidden_dim
    flat = []
    for layer in range(n_layers):
        for d in range(2):  # fwd, bwd
            w_ih, w_hh, b_ih, b_hh = params["gru"][layer][d]
            din = w_ih.shape[1]
            flat.append(jnp.transpose(w_ih.reshape(3, H, din), (0, 2, 1)))  # (3, Din, H)
            flat.append(jnp.transpose(w_hh.reshape(3, H, H), (0, 2, 1)))    # (3, H, H)
            flat.append(b_ih.reshape(3, 1, H))
            flat.append(b_hh.reshape(3, 1, H))
    w_fc, b_fc = params["fc"]
    flat.append(jnp.transpose(w_fc))        # (2H, H)
    flat.append(b_fc.reshape(1, H))
    return flat


# ----------------------------------------------------------------------------
# Pure-JAX reference (for a loose sanity check only)
# ----------------------------------------------------------------------------
def _reference_encoder(params, src, hidden_dim, n_layers):
    H = hidden_dim
    x = jnp.transpose(src.astype(jnp.float32), (1, 0, 2))  # (T, B, Din)
    T, B, _ = x.shape

    def run_dir(x_seq, w_ih, w_hh, b_ih, b_hh):
        def cell(h, x_t):
            gx = x_t @ w_ih.T + b_ih
            gh = h @ w_hh.T + b_hh
            r = jax.nn.sigmoid(gx[:, :H] + gh[:, :H])
            z = jax.nn.sigmoid(gx[:, H:2 * H] + gh[:, H:2 * H])
            n = jnp.tanh(gx[:, 2 * H:] + r * gh[:, 2 * H:])
            h_new = (1.0 - z) * n + z * h
            return h_new, h_new
        h0 = jnp.zeros((B, H), jnp.float32)
        hN, ys = lax.scan(cell, h0, x_seq)
        return ys, hN

    h_f = h_b = None
    for layer in range(n_layers):
        (wf, whf, bf, bhf), (wb, whb, bb, bhb) = params["gru"][layer]
        y_f, h_f = run_dir(x, wf, whf, bf, bhf)
        y_b_rev, h_b = run_dir(x[::-1], wb, whb, bb, bhb)
        x = jnp.concatenate([y_f, y_b_rev[::-1]], axis=-1)
    outputs = jnp.transpose(x, (1, 0, 2))
    w_fc, b_fc = params["fc"]
    hidden = jnp.tanh(jnp.concatenate([h_f, h_b], axis=1) @ w_fc.T + b_fc)
    return outputs, hidden


# ----------------------------------------------------------------------------
if __name__ == "__main__":
    INPUT_DIM = 4
    HIDDEN_DIM = 32
    N_LAYERS = 2
    BATCH = 2
    SEQ = 8

    key = jax.random.PRNGKey(0)
    key, pkey, xkey = jax.random.split(key, 3)

    params = init_encoder_params(pkey, INPUT_DIM, HIDDEN_DIM, N_LAYERS)
    prepared = prepare_encoder_params(params, HIDDEN_DIM, N_LAYERS)
    src = jax.random.normal(xkey, (BATCH, SEQ, INPUT_DIM), jnp.float32)

    outputs, hidden = encoder_forward(prepared, src,
                                      hidden_dim=HIDDEN_DIM, n_layers=N_LAYERS)
    jax.block_until_ready((outputs, hidden))

    assert outputs.shape == (BATCH, SEQ, 2 * HIDDEN_DIM)
    assert hidden.shape == (BATCH, HIDDEN_DIM)

    # Loose sanity check against a pure-JAX reference (tolerant of MXU rounding).
    ref_out, ref_hid = _reference_encoder(params, src, HIDDEN_DIM, N_LAYERS)
    assert float(jnp.max(jnp.abs(outputs - ref_out))) < 5e-2
    assert float(jnp.max(jnp.abs(hidden - ref_hid))) < 5e-2

    print("KERNEL_OK")
</pallas_src>

<mosaic_0001>
module attributes {stable_mosaic.version = 11 : i64} {
  func.func @_encoder_kernel(%arg0: memref<16x4xf32, #tpu.memory_space<vmem>>, %arg1: memref<3x4x32xf32, #tpu.memory_space<vmem>>, %arg2: memref<3x32x32xf32, #tpu.memory_space<vmem>>, %arg3: memref<3x1x32xf32, #tpu.memory_space<vmem>>, %arg4: memref<3x1x32xf32, #tpu.memory_space<vmem>>, %arg5: memref<3x4x32xf32, #tpu.memory_space<vmem>>, %arg6: memref<3x32x32xf32, #tpu.memory_space<vmem>>, %arg7: memref<3x1x32xf32, #tpu.memory_space<vmem>>, %arg8: memref<3x1x32xf32, #tpu.memory_space<vmem>>, %arg9: memref<3x64x32xf32, #tpu.memory_space<vmem>>, %arg10: memref<3x32x32xf32, #tpu.memory_space<vmem>>, %arg11: memref<3x1x32xf32, #tpu.memory_space<vmem>>, %arg12: memref<3x1x32xf32, #tpu.memory_space<vmem>>, %arg13: memref<3x64x32xf32, #tpu.memory_space<vmem>>, %arg14: memref<3x32x32xf32, #tpu.memory_space<vmem>>, %arg15: memref<3x1x32xf32, #tpu.memory_space<vmem>>, %arg16: memref<3x1x32xf32, #tpu.memory_space<vmem>>, %arg17: memref<64x32xf32, #tpu.memory_space<vmem>>, %arg18: memref<1x32xf32, #tpu.memory_space<vmem>>, %arg19: memref<16x64xf32, #tpu.memory_space<vmem>>, %arg20: memref<2x32xf32, #tpu.memory_space<vmem>>, %arg21: memref<16x32xf32, #tpu.memory_space<vmem>>, %arg22: memref<16x32xf32, #tpu.memory_space<vmem>>, %arg23: memref<16x32xf32, #tpu.memory_space<vmem>>, %arg24: memref<16x32xf32, #tpu.memory_space<vmem>>, %arg25: memref<16x32xf32, #tpu.memory_space<vmem>>, %arg26: memref<16x32xf32, #tpu.memory_space<vmem>>, %arg27: memref<16x32xf32, #tpu.memory_space<vmem>>, %arg28: memref<16x32xf32, #tpu.memory_space<vmem>>) attributes {dimension_semantics = [], scalar_prefetch = 0 : i64, scratch_operands = 8 : i64, tpu.core_type = #tpu.core_type<tc>} {
    %c0 = arith.constant 0 : index
    %c0_0 = arith.constant 0 : index
    %c0_1 = arith.constant 0 : index
    %0 = vector.load %arg1[%c0, %c0_0, %c0_1] : memref<3x4x32xf32, #tpu.memory_space<vmem>>, vector<3x4x32xf32>
    %c0_2 = arith.constant 0 : index
    %c0_3 = arith.constant 0 : index
    %c0_4 = arith.constant 0 : index
    %1 = vector.load %arg2[%c0_2, %c0_3, %c0_4] : memref<3x32x32xf32, #tpu.memory_space<vmem>>, vector<3x32x32xf32>
    %c0_5 = arith.constant 0 : index
    %c0_6 = arith.constant 0 : index
    %c0_7 = arith.constant 0 : index
    %2 = vector.load %arg3[%c0_5, %c0_6, %c0_7] : memref<3x1x32xf32, #tpu.memory_space<vmem>>, vector<3x1x32xf32>
    %c0_8 = arith.constant 0 : index
    %c0_9 = arith.constant 0 : index
    %c0_10 = arith.constant 0 : index
    %3 = vector.load %arg4[%c0_8, %c0_9, %c0_10] : memref<3x1x32xf32, #tpu.memory_space<vmem>>, vector<3x1x32xf32>
    %c0_11 = arith.constant 0 : index
    %c0_12 = arith.constant 0 : index
    %c0_13 = arith.constant 0 : index
    %4 = vector.load %arg5[%c0_11, %c0_12, %c0_13] : memref<3x4x32xf32, #tpu.memory_space<vmem>>, vector<3x4x32xf32>
    %c0_14 = arith.constant 0 : index
    %c0_15 = arith.constant 0 : index
    %c0_16 = arith.constant 0 : index
    %5 = vector.load %arg6[%c0_14, %c0_15, %c0_16] : memref<3x32x32xf32, #tpu.memory_space<vmem>>, vector<3x32x32xf32>
    %c0_17 = arith.constant 0 : index
    %c0_18 = arith.constant 0 : index
    %c0_19 = arith.constant 0 : index
    %6 = vector.load %arg7[%c0_17, %c0_18, %c0_19] : memref<3x1x32xf32, #tpu.memory_space<vmem>>, vector<3x1x32xf32>
    %c0_20 = arith.constant 0 : index
    %c0_21 = arith.constant 0 : index
    %c0_22 = arith.constant 0 : index
    %7 = vector.load %arg8[%c0_20, %c0_21, %c0_22] : memref<3x1x32xf32, #tpu.memory_space<vmem>>, vector<3x1x32xf32>
    %c0_23 = arith.constant 0 : index
    %c0_24 = arith.constant 0 : index
    %8 = vector.load %arg0[%c0_23, %c0_24] : memref<16x4xf32, #tpu.memory_space<vmem>>, vector<16x4xf32>
    %9 = vector.extract_strided_slice %0 {offsets = [0, 0, 0], sizes = [1, 4, 32], strides = [1, 1, 1]} : vector<3x4x32xf32> to vector<1x4x32xf32>
    %10 = vector.shape_cast %9 : vector<1x4x32xf32> to vector<4x32xf32>
    %cst = arith.constant dense<0.000000e+00> : vector<16x32xf32>
    %11 = tpu.matmul %8, %10, %cst {dimension_numbers = #tpu.dot_dimension_numbers<[1], [0], [0], [1], [0, 0, 1, 1], [], []>} : vector<16x4xf32>, vector<4x32xf32>, vector<16x32xf32> -> vector<16x32xf32>
    %12 = vector.extract_strided_slice %2 {offsets = [0, 0, 0], sizes = [1, 1, 32], strides = [1, 1, 1]} : vector<3x1x32xf32> to vector<1x1x32xf32>
    %13 = vector.shape_cast %12 : vector<1x1x32xf32> to vector<1x32xf32>
    %14 = vector.broadcast %13 : vector<1x32xf32> to vector<16x32xf32>
    %15 = arith.addf %11, %14 : vector<16x32xf32>
    %c0_25 = arith.constant 0 : index
    %c0_26 = arith.constant 0 : index
    %16 = vector.load %arg23[%c0_25, %c0_26] : memref<16x32xf32, #tpu.memory_space<vmem>>, vector<16x32xf32>
    tpu.vector_store %arg23[%c0_25, %c0_26], %15 {strides = array<i32>} : memref<16x32xf32, #tpu.memory_space<vmem>>, vector<16x32xf32>,
    %17 = vector.extract_strided_slice %0 {offsets = [1, 0, 0], sizes = [1, 4, 32], strides = [1, 1, 1]} : vector<3x4x32xf32> to vector<1x4x32xf32>
    %18 = vector.shape_cast %17 : vector<1x4x32xf32> to vector<4x32xf32>
    %cst_27 = arith.constant dense<0.000000e+00> : vector<16x32xf32>
    %19 = tpu.matmul %8, %18, %cst_27 {dimension_numbers = #tpu.dot_dimension_numbers<[1], [0], [0], [1], [0, 0, 1, 1], [], []>} : vector<16x4xf32>, vector<4x32xf32>, vector<16x32xf32> -> vector<16x32xf32>
    %20 = vector.extract_strided_slice %2 {offsets = [1, 0, 0], sizes = [1, 1, 32], strides = [1, 1, 1]} : vector<3x1x32xf32> to vector<1x1x32xf32>
    %21 = vector.shape_cast %20 : vector<1x1x32xf32> to vector<1x32xf32>
    %22 = vector.broadcast %21 : vector<1x32xf32> to vector<16x32xf32>
    %23 = arith.addf %19, %22 : vector<16x32xf32>
    %c0_28 = arith.constant 0 : index
    %c0_29 = arith.constant 0 : index
    %24 = vector.load %arg24[%c0_28, %c0_29] : memref<16x32xf32, #tpu.memory_space<vmem>>, vector<16x32xf32>
    tpu.vector_store %arg24[%c0_28, %c0_29], %23 {strides = array<i32>} : memref<16x32xf32, #tpu.memory_space<vmem>>, vector<16x32xf32>,
    %25 = vector.extract_strided_slice %0 {offsets = [2, 0, 0], sizes = [1, 4, 32], strides = [1, 1, 1]} : vector<3x4x32xf32> to vector<1x4x32xf32>
    %26 = vector.shape_cast %25 : vector<1x4x32xf32> to vector<4x32xf32>
    %cst_30 = arith.constant dense<0.000000e+00> : vector<16x32xf32>
    %27 = tpu.matmul %8, %26, %cst_30 {dimension_numbers = #tpu.dot_dimension_numbers<[1], [0], [0], [1], [0, 0, 1, 1], [], []>} : vector<16x4xf32>, vector<4x32xf32>, vector<16x32xf32> -> vector<16x32xf32>
    %28 = vector.extract_strided_slice %2 {offsets = [2, 0, 0], sizes = [1, 1, 32], strides = [1, 1, 1]} : vector<3x1x32xf32> to vector<1x1x32xf32>
    %29 = vector.shape_cast %28 : vector<1x1x32xf32> to vector<1x32xf32>
    %30 = vector.broadcast %29 : vector<1x32xf32> to vector<16x32xf32>
    %31 = arith.addf %27, %30 : vector<16x32xf32>
    %c0_31 = arith.constant 0 : index
    %c0_32 = arith.constant 0 : index
    %32 = vector.load %arg25[%c0_31, %c0_32] : memref<16x32xf32, #tpu.memory_space<vmem>>, vector<16x32xf32>
    tpu.vector_store %arg25[%c0_31, %c0_32], %31 {strides = array<i32>} : memref<16x32xf32, #tpu.memory_space<vmem>>, vector<16x32xf32>,
    %33 = vector.extract_strided_slice %4 {offsets = [0, 0, 0], sizes = [1, 4, 32], strides = [1, 1, 1]} : vector<3x4x32xf32> to vector<1x4x32xf32>
    %34 = vector.shape_cast %33 : vector<1x4x32xf32> to vector<4x32xf32>
    %cst_33 = arith.constant dense<0.000000e+00> : vector<16x32xf32>
    %35 = tpu.matmul %8, %34, %cst_33 {dimension_numbers = #tpu.dot_dimension_numbers<[1], [0], [0], [1], [0, 0, 1, 1], [], []>} : vector<16x4xf32>, vector<4x32xf32>, vector<16x32xf32> -> vector<16x32xf32>
    %36 = vector.extract_strided_slice %6 {offsets = [0, 0, 0], sizes = [1, 1, 32], strides = [1, 1, 1]} : vector<3x1x32xf32> to vector<1x1x32xf32>
    %37 = vector.shape_cast %36 : vector<1x1x32xf32> to vector<1x32xf32>
    %38 = vector.broadcast %37 : vector<1x32xf32> to vector<16x32xf32>
    %39 = arith.addf %35, %38 : vector<16x32xf32>
    %c0_34 = arith.constant 0 : index
    %c0_35 = arith.constant 0 : index
    %40 = vector.load %arg26[%c0_34, %c0_35] : memref<16x32xf32, #tpu.memory_space<vmem>>, vector<16x32xf32>
    tpu.vector_store %arg26[%c0_34, %c0_35], %39 {strides = array<i32>} : memref<16x32xf32, #tpu.memory_space<vmem>>, vector<16x32xf32>,
    %41 = vector.extract_strided_slice %4 {offsets = [1, 0, 0], sizes = [1, 4, 32], strides = [1, 1, 1]} : vector<3x4x32xf32> to vector<1x4x32xf32>
    %42 = vector.shape_cast %41 : vector<1x4x32xf32> to vector<4x32xf32>
    %cst_36 = arith.constant dense<0.000000e+00> : vector<16x32xf32>
    %43 = tpu.matmul %8, %42, %cst_36 {dimension_numbers = #tpu.dot_dimension_numbers<[1], [0], [0], [1], [0, 0, 1, 1], [], []>} : vector<16x4xf32>, vector<4x32xf32>, vector<16x32xf32> -> vector<16x32xf32>
    %44 = vector.extract_strided_slice %6 {offsets = [1, 0, 0], sizes = [1, 1, 32], strides = [1, 1, 1]} : vector<3x1x32xf32> to vector<1x1x32xf32>
    %45 = vector.shape_cast %44 : vector<1x1x32xf32> to vector<1x32xf32>
    %46 = vector.broadcast %45 : vector<1x32xf32> to vector<16x32xf32>
    %47 = arith.addf %43, %46 : vector<16x32xf32>
    %c0_37 = arith.constant 0 : index
    %c0_38 = arith.constant 0 : index
    %48 = vector.load %arg27[%c0_37, %c0_38] : memref<16x32xf32, #tpu.memory_space<vmem>>, vector<16x32xf32>
    tpu.vector_store %arg27[%c0_37, %c0_38], %47 {strides = array<i32>} : memref<16x32xf32, #tpu.memory_space<vmem>>, vector<16x32xf32>,
    %49 = vector.extract_strided_slice %4 {offsets = [2, 0, 0], sizes = [1, 4, 32], strides = [1, 1, 1]} : vector<3x4x32xf32> to vector<1x4x32xf32>
    %50 = vector.shape_cast %49 : vector<1x4x32xf32> to vector<4x32xf32>
    %cst_39 = arith.constant dense<0.000000e+00> : vector<16x32xf32>
    %51 = tpu.matmul %8, %50, %cst_39 {dimension_numbers = #tpu.dot_dimension_numbers<[1], [0], [0], [1], [0, 0, 1, 1], [], []>} : vector<16x4xf32>, vector<4x32xf32>, vector<16x32xf32> -> vector<16x32xf32>
    %52 = vector.extract_strided_slice %6 {offsets = [2, 0, 0], sizes = [1, 1, 32], strides = [1, 1, 1]} : vector<3x1x32xf32> to vector<1x1x32xf32>
    %53 = vector.shape_cast %52 : vector<1x1x32xf32> to vector<1x32xf32>
    %54 = vector.broadcast %53 : vector<1x32xf32> to vector<16x32xf32>
    %55 = arith.addf %51, %54 : vector<16x32xf32>
    %c0_40 = arith.constant 0 : index
    %c0_41 = arith.constant 0 : index
    %56 = vector.load %arg28[%c0_40, %c0_41] : memref<16x32xf32, #tpu.memory_space<vmem>>, vector<16x32xf32>
    tpu.vector_store %arg28[%c0_40, %c0_41], %55 {strides = array<i32>} : memref<16x32xf32, #tpu.memory_space<vmem>>, vector<16x32xf32>,
    %cst_42 = arith.constant 0.000000e+00 : f32
    %57 = vector.broadcast %cst_42 : f32 to vector<2x32xf32>
    %cst_43 = arith.constant 0.000000e+00 : f32
    %58 = vector.broadcast %cst_43 : f32 to vector<2x32xf32>
    %c0_44 = arith.constant 0 : index
    %c0_45 = arith.constant 0 : index
    %59 = vector.load %arg23[%c0_44, %c0_45] : memref<16x32xf32, #tpu.memory_space<vmem>>, vector<2x32xf32>
    %c0_46 = arith.constant 0 : index
    %c0_47 = arith.constant 0 : index
    %60 = vector.load %arg24[%c0_46, %c0_47] : memref<16x32xf32, #tpu.memory_space<vmem>>, vector<2x32xf32>
    %c0_48 = arith.constant 0 : index
    %c0_49 = arith.constant 0 : index
    %61 = vector.load %arg25[%c0_48, %c0_49] : memref<16x32xf32, #tpu.memory_space<vmem>>, vector<2x32xf32>
    %62 = vector.extract_strided_slice %1 {offsets = [0, 0, 0], sizes = [1, 32, 32], strides = [1, 1, 1]} : vector<3x32x32xf32> to vector<1x32x32xf32>
    %63 = vector.shape_cast %62 : vector<1x32x32xf32> to vector<32x32xf32>
    %cst_50 = arith.constant dense<0.000000e+00> : vector<2x32xf32>
    %64 = tpu.matmul %57, %63, %cst_50 {dimension_numbers = #tpu.dot_dimension_numbers<[1], [0], [0], [1], [0, 0, 1, 1], [], []>} : vector<2x32xf32>, vector<32x32xf32>, vector<2x32xf32> -> vector<2x32xf32>
    %65 = vector.extract_strided_slice %3 {offsets = [0, 0, 0], sizes = [1, 1, 32], strides = [1, 1, 1]} : vector<3x1x32xf32> to vector<1x1x32xf32>
    %66 = vector.shape_cast %65 : vector<1x1x32xf32> to vector<1x32xf32>
    %67 = vector.broadcast %66 : vector<1x32xf32> to vector<2x32xf32>
    %68 = arith.addf %64, %67 : vector<2x32xf32>
    %69 = vector.extract_strided_slice %1 {offsets = [1, 0, 0], sizes = [1, 32, 32], strides = [1, 1, 1]} : vector<3x32x32xf32> to vector<1x32x32xf32>
    %70 = vector.shape_cast %69 : vector<1x32x32xf32> to vector<32x32xf32>
    %cst_51 = arith.constant dense<0.000000e+00> : vector<2x32xf32>
    %71 = tpu.matmul %57, %70, %cst_51 {dimension_numbers = #tpu.dot_dimension_numbers<[1], [0], [0], [1], [0, 0, 1, 1], [], []>} : vector<2x32xf32>, vector<32x32xf32>, vector<2x32xf32> -> vector<2x32xf32>
    %72 = vector.extract_strided_slice %3 {offsets = [1, 0, 0], sizes = [1, 1, 32], strides = [1, 1, 1]} : vector<3x1x32xf32> to vector<1x1x32xf32>
    %73 = vector.shape_cast %72 : vector<1x1x32xf32> to vector<1x32xf32>
    %74 = vector.broadcast %73 : vector<1x32xf32> to vector<2x32xf32>
    %75 = arith.addf %71, %74 : vector<2x32xf32>
    %76 = vector.extract_strided_slice %1 {offsets = [2, 0, 0], sizes = [1, 32, 32], strides = [1, 1, 1]} : vector<3x32x32xf32> to vector<1x32x32xf32>
    %77 = vector.shape_cast %76 : vector<1x32x32xf32> to vector<32x32xf32>
    %cst_52 = arith.constant dense<0.000000e+00> : vector<2x32xf32>
    %78 = tpu.matmul %57, %77, %cst_52 {dimension_numbers = #tpu.dot_dimension_numbers<[1], [0], [0], [1], [0, 0, 1, 1], [], []>} : vector<2x32xf32>, vector<32x32xf32>, vector<2x32xf32> -> vector<2x32xf32>
    %79 = vector.extract_strided_slice %3 {offsets = [2, 0, 0], sizes = [1, 1, 32], strides = [1, 1, 1]} : vector<3x1x32xf32> to vector<1x1x32xf32>
    %80 = vector.shape_cast %79 : vector<1x1x32xf32> to vector<1x32xf32>
    %81 = vector.broadcast %80 : vector<1x32xf32> to vector<2x32xf32>
    %82 = arith.addf %78, %81 : vector<2x32xf32>
    %83 = arith.addf %59, %68 : vector<2x32xf32>
    %84 = arith.negf %83 : vector<2x32xf32>
    %85 = math.exp %84 : vector<2x32xf32>
    %cst_53 = arith.constant 1.000000e+00 : f32
    %86 = vector.broadcast %cst_53 : f32 to vector<2x32xf32>
    %87 = arith.addf %86, %85 : vector<2x32xf32>
    %88 = arith.divf %86, %87 : vector<2x32xf32>
    %89 = arith.addf %60, %75 : vector<2x32xf32>
    %90 = arith.negf %89 : vector<2x32xf32>
    %91 = math.exp %90 : vector<2x32xf32>
    %cst_54 = arith.constant 1.000000e+00 : f32
    %92 = vector.broadcast %cst_54 : f32 to vector<2x32xf32>
    %93 = arith.addf %92, %91 : vector<2x32xf32>
    %94 = arith.divf %92, %93 : vector<2x32xf32>
    %95 = arith.mulf %88, %82 : vector<2x32xf32>
    %96 = arith.addf %61, %95 : vector<2x32xf32>
    %97 = math.tanh %96 : vector<2x32xf32>
    %cst_55 = arith.constant 1.000000e+00 : f32
    %98 = vector.broadcast %cst_55 : f32 to vector<2x32xf32>
    %99 = arith.subf %98, %94 : vector<2x32xf32>
    %100 = arith.mulf %99, %97 : vector<2x32xf32>
    %101 = arith.mulf %94, %57 : vector<2x32xf32>
    %102 = arith.addf %100, %101 : vector<2x32xf32>
    %c0_56 = arith.constant 0 : index
    %c0_57 = arith.constant 0 : index
    %103 = vector.load %arg21[%c0_56, %c0_57] : memref<16x32xf32, #tpu.memory_space<vmem>>, vector<2x32xf32>
    tpu.vector_store %arg21[%c0_56, %c0_57], %102 {strides = array<i32>} : memref<16x32xf32, #tpu.memory_space<vmem>>, vector<2x32xf32>,
    %c14 = arith.constant 14 : index
    %c0_58 = arith.constant 0 : index
    %104 = vector.load %arg26[%c14, %c0_58] : memref<16x32xf32, #tpu.memory_space<vmem>>, vector<2x32xf32>
    %c14_59 = arith.constant 14 : index
    %c0_60 = arith.constant 0 : index
    %105 = vector.load %arg27[%c14_59, %c0_60] : memref<16x32xf32, #tpu.memory_space<vmem>>, vector<2x32xf32>
    %c14_61 = arith.constant 14 : index
    %c0_62 = arith.constant 0 : index
    %106 = vector.load %arg28[%c14_61, %c0_62] : memref<16x32xf32, #tpu.memory_space<vmem>>, vector<2x32xf32>
    %107 = vector.extract_strided_slice %5 {offsets = [0, 0, 0], sizes = [1, 32, 32], strides = [1, 1, 1]} : vector<3x32x32xf32> to vector<1x32x32xf32>
    %108 = vector.shape_cast %107 : vector<1x32x32xf32> to vector<32x32xf32>
    %cst_63 = arith.constant dense<0.000000e+00> : vector<2x32xf32>
    %109 = tpu.matmul %58, %108, %cst_63 {dimension_numbers = #tpu.dot_dimension_numbers<[1], [0], [0], [1], [0, 0, 1, 1], [], []>} : vector<2x32xf32>, vector<32x32xf32>, vector<2x32xf32> -> vector<2x32xf32>
    %110 = vector.extract_strided_slice %7 {offsets = [0, 0, 0], sizes = [1, 1, 32], strides = [1, 1, 1]} : vector<3x1x32xf32> to vector<1x1x32xf32>
    %111 = vector.shape_cast %110 : vector<1x1x32xf32> to vector<1x32xf32>
    %112 = vector.broadcast %111 : vector<1x32xf32> to vector<2x32xf32>
    %113 = arith.addf %109, %112 : vector<2x32xf32>
    %114 = vector.extract_strided_slice %5 {offsets = [1, 0, 0], sizes = [1, 32, 32], strides = [1, 1, 1]} : vector<3x32x32xf32> to vector<1x32x32xf32>
    %115 = vector.shape_cast %114 : vector<1x32x32xf32> to vector<32x32xf32>
    %cst_64 = arith.constant dense<0.000000e+00> : vector<2x32xf32>
    %116 = tpu.matmul %58, %115, %cst_64 {dimension_numbers = #tpu.dot_dimension_numbers<[1], [0], [0], [1], [0, 0, 1, 1], [], []>} : vector<2x32xf32>, vector<32x32xf32>, vector<2x32xf32> -> vector<2x32xf32>
    %117 = vector.extract_strided_slice %7 {offsets = [1, 0, 0], sizes = [1, 1, 32], strides = [1, 1, 1]} : vector<3x1x32xf32> to vector<1x1x32xf32>
    %118 = vector.shape_cast %117 : vector<1x1x32xf32> to vector<1x32xf32>
    %119 = vector.broadcast %118 : vector<1x32xf32> to vector<2x32xf32>
    %120 = arith.addf %116, %119 : vector<2x32xf32>
    %121 = vector.extract_strided_slice %5 {offsets = [2, 0, 0], sizes = [1, 32, 32], strides = [1, 1, 1]} : vector<3x32x32xf32> to vector<1x32x32xf32>
    %122 = vector.shape_cast %121 : vector<1x32x32xf32> to vector<32x32xf32>
    %cst_65 = arith.constant dense<0.000000e+00> : vector<2x32xf32>
    %123 = tpu.matmul %58, %122, %cst_65 {dimension_numbers = #tpu.dot_dimension_numbers<[1], [0], [0], [1], [0, 0, 1, 1], [], []>} : vector<2x32xf32>, vector<32x32xf32>, vector<2x32xf32> -> vector<2x32xf32>
    %124 = vector.extract_strided_slice %7 {offsets = [2, 0, 0], sizes = [1, 1, 32], strides = [1, 1, 1]} : vector<3x1x32xf32> to vector<1x1x32xf32>
    %125 = vector.shape_cast %124 : vector<1x1x32xf32> to vector<1x32xf32>
    %126 = vector.broadcast %125 : vector<1x32xf32> to vector<2x32xf32>
    %127 = arith.addf %123, %126 : vector<2x32xf32>
    %128 = arith.addf %104, %113 : vector<2x32xf32>
    %129 = arith.negf %128 : vector<2x32xf32>
    %130 = math.exp %129 : vector<2x32xf32>
    %cst_66 = arith.constant 1.000000e+00 : f32
    %131 = vector.broadcast %cst_66 : f32 to vector<2x32xf32>
    %132 = arith.addf %131, %130 : vector<2x32xf32>
    %133 = arith.divf %131, %132 : vector<2x32xf32>
    %134 = arith.addf %105, %120 : vector<2x32xf32>
    %135 = arith.negf %134 : vector<2x32xf32>
    %136 = math.exp %135 : vector<2x32xf32>
    %cst_67 = arith.constant 1.000000e+00 : f32
    %137 = vector.broadcast %cst_67 : f32 to vector<2x32xf32>
    %138 = arith.addf %137, %136 : vector<2x32xf32>
    %139 = arith.divf %137, %138 : vector<2x32xf32>
    %140 = arith.mulf %133, %127 : vector<2x32xf32>
    %141 = arith.addf %106, %140 : vector<2x32xf32>
    %142 = math.tanh %141 : vector<2x32xf32>
    %cst_68 = arith.constant 1.000000e+00 : f32
    %143 = vector.broadcast %cst_68 : f32 to vector<2x32xf32>
    %144 = arith.subf %143, %139 : vector<2x32xf32>
    %145 = arith.mulf %144, %142 : vector<2x32xf32>
    %146 = arith.mulf %139, %58 : vector<2x32xf32>
    %147 = arith.addf %145, %146 : vector<2x32xf32>
    %c14_69 = arith.constant 14 : index
    %c0_70 = arith.constant 0 : index
    %148 = vector.load %arg22[%c14_69, %c0_70] : memref<16x32xf32, #tpu.memory_space<vmem>>, vector<2x32xf32>
    tpu.vector_store %arg22[%c14_69, %c0_70], %147 {strides = array<i32>} : memref<16x32xf32, #tpu.memory_space<vmem>>, vector<2x32xf32>,
    %c2 = arith.constant 2 : index
    %c0_71 = arith.constant 0 : index
    %149 = vector.load %arg23[%c2, %c0_71] : memref<16x32xf32, #tpu.memory_space<vmem>>, vector<2x32xf32>
    %c2_72 = arith.constant 2 : index
    %c0_73 = arith.constant 0 : index
    %150 = vector.load %arg24[%c2_72, %c0_73] : memref<16x32xf32, #tpu.memory_space<vmem>>, vector<2x32xf32>
    %c2_74 = arith.constant 2 : index
    %c0_75 = arith.constant 0 : index
    %151 = vector.load %arg25[%c2_74, %c0_75] : memref<16x32xf32, #tpu.memory_space<vmem>>, vector<2x32xf32>
    %152 = vector.extract_strided_slice %1 {offsets = [0, 0, 0], sizes = [1, 32, 32], strides = [1, 1, 1]} : vector<3x32x32xf32> to vector<1x32x32xf32>
    %153 = vector.shape_cast %152 : vector<1x32x32xf32> to vector<32x32xf32>
    %cst_76 = arith.constant dense<0.000000e+00> : vector<2x32xf32>
    %154 = tpu.matmul %102, %153, %cst_76 {dimension_numbers = #tpu.dot_dimension_numbers<[1], [0], [0], [1], [0, 0, 1, 1], [], []>} : vector<2x32xf32>, vector<32x32xf32>, vector<2x32xf32> -> vector<2x32xf32>
    %155 = vector.extract_strided_slice %3 {offsets = [0, 0, 0], sizes = [1, 1, 32], strides = [1, 1, 1]} : vector<3x1x32xf32> to vector<1x1x32xf32>
    %156 = vector.shape_cast %155 : vector<1x1x32xf32> to vector<1x32xf32>
    %157 = vector.broadcast %156 : vector<1x32xf32> to vector<2x32xf32>
    %158 = arith.addf %154, %157 : vector<2x32xf32>
    %159 = vector.extract_strided_slice %1 {offsets = [1, 0, 0], sizes = [1, 32, 32], strides = [1, 1, 1]} : vector<3x32x32xf32> to vector<1x32x32xf32>
    %160 = vector.shape_cast %159 : vector<1x32x32xf32> to vector<32x32xf32>
    %cst_77 = arith.constant dense<0.000000e+00> : vector<2x32xf32>
    %161 = tpu.matmul %102, %160, %cst_77 {dimension_numbers = #tpu.dot_dimension_numbers<[1], [0], [0], [1], [0, 0, 1, 1], [], []>} : vector<2x32xf32>, vector<32x32xf32>, vector<2x32xf32> -> vector<2x32xf32>
    %162 = vector.extract_strided_slice %3 {offsets = [1, 0, 0], sizes = [1, 1, 32], strides = [1, 1, 1]} : vector<3x1x32xf32> to vector<1x1x32xf32>
    %163 = vector.shape_cast %162 : vector<1x1x32xf32> to vector<1x32xf32>
    %164 = vector.broadcast %163 : vector<1x32xf32> to vector<2x32xf32>
    %165 = arith.addf %161, %164 : vector<2x32xf32>
    %166 = vector.extract_strided_slice %1 {offsets = [2, 0, 0], sizes = [1, 32, 32], strides = [1, 1, 1]} : vector<3x32x32xf32> to vector<1x32x32xf32>
    %167 = vector.shape_cast %166 : vector<1x32x32xf32> to vector<32x32xf32>
    %cst_78 = arith.constant dense<0.000000e+00> : vector<2x32xf32>
    %168 = tpu.matmul %102, %167, %cst_78 {dimension_numbers = #tpu.dot_dimension_numbers<[1], [0], [0], [1], [0, 0, 1, 1], [], []>} : vector<2x32xf32>, vector<32x32xf32>, vector<2x32xf32> -> vector<2x32xf32>
    %169 = vector.extract_strided_slice %3 {offsets = [2, 0, 0], sizes = [1, 1, 32], strides = [1, 1, 1]} : vector<3x1x32xf32> to vector<1x1x32xf32>
    %170 = vector.shape_cast %169 : vector<1x1x32xf32> to vector<1x32xf32>
    %171 = vector.broadcast %170 : vector<1x32xf32> to vector<2x32xf32>
    %172 = arith.addf %168, %171 : vector<2x32xf32>
    %173 = arith.addf %149, %158 : vector<2x32xf32>
    %174 = arith.negf %173 : vector<2x32xf32>
    %175 = math.exp %174 : vector<2x32xf32>
    %cst_79 = arith.constant 1.000000e+00 : f32
    %176 = vector.broadcast %cst_79 : f32 to vector<2x32xf32>
    %177 = arith.addf %176, %175 : vector<2x32xf32>
    %178 = arith.divf %176, %177 : vector<2x32xf32>
    %179 = arith.addf %150, %165 : vector<2x32xf32>
    %180 = arith.negf %179 : vector<2x32xf32>
    %181 = math.exp %180 : vector<2x32xf32>
    %cst_80 = arith.constant 1.000000e+00 : f32
    %182 = vector.broadcast %cst_80 : f32 to vector<2x32xf32>
    %183 = arith.addf %182, %181 : vector<2x32xf32>
    %184 = arith.divf %182, %183 : vector<2x32xf32>
    %185 = arith.mulf %178, %172 : vector<2x32xf32>
    %186 = arith.addf %151, %185 : vector<2x32xf32>
    %187 = math.tanh %186 : vector<2x32xf32>
    %cst_81 = arith.constant 1.000000e+00 : f32
    %188 = vector.broadcast %cst_81 : f32 to vector<2x32xf32>
    %189 = arith.subf %188, %184 : vector<2x32xf32>
    %190 = arith.mulf %189, %187 : vector<2x32xf32>
    %191 = arith.mulf %184, %102 : vector<2x32xf32>
    %192 = arith.addf %190, %191 : vector<2x32xf32>
    %c2_82 = arith.constant 2 : index
    %c0_83 = arith.constant 0 : index
    %193 = vector.load %arg21[%c2_82, %c0_83] : memref<16x32xf32, #tpu.memory_space<vmem>>, vector<2x32xf32>
    tpu.vector_store %arg21[%c2_82, %c0_83], %192 {strides = array<i32>} : memref<16x32xf32, #tpu.memory_space<vmem>>, vector<2x32xf32>,
    %c12 = arith.constant 12 : index
    %c0_84 = arith.constant 0 : index
    %194 = vector.load %arg26[%c12, %c0_84] : memref<16x32xf32, #tpu.memory_space<vmem>>, vector<2x32xf32>
    %c12_85 = arith.constant 12 : index
    %c0_86 = arith.constant 0 : index
    %195 = vector.load %arg27[%c12_85, %c0_86] : memref<16x32xf32, #tpu.memory_space<vmem>>, vector<2x32xf32>
    %c12_87 = arith.constant 12 : index
    %c0_88 = arith.constant 0 : index
    %196 = vector.load %arg28[%c12_87, %c0_88] : memref<16x32xf32, #tpu.memory_space<vmem>>, vector<2x32xf32>
    %197 = vector.extract_strided_slice %5 {offsets = [0, 0, 0], sizes = [1, 32, 32], strides = [1, 1, 1]} : vector<3x32x32xf32> to vector<1x32x32xf32>
    %198 = vector.shape_cast %197 : vector<1x32x32xf32> to vector<32x32xf32>
    %cst_89 = arith.constant dense<0.000000e+00> : vector<2x32xf32>
    %199 = tpu.matmul %147, %198, %cst_89 {dimension_numbers = #tpu.dot_dimension_numbers<[1], [0], [0], [1], [0, 0, 1, 1], [], []>} : vector<2x32xf32>, vector<32x32xf32>, vector<2x32xf32> -> vector<2x32xf32>
    %200 = vector.extract_strided_slice %7 {offsets = [0, 0, 0], sizes = [1, 1, 32], strides = [1, 1, 1]} : vector<3x1x32xf32> to vector<1x1x32xf32>
    %201 = vector.shape_cast %200 : vector<1x1x32xf32> to vector<1x32xf32>
    %202 = vector.broadcast %201 : vector<1x32xf32> to vector<2x32xf32>
    %203 = arith.addf %199, %202 : vector<2x32xf32>
    %204 = vector.extract_strided_slice %5 {offsets = [1, 0, 0], sizes = [1, 32, 32], strides = [1, 1, 1]} : vector<3x32x32xf32> to vector<1x32x32xf32>
    %205 = vector.shape_cast %204 : vector<1x32x32xf32> to vector<32x32xf32>
    %cst_90 = arith.constant dense<0.000000e+00> : vector<2x32xf32>
    %206 = tpu.matmul %147, %205, %cst_90 {dimension_numbers = #tpu.dot_dimension_numbers<[1], [0], [0], [1], [0, 0, 1, 1], [], []>} : vector<2x32xf32>, vector<32x32xf32>, vector<2x32xf32> -> vector<2x32xf32>
    %207 = vector.extract_strided_slice %7 {offsets = [1, 0, 0], sizes = [1, 1, 32], strides = [1, 1, 1]} : vector<3x1x32xf32> to vector<1x1x32xf32>
    %208 = vector.shape_cast %207 : vector<1x1x32xf32> to vector<1x32xf32>
    %209 = vector.broadcast %208 : vector<1x32xf32> to vector<2x32xf32>
    %210 = arith.addf %206, %209 : vector<2x32xf32>
    %211 = vector.extract_strided_slice %5 {offsets = [2, 0, 0], sizes = [1, 32, 32], strides = [1, 1, 1]} : vector<3x32x32xf32> to vector<1x32x32xf32>
    %212 = vector.shape_cast %211 : vector<1x32x32xf32> to vector<32x32xf32>
    %cst_91 = arith.constant dense<0.000000e+00> : vector<2x32xf32>
    %213 = tpu.matmul %147, %212, %cst_91 {dimension_numbers = #tpu.dot_dimension_numbers<[1], [0], [0], [1], [0, 0, 1, 1], [], []>} : vector<2x32xf32>, vector<32x32xf32>, vector<2x32xf32> -> vector<2x32xf32>
    %214 = vector.extract_strided_slice %7 {offsets = [2, 0, 0], sizes = [1, 1, 32], strides = [1, 1, 1]} : vector<3x1x32xf32> to vector<1x1x32xf32>
    %215 = vector.shape_cast %214 : vector<1x1x32xf32> to vector<1x32xf32>
    %216 = vector.broadcast %215 : vector<1x32xf32> to vector<2x32xf32>
    %217 = arith.addf %213, %216 : vector<2x32xf32>
    %218 = arith.addf %194, %203 : vector<2x32xf32>
    %219 = arith.negf %218 : vector<2x32xf32>
    %220 = math.exp %219 : vector<2x32xf32>
    %cst_92 = arith.constant 1.000000e+00 : f32
    %221 = vector.broadcast %cst_92 : f32 to vector<2x32xf32>
    %222 = arith.addf %221, %220 : vector<2x32xf32>
    %223 = arith.divf %221, %222 : vector<2x32xf32>
    %224 = arith.addf %195, %210 : vector<2x32xf32>
    %225 = arith.negf %224 : vector<2x32xf32>
    %226 = math.exp %225 : vector<2x32xf32>
    %cst_93 = arith.constant 1.000000e+00 : f32
    %227 = vector.broadcast %cst_93 : f32 to vector<2x32xf32>
    %228 = arith.addf %227, %226 : vector<2x32xf32>
    %229 = arith.divf %227, %228 : vector<2x32xf32>
    %230 = arith.mulf %223, %217 : vector<2x32xf32>
    %231 = arith.addf %196, %230 : vector<2x32xf32>
    %232 = math.tanh %231 : vector<2x32xf32>
    %cst_94 = arith.constant 1.000000e+00 : f32
    %233 = vector.broadcast %cst_94 : f32 to vector<2x32xf32>
    %234 = arith.subf %233, %229 : vector<2x32xf32>
    %235 = arith.mulf %234, %232 : vector<2x32xf32>
    %236 = arith.mulf %229, %147 : vector<2x32xf32>
    %237 = arith.addf %235, %236 : vector<2x32xf32>
    %c12_95 = arith.constant 12 : index
    %c0_96 = arith.constant 0 : index
    %238 = vector.load %arg22[%c12_95, %c0_96] : memref<16x32xf32, #tpu.memory_space<vmem>>, vector<2x32xf32>
    tpu.vector_store %arg22[%c12_95, %c0_96], %237 {strides = array<i32>} : memref<16x32xf32, #tpu.memory_space<vmem>>, vector<2x32xf32>,
    %c4 = arith.constant 4 : index
    %c0_97 = arith.constant 0 : index
    %239 = vector.load %arg23[%c4, %c0_97] : memref<16x32xf32, #tpu.memory_space<vmem>>, vector<2x32xf32>
    %c4_98 = arith.constant 4 : index
    %c0_99 = arith.constant 0 : index
    %240 = vector.load %arg24[%c4_98, %c0_99] : memref<16x32xf32, #tpu.memory_space<vmem>>, vector<2x32xf32>
    %c4_100 = arith.constant 4 : index
    %c0_101 = arith.constant 0 : index
    %241 = vector.load %arg25[%c4_100, %c0_101] : memref<16x32xf32, #tpu.memory_space<vmem>>, vector<2x32xf32>
    %242 = vector.extract_strided_slice %1 {offsets = [0, 0, 0], sizes = [1, 32, 32], strides = [1, 1, 1]} : vector<3x32x32xf32> to vector<1x32x32xf32>
    %243 = vector.shape_cast %242 : vector<1x32x32xf32> to vector<32x32xf32>
    %cst_102 = arith.constant dense<0.000000e+00> : vector<2x32xf32>
    %244 = tpu.matmul %192, %243, %cst_102 {dimension_numbers = #tpu.dot_dimension_numbers<[1], [0], [0], [1], [0, 0, 1, 1], [], []>} : vector<2x32xf32>, vector<32x32xf32>, vector<2x32xf32> -> vector<2x32xf32>
    %245 = vector.extract_strided_slice %3 {offsets = [0, 0, 0], sizes = [1, 1, 32], strides = [1, 1, 1]} : vector<3x1x32xf32> to vector<1x1x32xf32>
    %246 = vector.shape_cast %245 : vector<1x1x32xf32> to vector<1x32xf32>
    %247 = vector.broadcast %246 : vector<1x32xf32> to vector<2x32xf32>
    %248 = arith.addf %244, %247 : vector<2x32xf32>
    %249 = vector.extract_strided_slice %1 {offsets = [1, 0, 0], sizes = [1, 32, 32], strides = [1, 1, 1]} : vector<3x32x32xf32> to vector<1x32x32xf32>
    %250 = vector.shape_cast %249 : vector<1x32x32xf32> to vector<32x32xf32>
    %cst_103 = arith.constant dense<0.000000e+00> : vector<2x32xf32>
    %251 = tpu.matmul %192, %250, %cst_103 {dimension_numbers = #tpu.dot_dimension_numbers<[1], [0], [0], [1], [0, 0, 1, 1], [], []>} : vector<2x32xf32>, vector<32x32xf32>, vector<2x32xf32> -> vector<2x32xf32>
    %252 = vector.extract_strided_slice %3 {offsets = [1, 0, 0], sizes = [1, 1, 32], strides = [1, 1, 1]} : vector<3x1x32xf32> to vector<1x1x32xf32>
    %253 = vector.shape_cast %252 : vector<1x1x32xf32> to vector<1x32xf32>
    %254 = vector.broadcast %253 : vector<1x32xf32> to vector<2x32xf32>
    %255 = arith.addf %251, %254 : vector<2x32xf32>
    %256 = vector.extract_strided_slice %1 {offsets = [2, 0, 0], sizes = [1, 32, 32], strides = [1, 1, 1]} : vector<3x32x32xf32> to vector<1x32x32xf32>
    %257 = vector.shape_cast %256 : vector<1x32x32xf32> to vector<32x32xf32>
    %cst_104 = arith.constant dense<0.000000e+00> : vector<2x32xf32>
    %258 = tpu.matmul %192, %257, %cst_104 {dimension_numbers = #tpu.dot_dimension_numbers<[1], [0], [0], [1], [0, 0, 1, 1], [], []>} : vector<2x32xf32>, vector<32x32xf32>, vector<2x32xf32> -> vector<2x32xf32>
    %259 = vector.extract_strided_slice %3 {offsets = [2, 0, 0], sizes = [1, 1, 32], strides = [1, 1, 1]} : vector<3x1x32xf32> to vector<1x1x32xf32>
    %260 = vector.shape_cast %259 : vector<1x1x32xf32> to vector<1x32xf32>
    %261 = vector.broadcast %260 : vector<1x32xf32> to vector<2x32xf32>
    %262 = arith.addf %258, %261 : vector<2x32xf32>
    %263 = arith.addf %239, %248 : vector<2x32xf32>
    %264 = arith.negf %263 : vector<2x32xf32>
    %265 = math.exp %264 : vector<2x32xf32>
    %cst_105 = arith.constant 1.000000e+00 : f32
    %266 = vector.broadcast %cst_105 : f32 to vector<2x32xf32>
    %267 = arith.addf %266, %265 : vector<2x32xf32>
    %268 = arith.divf %266, %267 : vector<2x32xf32>
    %269 = arith.addf %240, %255 : vector<2x32xf32>
    %270 = arith.negf %269 : vector<2x32xf32>
    %271 = math.exp %270 : vector<2x32xf32>
    %cst_106 = arith.constant 1.000000e+00 : f32
    %272 = vector.broadcast %cst_106 : f32 to vector<2x32xf32>
    %273 = arith.addf %272, %271 : vector<2x32xf32>
    %274 = arith.divf %272, %273 : vector<2x32xf32>
    %275 = arith.mulf %268, %262 : vector<2x32xf32>
    %276 = arith.addf %241, %275 : vector<2x32xf32>
    %277 = math.tanh %276 : vector<2x32xf32>
    %cst_107 = arith.constant 1.000000e+00 : f32
    %278 = vector.broadcast %cst_107 : f32 to vector<2x32xf32>
    %279 = arith.subf %278, %274 : vector<2x32xf32>
    %280 = arith.mulf %279, %277 : vector<2x32xf32>
    %281 = arith.mulf %274, %192 : vector<2x32xf32>
    %282 = arith.addf %280, %281 : vector<2x32xf32>
    %c4_108 = arith.constant 4 : index
    %c0_109 = arith.constant 0 : index
    %283 = vector.load %arg21[%c4_108, %c0_109] : memref<16x32xf32, #tpu.memory_space<vmem>>, vector<2x32xf32>
    tpu.vector_store %arg21[%c4_108, %c0_109], %282 {strides = array<i32>} : memref<16x32xf32, #tpu.memory_space<vmem>>, vector<2x32xf32>,
    %c10 = arith.constant 10 : index
    %c0_110 = arith.constant 0 : index
    %284 = vector.load %arg26[%c10, %c0_110] : memref<16x32xf32, #tpu.memory_space<vmem>>, vector<2x32xf32>
    %c10_111 = arith.constant 10 : index
    %c0_112 = arith.constant 0 : index
    %285 = vector.load %arg27[%c10_111, %c0_112] : memref<16x32xf32, #tpu.memory_space<vmem>>, vector<2x32xf32>
    %c10_113 = arith.constant 10 : index
    %c0_114 = arith.constant 0 : index
    %286 = vector.load %arg28[%c10_113, %c0_114] : memref<16x32xf32, #tpu.memory_space<vmem>>, vector<2x32xf32>
    %287 = vector.extract_strided_slice %5 {offsets = [0, 0, 0], sizes = [1, 32, 32], strides = [1, 1, 1]} : vector<3x32x32xf32> to vector<1x32x32xf32>
    %288 = vector.shape_cast %287 : vector<1x32x32xf32> to vector<32x32xf32>
    %cst_115 = arith.constant dense<0.000000e+00> : vector<2x32xf32>
    %289 = tpu.matmul %237, %288, %cst_115 {dimension_numbers = #tpu.dot_dimension_numbers<[1], [0], [0], [1], [0, 0, 1, 1], [], []>} : vector<2x32xf32>, vector<32x32xf32>, vector<2x32xf32> -> vector<2x32xf32>
    %290 = vector.extract_strided_slice %7 {offsets = [0, 0, 0], sizes = [1, 1, 32], strides = [1, 1, 1]} : vector<3x1x32xf32> to vector<1x1x32xf32>
    %291 = vector.shape_cast %290 : vector<1x1x32xf32> to vector<1x32xf32>
    %292 = vector.broadcast %291 : vector<1x32xf32> to vector<2x32xf32>
    %293 = arith.addf %289, %292 : vector<2x32xf32>
    %294 = vector.extract_strided_slice %5 {offsets = [1, 0, 0], sizes = [1, 32, 32], strides = [1, 1, 1]} : vector<3x32x32xf32> to vector<1x32x32xf32>
    %295 = vector.shape_cast %294 : vector<1x32x32xf32> to vector<32x32xf32>
    %cst_116 = arith.constant dense<0.000000e+00> : vector<2x32xf32>
    %296 = tpu.matmul %237, %295, %cst_116 {dimension_numbers = #tpu.dot_dimension_numbers<[1], [0], [0], [1], [0, 0, 1, 1], [], []>} : vector<2x32xf32>, vector<32x32xf32>, vector<2x32xf32> -> vector<2x32xf32>
    %297 = vector.extract_strided_slice %7 {offsets = [1, 0, 0], sizes = [1, 1, 32], strides = [1, 1, 1]} : vector<3x1x32xf32> to vector<1x1x32xf32>
    %298 = vector.shape_cast %297 : vector<1x1x32xf32> to vector<1x32xf32>
    %299 = vector.broadcast %298 : vector<1x32xf32> to vector<2x32xf32>
    %300 = arith.addf %296, %299 : vector<2x32xf32>
    %301 = vector.extract_strided_slice %5 {offsets = [2, 0, 0], sizes = [1, 32, 32], strides = [1, 1, 1]} : vector<3x32x32xf32> to vector<1x32x32xf32>
    %302 = vector.shape_cast %301 : vector<1x32x32xf32> to vector<32x32xf32>
    %cst_117 = arith.constant dense<0.000000e+00> : vector<2x32xf32>
    %303 = tpu.matmul %237, %302, %cst_117 {dimension_numbers = #tpu.dot_dimension_numbers<[1], [0], [0], [1], [0, 0, 1, 1], [], []>} : vector<2x32xf32>, vector<32x32xf32>, vector<2x32xf32> -> vector<2x32xf32>
    %304 = vector.extract_strided_slice %7 {offsets = [2, 0, 0], sizes = [1, 1, 32], strides = [1, 1, 1]} : vector<3x1x32xf32> to vector<1x1x32xf32>
    %305 = vector.shape_cast %304 : vector<1x1x32xf32> to vector<1x32xf32>
    %306 = vector.broadcast %305 : vector<1x32xf32> to vector<2x32xf32>
    %307 = arith.addf %303, %306 : vector<2x32xf32>
    %308 = arith.addf %284, %293 : vector<2x32xf32>
    %309 = arith.negf %308 : vector<2x32xf32>
    %310 = math.exp %309 : vector<2x32xf32>
    %cst_118 = arith.constant 1.000000e+00 : f32
    %311 = vector.broadcast %cst_118 : f32 to vector<2x32xf32>
    %312 = arith.addf %311, %310 : vector<2x32xf32>
    %313 = arith.divf %311, %312 : vector<2x32xf32>
    %314 = arith.addf %285, %300 : vector<2x32xf32>
    %315 = arith.negf %314 : vector<2x32xf32>
    %316 = math.exp %315 : vector<2x32xf32>
    %cst_119 = arith.constant 1.000000e+00 : f32
    %317 = vector.broadcast %cst_119 : f32 to vector<2x32xf32>
    %318 = arith.addf %317, %316 : vector<2x32xf32>
    %319 = arith.divf %317, %318 : vector<2x32xf32>
    %320 = arith.mulf %313, %307 : vector<2x32xf32>
    %321 = arith.addf %286, %320 : vector<2x32xf32>
    %322 = math.tanh %321 : vector<2x32xf32>
    %cst_120 = arith.constant 1.000000e+00 : f32
    %323 = vector.broadcast %cst_120 : f32 to vector<2x32xf32>
    %324 = arith.subf %323, %319 : vector<2x32xf32>
    %325 = arith.mulf %324, %322 : vector<2x32xf32>
    %326 = arith.mulf %319, %237 : vector<2x32xf32>
    %327 = arith.addf %325, %326 : vector<2x32xf32>
    %c10_121 = arith.constant 10 : index
    %c0_122 = arith.constant 0 : index
    %328 = vector.load %arg22[%c10_121, %c0_122] : memref<16x32xf32, #tpu.memory_space<vmem>>, vector<2x32xf32>
    tpu.vector_store %arg22[%c10_121, %c0_122], %327 {strides = array<i32>} : memref<16x32xf32, #tpu.memory_space<vmem>>, vector<2x32xf32>,
    %c6 = arith.constant 6 : index
    %c0_123 = arith.constant 0 : index
    %329 = vector.load %arg23[%c6, %c0_123] : memref<16x32xf32, #tpu.memory_space<vmem>>, vector<2x32xf32>
    %c6_124 = arith.constant 6 : index
    %c0_125 = arith.constant 0 : index
    %330 = vector.load %arg24[%c6_124, %c0_125] : memref<16x32xf32, #tpu.memory_space<vmem>>, vector<2x32xf32>
    %c6_126 = arith.constant 6 : index
    %c0_127 = arith.constant 0 : index
    %331 = vector.load %arg25[%c6_126, %c0_127] : memref<16x32xf32, #tpu.memory_space<vmem>>, vector<2x32xf32>
    %332 = vector.extract_strided_slice %1 {offsets = [0, 0, 0], sizes = [1, 32, 32], strides = [1, 1, 1]} : vector<3x32x32xf32> to vector<1x32x32xf32>
    %333 = vector.shape_cast %332 : vector<1x32x32xf32> to vector<32x32xf32>
    %cst_128 = arith.constant dense<0.000000e+00> : vector<2x32xf32>
    %334 = tpu.matmul %282, %333, %cst_128 {dimension_numbers = #tpu.dot_dimension_numbers<[1], [0], [0], [1], [0, 0, 1, 1], [], []>} : vector<2x32xf32>, vector<32x32xf32>, vector<2x32xf32> -> vector<2x32xf32>
    %335 = vector.extract_strided_slice %3 {offsets = [0, 0, 0], sizes = [1, 1, 32], strides = [1, 1, 1]} : vector<3x1x32xf32> to vector<1x1x32xf32>
    %336 = vector.shape_cast %335 : vector<1x1x32xf32> to vector<1x32xf32>
    %337 = vector.broadcast %336 : vector<1x32xf32> to vector<2x32xf32>
    %338 = arith.addf %334, %337 : vector<2x32xf32>
    %339 = vector.extract_strided_slice %1 {offsets = [1, 0, 0], sizes = [1, 32, 32], strides = [1, 1, 1]} : vector<3x32x32xf32> to vector<1x32x32xf32>
    %340 = vector.shape_cast %339 : vector<1x32x32xf32> to vector<32x32xf32>
    %cst_129 = arith.constant dense<0.000000e+00> : vector<2x32xf32>
    %341 = tpu.matmul %282, %340, %cst_129 {dimension_numbers = #tpu.dot_dimension_numbers<[1], [0], [0], [1], [0, 0, 1, 1], [], []>} : vector<2x32xf32>, vector<32x32xf32>, vector<2x32xf32> -> vector<2x32xf32>
    %342 = vector.extract_strided_slice %3 {offsets = [1, 0, 0], sizes = [1, 1, 32], strides = [1, 1, 1]} : vector<3x1x32xf32> to vector<1x1x32xf32>
    %343 = vector.shape_cast %342 : vector<1x1x32xf32> to vector<1x32xf32>
    %344 = vector.broadcast %343 : vector<1x32xf32> to vector<2x32xf32>
    %345 = arith.addf %341, %344 : vector<2x32xf32>
    %346 = vector.extract_strided_slice %1 {offsets = [2, 0, 0], sizes = [1, 32, 32], strides = [1, 1, 1]} : vector<3x32x32xf32> to vector<1x32x32xf32>
    %347 = vector.shape_cast %346 : vector<1x32x32xf32> to vector<32x32xf32>
    %cst_130 = arith.constant dense<0.000000e+00> : vector<2x32xf32>
    %348 = tpu.matmul %282, %347, %cst_130 {dimension_numbers = #tpu.dot_dimension_numbers<[1], [0], [0], [1], [0, 0, 1, 1], [], []>} : vector<2x32xf32>, vector<32x32xf32>, vector<2x32xf32> -> vector<2x32xf32>
    %349 = vector.extract_strided_slice %3 {offsets = [2, 0, 0], sizes = [1, 1, 32], strides = [1, 1, 1]} : vector<3x1x32xf32> to vector<1x1x32xf32>
    %350 = vector.shape_cast %349 : vector<1x1x32xf32> to vector<1x32xf32>
    %351 = vector.broadcast %350 : vector<1x32xf32> to vector<2x32xf32>
    %352 = arith.addf %348, %351 : vector<2x32xf32>
    %353 = arith.addf %329, %338 : vector<2x32xf32>
    %354 = arith.negf %353 : vector<2x32xf32>
    %355 = math.exp %354 : vector<2x32xf32>
    %cst_131 = arith.constant 1.000000e+00 : f32
    %356 = vector.broadcast %cst_131 : f32 to vector<2x32xf32>
    %357 = arith.addf %356, %355 : vector<2x32xf32>
    %358 = arith.divf %356, %357 : vector<2x32xf32>
    %359 = arith.addf %330, %345 : vector<2x32xf32>
    %360 = arith.negf %359 : vector<2x32xf32>
    %361 = math.exp %360 : vector<2x32xf32>
    %cst_132 = arith.constant 1.000000e+00 : f32
    %362 = vector.broadcast %cst_132 : f32 to vector<2x32xf32>
    %363 = arith.addf %362, %361 : vector<2x32xf32>
    %364 = arith.divf %362, %363 : vector<2x32xf32>
    %365 = arith.mulf %358, %352 : vector<2x32xf32>
    %366 = arith.addf %331, %365 : vector<2x32xf32>
    %367 = math.tanh %366 : vector<2x32xf32>
    %cst_133 = arith.constant 1.000000e+00 : f32
    %368 = vector.broadcast %cst_133 : f32 to vector<2x32xf32>
    %369 = arith.subf %368, %364 : vector<2x32xf32>
    %370 = arith.mulf %369, %367 : vector<2x32xf32>
    %371 = arith.mulf %364, %282 : vector<2x32xf32>
    %372 = arith.addf %370, %371 : vector<2x32xf32>
    %c6_134 = arith.constant 6 : index
    %c0_135 = arith.constant 0 : index
    %373 = vector.load %arg21[%c6_134, %c0_135] : memref<16x32xf32, #tpu.memory_space<vmem>>, vector<2x32xf32>
    tpu.vector_store %arg21[%c6_134, %c0_135], %372 {strides = array<i32>} : memref<16x32xf32, #tpu.memory_space<vmem>>, vector<2x32xf32>,
    %c8 = arith.constant 8 : index
    %c0_136 = arith.constant 0 : index
    %374 = vector.load %arg26[%c8, %c0_136] : memref<16x32xf32, #tpu.memory_space<vmem>>, vector<2x32xf32>
    %c8_137 = arith.constant 8 : index
    %c0_138 = arith.constant 0 : index
    %375 = vector.load %arg27[%c8_137, %c0_138] : memref<16x32xf32, #tpu.memory_space<vmem>>, vector<2x32xf32>
    %c8_139 = arith.constant 8 : index
    %c0_140 = arith.constant 0 : index
    %376 = vector.load %arg28[%c8_139, %c0_140] : memref<16x32xf32, #tpu.memory_space<vmem>>, vector<2x32xf32>
    %377 = vector.extract_strided_slice %5 {offsets = [0, 0, 0], sizes = [1, 32, 32], strides = [1, 1, 1]} : vector<3x32x32xf32> to vector<1x32x32xf32>
    %378 = vector.shape_cast %377 : vector<1x32x32xf32> to vector<32x32xf32>
    %cst_141 = arith.constant dense<0.000000e+00> : vector<2x32xf32>
    %379 = tpu.matmul %327, %378, %cst_141 {dimension_numbers = #tpu.dot_dimension_numbers<[1], [0], [0], [1], [0, 0, 1, 1], [], []>} : vector<2x32xf32>, vector<32x32xf32>, vector<2x32xf32> -> vector<2x32xf32>
    %380 = vector.extract_strided_slice %7 {offsets = [0, 0, 0], sizes = [1, 1, 32], strides = [1, 1, 1]} : vector<3x1x32xf32> to vector<1x1x32xf32>
    %381 = vector.shape_cast %380 : vector<1x1x32xf32> to vector<1x32xf32>
    %382 = vector.broadcast %381 : vector<1x32xf32> to vector<2x32xf32>
    %383 = arith.addf %379, %382 : vector<2x32xf32>
    %384 = vector.extract_strided_slice %5 {offsets = [1, 0, 0], sizes = [1, 32, 32], strides = [1, 1, 1]} : vector<3x32x32xf32> to vector<1x32x32xf32>
    %385 = vector.shape_cast %384 : vector<1x32x32xf32> to vector<32x32xf32>
    %cst_142 = arith.constant dense<0.000000e+00> : vector<2x32xf32>
    %386 = tpu.matmul %327, %385, %cst_142 {dimension_numbers = #tpu.dot_dimension_numbers<[1], [0], [0], [1], [0, 0, 1, 1], [], []>} : vector<2x32xf32>, vector<32x32xf32>, vector<2x32xf32> -> vector<2x32xf32>
    %387 = vector.extract_strided_slice %7 {offsets = [1, 0, 0], sizes = [1, 1, 32], strides = [1, 1, 1]} : vector<3x1x32xf32> to vector<1x1x32xf32>
    %388 = vector.shape_cast %387 : vector<1x1x32xf32> to vector<1x32xf32>
    %389 = vector.broadcast %388 : vector<1x32xf32> to vector<2x32xf32>
    %390 = arith.addf %386, %389 : vector<2x32xf32>
    %391 = vector.extract_strided_slice %5 {offsets = [2, 0, 0], sizes = [1, 32, 32], strides = [1, 1, 1]} : vector<3x32x32xf32> to vector<1x32x32xf32>
    %392 = vector.shape_cast %391 : vector<1x32x32xf32> to vector<32x32xf32>
    %cst_143 = arith.constant dense<0.000000e+00> : vector<2x32xf32>
    %393 = tpu.matmul %327, %392, %cst_143 {dimension_numbers = #tpu.dot_dimension_numbers<[1], [0], [0], [1], [0, 0, 1, 1], [], []>} : vector<2x32xf32>, vector<32x32xf32>, vector<2x32xf32> -> vector<2x32xf32>
    %394 = vector.extract_strided_slice %7 {offsets = [2, 0, 0], sizes = [1, 1, 32], strides = [1, 1, 1]} : vector<3x1x32xf32> to vector<1x1x32xf32>
    %395 = vector.shape_cast %394 : vector<1x1x32xf32> to vector<1x32xf32>
    %396 = vector.broadcast %395 : vector<1x32xf32> to vector<2x32xf32>
    %397 = arith.addf %393, %396 : vector<2x32xf32>
    %398 = arith.addf %374, %383 : vector<2x32xf32>
    %399 = arith.negf %398 : vector<2x32xf32>
    %400 = math.exp %399 : vector<2x32xf32>
    %cst_144 = arith.constant 1.000000e+00 : f32
    %401 = vector.broadcast %cst_144 : f32 to vector<2x32xf32>
    %402 = arith.addf %401, %400 : vector<2x32xf32>
    %403 = arith.divf %401, %402 : vector<2x32xf32>
    %404 = arith.addf %375, %390 : vector<2x32xf32>
    %405 = arith.negf %404 : vector<2x32xf32>
    %406 = math.exp %405 : vector<2x32xf32>
    %cst_145 = arith.constant 1.000000e+00 : f32
    %407 = vector.broadcast %cst_145 : f32 to vector<2x32xf32>
    %408 = arith.addf %407, %406 : vector<2x32xf32>
    %409 = arith.divf %407, %408 : vector<2x32xf32>
    %410 = arith.mulf %403, %397 : vector<2x32xf32>
    %411 = arith.addf %376, %410 : vector<2x32xf32>
    %412 = math.tanh %411 : vector<2x32xf32>
    %cst_146 = arith.constant 1.000000e+00 : f32
    %413 = vector.broadcast %cst_146 : f32 to vector<2x32xf32>
    %414 = arith.subf %413, %409 : vector<2x32xf32>
    %415 = arith.mulf %414, %412 : vector<2x32xf32>
    %416 = arith.mulf %409, %327 : vector<2x32xf32>
    %417 = arith.addf %415, %416 : vector<2x32xf32>
    %c8_147 = arith.constant 8 : index
    %c0_148 = arith.constant 0 : index
    %418 = vector.load %arg22[%c8_147, %c0_148] : memref<16x32xf32, #tpu.memory_space<vmem>>, vector<2x32xf32>
    tpu.vector_store %arg22[%c8_147, %c0_148], %417 {strides = array<i32>} : memref<16x32xf32, #tpu.memory_space<vmem>>, vector<2x32xf32>,
    %c8_149 = arith.constant 8 : index
    %c0_150 = arith.constant 0 : index
    %419 = vector.load %arg23[%c8_149, %c0_150] : memref<16x32xf32, #tpu.memory_space<vmem>>, vector<2x32xf32>
    %c8_151 = arith.constant 8 : index
    %c0_152 = arith.constant 0 : index
    %420 = vector.load %arg24[%c8_151, %c0_152] : memref<16x32xf32, #tpu.memory_space<vmem>>, vector<2x32xf32>
    %c8_153 = arith.constant 8 : index
    %c0_154 = arith.constant 0 : index
    %421 = vector.load %arg25[%c8_153, %c0_154] : memref<16x32xf32, #tpu.memory_space<vmem>>, vector<2x32xf32>
    %422 = vector.extract_strided_slice %1 {offsets = [0, 0, 0], sizes = [1, 32, 32], strides = [1, 1, 1]} : vector<3x32x32xf32> to vector<1x32x32xf32>
    %423 = vector.shape_cast %422 : vector<1x32x32xf32> to vector<32x32xf32>
    %cst_155 = arith.constant dense<0.000000e+00> : vector<2x32xf32>
    %424 = tpu.matmul %372, %423, %cst_155 {dimension_numbers = #tpu.dot_dimension_numbers<[1], [0], [0], [1], [0, 0, 1, 1], [], []>} : vector<2x32xf32>, vector<32x32xf32>, vector<2x32xf32> -> vector<2x32xf32>
    %425 = vector.extract_strided_slice %3 {offsets = [0, 0, 0], sizes = [1, 1, 32], strides = [1, 1, 1]} : vector<3x1x32xf32> to vector<1x1x32xf32>
    %426 = vector.shape_cast %425 : vector<1x1x32xf32> to vector<1x32xf32>
    %427 = vector.broadcast %426 : vector<1x32xf32> to vector<2x32xf32>
    %428 = arith.addf %424, %427 : vector<2x32xf32>
    %429 = vector.extract_strided_slice %1 {offsets = [1, 0, 0], sizes = [1, 32, 32], strides = [1, 1, 1]} : vector<3x32x32xf32> to vector<1x32x32xf32>
    %430 = vector.shape_cast %429 : vector<1x32x32xf32> to vector<32x32xf32>
    %cst_156 = arith.constant dense<0.000000e+00> : vector<2x32xf32>
    %431 = tpu.matmul %372, %430, %cst_156 {dimension_numbers = #tpu.dot_dimension_numbers<[1], [0], [0], [1], [0, 0, 1, 1], [], []>} : vector<2x32xf32>, vector<32x32xf32>, vector<2x32xf32> -> vector<2x32xf32>
    %432 = vector.extract_strided_slice %3 {offsets = [1, 0, 0], sizes = [1, 1, 32], strides = [1, 1, 1]} : vector<3x1x32xf32> to vector<1x1x32xf32>
    %433 = vector.shape_cast %432 : vector<1x1x32xf32> to vector<1x32xf32>
    %434 = vector.broadcast %433 : vector<1x32xf32> to vector<2x32xf32>
    %435 = arith.addf %431, %434 : vector<2x32xf32>
    %436 = vector.extract_strided_slice %1 {offsets = [2, 0, 0], sizes = [1, 32, 32], strides = [1, 1, 1]} : vector<3x32x32xf32> to vector<1x32x32xf32>
    %437 = vector.shape_cast %436 : vector<1x32x32xf32> to vector<32x32xf32>
    %cst_157 = arith.constant dense<0.000000e+00> : vector<2x32xf32>
    %438 = tpu.matmul %372, %437, %cst_157 {dimension_numbers = #tpu.dot_dimension_numbers<[1], [0], [0], [1], [0, 0, 1, 1], [], []>} : vector<2x32xf32>, vector<32x32xf32>, vector<2x32xf32> -> vector<2x32xf32>
    %439 = vector.extract_strided_slice %3 {offsets = [2, 0, 0], sizes = [1, 1, 32], strides = [1, 1, 1]} : vector<3x1x32xf32> to vector<1x1x32xf32>
    %440 = vector.shape_cast %439 : vector<1x1x32xf32> to vector<1x32xf32>
    %441 = vector.broadcast %440 : vector<1x32xf32> to vector<2x32xf32>
    %442 = arith.addf %438, %441 : vector<2x32xf32>
    %443 = arith.addf %419, %428 : vector<2x32xf32>
    %444 = arith.negf %443 : vector<2x32xf32>
    %445 = math.exp %444 : vector<2x32xf32>
    %cst_158 = arith.constant 1.000000e+00 : f32
    %446 = vector.broadcast %cst_158 : f32 to vector<2x32xf32>
    %447 = arith.addf %446, %445 : vector<2x32xf32>
    %448 = arith.divf %446, %447 : vector<2x32xf32>
    %449 = arith.addf %420, %435 : vector<2x32xf32>
    %450 = arith.negf %449 : vector<2x32xf32>
    %451 = math.exp %450 : vector<2x32xf32>
    %cst_159 = arith.constant 1.000000e+00 : f32
    %452 = vector.broadcast %cst_159 : f32 to vector<2x32xf32>
    %453 = arith.addf %452, %451 : vector<2x32xf32>
    %454 = arith.divf %452, %453 : vector<2x32xf32>
    %455 = arith.mulf %448, %442 : vector<2x32xf32>
    %456 = arith.addf %421, %455 : vector<2x32xf32>
    %457 = math.tanh %456 : vector<2x32xf32>
    %cst_160 = arith.constant 1.000000e+00 : f32
    %458 = vector.broadcast %cst_160 : f32 to vector<2x32xf32>
    %459 = arith.subf %458, %454 : vector<2x32xf32>
    %460 = arith.mulf %459, %457 : vector<2x32xf32>
    %461 = arith.mulf %454, %372 : vector<2x32xf32>
    %462 = arith.addf %460, %461 : vector<2x32xf32>
    %c8_161 = arith.constant 8 : index
    %c0_162 = arith.constant 0 : index
    %463 = vector.load %arg21[%c8_161, %c0_162] : memref<16x32xf32, #tpu.memory_space<vmem>>, vector<2x32xf32>
    tpu.vector_store %arg21[%c8_161, %c0_162], %462 {strides = array<i32>} : memref<16x32xf32, #tpu.memory_space<vmem>>, vector<2x32xf32>,
    %c6_163 = arith.constant 6 : index
    %c0_164 = arith.constant 0 : index
    %464 = vector.load %arg26[%c6_163, %c0_164] : memref<16x32xf32, #tpu.memory_space<vmem>>, vector<2x32xf32>
    %c6_165 = arith.constant 6 : index
    %c0_166 = arith.constant 0 : index
    %465 = vector.load %arg27[%c6_165, %c0_166] : memref<16x32xf32, #tpu.memory_space<vmem>>, vector<2x32xf32>
    %c6_167 = arith.constant 6 : index
    %c0_168 = arith.constant 0 : index
    %466 = vector.load %arg28[%c6_167, %c0_168] : memref<16x32xf32, #tpu.memory_space<vmem>>, vector<2x32xf32>
    %467 = vector.extract_strided_slice %5 {offsets = [0, 0, 0], sizes = [1, 32, 32], strides = [1, 1, 1]} : vector<3x32x32xf32> to vector<1x32x32xf32>
    %468 = vector.shape_cast %467 : vector<1x32x32xf32> to vector<32x32xf32>
    %cst_169 = arith.constant dense<0.000000e+00> : vector<2x32xf32>
    %469 = tpu.matmul %417, %468, %cst_169 {dimension_numbers = #tpu.dot_dimension_numbers<[1], [0], [0], [1], [0, 0, 1, 1], [], []>} : vector<2x32xf32>, vector<32x32xf32>, vector<2x32xf32> -> vector<2x32xf32>
    %470 = vector.extract_strided_slice %7 {offsets = [0, 0, 0], sizes = [1, 1, 32], strides = [1, 1, 1]} : vector<3x1x32xf32> to vector<1x1x32xf32>
    %471 = vector.shape_cast %470 : vector<1x1x32xf32> to vector<1x32xf32>
    %472 = vector.broadcast %471 : vector<1x32xf32> to vector<2x32xf32>
    %473 = arith.addf %469, %472 : vector<2x32xf32>
    %474 = vector.extract_strided_slice %5 {offsets = [1, 0, 0], sizes = [1, 32, 32], strides = [1, 1, 1]} : vector<3x32x32xf32> to vector<1x32x32xf32>
    %475 = vector.shape_cast %474 : vector<1x32x32xf32> to vector<32x32xf32>
    %cst_170 = arith.constant dense<0.000000e+00> : vector<2x32xf32>
    %476 = tpu.matmul %417, %475, %cst_170 {dimension_numbers = #tpu.dot_dimension_numbers<[1], [0], [0], [1], [0, 0, 1, 1], [], []>} : vector<2x32xf32>, vector<32x32xf32>, vector<2x32xf32> -> vector<2x32xf32>
    %477 = vector.extract_strided_slice %7 {offsets = [1, 0, 0], sizes = [1, 1, 32], strides = [1, 1, 1]} : vector<3x1x32xf32> to vector<1x1x32xf32>
    %478 = vector.shape_cast %477 : vector<1x1x32xf32> to vector<1x32xf32>
    %479 = vector.broadcast %478 : vector<1x32xf32> to vector<2x32xf32>
    %480 = arith.addf %476, %479 : vector<2x32xf32>
    %481 = vector.extract_strided_slice %5 {offsets = [2, 0, 0], sizes = [1, 32, 32], strides = [1, 1, 1]} : vector<3x32x32xf32> to vector<1x32x32xf32>
    %482 = vector.shape_cast %481 : vector<1x32x32xf32> to vector<32x32xf32>
    %cst_171 = arith.constant dense<0.000000e+00> : vector<2x32xf32>
    %483 = tpu.matmul %417, %482, %cst_171 {dimension_numbers = #tpu.dot_dimension_numbers<[1], [0], [0], [1], [0, 0, 1, 1], [], []>} : vector<2x32xf32>, vector<32x32xf32>, vector<2x32xf32> -> vector<2x32xf32>
    %484 = vector.extract_strided_slice %7 {offsets = [2, 0, 0], sizes = [1, 1, 32], strides = [1, 1, 1]} : vector<3x1x32xf32> to vector<1x1x32xf32>
    %485 = vector.shape_cast %484 : vector<1x1x32xf32> to vector<1x32xf32>
    %486 = vector.broadcast %485 : vector<1x32xf32> to vector<2x32xf32>
    %487 = arith.addf %483, %486 : vector<2x32xf32>
    %488 = arith.addf %464, %473 : vector<2x32xf32>
    %489 = arith.negf %488 : vector<2x32xf32>
    %490 = math.exp %489 : vector<2x32xf32>
    %cst_172 = arith.constant 1.000000e+00 : f32
    %491 = vector.broadcast %cst_172 : f32 to vector<2x32xf32>
    %492 = arith.addf %491, %490 : vector<2x32xf32>
    %493 = arith.divf %491, %492 : vector<2x32xf32>
    %494 = arith.addf %465, %480 : vector<2x32xf32>
    %495 = arith.negf %494 : vector<2x32xf32>
    %496 = math.exp %495 : vector<2x32xf32>
    %cst_173 = arith.constant 1.000000e+00 : f32
    %497 = vector.broadcast %cst_173 : f32 to vector<2x32xf32>
    %498 = arith.addf %497, %496 : vector<2x32xf32>
    %499 = arith.divf %497, %498 : vector<2x32xf32>
    %500 = arith.mulf %493, %487 : vector<2x32xf32>
    %501 = arith.addf %466, %500 : vector<2x32xf32>
    %502 = math.tanh %501 : vector<2x32xf32>
    %cst_174 = arith.constant 1.000000e+00 : f32
    %503 = vector.broadcast %cst_174 : f32 to vector<2x32xf32>
    %504 = arith.subf %503, %499 : vector<2x32xf32>
    %505 = arith.mulf %504, %502 : vector<2x32xf32>
    %506 = arith.mulf %499, %417 : vector<2x32xf32>
    %507 = arith.addf %505, %506 : vector<2x32xf32>
    %c6_175 = arith.constant 6 : index
    %c0_176 = arith.constant 0 : index
    %508 = vector.load %arg22[%c6_175, %c0_176] : memref<16x32xf32, #tpu.memory_space<vmem>>, vector<2x32xf32>
    tpu.vector_store %arg22[%c6_175, %c0_176], %507 {strides = array<i32>} : memref<16x32xf32, #tpu.memory_space<vmem>>, vector<2x32xf32>,
    %c10_177 = arith.constant 10 : index
    %c0_178 = arith.constant 0 : index
    %509 = vector.load %arg23[%c10_177, %c0_178] : memref<16x32xf32, #tpu.memory_space<vmem>>, vector<2x32xf32>
    %c10_179 = arith.constant 10 : index
    %c0_180 = arith.constant 0 : index
    %510 = vector.load %arg24[%c10_179, %c0_180] : memref<16x32xf32, #tpu.memory_space<vmem>>, vector<2x32xf32>
    %c10_181 = arith.constant 10 : index
    %c0_182 = arith.constant 0 : index
    %511 = vector.load %arg25[%c10_181, %c0_182] : memref<16x32xf32, #tpu.memory_space<vmem>>, vector<2x32xf32>
    %512 = vector.extract_strided_slice %1 {offsets = [0, 0, 0], sizes = [1, 32, 32], strides = [1, 1, 1]} : vector<3x32x32xf32> to vector<1x32x32xf32>
    %513 = vector.shape_cast %512 : vector<1x32x32xf32> to vector<32x32xf32>
    %cst_183 = arith.constant dense<0.000000e+00> : vector<2x32xf32>
    %514 = tpu.matmul %462, %513, %cst_183 {dimension_numbers = #tpu.dot_dimension_numbers<[1], [0], [0], [1], [0, 0, 1, 1], [], []>} : vector<2x32xf32>, vector<32x32xf32>, vector<2x32xf32> -> vector<2x32xf32>
    %515 = vector.extract_strided_slice %3 {offsets = [0, 0, 0], sizes = [1, 1, 32], strides = [1, 1, 1]} : vector<3x1x32xf32> to vector<1x1x32xf32>
    %516 = vector.shape_cast %515 : vector<1x1x32xf32> to vector<1x32xf32>
    %517 = vector.broadcast %516 : vector<1x32xf32> to vector<2x32xf32>
    %518 = arith.addf %514, %517 : vector<2x32xf32>
    %519 = vector.extract_strided_slice %1 {offsets = [1, 0, 0], sizes = [1, 32, 32], strides = [1, 1, 1]} : vector<3x32x32xf32> to vector<1x32x32xf32>
    %520 = vector.shape_cast %519 : vector<1x32x32xf32> to vector<32x32xf32>
    %cst_184 = arith.constant dense<0.000000e+00> : vector<2x32xf32>
    %521 = tpu.matmul %462, %520, %cst_184 {dimension_numbers = #tpu.dot_dimension_numbers<[1], [0], [0], [1], [0, 0, 1, 1], [], []>} : vector<2x32xf32>, vector<32x32xf32>, vector<2x32xf32> -> vector<2x32xf32>
    %522 = vector.extract_strided_slice %3 {offsets = [1, 0, 0], sizes = [1, 1, 32], strides = [1, 1, 1]} : vector<3x1x32xf32> to vector<1x1x32xf32>
    %523 = vector.shape_cast %522 : vector<1x1x32xf32> to vector<1x32xf32>
    %524 = vector.broadcast %523 : vector<1x32xf32> to vector<2x32xf32>
    %525 = arith.addf %521, %524 : vector<2x32xf32>
    %526 = vector.extract_strided_slice %1 {offsets = [2, 0, 0], sizes = [1, 32, 32], strides = [1, 1, 1]} : vector<3x32x32xf32> to vector<1x32x32xf32>
    %527 = vector.shape_cast %526 : vector<1x32x32xf32> to vector<32x32xf32>
    %cst_185 = arith.constant dense<0.000000e+00> : vector<2x32xf32>
    %528 = tpu.matmul %462, %527, %cst_185 {dimension_numbers = #tpu.dot_dimension_numbers<[1], [0], [0], [1], [0, 0, 1, 1], [], []>} : vector<2x32xf32>, vector<32x32xf32>, vector<2x32xf32> -> vector<2x32xf32>
    %529 = vector.extract_strided_slice %3 {offsets = [2, 0, 0], sizes = [1, 1, 32], strides = [1, 1, 1]} : vector<3x1x32xf32> to vector<1x1x32xf32>
    %530 = vector.shape_cast %529 : vector<1x1x32xf32> to vector<1x32xf32>
    %531 = vector.broadcast %530 : vector<1x32xf32> to vector<2x32xf32>
    %532 = arith.addf %528, %531 : vector<2x32xf32>
    %533 = arith.addf %509, %518 : vector<2x32xf32>
    %534 = arith.negf %533 : vector<2x32xf32>
    %535 = math.exp %534 : vector<2x32xf32>
    %cst_186 = arith.constant 1.000000e+00 : f32
    %536 = vector.broadcast %cst_186 : f32 to vector<2x32xf32>
    %537 = arith.addf %536, %535 : vector<2x32xf32>
    %538 = arith.divf %536, %537 : vector<2x32xf32>
    %539 = arith.addf %510, %525 : vector<2x32xf32>
    %540 = arith.negf %539 : vector<2x32xf32>
    %541 = math.exp %540 : vector<2x32xf32>
    %cst_187 = arith.constant 1.000000e+00 : f32
    %542 = vector.broadcast %cst_187 : f32 to vector<2x32xf32>
    %543 = arith.addf %542, %541 : vector<2x32xf32>
    %544 = arith.divf %542, %543 : vector<2x32xf32>
    %545 = arith.mulf %538, %532 : vector<2x32xf32>
    %546 = arith.addf %511, %545 : vector<2x32xf32>
    %547 = math.tanh %546 : vector<2x32xf32>
    %cst_188 = arith.constant 1.000000e+00 : f32
    %548 = vector.broadcast %cst_188 : f32 to vector<2x32xf32>
    %549 = arith.subf %548, %544 : vector<2x32xf32>
    %550 = arith.mulf %549, %547 : vector<2x32xf32>
    %551 = arith.mulf %544, %462 : vector<2x32xf32>
    %552 = arith.addf %550, %551 : vector<2x32xf32>
    %c10_189 = arith.constant 10 : index
    %c0_190 = arith.constant 0 : index
    %553 = vector.load %arg21[%c10_189, %c0_190] : memref<16x32xf32, #tpu.memory_space<vmem>>, vector<2x32xf32>
    tpu.vector_store %arg21[%c10_189, %c0_190], %552 {strides = array<i32>} : memref<16x32xf32, #tpu.memory_space<vmem>>, vector<2x32xf32>,
    %c4_191 = arith.constant 4 : index
    %c0_192 = arith.constant 0 : index
    %554 = vector.load %arg26[%c4_191, %c0_192] : memref<16x32xf32, #tpu.memory_space<vmem>>, vector<2x32xf32>
    %c4_193 = arith.constant 4 : index
    %c0_194 = arith.constant 0 : index
    %555 = vector.load %arg27[%c4_193, %c0_194] : memref<16x32xf32, #tpu.memory_space<vmem>>, vector<2x32xf32>
    %c4_195 = arith.constant 4 : index
    %c0_196 = arith.constant 0 : index
    %556 = vector.load %arg28[%c4_195, %c0_196] : memref<16x32xf32, #tpu.memory_space<vmem>>, vector<2x32xf32>
    %557 = vector.extract_strided_slice %5 {offsets = [0, 0, 0], sizes = [1, 32, 32], strides = [1, 1, 1]} : vector<3x32x32xf32> to vector<1x32x32xf32>
    %558 = vector.shape_cast %557 : vector<1x32x32xf32> to vector<32x32xf32>
    %cst_197 = arith.constant dense<0.000000e+00> : vector<2x32xf32>
    %559 = tpu.matmul %507, %558, %cst_197 {dimension_numbers = #tpu.dot_dimension_numbers<[1], [0], [0], [1], [0, 0, 1, 1], [], []>} : vector<2x32xf32>, vector<32x32xf32>, vector<2x32xf32> -> vector<2x32xf32>
    %560 = vector.extract_strided_slice %7 {offsets = [0, 0, 0], sizes = [1, 1, 32], strides = [1, 1, 1]} : vector<3x1x32xf32> to vector<1x1x32xf32>
    %561 = vector.shape_cast %560 : vector<1x1x32xf32> to vector<1x32xf32>
    %562 = vector.broadcast %561 : vector<1x32xf32> to vector<2x32xf32>
    %563 = arith.addf %559, %562 : vector<2x32xf32>
    %564 = vector.extract_strided_slice %5 {offsets = [1, 0, 0], sizes = [1, 32, 32], strides = [1, 1, 1]} : vector<3x32x32xf32> to vector<1x32x32xf32>
    %565 = vector.shape_cast %564 : vector<1x32x32xf32> to vector<32x32xf32>
    %cst_198 = arith.constant dense<0.000000e+00> : vector<2x32xf32>
    %566 = tpu.matmul %507, %565, %cst_198 {dimension_numbers = #tpu.dot_dimension_numbers<[1], [0], [0], [1], [0, 0, 1, 1], [], []>} : vector<2x32xf32>, vector<32x32xf32>, vector<2x32xf32> -> vector<2x32xf32>
    %567 = vector.extract_strided_slice %7 {offsets = [1, 0, 0], sizes = [1, 1, 32], strides = [1, 1, 1]} : vector<3x1x32xf32> to vector<1x1x32xf32>
    %568 = vector.shape_cast %567 : vector<1x1x32xf32> to vector<1x32xf32>
    %569 = vector.broadcast %568 : vector<1x32xf32> to vector<2x32xf32>
    %570 = arith.addf %566, %569 : vector<2x32xf32>
    %571 = vector.extract_strided_slice %5 {offsets = [2, 0, 0], sizes = [1, 32, 32], strides = [1, 1, 1]} : vector<3x32x32xf32> to vector<1x32x32xf32>
    %572 = vector.shape_cast %571 : vector<1x32x32xf32> to vector<32x32xf32>
    %cst_199 = arith.constant dense<0.000000e+00> : vector<2x32xf32>
    %573 = tpu.matmul %507, %572, %cst_199 {dimension_numbers = #tpu.dot_dimension_numbers<[1], [0], [0], [1], [0, 0, 1, 1], [], []>} : vector<2x32xf32>, vector<32x32xf32>, vector<2x32xf32> -> vector<2x32xf32>
    %574 = vector.extract_strided_slice %7 {offsets = [2, 0, 0], sizes = [1, 1, 32], strides = [1, 1, 1]} : vector<3x1x32xf32> to vector<1x1x32xf32>
    %575 = vector.shape_cast %574 : vector<1x1x32xf32> to vector<1x32xf32>
    %576 = vector.broadcast %575 : vector<1x32xf32> to vector<2x32xf32>
    %577 = arith.addf %573, %576 : vector<2x32xf32>
    %578 = arith.addf %554, %563 : vector<2x32xf32>
    %579 = arith.negf %578 : vector<2x32xf32>
    %580 = math.exp %579 : vector<2x32xf32>
    %cst_200 = arith.constant 1.000000e+00 : f32
    %581 = vector.broadcast %cst_200 : f32 to vector<2x32xf32>
    %582 = arith.addf %581, %580 : vector<2x32xf32>
    %583 = arith.divf %581, %582 : vector<2x32xf32>
    %584 = arith.addf %555, %570 : vector<2x32xf32>
    %585 = arith.negf %584 : vector<2x32xf32>
    %586 = math.exp %585 : vector<2x32xf32>
    %cst_201 = arith.constant 1.000000e+00 : f32
    %587 = vector.broadcast %cst_201 : f32 to vector<2x32xf32>
    %588 = arith.addf %587, %586 : vector<2x32xf32>
    %589 = arith.divf %587, %588 : vector<2x32xf32>
    %590 = arith.mulf %583, %577 : vector<2x32xf32>
    %591 = arith.addf %556, %590 : vector<2x32xf32>
    %592 = math.tanh %591 : vector<2x32xf32>
    %cst_202 = arith.constant 1.000000e+00 : f32
    %593 = vector.broadcast %cst_202 : f32 to vector<2x32xf32>
    %594 = arith.subf %593, %589 : vector<2x32xf32>
    %595 = arith.mulf %594, %592 : vector<2x32xf32>
    %596 = arith.mulf %589, %507 : vector<2x32xf32>
    %597 = arith.addf %595, %596 : vector<2x32xf32>
    %c4_203 = arith.constant 4 : index
    %c0_204 = arith.constant 0 : index
    %598 = vector.load %arg22[%c4_203, %c0_204] : memref<16x32xf32, #tpu.memory_space<vmem>>, vector<2x32xf32>
    tpu.vector_store %arg22[%c4_203, %c0_204], %597 {strides = array<i32>} : memref<16x32xf32, #tpu.memory_space<vmem>>, vector<2x32xf32>,
    %c12_205 = arith.constant 12 : index
    %c0_206 = arith.constant 0 : index
    %599 = vector.load %arg23[%c12_205, %c0_206] : memref<16x32xf32, #tpu.memory_space<vmem>>, vector<2x32xf32>
    %c12_207 = arith.constant 12 : index
    %c0_208 = arith.constant 0 : index
    %600 = vector.load %arg24[%c12_207, %c0_208] : memref<16x32xf32, #tpu.memory_space<vmem>>, vector<2x32xf32>
    %c12_209 = arith.constant 12 : index
    %c0_210 = arith.constant 0 : index
    %601 = vector.load %arg25[%c12_209, %c0_210] : memref<16x32xf32, #tpu.memory_space<vmem>>, vector<2x32xf32>
    %602 = vector.extract_strided_slice %1 {offsets = [0, 0, 0], sizes = [1, 32, 32], strides = [1, 1, 1]} : vector<3x32x32xf32> to vector<1x32x32xf32>
    %603 = vector.shape_cast %602 : vector<1x32x32xf32> to vector<32x32xf32>
    %cst_211 = arith.constant dense<0.000000e+00> : vector<2x32xf32>
    %604 = tpu.matmul %552, %603, %cst_211 {dimension_numbers = #tpu.dot_dimension_numbers<[1], [0], [0], [1], [0, 0, 1, 1], [], []>} : vector<2x32xf32>, vector<32x32xf32>, vector<2x32xf32> -> vector<2x32xf32>
    %605 = vector.extract_strided_slice %3 {offsets = [0, 0, 0], sizes = [1, 1, 32], strides = [1, 1, 1]} : vector<3x1x32xf32> to vector<1x1x32xf32>
    %606 = vector.shape_cast %605 : vector<1x1x32xf32> to vector<1x32xf32>
    %607 = vector.broadcast %606 : vector<1x32xf32> to vector<2x32xf32>
    %608 = arith.addf %604, %607 : vector<2x32xf32>
    %609 = vector.extract_strided_slice %1 {offsets = [1, 0, 0], sizes = [1, 32, 32], strides = [1, 1, 1]} : vector<3x32x32xf32> to vector<1x32x32xf32>
    %610 = vector.shape_cast %609 : vector<1x32x32xf32> to vector<32x32xf32>
    %cst_212 = arith.constant dense<0.000000e+00> : vector<2x32xf32>
    %611 = tpu.matmul %552, %610, %cst_212 {dimension_numbers = #tpu.dot_dimension_numbers<[1], [0], [0], [1], [0, 0, 1, 1], [], []>} : vector<2x32xf32>, vector<32x32xf32>, vector<2x32xf32> -> vector<2x32xf32>
    %612 = vector.extract_strided_slice %3 {offsets = [1, 0, 0], sizes = [1, 1, 32], strides = [1, 1, 1]} : vector<3x1x32xf32> to vector<1x1x32xf32>
    %613 = vector.shape_cast %612 : vector<1x1x32xf32> to vector<1x32xf32>
    %614 = vector.broadcast %613 : vector<1x32xf32> to vector<2x32xf32>
    %615 = arith.addf %611, %614 : vector<2x32xf32>
    %616 = vector.extract_strided_slice %1 {offsets = [2, 0, 0], sizes = [1, 32, 32], strides = [1, 1, 1]} : vector<3x32x32xf32> to vector<1x32x32xf32>
    %617 = vector.shape_cast %616 : vector<1x32x32xf32> to vector<32x32xf32>
    %cst_213 = arith.constant dense<0.000000e+00> : vector<2x32xf32>
    %618 = tpu.matmul %552, %617, %cst_213 {dimension_numbers = #tpu.dot_dimension_numbers<[1], [0], [0], [1], [0, 0, 1, 1], [], []>} : vector<2x32xf32>, vector<32x32xf32>, vector<2x32xf32> -> vector<2x32xf32>
    %619 = vector.extract_strided_slice %3 {offsets = [2, 0, 0], sizes = [1, 1, 32], strides = [1, 1, 1]} : vector<3x1x32xf32> to vector<1x1x32xf32>
    %620 = vector.shape_cast %619 : vector<1x1x32xf32> to vector<1x32xf32>
    %621 = vector.broadcast %620 : vector<1x32xf32> to vector<2x32xf32>
    %622 = arith.addf %618, %621 : vector<2x32xf32>
    %623 = arith.addf %599, %608 : vector<2x32xf32>
    %624 = arith.negf %623 : vector<2x32xf32>
    %625 = math.exp %624 : vector<2x32xf32>
    %cst_214 = arith.constant 1.000000e+00 : f32
    %626 = vector.broadcast %cst_214 : f32 to vector<2x32xf32>
    %627 = arith.addf %626, %625 : vector<2x32xf32>
    %628 = arith.divf %626, %627 : vector<2x32xf32>
    %629 = arith.addf %600, %615 : vector<2x32xf32>
    %630 = arith.negf %629 : vector<2x32xf32>
    %631 = math.exp %630 : vector<2x32xf32>
    %cst_215 = arith.constant 1.000000e+00 : f32
    %632 = vector.broadcast %cst_215 : f32 to vector<2x32xf32>
    %633 = arith.addf %632, %631 : vector<2x32xf32>
    %634 = arith.divf %632, %633 : vector<2x32xf32>
    %635 = arith.mulf %628, %622 : vector<2x32xf32>
    %636 = arith.addf %601, %635 : vector<2x32xf32>
    %637 = math.tanh %636 : vector<2x32xf32>
    %cst_216 = arith.constant 1.000000e+00 : f32
    %638 = vector.broadcast %cst_216 : f32 to vector<2x32xf32>
    %639 = arith.subf %638, %634 : vector<2x32xf32>
    %640 = arith.mulf %639, %637 : vector<2x32xf32>
    %641 = arith.mulf %634, %552 : vector<2x32xf32>
    %642 = arith.addf %640, %641 : vector<2x32xf32>
    %c12_217 = arith.constant 12 : index
    %c0_218 = arith.constant 0 : index
    %643 = vector.load %arg21[%c12_217, %c0_218] : memref<16x32xf32, #tpu.memory_space<vmem>>, vector<2x32xf32>
    tpu.vector_store %arg21[%c12_217, %c0_218], %642 {strides = array<i32>} : memref<16x32xf32, #tpu.memory_space<vmem>>, vector<2x32xf32>,
    %c2_219 = arith.constant 2 : index
    %c0_220 = arith.constant 0 : index
    %644 = vector.load %arg26[%c2_219, %c0_220] : memref<16x32xf32, #tpu.memory_space<vmem>>, vector<2x32xf32>
    %c2_221 = arith.constant 2 : index
    %c0_222 = arith.constant 0 : index
    %645 = vector.load %arg27[%c2_221, %c0_222] : memref<16x32xf32, #tpu.memory_space<vmem>>, vector<2x32xf32>
    %c2_223 = arith.constant 2 : index
    %c0_224 = arith.constant 0 : index
    %646 = vector.load %arg28[%c2_223, %c0_224] : memref<16x32xf32, #tpu.memory_space<vmem>>, vector<2x32xf32>
    %647 = vector.extract_strided_slice %5 {offsets = [0, 0, 0], sizes = [1, 32, 32], strides = [1, 1, 1]} : vector<3x32x32xf32> to vector<1x32x32xf32>
    %648 = vector.shape_cast %647 : vector<1x32x32xf32> to vector<32x32xf32>
    %cst_225 = arith.constant dense<0.000000e+00> : vector<2x32xf32>
    %649 = tpu.matmul %597, %648, %cst_225 {dimension_numbers = #tpu.dot_dimension_numbers<[1], [0], [0], [1], [0, 0, 1, 1], [], []>} : vector<2x32xf32>, vector<32x32xf32>, vector<2x32xf32> -> vector<2x32xf32>
    %650 = vector.extract_strided_slice %7 {offsets = [0, 0, 0], sizes = [1, 1, 32], strides = [1, 1, 1]} : vector<3x1x32xf32> to vector<1x1x32xf32>
    %651 = vector.shape_cast %650 : vector<1x1x32xf32> to vector<1x32xf32>
    %652 = vector.broadcast %651 : vector<1x32xf32> to vector<2x32xf32>
    %653 = arith.addf %649, %652 : vector<2x32xf32>
    %654 = vector.extract_strided_slice %5 {offsets = [1, 0, 0], sizes = [1, 32, 32], strides = [1, 1, 1]} : vector<3x32x32xf32> to vector<1x32x32xf32>
    %655 = vector.shape_cast %654 : vector<1x32x32xf32> to vector<32x32xf32>
    %cst_226 = arith.constant dense<0.000000e+00> : vector<2x32xf32>
    %656 = tpu.matmul %597, %655, %cst_226 {dimension_numbers = #tpu.dot_dimension_numbers<[1], [0], [0], [1], [0, 0, 1, 1], [], []>} : vector<2x32xf32>, vector<32x32xf32>, vector<2x32xf32> -> vector<2x32xf32>
    %657 = vector.extract_strided_slice %7 {offsets = [1, 0, 0], sizes = [1, 1, 32], strides = [1, 1, 1]} : vector<3x1x32xf32> to vector<1x1x32xf32>
    %658 = vector.shape_cast %657 : vector<1x1x32xf32> to vector<1x32xf32>
    %659 = vector.broadcast %658 : vector<1x32xf32> to vector<2x32xf32>
    %660 = arith.addf %656, %659 : vector<2x32xf32>
    %661 = vector.extract_strided_slice %5 {offsets = [2, 0, 0], sizes = [1, 32, 32], strides = [1, 1, 1]} : vector<3x32x32xf32> to vector<1x32x32xf32>
    %662 = vector.shape_cast %661 : vector<1x32x32xf32> to vector<32x32xf32>
    %cst_227 = arith.constant dense<0.000000e+00> : vector<2x32xf32>
    %663 = tpu.matmul %597, %662, %cst_227 {dimension_numbers = #tpu.dot_dimension_numbers<[1], [0], [0], [1], [0, 0, 1, 1], [], []>} : vector<2x32xf32>, vector<32x32xf32>, vector<2x32xf32> -> vector<2x32xf32>
    %664 = vector.extract_strided_slice %7 {offsets = [2, 0, 0], sizes = [1, 1, 32], strides = [1, 1, 1]} : vector<3x1x32xf32> to vector<1x1x32xf32>
    %665 = vector.shape_cast %664 : vector<1x1x32xf32> to vector<1x32xf32>
    %666 = vector.broadcast %665 : vector<1x32xf32> to vector<2x32xf32>
    %667 = arith.addf %663, %666 : vector<2x32xf32>
    %668 = arith.addf %644, %653 : vector<2x32xf32>
    %669 = arith.negf %668 : vector<2x32xf32>
    %670 = math.exp %669 : vector<2x32xf32>
    %cst_228 = arith.constant 1.000000e+00 : f32
    %671 = vector.broadcast %cst_228 : f32 to vector<2x32xf32>
    %672 = arith.addf %671, %670 : vector<2x32xf32>
    %673 = arith.divf %671, %672 : vector<2x32xf32>
    %674 = arith.addf %645, %660 : vector<2x32xf32>
    %675 = arith.negf %674 : vector<2x32xf32>
    %676 = math.exp %675 : vector<2x32xf32>
    %cst_229 = arith.constant 1.000000e+00 : f32
    %677 = vector.broadcast %cst_229 : f32 to vector<2x32xf32>
    %678 = arith.addf %677, %676 : vector<2x32xf32>
    %679 = arith.divf %677, %678 : vector<2x32xf32>
    %680 = arith.mulf %673, %667 : vector<2x32xf32>
    %681 = arith.addf %646, %680 : vector<2x32xf32>
    %682 = math.tanh %681 : vector<2x32xf32>
    %cst_230 = arith.constant 1.000000e+00 : f32
    %683 = vector.broadcast %cst_230 : f32 to vector<2x32xf32>
    %684 = arith.subf %683, %679 : vector<2x32xf32>
    %685 = arith.mulf %684, %682 : vector<2x32xf32>
    %686 = arith.mulf %679, %597 : vector<2x32xf32>
    %687 = arith.addf %685, %686 : vector<2x32xf32>
    %c2_231 = arith.constant 2 : index
    %c0_232 = arith.constant 0 : index
    %688 = vector.load %arg22[%c2_231, %c0_232] : memref<16x32xf32, #tpu.memory_space<vmem>>, vector<2x32xf32>
    tpu.vector_store %arg22[%c2_231, %c0_232], %687 {strides = array<i32>} : memref<16x32xf32, #tpu.memory_space<vmem>>, vector<2x32xf32>,
    %c14_233 = arith.constant 14 : index
    %c0_234 = arith.constant 0 : index
    %689 = vector.load %arg23[%c14_233, %c0_234] : memref<16x32xf32, #tpu.memory_space<vmem>>, vector<2x32xf32>
    %c14_235 = arith.constant 14 : index
    %c0_236 = arith.constant 0 : index
    %690 = vector.load %arg24[%c14_235, %c0_236] : memref<16x32xf32, #tpu.memory_space<vmem>>, vector<2x32xf32>
    %c14_237 = arith.constant 14 : index
    %c0_238 = arith.constant 0 : index
    %691 = vector.load %arg25[%c14_237, %c0_238] : memref<16x32xf32, #tpu.memory_space<vmem>>, vector<2x32xf32>
    %692 = vector.extract_strided_slice %1 {offsets = [0, 0, 0], sizes = [1, 32, 32], strides = [1, 1, 1]} : vector<3x32x32xf32> to vector<1x32x32xf32>
    %693 = vector.shape_cast %692 : vector<1x32x32xf32> to vector<32x32xf32>
    %cst_239 = arith.constant dense<0.000000e+00> : vector<2x32xf32>
    %694 = tpu.matmul %642, %693, %cst_239 {dimension_numbers = #tpu.dot_dimension_numbers<[1], [0], [0], [1], [0, 0, 1, 1], [], []>} : vector<2x32xf32>, vector<32x32xf32>, vector<2x32xf32> -> vector<2x32xf32>
    %695 = vector.extract_strided_slice %3 {offsets = [0, 0, 0], sizes = [1, 1, 32], strides = [1, 1, 1]} : vector<3x1x32xf32> to vector<1x1x32xf32>
    %696 = vector.shape_cast %695 : vector<1x1x32xf32> to vector<1x32xf32>
    %697 = vector.broadcast %696 : vector<1x32xf32> to vector<2x32xf32>
    %698 = arith.addf %694, %697 : vector<2x32xf32>
    %699 = vector.extract_strided_slice %1 {offsets = [1, 0, 0], sizes = [1, 32, 32], strides = [1, 1, 1]} : vector<3x32x32xf32> to vector<1x32x32xf32>
    %700 = vector.shape_cast %699 : vector<1x32x32xf32> to vector<32x32xf32>
    %cst_240 = arith.constant dense<0.000000e+00> : vector<2x32xf32>
    %701 = tpu.matmul %642, %700, %cst_240 {dimension_numbers = #tpu.dot_dimension_numbers<[1], [0], [0], [1], [0, 0, 1, 1], [], []>} : vector<2x32xf32>, vector<32x32xf32>, vector<2x32xf32> -> vector<2x32xf32>
    %702 = vector.extract_strided_slice %3 {offsets = [1, 0, 0], sizes = [1, 1, 32], strides = [1, 1, 1]} : vector<3x1x32xf32> to vector<1x1x32xf32>
    %703 = vector.shape_cast %702 : vector<1x1x32xf32> to vector<1x32xf32>
    %704 = vector.broadcast %703 : vector<1x32xf32> to vector<2x32xf32>
    %705 = arith.addf %701, %704 : vector<2x32xf32>
    %706 = vector.extract_strided_slice %1 {offsets = [2, 0, 0], sizes = [1, 32, 32], strides = [1, 1, 1]} : vector<3x32x32xf32> to vector<1x32x32xf32>
    %707 = vector.shape_cast %706 : vector<1x32x32xf32> to vector<32x32xf32>
    %cst_241 = arith.constant dense<0.000000e+00> : vector<2x32xf32>
    %708 = tpu.matmul %642, %707, %cst_241 {dimension_numbers = #tpu.dot_dimension_numbers<[1], [0], [0], [1], [0, 0, 1, 1], [], []>} : vector<2x32xf32>, vector<32x32xf32>, vector<2x32xf32> -> vector<2x32xf32>
    %709 = vector.extract_strided_slice %3 {offsets = [2, 0, 0], sizes = [1, 1, 32], strides = [1, 1, 1]} : vector<3x1x32xf32> to vector<1x1x32xf32>
    %710 = vector.shape_cast %709 : vector<1x1x32xf32> to vector<1x32xf32>
    %711 = vector.broadcast %710 : vector<1x32xf32> to vector<2x32xf32>
    %712 = arith.addf %708, %711 : vector<2x32xf32>
    %713 = arith.addf %689, %698 : vector<2x32xf32>
    %714 = arith.negf %713 : vector<2x32xf32>
    %715 = math.exp %714 : vector<2x32xf32>
    %cst_242 = arith.constant 1.000000e+00 : f32
    %716 = vector.broadcast %cst_242 : f32 to vector<2x32xf32>
    %717 = arith.addf %716, %715 : vector<2x32xf32>
    %718 = arith.divf %716, %717 : vector<2x32xf32>
    %719 = arith.addf %690, %705 : vector<2x32xf32>
    %720 = arith.negf %719 : vector<2x32xf32>
    %721 = math.exp %720 : vector<2x32xf32>
    %cst_243 = arith.constant 1.000000e+00 : f32
    %722 = vector.broadcast %cst_243 : f32 to vector<2x32xf32>
    %723 = arith.addf %722, %721 : vector<2x32xf32>
    %724 = arith.divf %722, %723 : vector<2x32xf32>
    %725 = arith.mulf %718, %712 : vector<2x32xf32>
    %726 = arith.addf %691, %725 : vector<2x32xf32>
    %727 = math.tanh %726 : vector<2x32xf32>
    %cst_244 = arith.constant 1.000000e+00 : f32
    %728 = vector.broadcast %cst_244 : f32 to vector<2x32xf32>
    %729 = arith.subf %728, %724 : vector<2x32xf32>
    %730 = arith.mulf %729, %727 : vector<2x32xf32>
    %731 = arith.mulf %724, %642 : vector<2x32xf32>
    %732 = arith.addf %730, %731 : vector<2x32xf32>
    %c14_245 = arith.constant 14 : index
    %c0_246 = arith.constant 0 : index
    %733 = vector.load %arg21[%c14_245, %c0_246] : memref<16x32xf32, #tpu.memory_space<vmem>>, vector<2x32xf32>
    tpu.vector_store %arg21[%c14_245, %c0_246], %732 {strides = array<i32>} : memref<16x32xf32, #tpu.memory_space<vmem>>, vector<2x32xf32>,
    %c0_247 = arith.constant 0 : index
    %c0_248 = arith.constant 0 : index
    %734 = vector.load %arg26[%c0_247, %c0_248] : memref<16x32xf32, #tpu.memory_space<vmem>>, vector<2x32xf32>
    %c0_249 = arith.constant 0 : index
    %c0_250 = arith.constant 0 : index
    %735 = vector.load %arg27[%c0_249, %c0_250] : memref<16x32xf32, #tpu.memory_space<vmem>>, vector<2x32xf32>
    %c0_251 = arith.constant 0 : index
    %c0_252 = arith.constant 0 : index
    %736 = vector.load %arg28[%c0_251, %c0_252] : memref<16x32xf32, #tpu.memory_space<vmem>>, vector<2x32xf32>
    %737 = vector.extract_strided_slice %5 {offsets = [0, 0, 0], sizes = [1, 32, 32], strides = [1, 1, 1]} : vector<3x32x32xf32> to vector<1x32x32xf32>
    %738 = vector.shape_cast %737 : vector<1x32x32xf32> to vector<32x32xf32>
    %cst_253 = arith.constant dense<0.000000e+00> : vector<2x32xf32>
    %739 = tpu.matmul %687, %738, %cst_253 {dimension_numbers = #tpu.dot_dimension_numbers<[1], [0], [0], [1], [0, 0, 1, 1], [], []>} : vector<2x32xf32>, vector<32x32xf32>, vector<2x32xf32> -> vector<2x32xf32>
    %740 = vector.extract_strided_slice %7 {offsets = [0, 0, 0], sizes = [1, 1, 32], strides = [1, 1, 1]} : vector<3x1x32xf32> to vector<1x1x32xf32>
    %741 = vector.shape_cast %740 : vector<1x1x32xf32> to vector<1x32xf32>
    %742 = vector.broadcast %741 : vector<1x32xf32> to vector<2x32xf32>
    %743 = arith.addf %739, %742 : vector<2x32xf32>
    %744 = vector.extract_strided_slice %5 {offsets = [1, 0, 0], sizes = [1, 32, 32], strides = [1, 1, 1]} : vector<3x32x32xf32> to vector<1x32x32xf32>
    %745 = vector.shape_cast %744 : vector<1x32x32xf32> to vector<32x32xf32>
    %cst_254 = arith.constant dense<0.000000e+00> : vector<2x32xf32>
    %746 = tpu.matmul %687, %745, %cst_254 {dimension_numbers = #tpu.dot_dimension_numbers<[1], [0], [0], [1], [0, 0, 1, 1], [], []>} : vector<2x32xf32>, vector<32x32xf32>, vector<2x32xf32> -> vector<2x32xf32>
    %747 = vector.extract_strided_slice %7 {offsets = [1, 0, 0], sizes = [1, 1, 32], strides = [1, 1, 1]} : vector<3x1x32xf32> to vector<1x1x32xf32>
    %748 = vector.shape_cast %747 : vector<1x1x32xf32> to vector<1x32xf32>
    %749 = vector.broadcast %748 : vector<1x32xf32> to vector<2x32xf32>
    %750 = arith.addf %746, %749 : vector<2x32xf32>
    %751 = vector.extract_strided_slice %5 {offsets = [2, 0, 0], sizes = [1, 32, 32], strides = [1, 1, 1]} : vector<3x32x32xf32> to vector<1x32x32xf32>
    %752 = vector.shape_cast %751 : vector<1x32x32xf32> to vector<32x32xf32>
    %cst_255 = arith.constant dense<0.000000e+00> : vector<2x32xf32>
    %753 = tpu.matmul %687, %752, %cst_255 {dimension_numbers = #tpu.dot_dimension_numbers<[1], [0], [0], [1], [0, 0, 1, 1], [], []>} : vector<2x32xf32>, vector<32x32xf32>, vector<2x32xf32> -> vector<2x32xf32>
    %754 = vector.extract_strided_slice %7 {offsets = [2, 0, 0], sizes = [1, 1, 32], strides = [1, 1, 1]} : vector<3x1x32xf32> to vector<1x1x32xf32>
    %755 = vector.shape_cast %754 : vector<1x1x32xf32> to vector<1x32xf32>
    %756 = vector.broadcast %755 : vector<1x32xf32> to vector<2x32xf32>
    %757 = arith.addf %753, %756 : vector<2x32xf32>
    %758 = arith.addf %734, %743 : vector<2x32xf32>
    %759 = arith.negf %758 : vector<2x32xf32>
    %760 = math.exp %759 : vector<2x32xf32>
    %cst_256 = arith.constant 1.000000e+00 : f32
    %761 = vector.broadcast %cst_256 : f32 to vector<2x32xf32>
    %762 = arith.addf %761, %760 : vector<2x32xf32>
    %763 = arith.divf %761, %762 : vector<2x32xf32>
    %764 = arith.addf %735, %750 : vector<2x32xf32>
    %765 = arith.negf %764 : vector<2x32xf32>
    %766 = math.exp %765 : vector<2x32xf32>
    %cst_257 = arith.constant 1.000000e+00 : f32
    %767 = vector.broadcast %cst_257 : f32 to vector<2x32xf32>
    %768 = arith.addf %767, %766 : vector<2x32xf32>
    %769 = arith.divf %767, %768 : vector<2x32xf32>
    %770 = arith.mulf %763, %757 : vector<2x32xf32>
    %771 = arith.addf %736, %770 : vector<2x32xf32>
    %772 = math.tanh %771 : vector<2x32xf32>
    %cst_258 = arith.constant 1.000000e+00 : f32
    %773 = vector.broadcast %cst_258 : f32 to vector<2x32xf32>
    %774 = arith.subf %773, %769 : vector<2x32xf32>
    %775 = arith.mulf %774, %772 : vector<2x32xf32>
    %776 = arith.mulf %769, %687 : vector<2x32xf32>
    %777 = arith.addf %775, %776 : vector<2x32xf32>
    %c0_259 = arith.constant 0 : index
    %c0_260 = arith.constant 0 : index
    %778 = vector.load %arg22[%c0_259, %c0_260] : memref<16x32xf32, #tpu.memory_space<vmem>>, vector<2x32xf32>
    tpu.vector_store %arg22[%c0_259, %c0_260], %777 {strides = array<i32>} : memref<16x32xf32, #tpu.memory_space<vmem>>, vector<2x32xf32>,
    %c0_261 = arith.constant 0 : index
    %c0_262 = arith.constant 0 : index
    %c0_263 = arith.constant 0 : index
    %779 = vector.load %arg9[%c0_261, %c0_262, %c0_263] : memref<3x64x32xf32, #tpu.memory_space<vmem>>, vector<3x64x32xf32>
    %c0_264 = arith.constant 0 : index
    %c0_265 = arith.constant 0 : index
    %c0_266 = arith.constant 0 : index
    %780 = vector.load %arg10[%c0_264, %c0_265, %c0_266] : memref<3x32x32xf32, #tpu.memory_space<vmem>>, vector<3x32x32xf32>
    %c0_267 = arith.constant 0 : index
    %c0_268 = arith.constant 0 : index
    %c0_269 = arith.constant 0 : index
    %781 = vector.load %arg11[%c0_267, %c0_268, %c0_269] : memref<3x1x32xf32, #tpu.memory_space<vmem>>, vector<3x1x32xf32>
    %c0_270 = arith.constant 0 : index
    %c0_271 = arith.constant 0 : index
    %c0_272 = arith.constant 0 : index
    %782 = vector.load %arg12[%c0_270, %c0_271, %c0_272] : memref<3x1x32xf32, #tpu.memory_space<vmem>>, vector<3x1x32xf32>
    %c0_273 = arith.constant 0 : index
    %c0_274 = arith.constant 0 : index
    %c0_275 = arith.constant 0 : index
    %783 = vector.load %arg13[%c0_273, %c0_274, %c0_275] : memref<3x64x32xf32, #tpu.memory_space<vmem>>, vector<3x64x32xf32>
    %c0_276 = arith.constant 0 : index
    %c0_277 = arith.constant 0 : index
    %c0_278 = arith.constant 0 : index
    %784 = vector.load %arg14[%c0_276, %c0_277, %c0_278] : memref<3x32x32xf32, #tpu.memory_space<vmem>>, vector<3x32x32xf32>
    %c0_279 = arith.constant 0 : index
    %c0_280 = arith.constant 0 : index
    %c0_281 = arith.constant 0 : index
    %785 = vector.load %arg15[%c0_279, %c0_280, %c0_281] : memref<3x1x32xf32, #tpu.memory_space<vmem>>, vector<3x1x32xf32>
    %c0_282 = arith.constant 0 : index
    %c0_283 = arith.constant 0 : index
    %c0_284 = arith.constant 0 : index
    %786 = vector.load %arg16[%c0_282, %c0_283, %c0_284] : memref<3x1x32xf32, #tpu.memory_space<vmem>>, vector<3x1x32xf32>
    %c0_285 = arith.constant 0 : index
    %c0_286 = arith.constant 0 : index
    %787 = vector.load %arg21[%c0_285, %c0_286] : memref<16x32xf32, #tpu.memory_space<vmem>>, vector<16x32xf32>
    %c0_287 = arith.constant 0 : index
    %c0_288 = arith.constant 0 : index
    %788 = vector.load %arg22[%c0_287, %c0_288] : memref<16x32xf32, #tpu.memory_space<vmem>>, vector<16x32xf32>
    %789 = vector.extract_strided_slice %779 {offsets = [0, 0, 0], sizes = [1, 32, 32], strides = [1, 1, 1]} : vector<3x64x32xf32> to vector<1x32x32xf32>
    %790 = vector.shape_cast %789 : vector<1x32x32xf32> to vector<32x32xf32>
    %cst_289 = arith.constant dense<0.000000e+00> : vector<16x32xf32>
    %791 = tpu.matmul %787, %790, %cst_289 {dimension_numbers = #tpu.dot_dimension_numbers<[1], [0], [0], [1], [0, 0, 1, 1], [], []>} : vector<16x32xf32>, vector<32x32xf32>, vector<16x32xf32> -> vector<16x32xf32>
    %792 = vector.extract_strided_slice %779 {offsets = [0, 32, 0], sizes = [1, 32, 32], strides = [1, 1, 1]} : vector<3x64x32xf32> to vector<1x32x32xf32>
    %793 = vector.shape_cast %792 : vector<1x32x32xf32> to vector<32x32xf32>
    %cst_290 = arith.constant dense<0.000000e+00> : vector<16x32xf32>
    %794 = tpu.matmul %788, %793, %cst_290 {dimension_numbers = #tpu.dot_dimension_numbers<[1], [0], [0], [1], [0, 0, 1, 1], [], []>} : vector<16x32xf32>, vector<32x32xf32>, vector<16x32xf32> -> vector<16x32xf32>
    %795 = arith.addf %791, %794 : vector<16x32xf32>
    %796 = vector.extract_strided_slice %781 {offsets = [0, 0, 0], sizes = [1, 1, 32], strides = [1, 1, 1]} : vector<3x1x32xf32> to vector<1x1x32xf32>
    %797 = vector.shape_cast %796 : vector<1x1x32xf32> to vector<1x32xf32>
    %798 = vector.broadcast %797 : vector<1x32xf32> to vector<16x32xf32>
    %799 = arith.addf %795, %798 : vector<16x32xf32>
    %c0_291 = arith.constant 0 : index
    %c0_292 = arith.constant 0 : index
    %800 = vector.load %arg23[%c0_291, %c0_292] : memref<16x32xf32, #tpu.memory_space<vmem>>, vector<16x32xf32>
    tpu.vector_store %arg23[%c0_291, %c0_292], %799 {strides = array<i32>} : memref<16x32xf32, #tpu.memory_space<vmem>>, vector<16x32xf32>,
    %801 = vector.extract_strided_slice %779 {offsets = [1, 0, 0], sizes = [1, 32, 32], strides = [1, 1, 1]} : vector<3x64x32xf32> to vector<1x32x32xf32>
    %802 = vector.shape_cast %801 : vector<1x32x32xf32> to vector<32x32xf32>
    %cst_293 = arith.constant dense<0.000000e+00> : vector<16x32xf32>
    %803 = tpu.matmul %787, %802, %cst_293 {dimension_numbers = #tpu.dot_dimension_numbers<[1], [0], [0], [1], [0, 0, 1, 1], [], []>} : vector<16x32xf32>, vector<32x32xf32>, vector<16x32xf32> -> vector<16x32xf32>
    %804 = vector.extract_strided_slice %779 {offsets = [1, 32, 0], sizes = [1, 32, 32], strides = [1, 1, 1]} : vector<3x64x32xf32> to vector<1x32x32xf32>
    %805 = vector.shape_cast %804 : vector<1x32x32xf32> to vector<32x32xf32>
    %cst_294 = arith.constant dense<0.000000e+00> : vector<16x32xf32>
    %806 = tpu.matmul %788, %805, %cst_294 {dimension_numbers = #tpu.dot_dimension_numbers<[1], [0], [0], [1], [0, 0, 1, 1], [], []>} : vector<16x32xf32>, vector<32x32xf32>, vector<16x32xf32> -> vector<16x32xf32>
    %807 = arith.addf %803, %806 : vector<16x32xf32>
    %808 = vector.extract_strided_slice %781 {offsets = [1, 0, 0], sizes = [1, 1, 32], strides = [1, 1, 1]} : vector<3x1x32xf32> to vector<1x1x32xf32>
    %809 = vector.shape_cast %808 : vector<1x1x32xf32> to vector<1x32xf32>
    %810 = vector.broadcast %809 : vector<1x32xf32> to vector<16x32xf32>
    %811 = arith.addf %807, %810 : vector<16x32xf32>
    %c0_295 = arith.constant 0 : index
    %c0_296 = arith.constant 0 : index
    %812 = vector.load %arg24[%c0_295, %c0_296] : memref<16x32xf32, #tpu.memory_space<vmem>>, vector<16x32xf32>
    tpu.vector_store %arg24[%c0_295, %c0_296], %811 {strides = array<i32>} : memref<16x32xf32, #tpu.memory_space<vmem>>, vector<16x32xf32>,
    %813 = vector.extract_strided_slice %779 {offsets = [2, 0, 0], sizes = [1, 32, 32], strides = [1, 1, 1]} : vector<3x64x32xf32> to vector<1x32x32xf32>
    %814 = vector.shape_cast %813 : vector<1x32x32xf32> to vector<32x32xf32>
    %cst_297 = arith.constant dense<0.000000e+00> : vector<16x32xf32>
    %815 = tpu.matmul %787, %814, %cst_297 {dimension_numbers = #tpu.dot_dimension_numbers<[1], [0], [0], [1], [0, 0, 1, 1], [], []>} : vector<16x32xf32>, vector<32x32xf32>, vector<16x32xf32> -> vector<16x32xf32>
    %816 = vector.extract_strided_slice %779 {offsets = [2, 32, 0], sizes = [1, 32, 32], strides = [1, 1, 1]} : vector<3x64x32xf32> to vector<1x32x32xf32>
    %817 = vector.shape_cast %816 : vector<1x32x32xf32> to vector<32x32xf32>
    %cst_298 = arith.constant dense<0.000000e+00> : vector<16x32xf32>
    %818 = tpu.matmul %788, %817, %cst_298 {dimension_numbers = #tpu.dot_dimension_numbers<[1], [0], [0], [1], [0, 0, 1, 1], [], []>} : vector<16x32xf32>, vector<32x32xf32>, vector<16x32xf32> -> vector<16x32xf32>
    %819 = arith.addf %815, %818 : vector<16x32xf32>
    %820 = vector.extract_strided_slice %781 {offsets = [2, 0, 0], sizes = [1, 1, 32], strides = [1, 1, 1]} : vector<3x1x32xf32> to vector<1x1x32xf32>
    %821 = vector.shape_cast %820 : vector<1x1x32xf32> to vector<1x32xf32>
    %822 = vector.broadcast %821 : vector<1x32xf32> to vector<16x32xf32>
    %823 = arith.addf %819, %822 : vector<16x32xf32>
    %c0_299 = arith.constant 0 : index
    %c0_300 = arith.constant 0 : index
    %824 = vector.load %arg25[%c0_299, %c0_300] : memref<16x32xf32, #tpu.memory_space<vmem>>, vector<16x32xf32>
    tpu.vector_store %arg25[%c0_299, %c0_300], %823 {strides = array<i32>} : memref<16x32xf32, #tpu.memory_space<vmem>>, vector<16x32xf32>,
    %825 = vector.extract_strided_slice %783 {offsets = [0, 0, 0], sizes = [1, 32, 32], strides = [1, 1, 1]} : vector<3x64x32xf32> to vector<1x32x32xf32>
    %826 = vector.shape_cast %825 : vector<1x32x32xf32> to vector<32x32xf32>
    %cst_301 = arith.constant dense<0.000000e+00> : vector<16x32xf32>
    %827 = tpu.matmul %787, %826, %cst_301 {dimension_numbers = #tpu.dot_dimension_numbers<[1], [0], [0], [1], [0, 0, 1, 1], [], []>} : vector<16x32xf32>, vector<32x32xf32>, vector<16x32xf32> -> vector<16x32xf32>
    %828 = vector.extract_strided_slice %783 {offsets = [0, 32, 0], sizes = [1, 32, 32], strides = [1, 1, 1]} : vector<3x64x32xf32> to vector<1x32x32xf32>
    %829 = vector.shape_cast %828 : vector<1x32x32xf32> to vector<32x32xf32>
    %cst_302 = arith.constant dense<0.000000e+00> : vector<16x32xf32>
    %830 = tpu.matmul %788, %829, %cst_302 {dimension_numbers = #tpu.dot_dimension_numbers<[1], [0], [0], [1], [0, 0, 1, 1], [], []>} : vector<16x32xf32>, vector<32x32xf32>, vector<16x32xf32> -> vector<16x32xf32>
    %831 = arith.addf %827, %830 : vector<16x32xf32>
    %832 = vector.extract_strided_slice %785 {offsets = [0, 0, 0], sizes = [1, 1, 32], strides = [1, 1, 1]} : vector<3x1x32xf32> to vector<1x1x32xf32>
    %833 = vector.shape_cast %832 : vector<1x1x32xf32> to vector<1x32xf32>
    %834 = vector.broadcast %833 : vector<1x32xf32> to vector<16x32xf32>
    %835 = arith.addf %831, %834 : vector<16x32xf32>
    %c0_303 = arith.constant 0 : index
    %c0_304 = arith.constant 0 : index
    %836 = vector.load %arg26[%c0_303, %c0_304] : memref<16x32xf32, #tpu.memory_space<vmem>>, vector<16x32xf32>
    tpu.vector_store %arg26[%c0_303, %c0_304], %835 {strides = array<i32>} : memref<16x32xf32, #tpu.memory_space<vmem>>, vector<16x32xf32>,
    %837 = vector.extract_strided_slice %783 {offsets = [1, 0, 0], sizes = [1, 32, 32], strides = [1, 1, 1]} : vector<3x64x32xf32> to vector<1x32x32xf32>
    %838 = vector.shape_cast %837 : vector<1x32x32xf32> to vector<32x32xf32>
    %cst_305 = arith.constant dense<0.000000e+00> : vector<16x32xf32>
    %839 = tpu.matmul %787, %838, %cst_305 {dimension_numbers = #tpu.dot_dimension_numbers<[1], [0], [0], [1], [0, 0, 1, 1], [], []>} : vector<16x32xf32>, vector<32x32xf32>, vector<16x32xf32> -> vector<16x32xf32>
    %840 = vector.extract_strided_slice %783 {offsets = [1, 32, 0], sizes = [1, 32, 32], strides = [1, 1, 1]} : vector<3x64x32xf32> to vector<1x32x32xf32>
    %841 = vector.shape_cast %840 : vector<1x32x32xf32> to vector<32x32xf32>
    %cst_306 = arith.constant dense<0.000000e+00> : vector<16x32xf32>
    %842 = tpu.matmul %788, %841, %cst_306 {dimension_numbers = #tpu.dot_dimension_numbers<[1], [0], [0], [1], [0, 0, 1, 1], [], []>} : vector<16x32xf32>, vector<32x32xf32>, vector<16x32xf32> -> vector<16x32xf32>
    %843 = arith.addf %839, %842 : vector<16x32xf32>
    %844 = vector.extract_strided_slice %785 {offsets = [1, 0, 0], sizes = [1, 1, 32], strides = [1, 1, 1]} : vector<3x1x32xf32> to vector<1x1x32xf32>
    %845 = vector.shape_cast %844 : vector<1x1x32xf32> to vector<1x32xf32>
    %846 = vector.broadcast %845 : vector<1x32xf32> to vector<16x32xf32>
    %847 = arith.addf %843, %846 : vector<16x32xf32>
    %c0_307 = arith.constant 0 : index
    %c0_308 = arith.constant 0 : index
    %848 = vector.load %arg27[%c0_307, %c0_308] : memref<16x32xf32, #tpu.memory_space<vmem>>, vector<16x32xf32>
    tpu.vector_store %arg27[%c0_307, %c0_308], %847 {strides = array<i32>} : memref<16x32xf32, #tpu.memory_space<vmem>>, vector<16x32xf32>,
    %849 = vector.extract_strided_slice %783 {offsets = [2, 0, 0], sizes = [1, 32, 32], strides = [1, 1, 1]} : vector<3x64x32xf32> to vector<1x32x32xf32>
    %850 = vector.shape_cast %849 : vector<1x32x32xf32> to vector<32x32xf32>
    %cst_309 = arith.constant dense<0.000000e+00> : vector<16x32xf32>
    %851 = tpu.matmul %787, %850, %cst_309 {dimension_numbers = #tpu.dot_dimension_numbers<[1], [0], [0], [1], [0, 0, 1, 1], [], []>} : vector<16x32xf32>, vector<32x32xf32>, vector<16x32xf32> -> vector<16x32xf32>
    %852 = vector.extract_strided_slice %783 {offsets = [2, 32, 0], sizes = [1, 32, 32], strides = [1, 1, 1]} : vector<3x64x32xf32> to vector<1x32x32xf32>
    %853 = vector.shape_cast %852 : vector<1x32x32xf32> to vector<32x32xf32>
    %cst_310 = arith.constant dense<0.000000e+00> : vector<16x32xf32>
    %854 = tpu.matmul %788, %853, %cst_310 {dimension_numbers = #tpu.dot_dimension_numbers<[1], [0], [0], [1], [0, 0, 1, 1], [], []>} : vector<16x32xf32>, vector<32x32xf32>, vector<16x32xf32> -> vector<16x32xf32>
    %855 = arith.addf %851, %854 : vector<16x32xf32>
    %856 = vector.extract_strided_slice %785 {offsets = [2, 0, 0], sizes = [1, 1, 32], strides = [1, 1, 1]} : vector<3x1x32xf32> to vector<1x1x32xf32>
    %857 = vector.shape_cast %856 : vector<1x1x32xf32> to vector<1x32xf32>
    %858 = vector.broadcast %857 : vector<1x32xf32> to vector<16x32xf32>
    %859 = arith.addf %855, %858 : vector<16x32xf32>
    %c0_311 = arith.constant 0 : index
    %c0_312 = arith.constant 0 : index
    %860 = vector.load %arg28[%c0_311, %c0_312] : memref<16x32xf32, #tpu.memory_space<vmem>>, vector<16x32xf32>
    tpu.vector_store %arg28[%c0_311, %c0_312], %859 {strides = array<i32>} : memref<16x32xf32, #tpu.memory_space<vmem>>, vector<16x32xf32>,
    %cst_313 = arith.constant 0.000000e+00 : f32
    %861 = vector.broadcast %cst_313 : f32 to vector<2x32xf32>
    %cst_314 = arith.constant 0.000000e+00 : f32
    %862 = vector.broadcast %cst_314 : f32 to vector<2x32xf32>
    %c0_315 = arith.constant 0 : index
    %c0_316 = arith.constant 0 : index
    %863 = vector.load %arg23[%c0_315, %c0_316] : memref<16x32xf32, #tpu.memory_space<vmem>>, vector<2x32xf32>
    %c0_317 = arith.constant 0 : index
    %c0_318 = arith.constant 0 : index
    %864 = vector.load %arg24[%c0_317, %c0_318] : memref<16x32xf32, #tpu.memory_space<vmem>>, vector<2x32xf32>
    %c0_319 = arith.constant 0 : index
    %c0_320 = arith.constant 0 : index
    %865 = vector.load %arg25[%c0_319, %c0_320] : memref<16x32xf32, #tpu.memory_space<vmem>>, vector<2x32xf32>
    %866 = vector.extract_strided_slice %780 {offsets = [0, 0, 0], sizes = [1, 32, 32], strides = [1, 1, 1]} : vector<3x32x32xf32> to vector<1x32x32xf32>
    %867 = vector.shape_cast %866 : vector<1x32x32xf32> to vector<32x32xf32>
    %cst_321 = arith.constant dense<0.000000e+00> : vector<2x32xf32>
    %868 = tpu.matmul %861, %867, %cst_321 {dimension_numbers = #tpu.dot_dimension_numbers<[1], [0], [0], [1], [0, 0, 1, 1], [], []>} : vector<2x32xf32>, vector<32x32xf32>, vector<2x32xf32> -> vector<2x32xf32>
    %869 = vector.extract_strided_slice %782 {offsets = [0, 0, 0], sizes = [1, 1, 32], strides = [1, 1, 1]} : vector<3x1x32xf32> to vector<1x1x32xf32>
    %870 = vector.shape_cast %869 : vector<1x1x32xf32> to vector<1x32xf32>
    %871 = vector.broadcast %870 : vector<1x32xf32> to vector<2x32xf32>
    %872 = arith.addf %868, %871 : vector<2x32xf32>
    %873 = vector.extract_strided_slice %780 {offsets = [1, 0, 0], sizes = [1, 32, 32], strides = [1, 1, 1]} : vector<3x32x32xf32> to vector<1x32x32xf32>
    %874 = vector.shape_cast %873 : vector<1x32x32xf32> to vector<32x32xf32>
    %cst_322 = arith.constant dense<0.000000e+00> : vector<2x32xf32>
    %875 = tpu.matmul %861, %874, %cst_322 {dimension_numbers = #tpu.dot_dimension_numbers<[1], [0], [0], [1], [0, 0, 1, 1], [], []>} : vector<2x32xf32>, vector<32x32xf32>, vector<2x32xf32> -> vector<2x32xf32>
    %876 = vector.extract_strided_slice %782 {offsets = [1, 0, 0], sizes = [1, 1, 32], strides = [1, 1, 1]} : vector<3x1x32xf32> to vector<1x1x32xf32>
    %877 = vector.shape_cast %876 : vector<1x1x32xf32> to vector<1x32xf32>
    %878 = vector.broadcast %877 : vector<1x32xf32> to vector<2x32xf32>
    %879 = arith.addf %875, %878 : vector<2x32xf32>
    %880 = vector.extract_strided_slice %780 {offsets = [2, 0, 0], sizes = [1, 32, 32], strides = [1, 1, 1]} : vector<3x32x32xf32> to vector<1x32x32xf32>
    %881 = vector.shape_cast %880 : vector<1x32x32xf32> to vector<32x32xf32>
    %cst_323 = arith.constant dense<0.000000e+00> : vector<2x32xf32>
    %882 = tpu.matmul %861, %881, %cst_323 {dimension_numbers = #tpu.dot_dimension_numbers<[1], [0], [0], [1], [0, 0, 1, 1], [], []>} : vector<2x32xf32>, vector<32x32xf32>, vector<2x32xf32> -> vector<2x32xf32>
    %883 = vector.extract_strided_slice %782 {offsets = [2, 0, 0], sizes = [1, 1, 32], strides = [1, 1, 1]} : vector<3x1x32xf32> to vector<1x1x32xf32>
    %884 = vector.shape_cast %883 : vector<1x1x32xf32> to vector<1x32xf32>
    %885 = vector.broadcast %884 : vector<1x32xf32> to vector<2x32xf32>
    %886 = arith.addf %882, %885 : vector<2x32xf32>
    %887 = arith.addf %863, %872 : vector<2x32xf32>
    %888 = arith.negf %887 : vector<2x32xf32>
    %889 = math.exp %888 : vector<2x32xf32>
    %cst_324 = arith.constant 1.000000e+00 : f32
    %890 = vector.broadcast %cst_324 : f32 to vector<2x32xf32>
    %891 = arith.addf %890, %889 : vector<2x32xf32>
    %892 = arith.divf %890, %891 : vector<2x32xf32>
    %893 = arith.addf %864, %879 : vector<2x32xf32>
    %894 = arith.negf %893 : vector<2x32xf32>
    %895 = math.exp %894 : vector<2x32xf32>
    %cst_325 = arith.constant 1.000000e+00 : f32
    %896 = vector.broadcast %cst_325 : f32 to vector<2x32xf32>
    %897 = arith.addf %896, %895 : vector<2x32xf32>
    %898 = arith.divf %896, %897 : vector<2x32xf32>
    %899 = arith.mulf %892, %886 : vector<2x32xf32>
    %900 = arith.addf %865, %899 : vector<2x32xf32>
    %901 = math.tanh %900 : vector<2x32xf32>
    %cst_326 = arith.constant 1.000000e+00 : f32
    %902 = vector.broadcast %cst_326 : f32 to vector<2x32xf32>
    %903 = arith.subf %902, %898 : vector<2x32xf32>
    %904 = arith.mulf %903, %901 : vector<2x32xf32>
    %905 = arith.mulf %898, %861 : vector<2x32xf32>
    %906 = arith.addf %904, %905 : vector<2x32xf32>
    %c0_327 = arith.constant 0 : index
    %c0_328 = arith.constant 0 : index
    %907 = vector.load %arg21[%c0_327, %c0_328] : memref<16x32xf32, #tpu.memory_space<vmem>>, vector<2x32xf32>
    tpu.vector_store %arg21[%c0_327, %c0_328], %906 {strides = array<i32>} : memref<16x32xf32, #tpu.memory_space<vmem>>, vector<2x32xf32>,
    %c14_329 = arith.constant 14 : index
    %c0_330 = arith.constant 0 : index
    %908 = vector.load %arg26[%c14_329, %c0_330] : memref<16x32xf32, #tpu.memory_space<vmem>>, vector<2x32xf32>
    %c14_331 = arith.constant 14 : index
    %c0_332 = arith.constant 0 : index
    %909 = vector.load %arg27[%c14_331, %c0_332] : memref<16x32xf32, #tpu.memory_space<vmem>>, vector<2x32xf32>
    %c14_333 = arith.constant 14 : index
    %c0_334 = arith.constant 0 : index
    %910 = vector.load %arg28[%c14_333, %c0_334] : memref<16x32xf32, #tpu.memory_space<vmem>>, vector<2x32xf32>
    %911 = vector.extract_strided_slice %784 {offsets = [0, 0, 0], sizes = [1, 32, 32], strides = [1, 1, 1]} : vector<3x32x32xf32> to vector<1x32x32xf32>
    %912 = vector.shape_cast %911 : vector<1x32x32xf32> to vector<32x32xf32>
    %cst_335 = arith.constant dense<0.000000e+00> : vector<2x32xf32>
    %913 = tpu.matmul %862, %912, %cst_335 {dimension_numbers = #tpu.dot_dimension_numbers<[1], [0], [0], [1], [0, 0, 1, 1], [], []>} : vector<2x32xf32>, vector<32x32xf32>, vector<2x32xf32> -> vector<2x32xf32>
    %914 = vector.extract_strided_slice %786 {offsets = [0, 0, 0], sizes = [1, 1, 32], strides = [1, 1, 1]} : vector<3x1x32xf32> to vector<1x1x32xf32>
    %915 = vector.shape_cast %914 : vector<1x1x32xf32> to vector<1x32xf32>
    %916 = vector.broadcast %915 : vector<1x32xf32> to vector<2x32xf32>
    %917 = arith.addf %913, %916 : vector<2x32xf32>
    %918 = vector.extract_strided_slice %784 {offsets = [1, 0, 0], sizes = [1, 32, 32], strides = [1, 1, 1]} : vector<3x32x32xf32> to vector<1x32x32xf32>
    %919 = vector.shape_cast %918 : vector<1x32x32xf32> to vector<32x32xf32>
    %cst_336 = arith.constant dense<0.000000e+00> : vector<2x32xf32>
    %920 = tpu.matmul %862, %919, %cst_336 {dimension_numbers = #tpu.dot_dimension_numbers<[1], [0], [0], [1], [0, 0, 1, 1], [], []>} : vector<2x32xf32>, vector<32x32xf32>, vector<2x32xf32> -> vector<2x32xf32>
    %921 = vector.extract_strided_slice %786 {offsets = [1, 0, 0], sizes = [1, 1, 32], strides = [1, 1, 1]} : vector<3x1x32xf32> to vector<1x1x32xf32>
    %922 = vector.shape_cast %921 : vector<1x1x32xf32> to vector<1x32xf32>
    %923 = vector.broadcast %922 : vector<1x32xf32> to vector<2x32xf32>
    %924 = arith.addf %920, %923 : vector<2x32xf32>
    %925 = vector.extract_strided_slice %784 {offsets = [2, 0, 0], sizes = [1, 32, 32], strides = [1, 1, 1]} : vector<3x32x32xf32> to vector<1x32x32xf32>
    %926 = vector.shape_cast %925 : vector<1x32x32xf32> to vector<32x32xf32>
    %cst_337 = arith.constant dense<0.000000e+00> : vector<2x32xf32>
    %927 = tpu.matmul %862, %926, %cst_337 {dimension_numbers = #tpu.dot_dimension_numbers<[1], [0], [0], [1], [0, 0, 1, 1], [], []>} : vector<2x32xf32>, vector<32x32xf32>, vector<2x32xf32> -> vector<2x32xf32>
    %928 = vector.extract_strided_slice %786 {offsets = [2, 0, 0], sizes = [1, 1, 32], strides = [1, 1, 1]} : vector<3x1x32xf32> to vector<1x1x32xf32>
    %929 = vector.shape_cast %928 : vector<1x1x32xf32> to vector<1x32xf32>
    %930 = vector.broadcast %929 : vector<1x32xf32> to vector<2x32xf32>
    %931 = arith.addf %927, %930 : vector<2x32xf32>
    %932 = arith.addf %908, %917 : vector<2x32xf32>
    %933 = arith.negf %932 : vector<2x32xf32>
    %934 = math.exp %933 : vector<2x32xf32>
    %cst_338 = arith.constant 1.000000e+00 : f32
    %935 = vector.broadcast %cst_338 : f32 to vector<2x32xf32>
    %936 = arith.addf %935, %934 : vector<2x32xf32>
    %937 = arith.divf %935, %936 : vector<2x32xf32>
    %938 = arith.addf %909, %924 : vector<2x32xf32>
    %939 = arith.negf %938 : vector<2x32xf32>
    %940 = math.exp %939 : vector<2x32xf32>
    %cst_339 = arith.constant 1.000000e+00 : f32
    %941 = vector.broadcast %cst_339 : f32 to vector<2x32xf32>
    %942 = arith.addf %941, %940 : vector<2x32xf32>
    %943 = arith.divf %941, %942 : vector<2x32xf32>
    %944 = arith.mulf %937, %931 : vector<2x32xf32>
    %945 = arith.addf %910, %944 : vector<2x32xf32>
    %946 = math.tanh %945 : vector<2x32xf32>
    %cst_340 = arith.constant 1.000000e+00 : f32
    %947 = vector.broadcast %cst_340 : f32 to vector<2x32xf32>
    %948 = arith.subf %947, %943 : vector<2x32xf32>
    %949 = arith.mulf %948, %946 : vector<2x32xf32>
    %950 = arith.mulf %943, %862 : vector<2x32xf32>
    %951 = arith.addf %949, %950 : vector<2x32xf32>
    %c14_341 = arith.constant 14 : index
    %c0_342 = arith.constant 0 : index
    %952 = vector.load %arg22[%c14_341, %c0_342] : memref<16x32xf32, #tpu.memory_space<vmem>>, vector<2x32xf32>
    tpu.vector_store %arg22[%c14_341, %c0_342], %951 {strides = array<i32>} : memref<16x32xf32, #tpu.memory_space<vmem>>, vector<2x32xf32>,
    %c2_343 = arith.constant 2 : index
    %c0_344 = arith.constant 0 : index
    %953 = vector.load %arg23[%c2_343, %c0_344] : memref<16x32xf32, #tpu.memory_space<vmem>>, vector<2x32xf32>
    %c2_345 = arith.constant 2 : index
    %c0_346 = arith.constant 0 : index
    %954 = vector.load %arg24[%c2_345, %c0_346] : memref<16x32xf32, #tpu.memory_space<vmem>>, vector<2x32xf32>
    %c2_347 = arith.constant 2 : index
    %c0_348 = arith.constant 0 : index
    %955 = vector.load %arg25[%c2_347, %c0_348] : memref<16x32xf32, #tpu.memory_space<vmem>>, vector<2x32xf32>
    %956 = vector.extract_strided_slice %780 {offsets = [0, 0, 0], sizes = [1, 32, 32], strides = [1, 1, 1]} : vector<3x32x32xf32> to vector<1x32x32xf32>
    %957 = vector.shape_cast %956 : vector<1x32x32xf32> to vector<32x32xf32>
    %cst_349 = arith.constant dense<0.000000e+00> : vector<2x32xf32>
    %958 = tpu.matmul %906, %957, %cst_349 {dimension_numbers = #tpu.dot_dimension_numbers<[1], [0], [0], [1], [0, 0, 1, 1], [], []>} : vector<2x32xf32>, vector<32x32xf32>, vector<2x32xf32> -> vector<2x32xf32>
    %959 = vector.extract_strided_slice %782 {offsets = [0, 0, 0], sizes = [1, 1, 32], strides = [1, 1, 1]} : vector<3x1x32xf32> to vector<1x1x32xf32>
    %960 = vector.shape_cast %959 : vector<1x1x32xf32> to vector<1x32xf32>
    %961 = vector.broadcast %960 : vector<1x32xf32> to vector<2x32xf32>
    %962 = arith.addf %958, %961 : vector<2x32xf32>
    %963 = vector.extract_strided_slice %780 {offsets = [1, 0, 0], sizes = [1, 32, 32], strides = [1, 1, 1]} : vector<3x32x32xf32> to vector<1x32x32xf32>
    %964 = vector.shape_cast %963 : vector<1x32x32xf32> to vector<32x32xf32>
    %cst_350 = arith.constant dense<0.000000e+00> : vector<2x32xf32>
    %965 = tpu.matmul %906, %964, %cst_350 {dimension_numbers = #tpu.dot_dimension_numbers<[1], [0], [0], [1], [0, 0, 1, 1], [], []>} : vector<2x32xf32>, vector<32x32xf32>, vector<2x32xf32> -> vector<2x32xf32>
    %966 = vector.extract_strided_slice %782 {offsets = [1, 0, 0], sizes = [1, 1, 32], strides = [1, 1, 1]} : vector<3x1x32xf32> to vector<1x1x32xf32>
    %967 = vector.shape_cast %966 : vector<1x1x32xf32> to vector<1x32xf32>
    %968 = vector.broadcast %967 : vector<1x32xf32> to vector<2x32xf32>
    %969 = arith.addf %965, %968 : vector<2x32xf32>
    %970 = vector.extract_strided_slice %780 {offsets = [2, 0, 0], sizes = [1, 32, 32], strides = [1, 1, 1]} : vector<3x32x32xf32> to vector<1x32x32xf32>
    %971 = vector.shape_cast %970 : vector<1x32x32xf32> to vector<32x32xf32>
    %cst_351 = arith.constant dense<0.000000e+00> : vector<2x32xf32>
    %972 = tpu.matmul %906, %971, %cst_351 {dimension_numbers = #tpu.dot_dimension_numbers<[1], [0], [0], [1], [0, 0, 1, 1], [], []>} : vector<2x32xf32>, vector<32x32xf32>, vector<2x32xf32> -> vector<2x32xf32>
    %973 = vector.extract_strided_slice %782 {offsets = [2, 0, 0], sizes = [1, 1, 32], strides = [1, 1, 1]} : vector<3x1x32xf32> to vector<1x1x32xf32>
    %974 = vector.shape_cast %973 : vector<1x1x32xf32> to vector<1x32xf32>
    %975 = vector.broadcast %974 : vector<1x32xf32> to vector<2x32xf32>
    %976 = arith.addf %972, %975 : vector<2x32xf32>
    %977 = arith.addf %953, %962 : vector<2x32xf32>
    %978 = arith.negf %977 : vector<2x32xf32>
    %979 = math.exp %978 : vector<2x32xf32>
    %cst_352 = arith.constant 1.000000e+00 : f32
    %980 = vector.broadcast %cst_352 : f32 to vector<2x32xf32>
    %981 = arith.addf %980, %979 : vector<2x32xf32>
    %982 = arith.divf %980, %981 : vector<2x32xf32>
    %983 = arith.addf %954, %969 : vector<2x32xf32>
    %984 = arith.negf %983 : vector<2x32xf32>
    %985 = math.exp %984 : vector<2x32xf32>
    %cst_353 = arith.constant 1.000000e+00 : f32
    %986 = vector.broadcast %cst_353 : f32 to vector<2x32xf32>
    %987 = arith.addf %986, %985 : vector<2x32xf32>
    %988 = arith.divf %986, %987 : vector<2x32xf32>
    %989 = arith.mulf %982, %976 : vector<2x32xf32>
    %990 = arith.addf %955, %989 : vector<2x32xf32>
    %991 = math.tanh %990 : vector<2x32xf32>
    %cst_354 = arith.constant 1.000000e+00 : f32
    %992 = vector.broadcast %cst_354 : f32 to vector<2x32xf32>
    %993 = arith.subf %992, %988 : vector<2x32xf32>
    %994 = arith.mulf %993, %991 : vector<2x32xf32>
    %995 = arith.mulf %988, %906 : vector<2x32xf32>
    %996 = arith.addf %994, %995 : vector<2x32xf32>
    %c2_355 = arith.constant 2 : index
    %c0_356 = arith.constant 0 : index
    %997 = vector.load %arg21[%c2_355, %c0_356] : memref<16x32xf32, #tpu.memory_space<vmem>>, vector<2x32xf32>
    tpu.vector_store %arg21[%c2_355, %c0_356], %996 {strides = array<i32>} : memref<16x32xf32, #tpu.memory_space<vmem>>, vector<2x32xf32>,
    %c12_357 = arith.constant 12 : index
    %c0_358 = arith.constant 0 : index
    %998 = vector.load %arg26[%c12_357, %c0_358] : memref<16x32xf32, #tpu.memory_space<vmem>>, vector<2x32xf32>
    %c12_359 = arith.constant 12 : index
    %c0_360 = arith.constant 0 : index
    %999 = vector.load %arg27[%c12_359, %c0_360] : memref<16x32xf32, #tpu.memory_space<vmem>>, vector<2x32xf32>
    %c12_361 = arith.constant 12 : index
    %c0_362 = arith.constant 0 : index
    %1000 = vector.load %arg28[%c12_361, %c0_362] : memref<16x32xf32, #tpu.memory_space<vmem>>, vector<2x32xf32>
    %1001 = vector.extract_strided_slice %784 {offsets = [0, 0, 0], sizes = [1, 32, 32], strides = [1, 1, 1]} : vector<3x32x32xf32> to vector<1x32x32xf32>
    %1002 = vector.shape_cast %1001 : vector<1x32x32xf32> to vector<32x32xf32>
    %cst_363 = arith.constant dense<0.000000e+00> : vector<2x32xf32>
    %1003 = tpu.matmul %951, %1002, %cst_363 {dimension_numbers = #tpu.dot_dimension_numbers<[1], [0], [0], [1], [0, 0, 1, 1], [], []>} : vector<2x32xf32>, vector<32x32xf32>, vector<2x32xf32> -> vector<2x32xf32>
    %1004 = vector.extract_strided_slice %786 {offsets = [0, 0, 0], sizes = [1, 1, 32], strides = [1, 1, 1]} : vector<3x1x32xf32> to vector<1x1x32xf32>
    %1005 = vector.shape_cast %1004 : vector<1x1x32xf32> to vector<1x32xf32>
    %1006 = vector.broadcast %1005 : vector<1x32xf32> to vector<2x32xf32>
    %1007 = arith.addf %1003, %1006 : vector<2x32xf32>
    %1008 = vector.extract_strided_slice %784 {offsets = [1, 0, 0], sizes = [1, 32, 32], strides = [1, 1, 1]} : vector<3x32x32xf32> to vector<1x32x32xf32>
    %1009 = vector.shape_cast %1008 : vector<1x32x32xf32> to vector<32x32xf32>
    %cst_364 = arith.constant dense<0.000000e+00> : vector<2x32xf32>
    %1010 = tpu.matmul %951, %1009, %cst_364 {dimension_numbers = #tpu.dot_dimension_numbers<[1], [0], [0], [1], [0, 0, 1, 1], [], []>} : vector<2x32xf32>, vector<32x32xf32>, vector<2x32xf32> -> vector<2x32xf32>
    %1011 = vector.extract_strided_slice %786 {offsets = [1, 0, 0], sizes = [1, 1, 32], strides = [1, 1, 1]} : vector<3x1x32xf32> to vector<1x1x32xf32>
    %1012 = vector.shape_cast %1011 : vector<1x1x32xf32> to vector<1x32xf32>
    %1013 = vector.broadcast %1012 : vector<1x32xf32> to vector<2x32xf32>
    %1014 = arith.addf %1010, %1013 : vector<2x32xf32>
    %1015 = vector.extract_strided_slice %784 {offsets = [2, 0, 0], sizes = [1, 32, 32], strides = [1, 1, 1]} : vector<3x32x32xf32> to vector<1x32x32xf32>
    %1016 = vector.shape_cast %1015 : vector<1x32x32xf32> to vector<32x32xf32>
    %cst_365 = arith.constant dense<0.000000e+00> : vector<2x32xf32>
    %1017 = tpu.matmul %951, %1016, %cst_365 {dimension_numbers = #tpu.dot_dimension_numbers<[1], [0], [0], [1], [0, 0, 1, 1], [], []>} : vector<2x32xf32>, vector<32x32xf32>, vector<2x32xf32> -> vector<2x32xf32>
    %1018 = vector.extract_strided_slice %786 {offsets = [2, 0, 0], sizes = [1, 1, 32], strides = [1, 1, 1]} : vector<3x1x32xf32> to vector<1x1x32xf32>
    %1019 = vector.shape_cast %1018 : vector<1x1x32xf32> to vector<1x32xf32>
    %1020 = vector.broadcast %1019 : vector<1x32xf32> to vector<2x32xf32>
    %1021 = arith.addf %1017, %1020 : vector<2x32xf32>
    %1022 = arith.addf %998, %1007 : vector<2x32xf32>
    %1023 = arith.negf %1022 : vector<2x32xf32>
    %1024 = math.exp %1023 : vector<2x32xf32>
    %cst_366 = arith.constant 1.000000e+00 : f32
    %1025 = vector.broadcast %cst_366 : f32 to vector<2x32xf32>
    %1026 = arith.addf %1025, %1024 : vector<2x32xf32>
    %1027 = arith.divf %1025, %1026 : vector<2x32xf32>
    %1028 = arith.addf %999, %1014 : vector<2x32xf32>
    %1029 = arith.negf %1028 : vector<2x32xf32>
    %1030 = math.exp %1029 : vector<2x32xf32>
    %cst_367 = arith.constant 1.000000e+00 : f32
    %1031 = vector.broadcast %cst_367 : f32 to vector<2x32xf32>
    %1032 = arith.addf %1031, %1030 : vector<2x32xf32>
    %1033 = arith.divf %1031, %1032 : vector<2x32xf32>
    %1034 = arith.mulf %1027, %1021 : vector<2x32xf32>
    %1035 = arith.addf %1000, %1034 : vector<2x32xf32>
    %1036 = math.tanh %1035 : vector<2x32xf32>
    %cst_368 = arith.constant 1.000000e+00 : f32
    %1037 = vector.broadcast %cst_368 : f32 to vector<2x32xf32>
    %1038 = arith.subf %1037, %1033 : vector<2x32xf32>
    %1039 = arith.mulf %1038, %1036 : vector<2x32xf32>
    %1040 = arith.mulf %1033, %951 : vector<2x32xf32>
    %1041 = arith.addf %1039, %1040 : vector<2x32xf32>
    %c12_369 = arith.constant 12 : index
    %c0_370 = arith.constant 0 : index
    %1042 = vector.load %arg22[%c12_369, %c0_370] : memref<16x32xf32, #tpu.memory_space<vmem>>, vector<2x32xf32>
    tpu.vector_store %arg22[%c12_369, %c0_370], %1041 {strides = array<i32>} : memref<16x32xf32, #tpu.memory_space<vmem>>, vector<2x32xf32>,
    %c4_371 = arith.constant 4 : index
    %c0_372 = arith.constant 0 : index
    %1043 = vector.load %arg23[%c4_371, %c0_372] : memref<16x32xf32, #tpu.memory_space<vmem>>, vector<2x32xf32>
    %c4_373 = arith.constant 4 : index
    %c0_374 = arith.constant 0 : index
    %1044 = vector.load %arg24[%c4_373, %c0_374] : memref<16x32xf32, #tpu.memory_space<vmem>>, vector<2x32xf32>
    %c4_375 = arith.constant 4 : index
    %c0_376 = arith.constant 0 : index
    %1045 = vector.load %arg25[%c4_375, %c0_376] : memref<16x32xf32, #tpu.memory_space<vmem>>, vector<2x32xf32>
    %1046 = vector.extract_strided_slice %780 {offsets = [0, 0, 0], sizes = [1, 32, 32], strides = [1, 1, 1]} : vector<3x32x32xf32> to vector<1x32x32xf32>
    %1047 = vector.shape_cast %1046 : vector<1x32x32xf32> to vector<32x32xf32>
    %cst_377 = arith.constant dense<0.000000e+00> : vector<2x32xf32>
    %1048 = tpu.matmul %996, %1047, %cst_377 {dimension_numbers = #tpu.dot_dimension_numbers<[1], [0], [0], [1], [0, 0, 1, 1], [], []>} : vector<2x32xf32>, vector<32x32xf32>, vector<2x32xf32> -> vector<2x32xf32>
    %1049 = vector.extract_strided_slice %782 {offsets = [0, 0, 0], sizes = [1, 1, 32], strides = [1, 1, 1]} : vector<3x1x32xf32> to vector<1x1x32xf32>
    %1050 = vector.shape_cast %1049 : vector<1x1x32xf32> to vector<1x32xf32>
    %1051 = vector.broadcast %1050 : vector<1x32xf32> to vector<2x32xf32>
    %1052 = arith.addf %1048, %1051 : vector<2x32xf32>
    %1053 = vector.extract_strided_slice %780 {offsets = [1, 0, 0], sizes = [1, 32, 32], strides = [1, 1, 1]} : vector<3x32x32xf32> to vector<1x32x32xf32>
    %1054 = vector.shape_cast %1053 : vector<1x32x32xf32> to vector<32x32xf32>
    %cst_378 = arith.constant dense<0.000000e+00> : vector<2x32xf32>
    %1055 = tpu.matmul %996, %1054, %cst_378 {dimension_numbers = #tpu.dot_dimension_numbers<[1], [0], [0], [1], [0, 0, 1, 1], [], []>} : vector<2x32xf32>, vector<32x32xf32>, vector<2x32xf32> -> vector<2x32xf32>
    %1056 = vector.extract_strided_slice %782 {offsets = [1, 0, 0], sizes = [1, 1, 32], strides = [1, 1, 1]} : vector<3x1x32xf32> to vector<1x1x32xf32>
    %1057 = vector.shape_cast %1056 : vector<1x1x32xf32> to vector<1x32xf32>
    %1058 = vector.broadcast %1057 : vector<1x32xf32> to vector<2x32xf32>
    %1059 = arith.addf %1055, %1058 : vector<2x32xf32>
    %1060 = vector.extract_strided_slice %780 {offsets = [2, 0, 0], sizes = [1, 32, 32], strides = [1, 1, 1]} : vector<3x32x32xf32> to vector<1x32x32xf32>
    %1061 = vector.shape_cast %1060 : vector<1x32x32xf32> to vector<32x32xf32>
    %cst_379 = arith.constant dense<0.000000e+00> : vector<2x32xf32>
    %1062 = tpu.matmul %996, %1061, %cst_379 {dimension_numbers = #tpu.dot_dimension_numbers<[1], [0], [0], [1], [0, 0, 1, 1], [], []>} : vector<2x32xf32>, vector<32x32xf32>, vector<2x32xf32> -> vector<2x32xf32>
    %1063 = vector.extract_strided_slice %782 {offsets = [2, 0, 0], sizes = [1, 1, 32], strides = [1, 1, 1]} : vector<3x1x32xf32> to vector<1x1x32xf32>
    %1064 = vector.shape_cast %1063 : vector<1x1x32xf32> to vector<1x32xf32>
    %1065 = vector.broadcast %1064 : vector<1x32xf32> to vector<2x32xf32>
    %1066 = arith.addf %1062, %1065 : vector<2x32xf32>
    %1067 = arith.addf %1043, %1052 : vector<2x32xf32>
    %1068 = arith.negf %1067 : vector<2x32xf32>
    %1069 = math.exp %1068 : vector<2x32xf32>
    %cst_380 = arith.constant 1.000000e+00 : f32
    %1070 = vector.broadcast %cst_380 : f32 to vector<2x32xf32>
    %1071 = arith.addf %1070, %1069 : vector<2x32xf32>
    %1072 = arith.divf %1070, %1071 : vector<2x32xf32>
    %1073 = arith.addf %1044, %1059 : vector<2x32xf32>
    %1074 = arith.negf %1073 : vector<2x32xf32>
    %1075 = math.exp %1074 : vector<2x32xf32>
    %cst_381 = arith.constant 1.000000e+00 : f32
    %1076 = vector.broadcast %cst_381 : f32 to vector<2x32xf32>
    %1077 = arith.addf %1076, %1075 : vector<2x32xf32>
    %1078 = arith.divf %1076, %1077 : vector<2x32xf32>
    %1079 = arith.mulf %1072, %1066 : vector<2x32xf32>
    %1080 = arith.addf %1045, %1079 : vector<2x32xf32>
    %1081 = math.tanh %1080 : vector<2x32xf32>
    %cst_382 = arith.constant 1.000000e+00 : f32
    %1082 = vector.broadcast %cst_382 : f32 to vector<2x32xf32>
    %1083 = arith.subf %1082, %1078 : vector<2x32xf32>
    %1084 = arith.mulf %1083, %1081 : vector<2x32xf32>
    %1085 = arith.mulf %1078, %996 : vector<2x32xf32>
    %1086 = arith.addf %1084, %1085 : vector<2x32xf32>
    %c4_383 = arith.constant 4 : index
    %c0_384 = arith.constant 0 : index
    %1087 = vector.load %arg21[%c4_383, %c0_384] : memref<16x32xf32, #tpu.memory_space<vmem>>, vector<2x32xf32>
    tpu.vector_store %arg21[%c4_383, %c0_384], %1086 {strides = array<i32>} : memref<16x32xf32, #tpu.memory_space<vmem>>, vector<2x32xf32>,
    %c10_385 = arith.constant 10 : index
    %c0_386 = arith.constant 0 : index
    %1088 = vector.load %arg26[%c10_385, %c0_386] : memref<16x32xf32, #tpu.memory_space<vmem>>, vector<2x32xf32>
    %c10_387 = arith.constant 10 : index
    %c0_388 = arith.constant 0 : index
    %1089 = vector.load %arg27[%c10_387, %c0_388] : memref<16x32xf32, #tpu.memory_space<vmem>>, vector<2x32xf32>
    %c10_389 = arith.constant 10 : index
    %c0_390 = arith.constant 0 : index
    %1090 = vector.load %arg28[%c10_389, %c0_390] : memref<16x32xf32, #tpu.memory_space<vmem>>, vector<2x32xf32>
    %1091 = vector.extract_strided_slice %784 {offsets = [0, 0, 0], sizes = [1, 32, 32], strides = [1, 1, 1]} : vector<3x32x32xf32> to vector<1x32x32xf32>
    %1092 = vector.shape_cast %1091 : vector<1x32x32xf32> to vector<32x32xf32>
    %cst_391 = arith.constant dense<0.000000e+00> : vector<2x32xf32>
    %1093 = tpu.matmul %1041, %1092, %cst_391 {dimension_numbers = #tpu.dot_dimension_numbers<[1], [0], [0], [1], [0, 0, 1, 1], [], []>} : vector<2x32xf32>, vector<32x32xf32>, vector<2x32xf32> -> vector<2x32xf32>
    %1094 = vector.extract_strided_slice %786 {offsets = [0, 0, 0], sizes = [1, 1, 32], strides = [1, 1, 1]} : vector<3x1x32xf32> to vector<1x1x32xf32>
    %1095 = vector.shape_cast %1094 : vector<1x1x32xf32> to vector<1x32xf32>
    %1096 = vector.broadcast %1095 : vector<1x32xf32> to vector<2x32xf32>
    %1097 = arith.addf %1093, %1096 : vector<2x32xf32>
    %1098 = vector.extract_strided_slice %784 {offsets = [1, 0, 0], sizes = [1, 32, 32], strides = [1, 1, 1]} : vector<3x32x32xf32> to vector<1x32x32xf32>
    %1099 = vector.shape_cast %1098 : vector<1x32x32xf32> to vector<32x32xf32>
    %cst_392 = arith.constant dense<0.000000e+00> : vector<2x32xf32>
    %1100 = tpu.matmul %1041, %1099, %cst_392 {dimension_numbers = #tpu.dot_dimension_numbers<[1], [0], [0], [1], [0, 0, 1, 1], [], []>} : vector<2x32xf32>, vector<32x32xf32>, vector<2x32xf32> -> vector<2x32xf32>
    %1101 = vector.extract_strided_slice %786 {offsets = [1, 0, 0], sizes = [1, 1, 32], strides = [1, 1, 1]} : vector<3x1x32xf32> to vector<1x1x32xf32>
    %1102 = vector.shape_cast %1101 : vector<1x1x32xf32> to vector<1x32xf32>
    %1103 = vector.broadcast %1102 : vector<1x32xf32> to vector<2x32xf32>
    %1104 = arith.addf %1100, %1103 : vector<2x32xf32>
    %1105 = vector.extract_strided_slice %784 {offsets = [2, 0, 0], sizes = [1, 32, 32], strides = [1, 1, 1]} : vector<3x32x32xf32> to vector<1x32x32xf32>
    %1106 = vector.shape_cast %1105 : vector<1x32x32xf32> to vector<32x32xf32>
    %cst_393 = arith.constant dense<0.000000e+00> : vector<2x32xf32>
    %1107 = tpu.matmul %1041, %1106, %cst_393 {dimension_numbers = #tpu.dot_dimension_numbers<[1], [0], [0], [1], [0, 0, 1, 1], [], []>} : vector<2x32xf32>, vector<32x32xf32>, vector<2x32xf32> -> vector<2x32xf32>
    %1108 = vector.extract_strided_slice %786 {offsets = [2, 0, 0], sizes = [1, 1, 32], strides = [1, 1, 1]} : vector<3x1x32xf32> to vector<1x1x32xf32>
    %1109 = vector.shape_cast %1108 : vector<1x1x32xf32> to vector<1x32xf32>
    %1110 = vector.broadcast %1109 : vector<1x32xf32> to vector<2x32xf32>
    %1111 = arith.addf %1107, %1110 : vector<2x32xf32>
    %1112 = arith.addf %1088, %1097 : vector<2x32xf32>
    %1113 = arith.negf %1112 : vector<2x32xf32>
    %1114 = math.exp %1113 : vector<2x32xf32>
    %cst_394 = arith.constant 1.000000e+00 : f32
    %1115 = vector.broadcast %cst_394 : f32 to vector<2x32xf32>
    %1116 = arith.addf %1115, %1114 : vector<2x32xf32>
    %1117 = arith.divf %1115, %1116 : vector<2x32xf32>
    %1118 = arith.addf %1089, %1104 : vector<2x32xf32>
    %1119 = arith.negf %1118 : vector<2x32xf32>
    %1120 = math.exp %1119 : vector<2x32xf32>
    %cst_395 = arith.constant 1.000000e+00 : f32
    %1121 = vector.broadcast %cst_395 : f32 to vector<2x32xf32>
    %1122 = arith.addf %1121, %1120 : vector<2x32xf32>
    %1123 = arith.divf %1121, %1122 : vector<2x32xf32>
    %1124 = arith.mulf %1117, %1111 : vector<2x32xf32>
    %1125 = arith.addf %1090, %1124 : vector<2x32xf32>
    %1126 = math.tanh %1125 : vector<2x32xf32>
    %cst_396 = arith.constant 1.000000e+00 : f32
    %1127 = vector.broadcast %cst_396 : f32 to vector<2x32xf32>
    %1128 = arith.subf %1127, %1123 : vector<2x32xf32>
    %1129 = arith.mulf %1128, %1126 : vector<2x32xf32>
    %1130 = arith.mulf %1123, %1041 : vector<2x32xf32>
    %1131 = arith.addf %1129, %1130 : vector<2x32xf32>
    %c10_397 = arith.constant 10 : index
    %c0_398 = arith.constant 0 : index
    %1132 = vector.load %arg22[%c10_397, %c0_398] : memref<16x32xf32, #tpu.memory_space<vmem>>, vector<2x32xf32>
    tpu.vector_store %arg22[%c10_397, %c0_398], %1131 {strides = array<i32>} : memref<16x32xf32, #tpu.memory_space<vmem>>, vector<2x32xf32>,
    %c6_399 = arith.constant 6 : index
    %c0_400 = arith.constant 0 : index
    %1133 = vector.load %arg23[%c6_399, %c0_400] : memref<16x32xf32, #tpu.memory_space<vmem>>, vector<2x32xf32>
    %c6_401 = arith.constant 6 : index
    %c0_402 = arith.constant 0 : index
    %1134 = vector.load %arg24[%c6_401, %c0_402] : memref<16x32xf32, #tpu.memory_space<vmem>>, vector<2x32xf32>
    %c6_403 = arith.constant 6 : index
    %c0_404 = arith.constant 0 : index
    %1135 = vector.load %arg25[%c6_403, %c0_404] : memref<16x32xf32, #tpu.memory_space<vmem>>, vector<2x32xf32>
    %1136 = vector.extract_strided_slice %780 {offsets = [0, 0, 0], sizes = [1, 32, 32], strides = [1, 1, 1]} : vector<3x32x32xf32> to vector<1x32x32xf32>
    %1137 = vector.shape_cast %1136 : vector<1x32x32xf32> to vector<32x32xf32>
    %cst_405 = arith.constant dense<0.000000e+00> : vector<2x32xf32>
    %1138 = tpu.matmul %1086, %1137, %cst_405 {dimension_numbers = #tpu.dot_dimension_numbers<[1], [0], [0], [1], [0, 0, 1, 1], [], []>} : vector<2x32xf32>, vector<32x32xf32>, vector<2x32xf32> -> vector<2x32xf32>
    %1139 = vector.extract_strided_slice %782 {offsets = [0, 0, 0], sizes = [1, 1, 32], strides = [1, 1, 1]} : vector<3x1x32xf32> to vector<1x1x32xf32>
    %1140 = vector.shape_cast %1139 : vector<1x1x32xf32> to vector<1x32xf32>
    %1141 = vector.broadcast %1140 : vector<1x32xf32> to vector<2x32xf32>
    %1142 = arith.addf %1138, %1141 : vector<2x32xf32>
    %1143 = vector.extract_strided_slice %780 {offsets = [1, 0, 0], sizes = [1, 32, 32], strides = [1, 1, 1]} : vector<3x32x32xf32> to vector<1x32x32xf32>
    %1144 = vector.shape_cast %1143 : vector<1x32x32xf32> to vector<32x32xf32>
    %cst_406 = arith.constant dense<0.000000e+00> : vector<2x32xf32>
    %1145 = tpu.matmul %1086, %1144, %cst_406 {dimension_numbers = #tpu.dot_dimension_numbers<[1], [0], [0], [1], [0, 0, 1, 1], [], []>} : vector<2x32xf32>, vector<32x32xf32>, vector<2x32xf32> -> vector<2x32xf32>
    %1146 = vector.extract_strided_slice %782 {offsets = [1, 0, 0], sizes = [1, 1, 32], strides = [1, 1, 1]} : vector<3x1x32xf32> to vector<1x1x32xf32>
    %1147 = vector.shape_cast %1146 : vector<1x1x32xf32> to vector<1x32xf32>
    %1148 = vector.broadcast %1147 : vector<1x32xf32> to vector<2x32xf32>
    %1149 = arith.addf %1145, %1148 : vector<2x32xf32>
    %1150 = vector.extract_strided_slice %780 {offsets = [2, 0, 0], sizes = [1, 32, 32], strides = [1, 1, 1]} : vector<3x32x32xf32> to vector<1x32x32xf32>
    %1151 = vector.shape_cast %1150 : vector<1x32x32xf32> to vector<32x32xf32>
    %cst_407 = arith.constant dense<0.000000e+00> : vector<2x32xf32>
    %1152 = tpu.matmul %1086, %1151, %cst_407 {dimension_numbers = #tpu.dot_dimension_numbers<[1], [0], [0], [1], [0, 0, 1, 1], [], []>} : vector<2x32xf32>, vector<32x32xf32>, vector<2x32xf32> -> vector<2x32xf32>
    %1153 = vector.extract_strided_slice %782 {offsets = [2, 0, 0], sizes = [1, 1, 32], strides = [1, 1, 1]} : vector<3x1x32xf32> to vector<1x1x32xf32>
    %1154 = vector.shape_cast %1153 : vector<1x1x32xf32> to vector<1x32xf32>
    %1155 = vector.broadcast %1154 : vector<1x32xf32> to vector<2x32xf32>
    %1156 = arith.addf %1152, %1155 : vector<2x32xf32>
    %1157 = arith.addf %1133, %1142 : vector<2x32xf32>
    %1158 = arith.negf %1157 : vector<2x32xf32>
    %1159 = math.exp %1158 : vector<2x32xf32>
    %cst_408 = arith.constant 1.000000e+00 : f32
    %1160 = vector.broadcast %cst_408 : f32 to vector<2x32xf32>
    %1161 = arith.addf %1160, %1159 : vector<2x32xf32>
    %1162 = arith.divf %1160, %1161 : vector<2x32xf32>
    %1163 = arith.addf %1134, %1149 : vector<2x32xf32>
    %1164 = arith.negf %1163 : vector<2x32xf32>
    %1165 = math.exp %1164 : vector<2x32xf32>
    %cst_409 = arith.constant 1.000000e+00 : f32
    %1166 = vector.broadcast %cst_409 : f32 to vector<2x32xf32>
    %1167 = arith.addf %1166, %1165 : vector<2x32xf32>
    %1168 = arith.divf %1166, %1167 : vector<2x32xf32>
    %1169 = arith.mulf %1162, %1156 : vector<2x32xf32>
    %1170 = arith.addf %1135, %1169 : vector<2x32xf32>
    %1171 = math.tanh %1170 : vector<2x32xf32>
    %cst_410 = arith.constant 1.000000e+00 : f32
    %1172 = vector.broadcast %cst_410 : f32 to vector<2x32xf32>
    %1173 = arith.subf %1172, %1168 : vector<2x32xf32>
    %1174 = arith.mulf %1173, %1171 : vector<2x32xf32>
    %1175 = arith.mulf %1168, %1086 : vector<2x32xf32>
    %1176 = arith.addf %1174, %1175 : vector<2x32xf32>
    %c6_411 = arith.constant 6 : index
    %c0_412 = arith.constant 0 : index
    %1177 = vector.load %arg21[%c6_411, %c0_412] : memref<16x32xf32, #tpu.memory_space<vmem>>, vector<2x32xf32>
    tpu.vector_store %arg21[%c6_411, %c0_412], %1176 {strides = array<i32>} : memref<16x32xf32, #tpu.memory_space<vmem>>, vector<2x32xf32>,
    %c8_413 = arith.constant 8 : index
    %c0_414 = arith.constant 0 : index
    %1178 = vector.load %arg26[%c8_413, %c0_414] : memref<16x32xf32, #tpu.memory_space<vmem>>, vector<2x32xf32>
    %c8_415 = arith.constant 8 : index
    %c0_416 = arith.constant 0 : index
    %1179 = vector.load %arg27[%c8_415, %c0_416] : memref<16x32xf32, #tpu.memory_space<vmem>>, vector<2x32xf32>
    %c8_417 = arith.constant 8 : index
    %c0_418 = arith.constant 0 : index
    %1180 = vector.load %arg28[%c8_417, %c0_418] : memref<16x32xf32, #tpu.memory_space<vmem>>, vector<2x32xf32>
    %1181 = vector.extract_strided_slice %784 {offsets = [0, 0, 0], sizes = [1, 32, 32], strides = [1, 1, 1]} : vector<3x32x32xf32> to vector<1x32x32xf32>
    %1182 = vector.shape_cast %1181 : vector<1x32x32xf32> to vector<32x32xf32>
    %cst_419 = arith.constant dense<0.000000e+00> : vector<2x32xf32>
    %1183 = tpu.matmul %1131, %1182, %cst_419 {dimension_numbers = #tpu.dot_dimension_numbers<[1], [0], [0], [1], [0, 0, 1, 1], [], []>} : vector<2x32xf32>, vector<32x32xf32>, vector<2x32xf32> -> vector<2x32xf32>
    %1184 = vector.extract_strided_slice %786 {offsets = [0, 0, 0], sizes = [1, 1, 32], strides = [1, 1, 1]} : vector<3x1x32xf32> to vector<1x1x32xf32>
    %1185 = vector.shape_cast %1184 : vector<1x1x32xf32> to vector<1x32xf32>
    %1186 = vector.broadcast %1185 : vector<1x32xf32> to vector<2x32xf32>
    %1187 = arith.addf %1183, %1186 : vector<2x32xf32>
    %1188 = vector.extract_strided_slice %784 {offsets = [1, 0, 0], sizes = [1, 32, 32], strides = [1, 1, 1]} : vector<3x32x32xf32> to vector<1x32x32xf32>
    %1189 = vector.shape_cast %1188 : vector<1x32x32xf32> to vector<32x32xf32>
    %cst_420 = arith.constant dense<0.000000e+00> : vector<2x32xf32>
    %1190 = tpu.matmul %1131, %1189, %cst_420 {dimension_numbers = #tpu.dot_dimension_numbers<[1], [0], [0], [1], [0, 0, 1, 1], [], []>} : vector<2x32xf32>, vector<32x32xf32>, vector<2x32xf32> -> vector<2x32xf32>
    %1191 = vector.extract_strided_slice %786 {offsets = [1, 0, 0], sizes = [1, 1, 32], strides = [1, 1, 1]} : vector<3x1x32xf32> to vector<1x1x32xf32>
    %1192 = vector.shape_cast %1191 : vector<1x1x32xf32> to vector<1x32xf32>
    %1193 = vector.broadcast %1192 : vector<1x32xf32> to vector<2x32xf32>
    %1194 = arith.addf %1190, %1193 : vector<2x32xf32>
    %1195 = vector.extract_strided_slice %784 {offsets = [2, 0, 0], sizes = [1, 32, 32], strides = [1, 1, 1]} : vector<3x32x32xf32> to vector<1x32x32xf32>
    %1196 = vector.shape_cast %1195 : vector<1x32x32xf32> to vector<32x32xf32>
    %cst_421 = arith.constant dense<0.000000e+00> : vector<2x32xf32>
    %1197 = tpu.matmul %1131, %1196, %cst_421 {dimension_numbers = #tpu.dot_dimension_numbers<[1], [0], [0], [1], [0, 0, 1, 1], [], []>} : vector<2x32xf32>, vector<32x32xf32>, vector<2x32xf32> -> vector<2x32xf32>
    %1198 = vector.extract_strided_slice %786 {offsets = [2, 0, 0], sizes = [1, 1, 32], strides = [1, 1, 1]} : vector<3x1x32xf32> to vector<1x1x32xf32>
    %1199 = vector.shape_cast %1198 : vector<1x1x32xf32> to vector<1x32xf32>
    %1200 = vector.broadcast %1199 : vector<1x32xf32> to vector<2x32xf32>
    %1201 = arith.addf %1197, %1200 : vector<2x32xf32>
    %1202 = arith.addf %1178, %1187 : vector<2x32xf32>
    %1203 = arith.negf %1202 : vector<2x32xf32>
    %1204 = math.exp %1203 : vector<2x32xf32>
    %cst_422 = arith.constant 1.000000e+00 : f32
    %1205 = vector.broadcast %cst_422 : f32 to vector<2x32xf32>
    %1206 = arith.addf %1205, %1204 : vector<2x32xf32>
    %1207 = arith.divf %1205, %1206 : vector<2x32xf32>
    %1208 = arith.addf %1179, %1194 : vector<2x32xf32>
    %1209 = arith.negf %1208 : vector<2x32xf32>
    %1210 = math.exp %1209 : vector<2x32xf32>
    %cst_423 = arith.constant 1.000000e+00 : f32
    %1211 = vector.broadcast %cst_423 : f32 to vector<2x32xf32>
    %1212 = arith.addf %1211, %1210 : vector<2x32xf32>
    %1213 = arith.divf %1211, %1212 : vector<2x32xf32>
    %1214 = arith.mulf %1207, %1201 : vector<2x32xf32>
    %1215 = arith.addf %1180, %1214 : vector<2x32xf32>
    %1216 = math.tanh %1215 : vector<2x32xf32>
    %cst_424 = arith.constant 1.000000e+00 : f32
    %1217 = vector.broadcast %cst_424 : f32 to vector<2x32xf32>
    %1218 = arith.subf %1217, %1213 : vector<2x32xf32>
    %1219 = arith.mulf %1218, %1216 : vector<2x32xf32>
    %1220 = arith.mulf %1213, %1131 : vector<2x32xf32>
    %1221 = arith.addf %1219, %1220 : vector<2x32xf32>
    %c8_425 = arith.constant 8 : index
    %c0_426 = arith.constant 0 : index
    %1222 = vector.load %arg22[%c8_425, %c0_426] : memref<16x32xf32, #tpu.memory_space<vmem>>, vector<2x32xf32>
    tpu.vector_store %arg22[%c8_425, %c0_426], %1221 {strides = array<i32>} : memref<16x32xf32, #tpu.memory_space<vmem>>, vector<2x32xf32>,
    %c8_427 = arith.constant 8 : index
    %c0_428 = arith.constant 0 : index
    %1223 = vector.load %arg23[%c8_427, %c0_428] : memref<16x32xf32, #tpu.memory_space<vmem>>, vector<2x32xf32>
    %c8_429 = arith.constant 8 : index
    %c0_430 = arith.constant 0 : index
    %1224 = vector.load %arg24[%c8_429, %c0_430] : memref<16x32xf32, #tpu.memory_space<vmem>>, vector<2x32xf32>
    %c8_431 = arith.constant 8 : index
    %c0_432 = arith.constant 0 : index
    %1225 = vector.load %arg25[%c8_431, %c0_432] : memref<16x32xf32, #tpu.memory_space<vmem>>, vector<2x32xf32>
    %1226 = vector.extract_strided_slice %780 {offsets = [0, 0, 0], sizes = [1, 32, 32], strides = [1, 1, 1]} : vector<3x32x32xf32> to vector<1x32x32xf32>
    %1227 = vector.shape_cast %1226 : vector<1x32x32xf32> to vector<32x32xf32>
    %cst_433 = arith.constant dense<0.000000e+00> : vector<2x32xf32>
    %1228 = tpu.matmul %1176, %1227, %cst_433 {dimension_numbers = #tpu.dot_dimension_numbers<[1], [0], [0], [1], [0, 0, 1, 1], [], []>} : vector<2x32xf32>, vector<32x32xf32>, vector<2x32xf32> -> vector<2x32xf32>
    %1229 = vector.extract_strided_slice %782 {offsets = [0, 0, 0], sizes = [1, 1, 32], strides = [1, 1, 1]} : vector<3x1x32xf32> to vector<1x1x32xf32>
    %1230 = vector.shape_cast %1229 : vector<1x1x32xf32> to vector<1x32xf32>
    %1231 = vector.broadcast %1230 : vector<1x32xf32> to vector<2x32xf32>
    %1232 = arith.addf %1228, %1231 : vector<2x32xf32>
    %1233 = vector.extract_strided_slice %780 {offsets = [1, 0, 0], sizes = [1, 32, 32], strides = [1, 1, 1]} : vector<3x32x32xf32> to vector<1x32x32xf32>
    %1234 = vector.shape_cast %1233 : vector<1x32x32xf32> to vector<32x32xf32>
    %cst_434 = arith.constant dense<0.000000e+00> : vector<2x32xf32>
    %1235 = tpu.matmul %1176, %1234, %cst_434 {dimension_numbers = #tpu.dot_dimension_numbers<[1], [0], [0], [1], [0, 0, 1, 1], [], []>} : vector<2x32xf32>, vector<32x32xf32>, vector<2x32xf32> -> vector<2x32xf32>
    %1236 = vector.extract_strided_slice %782 {offsets = [1, 0, 0], sizes = [1, 1, 32], strides = [1, 1, 1]} : vector<3x1x32xf32> to vector<1x1x32xf32>
    %1237 = vector.shape_cast %1236 : vector<1x1x32xf32> to vector<1x32xf32>
    %1238 = vector.broadcast %1237 : vector<1x32xf32> to vector<2x32xf32>
    %1239 = arith.addf %1235, %1238 : vector<2x32xf32>
    %1240 = vector.extract_strided_slice %780 {offsets = [2, 0, 0], sizes = [1, 32, 32], strides = [1, 1, 1]} : vector<3x32x32xf32> to vector<1x32x32xf32>
    %1241 = vector.shape_cast %1240 : vector<1x32x32xf32> to vector<32x32xf32>
    %cst_435 = arith.constant dense<0.000000e+00> : vector<2x32xf32>
    %1242 = tpu.matmul %1176, %1241, %cst_435 {dimension_numbers = #tpu.dot_dimension_numbers<[1], [0], [0], [1], [0, 0, 1, 1], [], []>} : vector<2x32xf32>, vector<32x32xf32>, vector<2x32xf32> -> vector<2x32xf32>
    %1243 = vector.extract_strided_slice %782 {offsets = [2, 0, 0], sizes = [1, 1, 32], strides = [1, 1, 1]} : vector<3x1x32xf32> to vector<1x1x32xf32>
    %1244 = vector.shape_cast %1243 : vector<1x1x32xf32> to vector<1x32xf32>
    %1245 = vector.broadcast %1244 : vector<1x32xf32> to vector<2x32xf32>
    %1246 = arith.addf %1242, %1245 : vector<2x32xf32>
    %1247 = arith.addf %1223, %1232 : vector<2x32xf32>
    %1248 = arith.negf %1247 : vector<2x32xf32>
    %1249 = math.exp %1248 : vector<2x32xf32>
    %cst_436 = arith.constant 1.000000e+00 : f32
    %1250 = vector.broadcast %cst_436 : f32 to vector<2x32xf32>
    %1251 = arith.addf %1250, %1249 : vector<2x32xf32>
    %1252 = arith.divf %1250, %1251 : vector<2x32xf32>
    %1253 = arith.addf %1224, %1239 : vector<2x32xf32>
    %1254 = arith.negf %1253 : vector<2x32xf32>
    %1255 = math.exp %1254 : vector<2x32xf32>
    %cst_437 = arith.constant 1.000000e+00 : f32
    %1256 = vector.broadcast %cst_437 : f32 to vector<2x32xf32>
    %1257 = arith.addf %1256, %1255 : vector<2x32xf32>
    %1258 = arith.divf %1256, %1257 : vector<2x32xf32>
    %1259 = arith.mulf %1252, %1246 : vector<2x32xf32>
    %1260 = arith.addf %1225, %1259 : vector<2x32xf32>
    %1261 = math.tanh %1260 : vector<2x32xf32>
    %cst_438 = arith.constant 1.000000e+00 : f32
    %1262 = vector.broadcast %cst_438 : f32 to vector<2x32xf32>
    %1263 = arith.subf %1262, %1258 : vector<2x32xf32>
    %1264 = arith.mulf %1263, %1261 : vector<2x32xf32>
    %1265 = arith.mulf %1258, %1176 : vector<2x32xf32>
    %1266 = arith.addf %1264, %1265 : vector<2x32xf32>
    %c8_439 = arith.constant 8 : index
    %c0_440 = arith.constant 0 : index
    %1267 = vector.load %arg21[%c8_439, %c0_440] : memref<16x32xf32, #tpu.memory_space<vmem>>, vector<2x32xf32>
    tpu.vector_store %arg21[%c8_439, %c0_440], %1266 {strides = array<i32>} : memref<16x32xf32, #tpu.memory_space<vmem>>, vector<2x32xf32>,
    %c6_441 = arith.constant 6 : index
    %c0_442 = arith.constant 0 : index
    %1268 = vector.load %arg26[%c6_441, %c0_442] : memref<16x32xf32, #tpu.memory_space<vmem>>, vector<2x32xf32>
    %c6_443 = arith.constant 6 : index
    %c0_444 = arith.constant 0 : index
    %1269 = vector.load %arg27[%c6_443, %c0_444] : memref<16x32xf32, #tpu.memory_space<vmem>>, vector<2x32xf32>
    %c6_445 = arith.constant 6 : index
    %c0_446 = arith.constant 0 : index
    %1270 = vector.load %arg28[%c6_445, %c0_446] : memref<16x32xf32, #tpu.memory_space<vmem>>, vector<2x32xf32>
    %1271 = vector.extract_strided_slice %784 {offsets = [0, 0, 0], sizes = [1, 32, 32], strides = [1, 1, 1]} : vector<3x32x32xf32> to vector<1x32x32xf32>
    %1272 = vector.shape_cast %1271 : vector<1x32x32xf32> to vector<32x32xf32>
    %cst_447 = arith.constant dense<0.000000e+00> : vector<2x32xf32>
    %1273 = tpu.matmul %1221, %1272, %cst_447 {dimension_numbers = #tpu.dot_dimension_numbers<[1], [0], [0], [1], [0, 0, 1, 1], [], []>} : vector<2x32xf32>, vector<32x32xf32>, vector<2x32xf32> -> vector<2x32xf32>
    %1274 = vector.extract_strided_slice %786 {offsets = [0, 0, 0], sizes = [1, 1, 32], strides = [1, 1, 1]} : vector<3x1x32xf32> to vector<1x1x32xf32>
    %1275 = vector.shape_cast %1274 : vector<1x1x32xf32> to vector<1x32xf32>
    %1276 = vector.broadcast %1275 : vector<1x32xf32> to vector<2x32xf32>
    %1277 = arith.addf %1273, %1276 : vector<2x32xf32>
    %1278 = vector.extract_strided_slice %784 {offsets = [1, 0, 0], sizes = [1, 32, 32], strides = [1, 1, 1]} : vector<3x32x32xf32> to vector<1x32x32xf32>
    %1279 = vector.shape_cast %1278 : vector<1x32x32xf32> to vector<32x32xf32>
    %cst_448 = arith.constant dense<0.000000e+00> : vector<2x32xf32>
    %1280 = tpu.matmul %1221, %1279, %cst_448 {dimension_numbers = #tpu.dot_dimension_numbers<[1], [0], [0], [1], [0, 0, 1, 1], [], []>} : vector<2x32xf32>, vector<32x32xf32>, vector<2x32xf32> -> vector<2x32xf32>
    %1281 = vector.extract_strided_slice %786 {offsets = [1, 0, 0], sizes = [1, 1, 32], strides = [1, 1, 1]} : vector<3x1x32xf32> to vector<1x1x32xf32>
    %1282 = vector.shape_cast %1281 : vector<1x1x32xf32> to vector<1x32xf32>
    %1283 = vector.broadcast %1282 : vector<1x32xf32> to vector<2x32xf32>
    %1284 = arith.addf %1280, %1283 : vector<2x32xf32>
    %1285 = vector.extract_strided_slice %784 {offsets = [2, 0, 0], sizes = [1, 32, 32], strides = [1, 1, 1]} : vector<3x32x32xf32> to vector<1x32x32xf32>
    %1286 = vector.shape_cast %1285 : vector<1x32x32xf32> to vector<32x32xf32>
    %cst_449 = arith.constant dense<0.000000e+00> : vector<2x32xf32>
    %1287 = tpu.matmul %1221, %1286, %cst_449 {dimension_numbers = #tpu.dot_dimension_numbers<[1], [0], [0], [1], [0, 0, 1, 1], [], []>} : vector<2x32xf32>, vector<32x32xf32>, vector<2x32xf32> -> vector<2x32xf32>
    %1288 = vector.extract_strided_slice %786 {offsets = [2, 0, 0], sizes = [1, 1, 32], strides = [1, 1, 1]} : vector<3x1x32xf32> to vector<1x1x32xf32>
    %1289 = vector.shape_cast %1288 : vector<1x1x32xf32> to vector<1x32xf32>
    %1290 = vector.broadcast %1289 : vector<1x32xf32> to vector<2x32xf32>
    %1291 = arith.addf %1287, %1290 : vector<2x32xf32>
    %1292 = arith.addf %1268, %1277 : vector<2x32xf32>
    %1293 = arith.negf %1292 : vector<2x32xf32>
    %1294 = math.exp %1293 : vector<2x32xf32>
    %cst_450 = arith.constant 1.000000e+00 : f32
    %1295 = vector.broadcast %cst_450 : f32 to vector<2x32xf32>
    %1296 = arith.addf %1295, %1294 : vector<2x32xf32>
    %1297 = arith.divf %1295, %1296 : vector<2x32xf32>
    %1298 = arith.addf %1269, %1284 : vector<2x32xf32>
    %1299 = arith.negf %1298 : vector<2x32xf32>
    %1300 = math.exp %1299 : vector<2x32xf32>
    %cst_451 = arith.constant 1.000000e+00 : f32
    %1301 = vector.broadcast %cst_451 : f32 to vector<2x32xf32>
    %1302 = arith.addf %1301, %1300 : vector<2x32xf32>
    %1303 = arith.divf %1301, %1302 : vector<2x32xf32>
    %1304 = arith.mulf %1297, %1291 : vector<2x32xf32>
    %1305 = arith.addf %1270, %1304 : vector<2x32xf32>
    %1306 = math.tanh %1305 : vector<2x32xf32>
    %cst_452 = arith.constant 1.000000e+00 : f32
    %1307 = vector.broadcast %cst_452 : f32 to vector<2x32xf32>
    %1308 = arith.subf %1307, %1303 : vector<2x32xf32>
    %1309 = arith.mulf %1308, %1306 : vector<2x32xf32>
    %1310 = arith.mulf %1303, %1221 : vector<2x32xf32>
    %1311 = arith.addf %1309, %1310 : vector<2x32xf32>
    %c6_453 = arith.constant 6 : index
    %c0_454 = arith.constant 0 : index
    %1312 = vector.load %arg22[%c6_453, %c0_454] : memref<16x32xf32, #tpu.memory_space<vmem>>, vector<2x32xf32>
    tpu.vector_store %arg22[%c6_453, %c0_454], %1311 {strides = array<i32>} : memref<16x32xf32, #tpu.memory_space<vmem>>, vector<2x32xf32>,
    %c10_455 = arith.constant 10 : index
    %c0_456 = arith.constant 0 : index
    %1313 = vector.load %arg23[%c10_455, %c0_456] : memref<16x32xf32, #tpu.memory_space<vmem>>, vector<2x32xf32>
    %c10_457 = arith.constant 10 : index
    %c0_458 = arith.constant 0 : index
    %1314 = vector.load %arg24[%c10_457, %c0_458] : memref<16x32xf32, #tpu.memory_space<vmem>>, vector<2x32xf32>
    %c10_459 = arith.constant 10 : index
    %c0_460 = arith.constant 0 : index
    %1315 = vector.load %arg25[%c10_459, %c0_460] : memref<16x32xf32, #tpu.memory_space<vmem>>, vector<2x32xf32>
    %1316 = vector.extract_strided_slice %780 {offsets = [0, 0, 0], sizes = [1, 32, 32], strides = [1, 1, 1]} : vector<3x32x32xf32> to vector<1x32x32xf32>
    %1317 = vector.shape_cast %1316 : vector<1x32x32xf32> to vector<32x32xf32>
    %cst_461 = arith.constant dense<0.000000e+00> : vector<2x32xf32>
    %1318 = tpu.matmul %1266, %1317, %cst_461 {dimension_numbers = #tpu.dot_dimension_numbers<[1], [0], [0], [1], [0, 0, 1, 1], [], []>} : vector<2x32xf32>, vector<32x32xf32>, vector<2x32xf32> -> vector<2x32xf32>
    %1319 = vector.extract_strided_slice %782 {offsets = [0, 0, 0], sizes = [1, 1, 32], strides = [1, 1, 1]} : vector<3x1x32xf32> to vector<1x1x32xf32>
    %1320 = vector.shape_cast %1319 : vector<1x1x32xf32> to vector<1x32xf32>
    %1321 = vector.broadcast %1320 : vector<1x32xf32> to vector<2x32xf32>
    %1322 = arith.addf %1318, %1321 : vector<2x32xf32>
    %1323 = vector.extract_strided_slice %780 {offsets = [1, 0, 0], sizes = [1, 32, 32], strides = [1, 1, 1]} : vector<3x32x32xf32> to vector<1x32x32xf32>
    %1324 = vector.shape_cast %1323 : vector<1x32x32xf32> to vector<32x32xf32>
    %cst_462 = arith.constant dense<0.000000e+00> : vector<2x32xf32>
    %1325 = tpu.matmul %1266, %1324, %cst_462 {dimension_numbers = #tpu.dot_dimension_numbers<[1], [0], [0], [1], [0, 0, 1, 1], [], []>} : vector<2x32xf32>, vector<32x32xf32>, vector<2x32xf32> -> vector<2x32xf32>
    %1326 = vector.extract_strided_slice %782 {offsets = [1, 0, 0], sizes = [1, 1, 32], strides = [1, 1, 1]} : vector<3x1x32xf32> to vector<1x1x32xf32>
    %1327 = vector.shape_cast %1326 : vector<1x1x32xf32> to vector<1x32xf32>
    %1328 = vector.broadcast %1327 : vector<1x32xf32> to vector<2x32xf32>
    %1329 = arith.addf %1325, %1328 : vector<2x32xf32>
    %1330 = vector.extract_strided_slice %780 {offsets = [2, 0, 0], sizes = [1, 32, 32], strides = [1, 1, 1]} : vector<3x32x32xf32> to vector<1x32x32xf32>
    %1331 = vector.shape_cast %1330 : vector<1x32x32xf32> to vector<32x32xf32>
    %cst_463 = arith.constant dense<0.000000e+00> : vector<2x32xf32>
    %1332 = tpu.matmul %1266, %1331, %cst_463 {dimension_numbers = #tpu.dot_dimension_numbers<[1], [0], [0], [1], [0, 0, 1, 1], [], []>} : vector<2x32xf32>, vector<32x32xf32>, vector<2x32xf32> -> vector<2x32xf32>
    %1333 = vector.extract_strided_slice %782 {offsets = [2, 0, 0], sizes = [1, 1, 32], strides = [1, 1, 1]} : vector<3x1x32xf32> to vector<1x1x32xf32>
    %1334 = vector.shape_cast %1333 : vector<1x1x32xf32> to vector<1x32xf32>
    %1335 = vector.broadcast %1334 : vector<1x32xf32> to vector<2x32xf32>
    %1336 = arith.addf %1332, %1335 : vector<2x32xf32>
    %1337 = arith.addf %1313, %1322 : vector<2x32xf32>
    %1338 = arith.negf %1337 : vector<2x32xf32>
    %1339 = math.exp %1338 : vector<2x32xf32>
    %cst_464 = arith.constant 1.000000e+00 : f32
    %1340 = vector.broadcast %cst_464 : f32 to vector<2x32xf32>
    %1341 = arith.addf %1340, %1339 : vector<2x32xf32>
    %1342 = arith.divf %1340, %1341 : vector<2x32xf32>
    %1343 = arith.addf %1314, %1329 : vector<2x32xf32>
    %1344 = arith.negf %1343 : vector<2x32xf32>
    %1345 = math.exp %1344 : vector<2x32xf32>
    %cst_465 = arith.constant 1.000000e+00 : f32
    %1346 = vector.broadcast %cst_465 : f32 to vector<2x32xf32>
    %1347 = arith.addf %1346, %1345 : vector<2x32xf32>
    %1348 = arith.divf %1346, %1347 : vector<2x32xf32>
    %1349 = arith.mulf %1342, %1336 : vector<2x32xf32>
    %1350 = arith.addf %1315, %1349 : vector<2x32xf32>
    %1351 = math.tanh %1350 : vector<2x32xf32>
    %cst_466 = arith.constant 1.000000e+00 : f32
    %1352 = vector.broadcast %cst_466 : f32 to vector<2x32xf32>
    %1353 = arith.subf %1352, %1348 : vector<2x32xf32>
    %1354 = arith.mulf %1353, %1351 : vector<2x32xf32>
    %1355 = arith.mulf %1348, %1266 : vector<2x32xf32>
    %1356 = arith.addf %1354, %1355 : vector<2x32xf32>
    %c10_467 = arith.constant 10 : index
    %c0_468 = arith.constant 0 : index
    %1357 = vector.load %arg21[%c10_467, %c0_468] : memref<16x32xf32, #tpu.memory_space<vmem>>, vector<2x32xf32>
    tpu.vector_store %arg21[%c10_467, %c0_468], %1356 {strides = array<i32>} : memref<16x32xf32, #tpu.memory_space<vmem>>, vector<2x32xf32>,
    %c4_469 = arith.constant 4 : index
    %c0_470 = arith.constant 0 : index
    %1358 = vector.load %arg26[%c4_469, %c0_470] : memref<16x32xf32, #tpu.memory_space<vmem>>, vector<2x32xf32>
    %c4_471 = arith.constant 4 : index
    %c0_472 = arith.constant 0 : index
    %1359 = vector.load %arg27[%c4_471, %c0_472] : memref<16x32xf32, #tpu.memory_space<vmem>>, vector<2x32xf32>
    %c4_473 = arith.constant 4 : index
    %c0_474 = arith.constant 0 : index
    %1360 = vector.load %arg28[%c4_473, %c0_474] : memref<16x32xf32, #tpu.memory_space<vmem>>, vector<2x32xf32>
    %1361 = vector.extract_strided_slice %784 {offsets = [0, 0, 0], sizes = [1, 32, 32], strides = [1, 1, 1]} : vector<3x32x32xf32> to vector<1x32x32xf32>
    %1362 = vector.shape_cast %1361 : vector<1x32x32xf32> to vector<32x32xf32>
    %cst_475 = arith.constant dense<0.000000e+00> : vector<2x32xf32>
    %1363 = tpu.matmul %1311, %1362, %cst_475 {dimension_numbers = #tpu.dot_dimension_numbers<[1], [0], [0], [1], [0, 0, 1, 1], [], []>} : vector<2x32xf32>, vector<32x32xf32>, vector<2x32xf32> -> vector<2x32xf32>
    %1364 = vector.extract_strided_slice %786 {offsets = [0, 0, 0], sizes = [1, 1, 32], strides = [1, 1, 1]} : vector<3x1x32xf32> to vector<1x1x32xf32>
    %1365 = vector.shape_cast %1364 : vector<1x1x32xf32> to vector<1x32xf32>
    %1366 = vector.broadcast %1365 : vector<1x32xf32> to vector<2x32xf32>
    %1367 = arith.addf %1363, %1366 : vector<2x32xf32>
    %1368 = vector.extract_strided_slice %784 {offsets = [1, 0, 0], sizes = [1, 32, 32], strides = [1, 1, 1]} : vector<3x32x32xf32> to vector<1x32x32xf32>
    %1369 = vector.shape_cast %1368 : vector<1x32x32xf32> to vector<32x32xf32>
    %cst_476 = arith.constant dense<0.000000e+00> : vector<2x32xf32>
    %1370 = tpu.matmul %1311, %1369, %cst_476 {dimension_numbers = #tpu.dot_dimension_numbers<[1], [0], [0], [1], [0, 0, 1, 1], [], []>} : vector<2x32xf32>, vector<32x32xf32>, vector<2x32xf32> -> vector<2x32xf32>
    %1371 = vector.extract_strided_slice %786 {offsets = [1, 0, 0], sizes = [1, 1, 32], strides = [1, 1, 1]} : vector<3x1x32xf32> to vector<1x1x32xf32>
    %1372 = vector.shape_cast %1371 : vector<1x1x32xf32> to vector<1x32xf32>
    %1373 = vector.broadcast %1372 : vector<1x32xf32> to vector<2x32xf32>
    %1374 = arith.addf %1370, %1373 : vector<2x32xf32>
    %1375 = vector.extract_strided_slice %784 {offsets = [2, 0, 0], sizes = [1, 32, 32], strides = [1, 1, 1]} : vector<3x32x32xf32> to vector<1x32x32xf32>
    %1376 = vector.shape_cast %1375 : vector<1x32x32xf32> to vector<32x32xf32>
    %cst_477 = arith.constant dense<0.000000e+00> : vector<2x32xf32>
    %1377 = tpu.matmul %1311, %1376, %cst_477 {dimension_numbers = #tpu.dot_dimension_numbers<[1], [0], [0], [1], [0, 0, 1, 1], [], []>} : vector<2x32xf32>, vector<32x32xf32>, vector<2x32xf32> -> vector<2x32xf32>
    %1378 = vector.extract_strided_slice %786 {offsets = [2, 0, 0], sizes = [1, 1, 32], strides = [1, 1, 1]} : vector<3x1x32xf32> to vector<1x1x32xf32>
    %1379 = vector.shape_cast %1378 : vector<1x1x32xf32> to vector<1x32xf32>
    %1380 = vector.broadcast %1379 : vector<1x32xf32> to vector<2x32xf32>
    %1381 = arith.addf %1377, %1380 : vector<2x32xf32>
    %1382 = arith.addf %1358, %1367 : vector<2x32xf32>
    %1383 = arith.negf %1382 : vector<2x32xf32>
    %1384 = math.exp %1383 : vector<2x32xf32>
    %cst_478 = arith.constant 1.000000e+00 : f32
    %1385 = vector.broadcast %cst_478 : f32 to vector<2x32xf32>
    %1386 = arith.addf %1385, %1384 : vector<2x32xf32>
    %1387 = arith.divf %1385, %1386 : vector<2x32xf32>
    %1388 = arith.addf %1359, %1374 : vector<2x32xf32>
    %1389 = arith.negf %1388 : vector<2x32xf32>
    %1390 = math.exp %1389 : vector<2x32xf32>
    %cst_479 = arith.constant 1.000000e+00 : f32
    %1391 = vector.broadcast %cst_479 : f32 to vector<2x32xf32>
    %1392 = arith.addf %1391, %1390 : vector<2x32xf32>
    %1393 = arith.divf %1391, %1392 : vector<2x32xf32>
    %1394 = arith.mulf %1387, %1381 : vector<2x32xf32>
    %1395 = arith.addf %1360, %1394 : vector<2x32xf32>
    %1396 = math.tanh %1395 : vector<2x32xf32>
    %cst_480 = arith.constant 1.000000e+00 : f32
    %1397 = vector.broadcast %cst_480 : f32 to vector<2x32xf32>
    %1398 = arith.subf %1397, %1393 : vector<2x32xf32>
    %1399 = arith.mulf %1398, %1396 : vector<2x32xf32>
    %1400 = arith.mulf %1393, %1311 : vector<2x32xf32>
    %1401 = arith.addf %1399, %1400 : vector<2x32xf32>
    %c4_481 = arith.constant 4 : index
    %c0_482 = arith.constant 0 : index
    %1402 = vector.load %arg22[%c4_481, %c0_482] : memref<16x32xf32, #tpu.memory_space<vmem>>, vector<2x32xf32>
    tpu.vector_store %arg22[%c4_481, %c0_482], %1401 {strides = array<i32>} : memref<16x32xf32, #tpu.memory_space<vmem>>, vector<2x32xf32>,
    %c12_483 = arith.constant 12 : index
    %c0_484 = arith.constant 0 : index
    %1403 = vector.load %arg23[%c12_483, %c0_484] : memref<16x32xf32, #tpu.memory_space<vmem>>, vector<2x32xf32>
    %c12_485 = arith.constant 12 : index
    %c0_486 = arith.constant 0 : index
    %1404 = vector.load %arg24[%c12_485, %c0_486] : memref<16x32xf32, #tpu.memory_space<vmem>>, vector<2x32xf32>
    %c12_487 = arith.constant 12 : index
    %c0_488 = arith.constant 0 : index
    %1405 = vector.load %arg25[%c12_487, %c0_488] : memref<16x32xf32, #tpu.memory_space<vmem>>, vector<2x32xf32>
    %1406 = vector.extract_strided_slice %780 {offsets = [0, 0, 0], sizes = [1, 32, 32], strides = [1, 1, 1]} : vector<3x32x32xf32> to vector<1x32x32xf32>
    %1407 = vector.shape_cast %1406 : vector<1x32x32xf32> to vector<32x32xf32>
    %cst_489 = arith.constant dense<0.000000e+00> : vector<2x32xf32>
    %1408 = tpu.matmul %1356, %1407, %cst_489 {dimension_numbers = #tpu.dot_dimension_numbers<[1], [0], [0], [1], [0, 0, 1, 1], [], []>} : vector<2x32xf32>, vector<32x32xf32>, vector<2x32xf32> -> vector<2x32xf32>
    %1409 = vector.extract_strided_slice %782 {offsets = [0, 0, 0], sizes = [1, 1, 32], strides = [1, 1, 1]} : vector<3x1x32xf32> to vector<1x1x32xf32>
    %1410 = vector.shape_cast %1409 : vector<1x1x32xf32> to vector<1x32xf32>
    %1411 = vector.broadcast %1410 : vector<1x32xf32> to vector<2x32xf32>
    %1412 = arith.addf %1408, %1411 : vector<2x32xf32>
    %1413 = vector.extract_strided_slice %780 {offsets = [1, 0, 0], sizes = [1, 32, 32], strides = [1, 1, 1]} : vector<3x32x32xf32> to vector<1x32x32xf32>
    %1414 = vector.shape_cast %1413 : vector<1x32x32xf32> to vector<32x32xf32>
    %cst_490 = arith.constant dense<0.000000e+00> : vector<2x32xf32>
    %1415 = tpu.matmul %1356, %1414, %cst_490 {dimension_numbers = #tpu.dot_dimension_numbers<[1], [0], [0], [1], [0, 0, 1, 1], [], []>} : vector<2x32xf32>, vector<32x32xf32>, vector<2x32xf32> -> vector<2x32xf32>
    %1416 = vector.extract_strided_slice %782 {offsets = [1, 0, 0], sizes = [1, 1, 32], strides = [1, 1, 1]} : vector<3x1x32xf32> to vector<1x1x32xf32>
    %1417 = vector.shape_cast %1416 : vector<1x1x32xf32> to vector<1x32xf32>
    %1418 = vector.broadcast %1417 : vector<1x32xf32> to vector<2x32xf32>
    %1419 = arith.addf %1415, %1418 : vector<2x32xf32>
    %1420 = vector.extract_strided_slice %780 {offsets = [2, 0, 0], sizes = [1, 32, 32], strides = [1, 1, 1]} : vector<3x32x32xf32> to vector<1x32x32xf32>
    %1421 = vector.shape_cast %1420 : vector<1x32x32xf32> to vector<32x32xf32>
    %cst_491 = arith.constant dense<0.000000e+00> : vector<2x32xf32>
    %1422 = tpu.matmul %1356, %1421, %cst_491 {dimension_numbers = #tpu.dot_dimension_numbers<[1], [0], [0], [1], [0, 0, 1, 1], [], []>} : vector<2x32xf32>, vector<32x32xf32>, vector<2x32xf32> -> vector<2x32xf32>
    %1423 = vector.extract_strided_slice %782 {offsets = [2, 0, 0], sizes = [1, 1, 32], strides = [1, 1, 1]} : vector<3x1x32xf32> to vector<1x1x32xf32>
    %1424 = vector.shape_cast %1423 : vector<1x1x32xf32> to vector<1x32xf32>
    %1425 = vector.broadcast %1424 : vector<1x32xf32> to vector<2x32xf32>
    %1426 = arith.addf %1422, %1425 : vector<2x32xf32>
    %1427 = arith.addf %1403, %1412 : vector<2x32xf32>
    %1428 = arith.negf %1427 : vector<2x32xf32>
    %1429 = math.exp %1428 : vector<2x32xf32>
    %cst_492 = arith.constant 1.000000e+00 : f32
    %1430 = vector.broadcast %cst_492 : f32 to vector<2x32xf32>
    %1431 = arith.addf %1430, %1429 : vector<2x32xf32>
    %1432 = arith.divf %1430, %1431 : vector<2x32xf32>
    %1433 = arith.addf %1404, %1419 : vector<2x32xf32>
    %1434 = arith.negf %1433 : vector<2x32xf32>
    %1435 = math.exp %1434 : vector<2x32xf32>
    %cst_493 = arith.constant 1.000000e+00 : f32
    %1436 = vector.broadcast %cst_493 : f32 to vector<2x32xf32>
    %1437 = arith.addf %1436, %1435 : vector<2x32xf32>
    %1438 = arith.divf %1436, %1437 : vector<2x32xf32>
    %1439 = arith.mulf %1432, %1426 : vector<2x32xf32>
    %1440 = arith.addf %1405, %1439 : vector<2x32xf32>
    %1441 = math.tanh %1440 : vector<2x32xf32>
    %cst_494 = arith.constant 1.000000e+00 : f32
    %1442 = vector.broadcast %cst_494 : f32 to vector<2x32xf32>
    %1443 = arith.subf %1442, %1438 : vector<2x32xf32>
    %1444 = arith.mulf %1443, %1441 : vector<2x32xf32>
    %1445 = arith.mulf %1438, %1356 : vector<2x32xf32>
    %1446 = arith.addf %1444, %1445 : vector<2x32xf32>
    %c12_495 = arith.constant 12 : index
    %c0_496 = arith.constant 0 : index
    %1447 = vector.load %arg21[%c12_495, %c0_496] : memref<16x32xf32, #tpu.memory_space<vmem>>, vector<2x32xf32>
    tpu.vector_store %arg21[%c12_495, %c0_496], %1446 {strides = array<i32>} : memref<16x32xf32, #tpu.memory_space<vmem>>, vector<2x32xf32>,
    %c2_497 = arith.constant 2 : index
    %c0_498 = arith.constant 0 : index
    %1448 = vector.load %arg26[%c2_497, %c0_498] : memref<16x32xf32, #tpu.memory_space<vmem>>, vector<2x32xf32>
    %c2_499 = arith.constant 2 : index
    %c0_500 = arith.constant 0 : index
    %1449 = vector.load %arg27[%c2_499, %c0_500] : memref<16x32xf32, #tpu.memory_space<vmem>>, vector<2x32xf32>
    %c2_501 = arith.constant 2 : index
    %c0_502 = arith.constant 0 : index
    %1450 = vector.load %arg28[%c2_501, %c0_502] : memref<16x32xf32, #tpu.memory_space<vmem>>, vector<2x32xf32>
    %1451 = vector.extract_strided_slice %784 {offsets = [0, 0, 0], sizes = [1, 32, 32], strides = [1, 1, 1]} : vector<3x32x32xf32> to vector<1x32x32xf32>
    %1452 = vector.shape_cast %1451 : vector<1x32x32xf32> to vector<32x32xf32>
    %cst_503 = arith.constant dense<0.000000e+00> : vector<2x32xf32>
    %1453 = tpu.matmul %1401, %1452, %cst_503 {dimension_numbers = #tpu.dot_dimension_numbers<[1], [0], [0], [1], [0, 0, 1, 1], [], []>} : vector<2x32xf32>, vector<32x32xf32>, vector<2x32xf32> -> vector<2x32xf32>
    %1454 = vector.extract_strided_slice %786 {offsets = [0, 0, 0], sizes = [1, 1, 32], strides = [1, 1, 1]} : vector<3x1x32xf32> to vector<1x1x32xf32>
    %1455 = vector.shape_cast %1454 : vector<1x1x32xf32> to vector<1x32xf32>
    %1456 = vector.broadcast %1455 : vector<1x32xf32> to vector<2x32xf32>
    %1457 = arith.addf %1453, %1456 : vector<2x32xf32>
    %1458 = vector.extract_strided_slice %784 {offsets = [1, 0, 0], sizes = [1, 32, 32], strides = [1, 1, 1]} : vector<3x32x32xf32> to vector<1x32x32xf32>
    %1459 = vector.shape_cast %1458 : vector<1x32x32xf32> to vector<32x32xf32>
    %cst_504 = arith.constant dense<0.000000e+00> : vector<2x32xf32>
    %1460 = tpu.matmul %1401, %1459, %cst_504 {dimension_numbers = #tpu.dot_dimension_numbers<[1], [0], [0], [1], [0, 0, 1, 1], [], []>} : vector<2x32xf32>, vector<32x32xf32>, vector<2x32xf32> -> vector<2x32xf32>
    %1461 = vector.extract_strided_slice %786 {offsets = [1, 0, 0], sizes = [1, 1, 32], strides = [1, 1, 1]} : vector<3x1x32xf32> to vector<1x1x32xf32>
    %1462 = vector.shape_cast %1461 : vector<1x1x32xf32> to vector<1x32xf32>
    %1463 = vector.broadcast %1462 : vector<1x32xf32> to vector<2x32xf32>
    %1464 = arith.addf %1460, %1463 : vector<2x32xf32>
    %1465 = vector.extract_strided_slice %784 {offsets = [2, 0, 0], sizes = [1, 32, 32], strides = [1, 1, 1]} : vector<3x32x32xf32> to vector<1x32x32xf32>
    %1466 = vector.shape_cast %1465 : vector<1x32x32xf32> to vector<32x32xf32>
    %cst_505 = arith.constant dense<0.000000e+00> : vector<2x32xf32>
    %1467 = tpu.matmul %1401, %1466, %cst_505 {dimension_numbers = #tpu.dot_dimension_numbers<[1], [0], [0], [1], [0, 0, 1, 1], [], []>} : vector<2x32xf32>, vector<32x32xf32>, vector<2x32xf32> -> vector<2x32xf32>
    %1468 = vector.extract_strided_slice %786 {offsets = [2, 0, 0], sizes = [1, 1, 32], strides = [1, 1, 1]} : vector<3x1x32xf32> to vector<1x1x32xf32>
    %1469 = vector.shape_cast %1468 : vector<1x1x32xf32> to vector<1x32xf32>
    %1470 = vector.broadcast %1469 : vector<1x32xf32> to vector<2x32xf32>
    %1471 = arith.addf %1467, %1470 : vector<2x32xf32>
    %1472 = arith.addf %1448, %1457 : vector<2x32xf32>
    %1473 = arith.negf %1472 : vector<2x32xf32>
    %1474 = math.exp %1473 : vector<2x32xf32>
    %cst_506 = arith.constant 1.000000e+00 : f32
    %1475 = vector.broadcast %cst_506 : f32 to vector<2x32xf32>
    %1476 = arith.addf %1475, %1474 : vector<2x32xf32>
    %1477 = arith.divf %1475, %1476 : vector<2x32xf32>
    %1478 = arith.addf %1449, %1464 : vector<2x32xf32>
    %1479 = arith.negf %1478 : vector<2x32xf32>
    %1480 = math.exp %1479 : vector<2x32xf32>
    %cst_507 = arith.constant 1.000000e+00 : f32
    %1481 = vector.broadcast %cst_507 : f32 to vector<2x32xf32>
    %1482 = arith.addf %1481, %1480 : vector<2x32xf32>
    %1483 = arith.divf %1481, %1482 : vector<2x32xf32>
    %1484 = arith.mulf %1477, %1471 : vector<2x32xf32>
    %1485 = arith.addf %1450, %1484 : vector<2x32xf32>
    %1486 = math.tanh %1485 : vector<2x32xf32>
    %cst_508 = arith.constant 1.000000e+00 : f32
    %1487 = vector.broadcast %cst_508 : f32 to vector<2x32xf32>
    %1488 = arith.subf %1487, %1483 : vector<2x32xf32>
    %1489 = arith.mulf %1488, %1486 : vector<2x32xf32>
    %1490 = arith.mulf %1483, %1401 : vector<2x32xf32>
    %1491 = arith.addf %1489, %1490 : vector<2x32xf32>
    %c2_509 = arith.constant 2 : index
    %c0_510 = arith.constant 0 : index
    %1492 = vector.load %arg22[%c2_509, %c0_510] : memref<16x32xf32, #tpu.memory_space<vmem>>, vector<2x32xf32>
    tpu.vector_store %arg22[%c2_509, %c0_510], %1491 {strides = array<i32>} : memref<16x32xf32, #tpu.memory_space<vmem>>, vector<2x32xf32>,
    %c14_511 = arith.constant 14 : index
    %c0_512 = arith.constant 0 : index
    %1493 = vector.load %arg23[%c14_511, %c0_512] : memref<16x32xf32, #tpu.memory_space<vmem>>, vector<2x32xf32>
    %c14_513 = arith.constant 14 : index
    %c0_514 = arith.constant 0 : index
    %1494 = vector.load %arg24[%c14_513, %c0_514] : memref<16x32xf32, #tpu.memory_space<vmem>>, vector<2x32xf32>
    %c14_515 = arith.constant 14 : index
    %c0_516 = arith.constant 0 : index
    %1495 = vector.load %arg25[%c14_515, %c0_516] : memref<16x32xf32, #tpu.memory_space<vmem>>, vector<2x32xf32>
    %1496 = vector.extract_strided_slice %780 {offsets = [0, 0, 0], sizes = [1, 32, 32], strides = [1, 1, 1]} : vector<3x32x32xf32> to vector<1x32x32xf32>
    %1497 = vector.shape_cast %1496 : vector<1x32x32xf32> to vector<32x32xf32>
    %cst_517 = arith.constant dense<0.000000e+00> : vector<2x32xf32>
    %1498 = tpu.matmul %1446, %1497, %cst_517 {dimension_numbers = #tpu.dot_dimension_numbers<[1], [0], [0], [1], [0, 0, 1, 1], [], []>} : vector<2x32xf32>, vector<32x32xf32>, vector<2x32xf32> -> vector<2x32xf32>
    %1499 = vector.extract_strided_slice %782 {offsets = [0, 0, 0], sizes = [1, 1, 32], strides = [1, 1, 1]} : vector<3x1x32xf32> to vector<1x1x32xf32>
    %1500 = vector.shape_cast %1499 : vector<1x1x32xf32> to vector<1x32xf32>
    %1501 = vector.broadcast %1500 : vector<1x32xf32> to vector<2x32xf32>
    %1502 = arith.addf %1498, %1501 : vector<2x32xf32>
    %1503 = vector.extract_strided_slice %780 {offsets = [1, 0, 0], sizes = [1, 32, 32], strides = [1, 1, 1]} : vector<3x32x32xf32> to vector<1x32x32xf32>
    %1504 = vector.shape_cast %1503 : vector<1x32x32xf32> to vector<32x32xf32>
    %cst_518 = arith.constant dense<0.000000e+00> : vector<2x32xf32>
    %1505 = tpu.matmul %1446, %1504, %cst_518 {dimension_numbers = #tpu.dot_dimension_numbers<[1], [0], [0], [1], [0, 0, 1, 1], [], []>} : vector<2x32xf32>, vector<32x32xf32>, vector<2x32xf32> -> vector<2x32xf32>
    %1506 = vector.extract_strided_slice %782 {offsets = [1, 0, 0], sizes = [1, 1, 32], strides = [1, 1, 1]} : vector<3x1x32xf32> to vector<1x1x32xf32>
    %1507 = vector.shape_cast %1506 : vector<1x1x32xf32> to vector<1x32xf32>
    %1508 = vector.broadcast %1507 : vector<1x32xf32> to vector<2x32xf32>
    %1509 = arith.addf %1505, %1508 : vector<2x32xf32>
    %1510 = vector.extract_strided_slice %780 {offsets = [2, 0, 0], sizes = [1, 32, 32], strides = [1, 1, 1]} : vector<3x32x32xf32> to vector<1x32x32xf32>
    %1511 = vector.shape_cast %1510 : vector<1x32x32xf32> to vector<32x32xf32>
    %cst_519 = arith.constant dense<0.000000e+00> : vector<2x32xf32>
    %1512 = tpu.matmul %1446, %1511, %cst_519 {dimension_numbers = #tpu.dot_dimension_numbers<[1], [0], [0], [1], [0, 0, 1, 1], [], []>} : vector<2x32xf32>, vector<32x32xf32>, vector<2x32xf32> -> vector<2x32xf32>
    %1513 = vector.extract_strided_slice %782 {offsets = [2, 0, 0], sizes = [1, 1, 32], strides = [1, 1, 1]} : vector<3x1x32xf32> to vector<1x1x32xf32>
    %1514 = vector.shape_cast %1513 : vector<1x1x32xf32> to vector<1x32xf32>
    %1515 = vector.broadcast %1514 : vector<1x32xf32> to vector<2x32xf32>
    %1516 = arith.addf %1512, %1515 : vector<2x32xf32>
    %1517 = arith.addf %1493, %1502 : vector<2x32xf32>
    %1518 = arith.negf %1517 : vector<2x32xf32>
    %1519 = math.exp %1518 : vector<2x32xf32>
    %cst_520 = arith.constant 1.000000e+00 : f32
    %1520 = vector.broadcast %cst_520 : f32 to vector<2x32xf32>
    %1521 = arith.addf %1520, %1519 : vector<2x32xf32>
    %1522 = arith.divf %1520, %1521 : vector<2x32xf32>
    %1523 = arith.addf %1494, %1509 : vector<2x32xf32>
    %1524 = arith.negf %1523 : vector<2x32xf32>
    %1525 = math.exp %1524 : vector<2x32xf32>
    %cst_521 = arith.constant 1.000000e+00 : f32
    %1526 = vector.broadcast %cst_521 : f32 to vector<2x32xf32>
    %1527 = arith.addf %1526, %1525 : vector<2x32xf32>
    %1528 = arith.divf %1526, %1527 : vector<2x32xf32>
    %1529 = arith.mulf %1522, %1516 : vector<2x32xf32>
    %1530 = arith.addf %1495, %1529 : vector<2x32xf32>
    %1531 = math.tanh %1530 : vector<2x32xf32>
    %cst_522 = arith.constant 1.000000e+00 : f32
    %1532 = vector.broadcast %cst_522 : f32 to vector<2x32xf32>
    %1533 = arith.subf %1532, %1528 : vector<2x32xf32>
    %1534 = arith.mulf %1533, %1531 : vector<2x32xf32>
    %1535 = arith.mulf %1528, %1446 : vector<2x32xf32>
    %1536 = arith.addf %1534, %1535 : vector<2x32xf32>
    %c14_523 = arith.constant 14 : index
    %c0_524 = arith.constant 0 : index
    %1537 = vector.load %arg21[%c14_523, %c0_524] : memref<16x32xf32, #tpu.memory_space<vmem>>, vector<2x32xf32>
    tpu.vector_store %arg21[%c14_523, %c0_524], %1536 {strides = array<i32>} : memref<16x32xf32, #tpu.memory_space<vmem>>, vector<2x32xf32>,
    %c0_525 = arith.constant 0 : index
    %c0_526 = arith.constant 0 : index
    %1538 = vector.load %arg26[%c0_525, %c0_526] : memref<16x32xf32, #tpu.memory_space<vmem>>, vector<2x32xf32>
    %c0_527 = arith.constant 0 : index
    %c0_528 = arith.constant 0 : index
    %1539 = vector.load %arg27[%c0_527, %c0_528] : memref<16x32xf32, #tpu.memory_space<vmem>>, vector<2x32xf32>
    %c0_529 = arith.constant 0 : index
    %c0_530 = arith.constant 0 : index
    %1540 = vector.load %arg28[%c0_529, %c0_530] : memref<16x32xf32, #tpu.memory_space<vmem>>, vector<2x32xf32>
    %1541 = vector.extract_strided_slice %784 {offsets = [0, 0, 0], sizes = [1, 32, 32], strides = [1, 1, 1]} : vector<3x32x32xf32> to vector<1x32x32xf32>
    %1542 = vector.shape_cast %1541 : vector<1x32x32xf32> to vector<32x32xf32>
    %cst_531 = arith.constant dense<0.000000e+00> : vector<2x32xf32>
    %1543 = tpu.matmul %1491, %1542, %cst_531 {dimension_numbers = #tpu.dot_dimension_numbers<[1], [0], [0], [1], [0, 0, 1, 1], [], []>} : vector<2x32xf32>, vector<32x32xf32>, vector<2x32xf32> -> vector<2x32xf32>
    %1544 = vector.extract_strided_slice %786 {offsets = [0, 0, 0], sizes = [1, 1, 32], strides = [1, 1, 1]} : vector<3x1x32xf32> to vector<1x1x32xf32>
    %1545 = vector.shape_cast %1544 : vector<1x1x32xf32> to vector<1x32xf32>
    %1546 = vector.broadcast %1545 : vector<1x32xf32> to vector<2x32xf32>
    %1547 = arith.addf %1543, %1546 : vector<2x32xf32>
    %1548 = vector.extract_strided_slice %784 {offsets = [1, 0, 0], sizes = [1, 32, 32], strides = [1, 1, 1]} : vector<3x32x32xf32> to vector<1x32x32xf32>
    %1549 = vector.shape_cast %1548 : vector<1x32x32xf32> to vector<32x32xf32>
    %cst_532 = arith.constant dense<0.000000e+00> : vector<2x32xf32>
    %1550 = tpu.matmul %1491, %1549, %cst_532 {dimension_numbers = #tpu.dot_dimension_numbers<[1], [0], [0], [1], [0, 0, 1, 1], [], []>} : vector<2x32xf32>, vector<32x32xf32>, vector<2x32xf32> -> vector<2x32xf32>
    %1551 = vector.extract_strided_slice %786 {offsets = [1, 0, 0], sizes = [1, 1, 32], strides = [1, 1, 1]} : vector<3x1x32xf32> to vector<1x1x32xf32>
    %1552 = vector.shape_cast %1551 : vector<1x1x32xf32> to vector<1x32xf32>
    %1553 = vector.broadcast %1552 : vector<1x32xf32> to vector<2x32xf32>
    %1554 = arith.addf %1550, %1553 : vector<2x32xf32>
    %1555 = vector.extract_strided_slice %784 {offsets = [2, 0, 0], sizes = [1, 32, 32], strides = [1, 1, 1]} : vector<3x32x32xf32> to vector<1x32x32xf32>
    %1556 = vector.shape_cast %1555 : vector<1x32x32xf32> to vector<32x32xf32>
    %cst_533 = arith.constant dense<0.000000e+00> : vector<2x32xf32>
    %1557 = tpu.matmul %1491, %1556, %cst_533 {dimension_numbers = #tpu.dot_dimension_numbers<[1], [0], [0], [1], [0, 0, 1, 1], [], []>} : vector<2x32xf32>, vector<32x32xf32>, vector<2x32xf32> -> vector<2x32xf32>
    %1558 = vector.extract_strided_slice %786 {offsets = [2, 0, 0], sizes = [1, 1, 32], strides = [1, 1, 1]} : vector<3x1x32xf32> to vector<1x1x32xf32>
    %1559 = vector.shape_cast %1558 : vector<1x1x32xf32> to vector<1x32xf32>
    %1560 = vector.broadcast %1559 : vector<1x32xf32> to vector<2x32xf32>
    %1561 = arith.addf %1557, %1560 : vector<2x32xf32>
    %1562 = arith.addf %1538, %1547 : vector<2x32xf32>
    %1563 = arith.negf %1562 : vector<2x32xf32>
    %1564 = math.exp %1563 : vector<2x32xf32>
    %cst_534 = arith.constant 1.000000e+00 : f32
    %1565 = vector.broadcast %cst_534 : f32 to vector<2x32xf32>
    %1566 = arith.addf %1565, %1564 : vector<2x32xf32>
    %1567 = arith.divf %1565, %1566 : vector<2x32xf32>
    %1568 = arith.addf %1539, %1554 : vector<2x32xf32>
    %1569 = arith.negf %1568 : vector<2x32xf32>
    %1570 = math.exp %1569 : vector<2x32xf32>
    %cst_535 = arith.constant 1.000000e+00 : f32
    %1571 = vector.broadcast %cst_535 : f32 to vector<2x32xf32>
    %1572 = arith.addf %1571, %1570 : vector<2x32xf32>
    %1573 = arith.divf %1571, %1572 : vector<2x32xf32>
    %1574 = arith.mulf %1567, %1561 : vector<2x32xf32>
    %1575 = arith.addf %1540, %1574 : vector<2x32xf32>
    %1576 = math.tanh %1575 : vector<2x32xf32>
    %cst_536 = arith.constant 1.000000e+00 : f32
    %1577 = vector.broadcast %cst_536 : f32 to vector<2x32xf32>
    %1578 = arith.subf %1577, %1573 : vector<2x32xf32>
    %1579 = arith.mulf %1578, %1576 : vector<2x32xf32>
    %1580 = arith.mulf %1573, %1491 : vector<2x32xf32>
    %1581 = arith.addf %1579, %1580 : vector<2x32xf32>
    %c0_537 = arith.constant 0 : index
    %c0_538 = arith.constant 0 : index
    %1582 = vector.load %arg22[%c0_537, %c0_538] : memref<16x32xf32, #tpu.memory_space<vmem>>, vector<2x32xf32>
    tpu.vector_store %arg22[%c0_537, %c0_538], %1581 {strides = array<i32>} : memref<16x32xf32, #tpu.memory_space<vmem>>, vector<2x32xf32>,
    %c0_539 = arith.constant 0 : index
    %c0_540 = arith.constant 0 : index
    %1583 = vector.load %arg21[%c0_539, %c0_540] : memref<16x32xf32, #tpu.memory_space<vmem>>, vector<16x32xf32>
    %c0_541 = arith.constant 0 : index
    %c0_542 = arith.constant 0 : index
    %1584 = vector.load %arg22[%c0_541, %c0_542] : memref<16x32xf32, #tpu.memory_space<vmem>>, vector<16x32xf32>
    %1585 = tpu.concatenate %1583, %1584 in 1 : vector<16x32xf32>, vector<16x32xf32> -> vector<16x64xf32>
    %c0_543 = arith.constant 0 : index
    %c0_544 = arith.constant 0 : index
    %1586 = vector.load %arg19[%c0_543, %c0_544] : memref<16x64xf32, #tpu.memory_space<vmem>>, vector<16x64xf32>
    tpu.vector_store %arg19[%c0_543, %c0_544], %1585 {strides = array<i32>} : memref<16x64xf32, #tpu.memory_space<vmem>>, vector<16x64xf32>,
    %1587 = tpu.concatenate %1536, %1581 in 1 : vector<2x32xf32>, vector<2x32xf32> -> vector<2x64xf32>
    %c0_545 = arith.constant 0 : index
    %c0_546 = arith.constant 0 : index
    %1588 = vector.load %arg17[%c0_545, %c0_546] : memref<64x32xf32, #tpu.memory_space<vmem>>, vector<64x32xf32>
    %cst_547 = arith.constant dense<0.000000e+00> : vector<2x32xf32>
    %1589 = tpu.matmul %1587, %1588, %cst_547 {dimension_numbers = #tpu.dot_dimension_numbers<[1], [0], [0], [1], [0, 0, 1, 1], [], []>} : vector<2x64xf32>, vector<64x32xf32>, vector<2x32xf32> -> vector<2x32xf32>
    %c0_548 = arith.constant 0 : index
    %c0_549 = arith.constant 0 : index
    %1590 = vector.load %arg18[%c0_548, %c0_549] : memref<1x32xf32, #tpu.memory_space<vmem>>, vector<1x32xf32>
    %1591 = vector.broadcast %1590 : vector<1x32xf32> to vector<2x32xf32>
    %1592 = arith.addf %1589, %1591 : vector<2x32xf32>
    %1593 = math.tanh %1592 : vector<2x32xf32>
    %c0_550 = arith.constant 0 : index
    %c0_551 = arith.constant 0 : index
    %1594 = vector.load %arg20[%c0_550, %c0_551] : memref<2x32xf32, #tpu.memory_space<vmem>>, vector<2x32xf32>
    tpu.vector_store %arg20[%c0_550, %c0_551], %1593 {strides = array<i32>} : memref<2x32xf32, #tpu.memory_space<vmem>>, vector<2x32xf32>,
    return
  }
}

</mosaic_0001>

<bundles_post_ra>
// kernel: encoder_forward.1
= control target key start
LH: loop header
LB: loop body
LE: loop exit
PB: predicated region body
PF: predicated region fallthrough
CT: control target
= control target key end

     0   :  { %s14390_s0 = inlined_call_operand.vmem [shape: f32[16,4], index: 0, kind: input, shape index: {}]   ;;  %s14391_s1 = inlined_call_operand.vmem [shape: f32[3,4,32], index: 1, kind: input, shape index: {}]   ;;  %s14392_s2 = inlined_call_operand.vmem [shape: f32[3,32,32], index: 2, kind: input, shape index: {}]   ;;  %s14393_s3 = inlined_call_operand.vmem [shape: f32[3,1,32], index: 3, kind: input, shape index: {}]   ;;  %s14394_s4 = inlined_call_operand.vmem [shape: f32[3,1,32], index: 4, kind: input, shape index: {}]   ;;  %s14395_s5 = inlined_call_operand.vmem [shape: f32[3,4,32], index: 5, kind: input, shape index: {}]   ;;  %s14396_s6 = inlined_call_operand.vmem [shape: f32[3,32,32], index: 6, kind: input, shape index: {}]   ;;  %s14397_s7 = inlined_call_operand.vmem [shape: f32[3,1,32], index: 7, kind: input, shape index: {}]   ;;  %s14398_s8 = inlined_call_operand.vmem [shape: f32[3,1,32], index: 8, kind: input, shape index: {}]   ;;  %s14399_s9 = inlined_call_operand.vmem [shape: f32[3,64,32], index: 9, kind: input, shape index: {}]   ;;  %s14400_s10 = inlined_call_operand.vmem [shape: f32[3,32,32], index: 10, kind: input, shape index: {}]   ;;  %s14401_s11 = inlined_call_operand.vmem [shape: f32[3,1,32], index: 11, kind: input, shape index: {}]   ;;  %s14402_s12 = inlined_call_operand.vmem [shape: f32[3,1,32], index: 12, kind: input, shape index: {}]   ;;  %s14403_s13 = inlined_call_operand.vmem [shape: f32[3,64,32], index: 13, kind: input, shape index: {}]   ;;  %s14404_s14 = inlined_call_operand.vmem [shape: f32[3,32,32], index: 14, kind: input, shape index: {}]   ;;  %s14405_s15 = inlined_call_operand.vmem [shape: f32[3,1,32], index: 15, kind: input, shape index: {}]   ;;  %s14406_s16 = inlined_call_operand.vmem [shape: f32[3,1,32], index: 16, kind: input, shape index: {}]   ;;  %s14407_s17 = inlined_call_operand.vmem [shape: f32[64,32], index: 17, kind: input, shape index: {}]   ;;  %s14408_s18 = inlined_call_operand.vmem [shape: f32[1,32], index: 18, kind: input, shape index: {}]   ;;  %s14409_s19 = inlined_call_operand.vmem [shape: f32[16,64], index: 19, kind: output, shape index: {0}]   ;;  %s14410_s20 = inlined_call_operand.hbm [shape: f32[2,32], index: 20, kind: output, shape index: {1}]  }
   0x1   :  { %14416 = sst [smem:[#allocation13_spill]] %s14390_s0 }
   0x2   :  { %14417 = sst [smem:[#allocation14_spill]] %s14391_s1 }
   0x3   :  { %14418 = sst [smem:[#allocation15_spill]] %s14392_s2 }
   0x4   :  { %14419 = sst [smem:[#allocation16_spill]] %s14393_s3 }
   0x5   :  { %14420 = sst [smem:[#allocation17_spill]] %s14394_s4 }
   0x6   :  { %s14421_s23 = sld [smem:[#allocation14_spill]]  ;;  %vm122_vm0 = vcmask 1043456   ;;  %s14422_s25 = sld [smem:[#allocation13_spill]]  ;;  %vm115_vm1 = vcmask 31744   ;;  %v86_v3 = vld [vmem:[%s14395_s5] sm:$0xf] }
   0x7   :  { %v88_v5 = vld [vmem:[%s14395_s5 + $0x8] sm:$0xf]  ;;  %s14423_s2 = sld [smem:[#allocation15_spill]]  ;;  %v87_v9 = vld [vmem:[%s14395_s5 + $0x4] sm:$0xf]  ;;  %v12595_v12 = vmov 0.0|0.0  }
   0xc   :  { %v66_v0 = vld [vmem:[%s14421_s23 + $0x4] sm:$0xf]  ;;  %v108_v2 = vld [vmem:[%s14422_s25 + $0x8] sm:$0xff]  ;;  %v65_v4 = vld [vmem:[%s14421_s23] sm:$0xf] }
   0xd   :  { %v107_v1 = vld [vmem:[%s14422_s25] sm:$0xff]  ;;  %10304 = vmatprep.subr.msk.mxu1 %vm122_vm0, %v66_v0  ;;  %10299 = vmatprep.subr.msk.mxu0 %vm122_vm0, %v65_v4  ;;  %v67_v6 = vld [vmem:[%s14421_s23 + $0x8] sm:$0xf]  ;;  %v70_v11 = vld [vmem:[%s14423_s2 + $0x10] sm:$0xff] }
   0xe   :  { %10306 = vmatprep.mubr.msk.f32.mxu1 %vm115_vm1, %v107_v1  ;;  %10305 = vmatpush3.msk.msra.mxu1 %vm122_vm0, %v66_v0  ;;  %v68_v7 = vld [vmem:[%s14423_s2] sm:$0xff]  ;;  %v69_v8 = vld [vmem:[%s14423_s2 + $0x8] sm:$0xff]  ;;  %v71_v13 = vld [vmem:[%s14423_s2 + $0x18] sm:$0xff] }
   0xf   :  { %10307 = vmatmul.mubr.msk.f32.vlgmr.msra.gmra.mrb[0].mxu1 %vm115_vm1, %v108_v2  ;;  %10314 = vmatprep.subr.msk.mxu1 %vm122_vm0, %v86_v3  ;;  %v12751_v10 = vpack.c.bf16 %v69_v8, %v68_v7  ;;  %v76_v14 = vld [vmem:[%s14423_s2 + $0x40] sm:$0xff]  ;;  %v77_v15 = vld [vmem:[%s14423_s2 + $0x48] sm:$0xff] }
  0x10   :  { %10315 = vmatpush3.msk.msra.mxu1 %vm122_vm0, %v86_v3  ;;  %10316 = vmatprep.mubr.msk.f32.mxu1 %vm115_vm1, %v107_v1 }
  0x11   :  { %10324 = vmatprep.subr.msk.mxu1 %vm122_vm0, %v88_v5  ;;  %10300 = vmatpush3.msk.msra.mxu0 %vm122_vm0, %v65_v4 }
  0x12   :  { %10301 = vmatprep.mubr.msk.f32.mxu0 %vm115_vm1, %v107_v1  ;;  %10309 = vmatprep.subr.msk.mxu0 %vm122_vm0, %v67_v6 }
  0x13   :  { %10317 = vmatmul.mubr.msk.f32.vlgmr.msra.gmra.mrb[2].mxu1 %vm115_vm1, %v108_v2  ;;  %10302 = vmatmul.mubr.msk.f32.vlgmr.msra.gmra.mrb[0].mxu0 %vm115_vm1, %v108_v2 }
  0x14   :  { %10325 = vmatpush3.msk.msra.mxu1 %vm122_vm0, %v88_v5  ;;  %10326 = vmatprep.mubr.msk.f32.mxu1 %vm115_vm1, %v107_v1 }
  0x15   :  { %11536 = vmatprep.subr.bf16.mxu1 %v12595_v12  ;;  %10310 = vmatpush3.msk.msra.mxu0 %vm122_vm0, %v67_v6 }
  0x16   :  { %10311 = vmatprep.mubr.msk.f32.mxu0 %vm115_vm1, %v107_v1  ;;  %10319 = vmatprep.subr.msk.mxu0 %vm122_vm0, %v87_v9 }
  0x17   :  { %26 = vsyncpa [#allocation11], 0  ;;  %10327 = vmatmul.mubr.msk.f32.vlgmr.msra.gmra.mrb[4].mxu1 %vm115_vm1, %v108_v2  ;;  %10312 = vmatmul.mubr.msk.f32.vlgmr.msra.gmra.mrb[2].mxu0 %vm115_vm1, %v108_v2  ;;  %v12772_v16 = vpack.c.bf16 %v71_v13, %v70_v11  ;;  %vm12596_vm2 = vmmov 0   ;;  %v12597_v17 = vmov 0.0   ;;  %v12776_v18 = vpack.c.bf16 %v77_v15, %v76_v14  ;;  %v72_v19 = vld [vmem:[%s14423_s2 + $0x20] sm:$0xff]  ;;  %v73_v20 = vld [vmem:[%s14423_s2 + $0x28] sm:$0xff] }
  0x18   :  { %11538 = vmatpush3.bf16.msra.mxu1 %v12751_v10  ;;  %10337 = vmatprep.mubr.msk.f32.mxu1 %vm12596_vm2, %v12597_v17  ;;  %v78_v21 = vld [vmem:[%s14423_s2 + $0x50] sm:$0xff]  ;;  %v79_v22 = vld [vmem:[%s14423_s2 + $0x58] sm:$0xff]  ;;  %v12796_v23 = vpack.c.bf16 %v73_v20, %v72_v19  ;;  %v93_v27 = vld [vmem:[%s14396_s6 + $0x20] sm:$0xff]  ;;  %s14424_s23 = sld [smem:[#allocation16_spill]]  ;;  %vm201_vm3 = vcmask 261120   ;;  %s14425_s24 = sld [smem:[#allocation17_spill]] }
  0x19   :  { %11539 = vmatprep.subr.bf16.mxu1 %v12595_v12  ;;  %10320 = vmatpush3.msk.msra.mxu0 %vm122_vm0, %v87_v9  ;;  %v74_v24 = vld [vmem:[%s14423_s2 + $0x30] sm:$0xff]  ;;  %v75_v25 = vld [vmem:[%s14423_s2 + $0x38] sm:$0xff]  ;;  %v12807_v26 = vpack.c.bf16 %v79_v22, %v78_v21  ;;  %v94_v28 = vld [vmem:[%s14396_s6 + $0x28] sm:$0xff]  ;;  %vm889_vm4 = vcmask 254976   ;;  %s12598_s26 = smov 32   ;;  %vm9388_vm5 = vcmask 523264  }
  0x1a   :  { %10321 = vmatprep.mubr.msk.f32.mxu0 %vm115_vm1, %v107_v1  ;;  %11548 = vmatprep.subr.bf16.mxu0 %v12595_v12  ;;  %v12819_v29 = vpack.c.bf16 %v75_v25, %v74_v24  ;;  %v89_v30 = vld [vmem:[%s14396_s6] sm:$0xff]  ;;  %v90_v31 = vld [vmem:[%s14396_s6 + $0x8] sm:$0xff]  ;;  %v12831_v32 = vpack.c.bf16 %v94_v28, %v93_v27  ;;  %v95_v33 = vld [vmem:[%s14396_s6 + $0x30] sm:$0xff] }
  0x1b   :  { %10322 = vmatmul.mubr.msk.f32.vlgmr.msra.gmra.mrb[4].mxu0 %vm115_vm1, %v108_v2  ;;  %v96_v34 = vld [vmem:[%s14396_s6 + $0x38] sm:$0xff]  ;;  %v12841_v35 = vpack.c.bf16 %v90_v31, %v89_v30  ;;  %v91_v36 = vld [vmem:[%s14396_s6 + $0x10] sm:$0xff]  ;;  %v97_v40 = vld [vmem:[%s14396_s6 + $0x40] sm:$0xff] }
  0x1c   :  { %11541 = vmatpush3.bf16.msra.mxu1 %v12772_v16  ;;  %11550 = vmatpush3.bf16.msra.mxu0 %v12776_v18  ;;  %v92_v37 = vld [vmem:[%s14396_s6 + $0x18] sm:$0xff]  ;;  %v12852_v38 = vpack.c.bf16 %v96_v34, %v95_v33  ;;  %v98_v41 = vld [vmem:[%s14396_s6 + $0x48] sm:$0xff]  ;;  %v99_v43 = vld [vmem:[%s14396_s6 + $0x50] sm:$0xff] }
  0x1d   :  { %11542 = vmatprep.subr.bf16.mxu1 %v12595_v12  ;;  %11551 = vmatprep.subr.bf16.mxu0 %v12595_v12  ;;  %v12859_v39 = vpack.c.bf16 %v92_v37, %v91_v36  ;;  %v12874_v42 = vpack.c.bf16 %v98_v41, %v97_v40  ;;  %v100_v44 = vld [vmem:[%s14396_s6 + $0x58] sm:$0xff]  ;;  %v9516_v51 = vld [vmem:[%s14397_s7] ss:$0 sm:$0xff]  ;;  %v9524_v61 = vld [vmem:[%s14397_s7 + $0x2] ss:$0 sm:$0xff] }
  0x1e   :  { %10359 = vmatprep.mubr.msk.f32.mxu0 %vm12596_vm2, %v12597_v17  ;;  %v12889_v45 = vpack.c.bf16 %v100_v44, %v99_v43  ;;  %v9508_v46 = vld [vmem:[%s14424_s23 + $0x1] ss:$0 sm:$0xff]  ;;  %v9504_v52 = vld [vmem:[%s14424_s23] ss:$0 sm:$0xff]  ;;  %v9512_v62 = vld [vmem:[%s14424_s23 + $0x2] ss:$0 sm:$0xff] }
  0x1f   :  { %10338 = vmatmul.mubr.f32.vlgmr.msra.gmra.mrb[6].mxu1 %v12597_v17  ;;  %v9520_v7 = vld [vmem:[%s14397_s7 + $0x1] ss:$0 sm:$0xff]  ;;  %v12936_v13 = vld [vmem:[%s14425_s24] ss:$0 sm:$0xff] }
  0x20   :  { %11544 = vmatpush3.bf16.msra.mxu1 %v12796_v23  ;;  %10348 = vmatprep.mubr.msk.f32.mxu1 %vm12596_vm2, %v12597_v17  ;;  %v12944_v27 = vld [vmem:[%s14425_s24 + $0x1] ss:$0 sm:$0xff]  ;;  %v12950_v41 = vld [vmem:[%s14398_s8] ss:$0 sm:$0xff] }
  0x21   :  { %11545 = vmatprep.subr.bf16.mxu1 %v12595_v12  ;;  %11553 = vmatpush3.bf16.msra.mxu0 %v12807_v26  ;;  %v12955_v44 = vld [vmem:[%s14398_s8 + $0x1] ss:$0 sm:$0xff] }
  0x22   :  { %11560 = vmatprep.subr.bf16.mxu0 %v12595_v12 }
  0x24   :  { %11547 = vmatpush3.bf16.msra.mxu1 %v12819_v29  ;;  %10360 = vmatmul.mubr.f32.vlgmr.msra.gmra.mrb[6].mxu0 %v12597_v17 }
  0x25   :  { %11554 = vmatprep.subr.bf16.mxu1 %v12595_v12  ;;  %11562 = vmatpush3.bf16.msra.mxu0 %v12831_v32 }
  0x26   :  { %11563 = vmatprep.subr.bf16.mxu0 %v12595_v12  ;;  %10381 = vmatprep.mubr.msk.f32.mxu0 %vm12596_vm2, %v12597_v17 }
  0x27   :  { %10349 = vmatmul.mubr.f32.vlgmr.msra.gmra.mrb[8].mxu1 %v12597_v17 }
  0x28   :  { %11556 = vmatpush3.bf16.msra.mxu1 %v12841_v35  ;;  %10370 = vmatprep.mubr.msk.f32.mxu1 %vm12596_vm2, %v12597_v17 }
  0x29   :  { %11557 = vmatprep.subr.bf16.mxu1 %v12595_v12  ;;  %11565 = vmatpush3.bf16.msra.mxu0 %v12852_v38 }
  0x2a   :  { %11572 = vmatprep.subr.bf16.mxu0 %v12595_v12 }
  0x2c   :  { %11559 = vmatpush3.bf16.msra.mxu1 %v12859_v39  ;;  %10382 = vmatmul.mubr.f32.vlgmr.msra.gmra.mrb[8].mxu0 %v12597_v17 }
  0x2d   :  { %11566 = vmatprep.subr.bf16.mxu1 %v12595_v12  ;;  %11574 = vmatpush3.bf16.msra.mxu0 %v12751_v10 }
  0x2e   :  { %11575 = vmatprep.subr.bf16.mxu0 %v12595_v12  ;;  %10403 = vmatprep.mubr.msk.f32.mxu0 %vm12596_vm2, %v12597_v17 }
  0x2f   :  { %10371 = vmatmul.mubr.f32.vlgmr.msra.gmra.mrb[10].mxu1 %v12597_v17 }
  0x30   :  { %11568 = vmatpush3.bf16.msra.mxu1 %v12874_v42  ;;  %10392 = vmatprep.mubr.msk.f32.mxu1 %vm12596_vm2, %v12597_v17 }
  0x31   :  { %11569 = vmatprep.subr.bf16.mxu1 %v12595_v12  ;;  %11577 = vmatpush3.bf16.msra.mxu0 %v12772_v16 }
  0x32   :  { %11584 = vmatprep.subr.bf16.mxu0 %v12595_v12 }
  0x34   :  { %11571 = vmatpush3.bf16.msra.mxu1 %v12889_v45 }
  0x35   :  { %11578 = vmatprep.subr.bf16.mxu1 %v12595_v12 }
  0x37   :  { %10393 = vmatmul.mubr.f32.vlgmr.msra.gmra.mrb[12].mxu1 %v12597_v17 }
  0x38   :  { %11580 = vmatpush3.bf16.msra.mxu1 %v12796_v23  ;;  %10414 = vmatprep.mubr.msk.f32.mxu1 %vm12596_vm2, %v12597_v17 }
  0x39   :  { %11581 = vmatprep.subr.bf16.mxu1 %v12595_v12 }
  0x3c   :  { %11583 = vmatpush3.bf16.msra.mxu1 %v12819_v29 }
  0x3d   :  { %11590 = vmatprep.subr.bf16.mxu1 %v12595_v12 }
  0xe2   :  { %v10308_v47 = vpop.f32.mrb[0].mxu1 }
  0xe3   :  { %v285_v48 = vadd.f32 %v10308_v47, %v9508_v46  ;;  %v279_v49 = vpop.f32.mrb[1].mxu1 }
  0xe4   :  { %v280_v50 = vadd.f32 %v9508_v46, %v279_v49 }
  0xe5   :  { %289 = vst.msk [vmem:[#allocation5 + $0x8] sm:$0xff] %vm201_vm3, %v285_v48 }
  0xe6   :  { %288 = vst.msk [vmem:[#allocation5] sm:$0xff] %vm201_vm3, %v280_v50  ;;  %v10318_v53 = vpop.f32.mrb[2].mxu1  ;;  %v10303_v54 = vpop.f32.mrb[0].mxu0 }
  0xe7   :  { %v457_v55 = vadd.f32 %v10318_v53, %v9516_v51  ;;  %v451_v56 = vpop.f32.mrb[3].mxu1  ;;  %v198_v57 = vadd.f32 %v10303_v54, %v9504_v52  ;;  %v192_v58 = vpop.f32.mrb[1].mxu0 }
  0xe8   :  { %v452_v59 = vadd.f32 %v9516_v51, %v451_v56  ;;  %v193_v60 = vadd.f32 %v9504_v52, %v192_v58 }
  0xe9   :  { %461 = vst.msk [vmem:[#allocation7 + $0x8] sm:$0xff] %vm201_vm3, %v457_v55  ;;  %203 = vst.msk [vmem:[#allocation4 + $0x8] sm:$0xff] %vm201_vm3, %v198_v57 }
  0xea   :  { %460 = vst.msk [vmem:[#allocation7] sm:$0xff] %vm201_vm3, %v452_v59  ;;  %202 = vst.msk [vmem:[#allocation4] sm:$0xff] %vm201_vm3, %v193_v60  ;;  %v10328_v63 = vpop.f32.mrb[4].mxu1  ;;  %v10313_v0 = vpop.f32.mrb[2].mxu0  ;;  %v12962_v60 = vld [vmem:[%s14425_s24 + $0x2] ss:$0 sm:$0xff] }
  0xeb   :  { %v629_v1 = vadd.f32 %v10328_v63, %v9524_v61  ;;  %v623_v2 = vpop.f32.mrb[5].mxu1  ;;  %v371_v3 = vadd.f32 %v10313_v0, %v9512_v62  ;;  %v365_v4 = vpop.f32.mrb[3].mxu0 }
  0xec   :  { %v624_v5 = vadd.f32 %v9524_v61, %v623_v2  ;;  %v366_v6 = vadd.f32 %v9512_v62, %v365_v4 }
  0xed   :  { %633 = vst.msk [vmem:[#allocation9 + $0x8] sm:$0xff] %vm201_vm3, %v629_v1  ;;  %375 = vst.msk [vmem:[#allocation6 + $0x8] sm:$0xff] %vm201_vm3, %v371_v3  ;;  %v635_v34 = vld [vmem:[#allocation5] sm:$0x3] }
  0xee   :  { %632 = vst.msk [vmem:[#allocation9] sm:$0xff] %vm201_vm3, %v624_v5  ;;  %374 = vst.msk [vmem:[#allocation6] sm:$0xff] %vm201_vm3, %v366_v6  ;;  %v10323_v8 = vpop.f32.mrb[4].mxu0 }
  0xef   :  { %v543_v9 = vadd.f32 %v10323_v8, %v9520_v7  ;;  %v537_v11 = vpop.f32.mrb[5].mxu0 }
  0xf0   :  { %v538_v14 = vadd.f32 %v9520_v7, %v537_v11  ;;  %v891_v51 = vld [vmem:[#allocation7 + $0xe] sm:$0x3]  ;;  %v12968_v7 = vld [vmem:[%s14398_s8 + $0x2] ss:$0 sm:$0xff] }
  0xf1   :  { %547 = vst.msk [vmem:[#allocation8 + $0x8] sm:$0xff] %vm201_vm3, %v543_v9  ;;  %v634_v15 = vld [vmem:[#allocation4] sm:$0x3] }
  0xf2   :  { %v712_v19 = vpop.f32.mrb[6].mxu1  ;;  %546 = vst.msk [vmem:[#allocation8] sm:$0xff] %vm201_vm3, %v538_v14 }
  0xf3   :  { %v713_v20 = vadd.f32 %v12936_v13, %v712_v19  ;;  %v10339_v21 = vpop.f32.mrb[7].mxu1 }
  0xf5   :  { %v868_v22 = vadd.f32 %v713_v20, %v634_v15  ;;  %v636_v2 = vld [vmem:[#allocation6] sm:$0x3] }
  0xf7   :  { %v9531_v24 = vmul.f32 -1.442695, %v868_v22  ;;  %v864_v25 = vpop.f32.mrb[6].mxu0 }
  0xf8   :  { %v10361_v28 = vpop.f32.mrb[7].mxu0  ;;  %v892_v54 = vld [vmem:[#allocation8 + $0xe] sm:$0x3]  ;;  %v865_v63 = vadd.f32 %v12962_v60, %v864_v25 }
  0xf9   :  { %12237 = vpow2.f32 %v9531_v24  ;;  %v893_v24 = vld [vmem:[#allocation9 + $0xe] sm:$0x3] }
  0xfa   :  { %v788_v30 = vpop.f32.mrb[8].mxu1 }
  0xfb   :  { %v789_v31 = vadd.f32 %v12944_v27, %v788_v30  ;;  %v10350_v33 = vpop.f32.mrb[9].mxu1 }
  0xfd   :  { %v875_v36 = vadd.f32 %v789_v31, %v635_v34 }
  0xff   :  { %v9532_v37 = vmul.f32 -1.442695, %v875_v36  ;;  %v1042_v40 = vpop.f32.mrb[8].mxu0 }
 0x100   :  { %v10383_v43 = vpop.f32.mrb[9].mxu0  ;;  %v1043_v52 = vadd.f32 %v12955_v44, %v1042_v40 }
 0x101   :  { %12239 = vpow2.f32 %v9532_v37 }
 0x102   :  { %v966_v46 = vpop.f32.mrb[10].mxu1  ;;  %v1129_v56 = vadd.f32 %v1043_v52, %v892_v54 }
 0x103   :  { %v12238_v47 = vpop.eup %12237  ;;  %v967_v48 = vadd.f32 %v12950_v41, %v966_v46  ;;  %v10372_v49 = vpop.f32.mrb[11].mxu1 }
 0x104   :  { %v872_v50 = vadd.f32 1.0, %v12238_v47  ;;  %v9537_v61 = vmul.f32 -1.442695, %v1129_v56  ;;  %v1144_v49 = vld [vmem:[#allocation4 + $0x2] sm:$0x3] }
 0x105   :  { %v1122_v53 = vadd.f32 %v967_v48, %v891_v51 }
 0x106   :  { %12241 = vrcp.f32 %v872_v50 }
 0x107   :  { %v9536_v55 = vmul.f32 -1.442695, %v1122_v53  ;;  %v1145_v53 = vld [vmem:[#allocation5 + $0x2] sm:$0x3] }
 0x109   :  { %12243 = vpow2.f32 %v9536_v55 }
 0x10a   :  { %v1118_v57 = vpop.f32.mrb[12].mxu1  ;;  %12245 = vpow2.f32 %v9537_v61 }
 0x10b   :  { %v12240_v58 = vpop.eup %12239  ;;  %v10394_v59 = vpop.f32.mrb[13].mxu1  ;;  %v1119_v11 = vadd.f32 %v12968_v7, %v1118_v57 }
 0x10c   :  { %v879_v62 = vadd.f32 1.0, %v12240_v58 }
 0x10e   :  { %12247 = vrcp.f32 %v879_v62 }
 0x110   :  { %v12242_v0 = vpop.eup %12241 }
 0x111   :  { %v882_v1 = vmul.f32 %v12242_v0, %v865_v63 }
 0x113   :  { %v12244_v3 = vpop.eup %12243  ;;  %v883_v4 = vadd.f32 %v882_v1, %v636_v2  ;;  %v1382_v2 = vld [vmem:[#allocation7 + $0xc] sm:$0x3] }
 0x114   :  { %v1126_v5 = vadd.f32 1.0, %v12244_v3  ;;  %v12246_v6 = vpop.eup %12245 }
 0x115   :  { %12249 = vtanh.f32 %v883_v4  ;;  %v1133_v9 = vadd.f32 1.0, %v12246_v6  ;;  %v1383_v6 = vld [vmem:[#allocation8 + $0xc] sm:$0x3] }
 0x116   :  { %12251 = vrcp.f32 %v1126_v5 }
 0x117   :  { %12253 = vrcp.f32 %v1133_v9 }
 0x118   :  { %v12248_v8 = vpop.eup %12247 }
 0x119   :  { %v885_v14 = vsub.f32 1.0, %v12248_v8  ;;  %v887_v21 = vmul.f32 0.0, %v12248_v8 }
 0x11f   :  { %v12250_v15 = vpop.eup %12249 }
 0x120   :  { %v12252_v19 = vpop.eup %12251  ;;  %v886_v20 = vmul.f32 %v12250_v15, %v885_v14 }
 0x121   :  { %v1136_v22 = vmul.f32 %v12252_v19, %v1119_v11  ;;  %v12254_v30 = vpop.eup %12253 }
 0x122   :  { %v12971_v25 = vadd.f32 %v887_v21, %v886_v20  ;;  %v1139_v31 = vsub.f32 1.0, %v12254_v30  ;;  %v1141_v36 = vmul.f32 0.0, %v12254_v30 }
 0x123   :  { %v1137_v28 = vadd.f32 %v1136_v22, %v893_v24  ;;  %v1146_v24 = vld [vmem:[#allocation6 + $0x2] sm:$0x3] }
 0x124   :  { %890 = vst.msk [vmem:[#allocation2] sm:$0x3] %vm889_vm4, %v12971_v25  ;;  %10404 = vmatmul.mubr.msk.f32.vlgmr.msra.gmra.mrb[10].mxu0 %vm201_vm3, %v12971_v25  ;;  %10415 = vmatmul.mubr.msk.f32.vlgmr.msra.gmra.mrb[14].mxu1 %vm201_vm3, %v12971_v25 }
 0x125   :  { %12255 = vtanh.f32 %v1137_v28  ;;  %11586 = vmatpush3.bf16.msra.mxu0 %v12776_v18  ;;  %10425 = vmatprep.mubr.msk.f32.mxu0 %vm12596_vm2, %v12597_v17 }
 0x126   :  { %11587 = vmatprep.subr.bf16.mxu0 %v12595_v12  ;;  %11592 = vmatpush3.bf16.msra.mxu1 %v12841_v35 }
 0x127   :  { %11593 = vmatprep.subr.bf16.mxu1 %v12595_v12  ;;  %10436 = vmatprep.mubr.msk.f32.mxu1 %vm12596_vm2, %v12597_v17 }
 0x129   :  { %11589 = vmatpush3.bf16.msra.mxu0 %v12807_v26 }
 0x12a   :  { %11596 = vmatprep.subr.bf16.mxu0 %v12595_v12  ;;  %11595 = vmatpush3.bf16.msra.mxu1 %v12859_v39 }
 0x12b   :  { %11602 = vmatprep.subr.bf16.mxu1 %v12595_v12 }
 0x12c   :  { %10426 = vmatmul.mubr.msk.f32.vlgmr.msra.gmra.mrb[12].mxu0 %vm201_vm3, %v12971_v25 }
 0x12d   :  { %11598 = vmatpush3.bf16.msra.mxu0 %v12831_v32  ;;  %10447 = vmatprep.mubr.msk.f32.mxu0 %vm12596_vm2, %v12597_v17 }
 0x12e   :  { %11599 = vmatprep.subr.bf16.mxu0 %v12595_v12 }
 0x12f   :  { %v12256_v33 = vpop.eup %12255 }
 0x130   :  { %v1140_v34 = vmul.f32 %v12256_v33, %v1139_v31 }
 0x131   :  { %11601 = vmatpush3.bf16.msra.mxu0 %v12852_v38 }
 0x132   :  { %v12998_v37 = vadd.f32 %v1141_v36, %v1140_v34  ;;  %11608 = vmatprep.subr.bf16.mxu0 %v12595_v12 }
 0x134   :  { %1143 = vst.msk [vmem:[#allocation3 + $0xe] sm:$0x3] %vm889_vm4, %v12998_v37  ;;  %10437 = vmatmul.mubr.msk.f32.vlgmr.msra.gmra.mrb[16].mxu1 %vm201_vm3, %v12998_v37  ;;  %10448 = vmatmul.mubr.msk.f32.vlgmr.msra.gmra.mrb[14].mxu0 %vm201_vm3, %v12998_v37 }
 0x135   :  { %11604 = vmatpush3.bf16.msra.mxu1 %v12874_v42  ;;  %10458 = vmatprep.mubr.msk.f32.mxu1 %vm12596_vm2, %v12597_v17 }
 0x136   :  { %11605 = vmatprep.subr.bf16.mxu1 %v12595_v12  ;;  %11610 = vmatpush3.bf16.msra.mxu0 %v12751_v10 }
 0x137   :  { %11611 = vmatprep.subr.bf16.mxu0 %v12595_v12  ;;  %10469 = vmatprep.mubr.msk.f32.mxu0 %vm12596_vm2, %v12597_v17 }
 0x139   :  { %11607 = vmatpush3.bf16.msra.mxu1 %v12889_v45 }
 0x13a   :  { %11614 = vmatprep.subr.bf16.mxu1 %v12595_v12  ;;  %11613 = vmatpush3.bf16.msra.mxu0 %v12772_v16 }
 0x13b   :  { %11620 = vmatprep.subr.bf16.mxu0 %v12595_v12 }
 0x13c   :  { %10459 = vmatmul.mubr.msk.f32.vlgmr.msra.gmra.mrb[18].mxu1 %vm201_vm3, %v12998_v37 }
 0x13d   :  { %11616 = vmatpush3.bf16.msra.mxu1 %v12796_v23  ;;  %10480 = vmatprep.mubr.msk.f32.mxu1 %vm12596_vm2, %v12597_v17 }
 0x13e   :  { %11617 = vmatprep.subr.bf16.mxu1 %v12595_v12 }
 0x141   :  { %11619 = vmatpush3.bf16.msra.mxu1 %v12819_v29 }
 0x142   :  { %11626 = vmatprep.subr.bf16.mxu1 %v12595_v12 }
 0x1f7   :  { %v1216_v40 = vpop.f32.mrb[10].mxu0  ;;  %v1286_v43 = vpop.f32.mrb[14].mxu1 }
 0x1f8   :  { %v1217_v46 = vadd.f32 %v12936_v13, %v1216_v40  ;;  %v10405_v47 = vpop.f32.mrb[11].mxu0  ;;  %v10416_v48 = vpop.f32.mrb[15].mxu1  ;;  %v1287_v50 = vadd.f32 %v12944_v27, %v1286_v43 }
 0x1fa   :  { %v1360_v51 = vadd.f32 %v1217_v46, %v1144_v49  ;;  %v1367_v54 = vadd.f32 %v1287_v50, %v1145_v53 }
 0x1fc   :  { %v9541_v52 = vmul.f32 -1.442695, %v1360_v51  ;;  %v9542_v57 = vmul.f32 -1.442695, %v1367_v54  ;;  %v1384_v51 = vld [vmem:[#allocation9 + $0xc] sm:$0x3] }
 0x1fe   :  { %12257 = vpow2.f32 %v9541_v52 }
 0x1ff   :  { %v1356_v55 = vpop.f32.mrb[12].mxu0  ;;  %12259 = vpow2.f32 %v9542_v57 }
 0x200   :  { %v10427_v56 = vpop.f32.mrb[13].mxu0  ;;  %v1357_v20 = vadd.f32 %v12962_v60, %v1356_v55 }
 0x207   :  { %v1454_v58 = vpop.f32.mrb[16].mxu1  ;;  %v1524_v59 = vpop.f32.mrb[14].mxu0 }
 0x208   :  { %v12258_v61 = vpop.eup %12257  ;;  %v1455_v62 = vadd.f32 %v12950_v41, %v1454_v58  ;;  %v10438_v63 = vpop.f32.mrb[17].mxu1  ;;  %v1525_v3 = vadd.f32 %v12955_v44, %v1524_v59 }
 0x209   :  { %v10449_v0 = vpop.f32.mrb[15].mxu0  ;;  %v1364_v1 = vadd.f32 1.0, %v12258_v61  ;;  %v12260_v9 = vpop.eup %12259 }
 0x20a   :  { %v1598_v4 = vadd.f32 %v1455_v62, %v1382_v2  ;;  %v1605_v8 = vadd.f32 %v1525_v3, %v1383_v6  ;;  %v1371_v19 = vadd.f32 1.0, %v12260_v9  ;;  %v1620_v0 = vld [vmem:[#allocation4 + $0x4] sm:$0x3] }
 0x20b   :  { %12261 = vrcp.f32 %v1364_v1 }
 0x20c   :  { %v9546_v5 = vmul.f32 -1.442695, %v1598_v4  ;;  %v9547_v15 = vmul.f32 -1.442695, %v1605_v8  ;;  %v1621_v4 = vld [vmem:[#allocation5 + $0x4] sm:$0x3] }
 0x20e   :  { %12263 = vpow2.f32 %v9546_v5 }
 0x20f   :  { %v1594_v11 = vpop.f32.mrb[18].mxu1  ;;  %12265 = vpow2.f32 %v9547_v15 }
 0x210   :  { %v10460_v14 = vpop.f32.mrb[19].mxu1  ;;  %12267 = vrcp.f32 %v1371_v19  ;;  %v1595_v46 = vadd.f32 %v12968_v7, %v1594_v11 }
 0x215   :  { %v12262_v21 = vpop.eup %12261 }
 0x216   :  { %v1374_v22 = vmul.f32 %v12262_v21, %v1357_v20 }
 0x218   :  { %v12264_v28 = vpop.eup %12263  ;;  %v1375_v30 = vadd.f32 %v1374_v22, %v1146_v24  ;;  %v1858_v24 = vld [vmem:[#allocation7 + $0xa] sm:$0x3] }
 0x219   :  { %v1602_v31 = vadd.f32 1.0, %v12264_v28  ;;  %v12266_v33 = vpop.eup %12265 }
 0x21a   :  { %12269 = vtanh.f32 %v1375_v30  ;;  %v12268_v34 = vpop.eup %12267  ;;  %v1609_v36 = vadd.f32 1.0, %v12266_v33  ;;  %v1859_v33 = vld [vmem:[#allocation8 + $0xa] sm:$0x3] }
 0x21b   :  { %12271 = vrcp.f32 %v1602_v31  ;;  %v1377_v40 = vsub.f32 1.0, %v12268_v34  ;;  %v1379_v49 = vmul.f32 %v12268_v34, %v12971_v25 }
 0x21c   :  { %12273 = vrcp.f32 %v1609_v36 }
 0x224   :  { %v12270_v43 = vpop.eup %12269 }
 0x225   :  { %v12272_v47 = vpop.eup %12271  ;;  %v1378_v48 = vmul.f32 %v12270_v43, %v1377_v40 }
 0x226   :  { %v1612_v50 = vmul.f32 %v12272_v47, %v1595_v46  ;;  %v12274_v25 = vpop.eup %12273 }
 0x227   :  { %v13034_v52 = vadd.f32 %v1379_v49, %v1378_v48  ;;  %v1615_v54 = vsub.f32 1.0, %v12274_v25  ;;  %v1617_v57 = vmul.f32 %v12274_v25, %v12998_v37 }
 0x228   :  { %v1613_v53 = vadd.f32 %v1612_v50, %v1384_v51  ;;  %v1622_v51 = vld [vmem:[#allocation6 + $0x4] sm:$0x3] }
 0x229   :  { %1381 = vst.msk [vmem:[#allocation2 + $0x2] sm:$0x3] %vm889_vm4, %v13034_v52  ;;  %10470 = vmatmul.mubr.msk.f32.vlgmr.msra.gmra.mrb[16].mxu0 %vm201_vm3, %v13034_v52  ;;  %10481 = vmatmul.mubr.msk.f32.vlgmr.msra.gmra.mrb[20].mxu1 %vm201_vm3, %v13034_v52 }
 0x22a   :  { %12275 = vtanh.f32 %v1613_v53  ;;  %11622 = vmatpush3.bf16.msra.mxu0 %v12776_v18  ;;  %10491 = vmatprep.mubr.msk.f32.mxu0 %vm12596_vm2, %v12597_v17 }
 0x22b   :  { %11623 = vmatprep.subr.bf16.mxu0 %v12595_v12  ;;  %11628 = vmatpush3.bf16.msra.mxu1 %v12841_v35 }
 0x22c   :  { %11629 = vmatprep.subr.bf16.mxu1 %v12595_v12  ;;  %10502 = vmatprep.mubr.msk.f32.mxu1 %vm12596_vm2, %v12597_v17 }
 0x22e   :  { %11625 = vmatpush3.bf16.msra.mxu0 %v12807_v26 }
 0x22f   :  { %11632 = vmatprep.subr.bf16.mxu0 %v12595_v12  ;;  %11631 = vmatpush3.bf16.msra.mxu1 %v12859_v39 }
 0x230   :  { %11638 = vmatprep.subr.bf16.mxu1 %v12595_v12 }
 0x231   :  { %10492 = vmatmul.mubr.msk.f32.vlgmr.msra.gmra.mrb[18].mxu0 %vm201_vm3, %v13034_v52 }
 0x232   :  { %11634 = vmatpush3.bf16.msra.mxu0 %v12831_v32  ;;  %10513 = vmatprep.mubr.msk.f32.mxu0 %vm12596_vm2, %v12597_v17 }
 0x233   :  { %11635 = vmatprep.subr.bf16.mxu0 %v12595_v12 }
 0x234   :  { %v12276_v55 = vpop.eup %12275 }
 0x235   :  { %v1616_v56 = vmul.f32 %v12276_v55, %v1615_v54 }
 0x236   :  { %11637 = vmatpush3.bf16.msra.mxu0 %v12852_v38 }
 0x237   :  { %v13062_v58 = vadd.f32 %v1617_v57, %v1616_v56  ;;  %11644 = vmatprep.subr.bf16.mxu0 %v12595_v12 }
 0x239   :  { %1619 = vst.msk [vmem:[#allocation3 + $0xc] sm:$0x3] %vm889_vm4, %v13062_v58  ;;  %10503 = vmatmul.mubr.msk.f32.vlgmr.msra.gmra.mrb[22].mxu1 %vm201_vm3, %v13062_v58  ;;  %10514 = vmatmul.mubr.msk.f32.vlgmr.msra.gmra.mrb[20].mxu0 %vm201_vm3, %v13062_v58 }
 0x23a   :  { %11640 = vmatpush3.bf16.msra.mxu1 %v12874_v42  ;;  %10524 = vmatprep.mubr.msk.f32.mxu1 %vm12596_vm2, %v12597_v17 }
 0x23b   :  { %11641 = vmatprep.subr.bf16.mxu1 %v12595_v12  ;;  %11646 = vmatpush3.bf16.msra.mxu0 %v12751_v10 }
 0x23c   :  { %11647 = vmatprep.subr.bf16.mxu0 %v12595_v12  ;;  %10535 = vmatprep.mubr.msk.f32.mxu0 %vm12596_vm2, %v12597_v17 }
 0x23e   :  { %11643 = vmatpush3.bf16.msra.mxu1 %v12889_v45 }
 0x23f   :  { %11650 = vmatprep.subr.bf16.mxu1 %v12595_v12  ;;  %11649 = vmatpush3.bf16.msra.mxu0 %v12772_v16 }
 0x240   :  { %11656 = vmatprep.subr.bf16.mxu0 %v12595_v12 }
 0x241   :  { %10525 = vmatmul.mubr.msk.f32.vlgmr.msra.gmra.mrb[24].mxu1 %vm201_vm3, %v13062_v58 }
 0x242   :  { %11652 = vmatpush3.bf16.msra.mxu1 %v12796_v23  ;;  %10546 = vmatprep.mubr.msk.f32.mxu1 %vm12596_vm2, %v12597_v17 }
 0x243   :  { %11653 = vmatprep.subr.bf16.mxu1 %v12595_v12 }
 0x246   :  { %11655 = vmatpush3.bf16.msra.mxu1 %v12819_v29 }
 0x247   :  { %11662 = vmatprep.subr.bf16.mxu1 %v12595_v12 }
 0x2fc   :  { %v1692_v37 = vpop.f32.mrb[16].mxu0  ;;  %v1762_v59 = vpop.f32.mrb[20].mxu1 }
 0x2fd   :  { %v1693_v61 = vadd.f32 %v12936_v13, %v1692_v37  ;;  %v10471_v62 = vpop.f32.mrb[17].mxu0  ;;  %v10482_v63 = vpop.f32.mrb[21].mxu1  ;;  %v1763_v1 = vadd.f32 %v12944_v27, %v1762_v59 }
 0x2ff   :  { %v1836_v2 = vadd.f32 %v1693_v61, %v1620_v0  ;;  %v1843_v5 = vadd.f32 %v1763_v1, %v1621_v4 }
 0x301   :  { %v9551_v3 = vmul.f32 -1.442695, %v1836_v2  ;;  %v9552_v9 = vmul.f32 -1.442695, %v1843_v5  ;;  %v1860_v2 = vld [vmem:[#allocation9 + $0xa] sm:$0x3] }
 0x303   :  { %12277 = vpow2.f32 %v9551_v3 }
 0x304   :  { %v1832_v6 = vpop.f32.mrb[18].mxu0  ;;  %12279 = vpow2.f32 %v9552_v9 }
 0x305   :  { %v10493_v8 = vpop.f32.mrb[19].mxu0  ;;  %v1833_v48 = vadd.f32 %v12962_v60, %v1832_v6 }
 0x30c   :  { %v1930_v11 = vpop.f32.mrb[22].mxu1  ;;  %v2000_v14 = vpop.f32.mrb[20].mxu0 }
 0x30d   :  { %v12278_v15 = vpop.eup %12277  ;;  %v1931_v19 = vadd.f32 %v12950_v41, %v1930_v11  ;;  %v10504_v20 = vpop.f32.mrb[23].mxu1  ;;  %v2001_v28 = vadd.f32 %v12955_v44, %v2000_v14 }
 0x30e   :  { %v10515_v21 = vpop.f32.mrb[21].mxu0  ;;  %v1840_v22 = vadd.f32 1.0, %v12278_v15  ;;  %v12280_v36 = vpop.eup %12279 }
 0x30f   :  { %v2074_v30 = vadd.f32 %v1931_v19, %v1858_v24  ;;  %v2081_v34 = vadd.f32 %v2001_v28, %v1859_v33  ;;  %v1847_v47 = vadd.f32 1.0, %v12280_v36  ;;  %v2096_v21 = vld [vmem:[#allocation4 + $0x6] sm:$0x3] }
 0x310   :  { %12281 = vrcp.f32 %v1840_v22 }
 0x311   :  { %v9556_v31 = vmul.f32 -1.442695, %v2074_v30  ;;  %v9557_v46 = vmul.f32 -1.442695, %v2081_v34  ;;  %v2097_v30 = vld [vmem:[#allocation5 + $0x6] sm:$0x3] }
 0x313   :  { %12283 = vpow2.f32 %v9556_v31 }
 0x314   :  { %v2070_v40 = vpop.f32.mrb[24].mxu1  ;;  %12285 = vpow2.f32 %v9557_v46 }
 0x315   :  { %v10526_v43 = vpop.f32.mrb[25].mxu1  ;;  %12287 = vrcp.f32 %v1847_v47  ;;  %v2071_v61 = vadd.f32 %v12968_v7, %v2070_v40 }
 0x31a   :  { %v12282_v49 = vpop.eup %12281 }
 0x31b   :  { %v1850_v50 = vmul.f32 %v12282_v49, %v1833_v48 }
 0x31d   :  { %v12284_v53 = vpop.eup %12283  ;;  %v1851_v25 = vadd.f32 %v1850_v50, %v1622_v51  ;;  %v2334_v51 = vld [vmem:[#allocation7 + $0x8] sm:$0x3] }
 0x31e   :  { %v2078_v54 = vadd.f32 1.0, %v12284_v53  ;;  %v12286_v55 = vpop.eup %12285 }
 0x31f   :  { %12289 = vtanh.f32 %v1851_v25  ;;  %v12288_v56 = vpop.eup %12287  ;;  %v2085_v57 = vadd.f32 1.0, %v12286_v55  ;;  %v2335_v55 = vld [vmem:[#allocation8 + $0x8] sm:$0x3] }
 0x320   :  { %12291 = vrcp.f32 %v2078_v54  ;;  %v1853_v37 = vsub.f32 1.0, %v12288_v56  ;;  %v1855_v0 = vmul.f32 %v12288_v56, %v13034_v52 }
 0x321   :  { %12293 = vrcp.f32 %v2085_v57 }
 0x329   :  { %v12290_v59 = vpop.eup %12289 }
 0x32a   :  { %v12292_v62 = vpop.eup %12291  ;;  %v1854_v63 = vmul.f32 %v12290_v59, %v1853_v37 }
 0x32b   :  { %v2088_v1 = vmul.f32 %v12292_v62, %v2071_v61  ;;  %v12294_v52 = vpop.eup %12293 }
 0x32c   :  { %v13098_v3 = vadd.f32 %v1855_v0, %v1854_v63  ;;  %v2091_v5 = vsub.f32 1.0, %v12294_v52  ;;  %v2093_v9 = vmul.f32 %v12294_v52, %v13062_v58 }
 0x32d   :  { %v2089_v4 = vadd.f32 %v2088_v1, %v1860_v2  ;;  %v2098_v2 = vld [vmem:[#allocation6 + $0x6] sm:$0x3] }
 0x32e   :  { %1857 = vst.msk [vmem:[#allocation2 + $0x4] sm:$0x3] %vm889_vm4, %v13098_v3  ;;  %10536 = vmatmul.mubr.msk.f32.vlgmr.msra.gmra.mrb[22].mxu0 %vm201_vm3, %v13098_v3  ;;  %10547 = vmatmul.mubr.msk.f32.vlgmr.msra.gmra.mrb[26].mxu1 %vm201_vm3, %v13098_v3 }
 0x32f   :  { %12295 = vtanh.f32 %v2089_v4  ;;  %11658 = vmatpush3.bf16.msra.mxu0 %v12776_v18  ;;  %10557 = vmatprep.mubr.msk.f32.mxu0 %vm12596_vm2, %v12597_v17 }
 0x330   :  { %11659 = vmatprep.subr.bf16.mxu0 %v12595_v12  ;;  %11664 = vmatpush3.bf16.msra.mxu1 %v12841_v35 }
 0x331   :  { %11665 = vmatprep.subr.bf16.mxu1 %v12595_v12  ;;  %10568 = vmatprep.mubr.msk.f32.mxu1 %vm12596_vm2, %v12597_v17 }
 0x333   :  { %11661 = vmatpush3.bf16.msra.mxu0 %v12807_v26 }
 0x334   :  { %11668 = vmatprep.subr.bf16.mxu0 %v12595_v12  ;;  %11667 = vmatpush3.bf16.msra.mxu1 %v12859_v39 }
 0x335   :  { %11674 = vmatprep.subr.bf16.mxu1 %v12595_v12 }
 0x336   :  { %10558 = vmatmul.mubr.msk.f32.vlgmr.msra.gmra.mrb[24].mxu0 %vm201_vm3, %v13098_v3 }
 0x337   :  { %11670 = vmatpush3.bf16.msra.mxu0 %v12831_v32  ;;  %10579 = vmatprep.mubr.msk.f32.mxu0 %vm12596_vm2, %v12597_v17 }
 0x338   :  { %11671 = vmatprep.subr.bf16.mxu0 %v12595_v12 }
 0x339   :  { %v12296_v6 = vpop.eup %12295 }
 0x33a   :  { %v2092_v8 = vmul.f32 %v12296_v6, %v2091_v5 }
 0x33b   :  { %11673 = vmatpush3.bf16.msra.mxu0 %v12852_v38 }
 0x33c   :  { %v13126_v11 = vadd.f32 %v2093_v9, %v2092_v8  ;;  %11680 = vmatprep.subr.bf16.mxu0 %v12595_v12 }
 0x33e   :  { %2095 = vst.msk [vmem:[#allocation3 + $0xa] sm:$0x3] %vm889_vm4, %v13126_v11  ;;  %10569 = vmatmul.mubr.msk.f32.vlgmr.msra.gmra.mrb[28].mxu1 %vm201_vm3, %v13126_v11  ;;  %10580 = vmatmul.mubr.msk.f32.vlgmr.msra.gmra.mrb[26].mxu0 %vm201_vm3, %v13126_v11 }
 0x33f   :  { %11676 = vmatpush3.bf16.msra.mxu1 %v12874_v42  ;;  %10590 = vmatprep.mubr.msk.f32.mxu1 %vm12596_vm2, %v12597_v17 }
 0x340   :  { %11677 = vmatprep.subr.bf16.mxu1 %v12595_v12  ;;  %11682 = vmatpush3.bf16.msra.mxu0 %v12751_v10 }
 0x341   :  { %11683 = vmatprep.subr.bf16.mxu0 %v12595_v12  ;;  %10601 = vmatprep.mubr.msk.f32.mxu0 %vm12596_vm2, %v12597_v17 }
 0x343   :  { %11679 = vmatpush3.bf16.msra.mxu1 %v12889_v45 }
 0x344   :  { %11686 = vmatprep.subr.bf16.mxu1 %v12595_v12  ;;  %11685 = vmatpush3.bf16.msra.mxu0 %v12772_v16 }
 0x345   :  { %11692 = vmatprep.subr.bf16.mxu0 %v12595_v12 }
 0x346   :  { %10591 = vmatmul.mubr.msk.f32.vlgmr.msra.gmra.mrb[30].mxu1 %vm201_vm3, %v13126_v11 }
 0x347   :  { %11688 = vmatpush3.bf16.msra.mxu1 %v12796_v23  ;;  %10612 = vmatprep.mubr.msk.f32.mxu1 %vm12596_vm2, %v12597_v17 }
 0x348   :  { %11689 = vmatprep.subr.bf16.mxu1 %v12595_v12 }
 0x34b   :  { %11691 = vmatpush3.bf16.msra.mxu1 %v12819_v29 }
 0x34c   :  { %11698 = vmatprep.subr.bf16.mxu1 %v12595_v12 }
 0x401   :  { %v2168_v58 = vpop.f32.mrb[22].mxu0  ;;  %v2238_v14 = vpop.f32.mrb[26].mxu1 }
 0x402   :  { %v2169_v15 = vadd.f32 %v12936_v13, %v2168_v58  ;;  %v10537_v19 = vpop.f32.mrb[23].mxu0  ;;  %v10548_v20 = vpop.f32.mrb[27].mxu1  ;;  %v2239_v22 = vadd.f32 %v12944_v27, %v2238_v14 }
 0x404   :  { %v2312_v24 = vadd.f32 %v2169_v15, %v2096_v21  ;;  %v2319_v31 = vadd.f32 %v2239_v22, %v2097_v30 }
 0x406   :  { %v9561_v28 = vmul.f32 -1.442695, %v2312_v24  ;;  %v9562_v36 = vmul.f32 -1.442695, %v2319_v31  ;;  %v2336_v24 = vld [vmem:[#allocation9 + $0x8] sm:$0x3] }
 0x408   :  { %12297 = vpow2.f32 %v9561_v28 }
 0x409   :  { %v2308_v33 = vpop.f32.mrb[24].mxu0  ;;  %12299 = vpow2.f32 %v9562_v36 }
 0x40a   :  { %v10559_v34 = vpop.f32.mrb[25].mxu0  ;;  %v2309_v63 = vadd.f32 %v12962_v60, %v2308_v33 }
 0x411   :  { %v2406_v40 = vpop.f32.mrb[28].mxu1  ;;  %v2476_v43 = vpop.f32.mrb[26].mxu0 }
 0x412   :  { %v12298_v46 = vpop.eup %12297  ;;  %v2407_v47 = vadd.f32 %v12950_v41, %v2406_v40  ;;  %v10570_v48 = vpop.f32.mrb[29].mxu1  ;;  %v2477_v53 = vadd.f32 %v12955_v44, %v2476_v43 }
 0x413   :  { %v10581_v49 = vpop.f32.mrb[27].mxu0  ;;  %v2316_v50 = vadd.f32 1.0, %v12298_v46  ;;  %v12300_v57 = vpop.eup %12299 }
 0x414   :  { %v2550_v25 = vadd.f32 %v2407_v47, %v2334_v51  ;;  %v2557_v56 = vadd.f32 %v2477_v53, %v2335_v55  ;;  %v2323_v62 = vadd.f32 1.0, %v12300_v57  ;;  %v2572_v49 = vld [vmem:[#allocation4 + $0x8] sm:$0x3] }
 0x415   :  { %12301 = vrcp.f32 %v2316_v50 }
 0x416   :  { %v9566_v54 = vmul.f32 -1.442695, %v2550_v25  ;;  %v9567_v61 = vmul.f32 -1.442695, %v2557_v56  ;;  %v2573_v25 = vld [vmem:[#allocation5 + $0x8] sm:$0x3] }
 0x418   :  { %12303 = vpow2.f32 %v9566_v54 }
 0x419   :  { %v2546_v37 = vpop.f32.mrb[30].mxu1  ;;  %12305 = vpow2.f32 %v9567_v61 }
 0x41a   :  { %v10592_v59 = vpop.f32.mrb[31].mxu1  ;;  %12307 = vrcp.f32 %v2323_v62  ;;  %v2547_v15 = vadd.f32 %v12968_v7, %v2546_v37 }
 0x41f   :  { %v12302_v0 = vpop.eup %12301 }
 0x420   :  { %v2326_v1 = vmul.f32 %v12302_v0, %v2309_v63 }
 0x422   :  { %v12304_v4 = vpop.eup %12303  ;;  %v2327_v52 = vadd.f32 %v2326_v1, %v2098_v2  ;;  %v2810_v1 = vld [vmem:[#allocation7 + $0x6] sm:$0x3] }
 0x423   :  { %v2554_v5 = vadd.f32 1.0, %v12304_v4  ;;  %v12306_v6 = vpop.eup %12305 }
 0x424   :  { %12309 = vtanh.f32 %v2327_v52  ;;  %v12308_v8 = vpop.eup %12307  ;;  %v2561_v9 = vadd.f32 1.0, %v12306_v6  ;;  %v2811_v52 = vld [vmem:[#allocation8 + $0x6] sm:$0x3] }
 0x425   :  { %12311 = vrcp.f32 %v2554_v5  ;;  %v2329_v58 = vsub.f32 1.0, %v12308_v8  ;;  %v2331_v21 = vmul.f32 %v12308_v8, %v13098_v3 }
 0x426   :  { %12313 = vrcp.f32 %v2561_v9 }
 0x42e   :  { %v12310_v14 = vpop.eup %12309 }
 0x42f   :  { %v12312_v19 = vpop.eup %12311  ;;  %v2330_v20 = vmul.f32 %v12310_v14, %v2329_v58 }
 0x430   :  { %v2564_v22 = vmul.f32 %v12312_v19, %v2547_v15  ;;  %v12314_v3 = vpop.eup %12313 }
 0x431   :  { %v13162_v28 = vadd.f32 %v2331_v21, %v2330_v20  ;;  %v2567_v31 = vsub.f32 1.0, %v12314_v3  ;;  %v2569_v36 = vmul.f32 %v12314_v3, %v13126_v11  ;;  %v2574_v20 = vld [vmem:[#allocation6 + $0x8] sm:$0x3] }
 0x432   :  { %v2565_v30 = vadd.f32 %v2564_v22, %v2336_v24 }
 0x433   :  { %2333 = vst.msk [vmem:[#allocation2 + $0x6] sm:$0x3] %vm889_vm4, %v13162_v28  ;;  %10602 = vmatmul.mubr.msk.f32.vlgmr.msra.gmra.mrb[28].mxu0 %vm201_vm3, %v13162_v28  ;;  %10613 = vmatmul.mubr.msk.f32.vlgmr.msra.gmra.mrb[32].mxu1 %vm201_vm3, %v13162_v28 }
 0x434   :  { %12315 = vtanh.f32 %v2565_v30  ;;  %11694 = vmatpush3.bf16.msra.mxu0 %v12776_v18  ;;  %10623 = vmatprep.mubr.msk.f32.mxu0 %vm12596_vm2, %v12597_v17 }
 0x435   :  { %11695 = vmatprep.subr.bf16.mxu0 %v12595_v12  ;;  %11700 = vmatpush3.bf16.msra.mxu1 %v12841_v35 }
 0x436   :  { %11701 = vmatprep.subr.bf16.mxu1 %v12595_v12  ;;  %10634 = vmatprep.mubr.msk.f32.mxu1 %vm12596_vm2, %v12597_v17 }
 0x438   :  { %11697 = vmatpush3.bf16.msra.mxu0 %v12807_v26 }
 0x439   :  { %11704 = vmatprep.subr.bf16.mxu0 %v12595_v12  ;;  %11703 = vmatpush3.bf16.msra.mxu1 %v12859_v39 }
 0x43a   :  { %11710 = vmatprep.subr.bf16.mxu1 %v12595_v12 }
 0x43b   :  { %10624 = vmatmul.mubr.msk.f32.vlgmr.msra.gmra.mrb[30].mxu0 %vm201_vm3, %v13162_v28 }
 0x43c   :  { %11706 = vmatpush3.bf16.msra.mxu0 %v12831_v32  ;;  %10645 = vmatprep.mubr.msk.f32.mxu0 %vm12596_vm2, %v12597_v17 }
 0x43d   :  { %11707 = vmatprep.subr.bf16.mxu0 %v12595_v12 }
 0x43e   :  { %v12316_v33 = vpop.eup %12315 }
 0x43f   :  { %v2568_v34 = vmul.f32 %v12316_v33, %v2567_v31 }
 0x440   :  { %11709 = vmatpush3.bf16.msra.mxu0 %v12852_v38 }
 0x441   :  { %v13190_v40 = vadd.f32 %v2569_v36, %v2568_v34  ;;  %11716 = vmatprep.subr.bf16.mxu0 %v12595_v12 }
 0x443   :  { %2571 = vst.msk [vmem:[#allocation3 + $0x8] sm:$0x3] %vm889_vm4, %v13190_v40  ;;  %10635 = vmatmul.mubr.msk.f32.vlgmr.msra.gmra.mrb[34].mxu1 %vm201_vm3, %v13190_v40  ;;  %10646 = vmatmul.mubr.msk.f32.vlgmr.msra.gmra.mrb[32].mxu0 %vm201_vm3, %v13190_v40 }
 0x444   :  { %11712 = vmatpush3.bf16.msra.mxu1 %v12874_v42  ;;  %10656 = vmatprep.mubr.msk.f32.mxu1 %vm12596_vm2, %v12597_v17 }
 0x445   :  { %11713 = vmatprep.subr.bf16.mxu1 %v12595_v12  ;;  %11718 = vmatpush3.bf16.msra.mxu0 %v12751_v10 }
 0x446   :  { %11719 = vmatprep.subr.bf16.mxu0 %v12595_v12  ;;  %10667 = vmatprep.mubr.msk.f32.mxu0 %vm12596_vm2, %v12597_v17 }
 0x448   :  { %11715 = vmatpush3.bf16.msra.mxu1 %v12889_v45 }
 0x449   :  { %11722 = vmatprep.subr.bf16.mxu1 %v12595_v12  ;;  %11721 = vmatpush3.bf16.msra.mxu0 %v12772_v16 }
 0x44a   :  { %11728 = vmatprep.subr.bf16.mxu0 %v12595_v12 }
 0x44b   :  { %10657 = vmatmul.mubr.msk.f32.vlgmr.msra.gmra.mrb[36].mxu1 %vm201_vm3, %v13190_v40 }
 0x44c   :  { %11724 = vmatpush3.bf16.msra.mxu1 %v12796_v23  ;;  %10678 = vmatprep.mubr.msk.f32.mxu1 %vm12596_vm2, %v12597_v17 }
 0x44d   :  { %11725 = vmatprep.subr.bf16.mxu1 %v12595_v12 }
 0x450   :  { %11727 = vmatpush3.bf16.msra.mxu1 %v12819_v29 }
 0x451   :  { %11734 = vmatprep.subr.bf16.mxu1 %v12595_v12 }
 0x506   :  { %v2644_v11 = vpop.f32.mrb[28].mxu0  ;;  %v2714_v43 = vpop.f32.mrb[32].mxu1 }
 0x507   :  { %v2645_v46 = vadd.f32 %v12936_v13, %v2644_v11  ;;  %v10603_v47 = vpop.f32.mrb[29].mxu0  ;;  %v10614_v48 = vpop.f32.mrb[33].mxu1  ;;  %v2715_v50 = vadd.f32 %v12944_v27, %v2714_v43 }
 0x509   :  { %v2788_v51 = vadd.f32 %v2645_v46, %v2572_v49  ;;  %v2795_v54 = vadd.f32 %v2715_v50, %v2573_v25  ;;  %v2812_v46 = vld [vmem:[#allocation9 + $0x6] sm:$0x3] }
 0x50b   :  { %v9571_v53 = vmul.f32 -1.442695, %v2788_v51  ;;  %v9572_v57 = vmul.f32 -1.442695, %v2795_v54  ;;  %v13286_v54 = vld [vmem:[%s14425_s24] ss:$0 sm:$0xff] }
 0x50d   :  { %12317 = vpow2.f32 %v9571_v53 }
 0x50e   :  { %v2784_v55 = vpop.f32.mrb[30].mxu0  ;;  %12319 = vpow2.f32 %v9572_v57 }
 0x50f   :  { %v10625_v56 = vpop.f32.mrb[31].mxu0  ;;  %v2785_v15 = vadd.f32 %v12962_v60, %v2784_v55 }
 0x516   :  { %v2882_v37 = vpop.f32.mrb[34].mxu1  ;;  %v2952_v59 = vpop.f32.mrb[32].mxu0 }
 0x517   :  { %v12318_v61 = vpop.eup %12317  ;;  %v2883_v62 = vadd.f32 %v12950_v41, %v2882_v37  ;;  %v10636_v13 = vpop.f32.mrb[35].mxu1  ;;  %v2953_v27 = vadd.f32 %v12955_v44, %v2952_v59  ;;  %v3048_v37 = vld [vmem:[#allocation4 + $0xa] sm:$0x3]  ;;  %v13292_v59 = vld [vmem:[%s14425_s24 + $0x1] ss:$0 sm:$0xff] }
 0x518   :  { %v10647_v63 = vpop.f32.mrb[33].mxu0  ;;  %v2792_v0 = vadd.f32 1.0, %v12318_v61  ;;  %v12320_v6 = vpop.eup %12319 }
 0x519   :  { %v3026_v2 = vadd.f32 %v2883_v62, %v2810_v1  ;;  %v3033_v5 = vadd.f32 %v2953_v27, %v2811_v52  ;;  %v2799_v14 = vadd.f32 1.0, %v12320_v6  ;;  %v3049_v63 = vld [vmem:[#allocation5 + $0xa] sm:$0x3]  ;;  %v13298_v6 = vld [vmem:[%s14398_s8] ss:$0 sm:$0xff] }
 0x51a   :  { %12321 = vrcp.f32 %v2792_v0 }
 0x51b   :  { %v9576_v4 = vmul.f32 -1.442695, %v3026_v2  ;;  %v9577_v58 = vmul.f32 -1.442695, %v3033_v5 }
 0x51d   :  { %12323 = vpow2.f32 %v9576_v4 }
 0x51e   :  { %v3022_v8 = vpop.f32.mrb[36].mxu1  ;;  %12325 = vpow2.f32 %v9577_v58 }
 0x51f   :  { %v10658_v9 = vpop.f32.mrb[37].mxu1  ;;  %12327 = vrcp.f32 %v2799_v14  ;;  %v3023_v34 = vadd.f32 %v12968_v7, %v3022_v8 }
 0x524   :  { %v12322_v41 = vpop.eup %12321 }
 0x525   :  { %v2802_v19 = vmul.f32 %v12322_v41, %v2785_v15  ;;  %v3286_v15 = vld [vmem:[#allocation7 + $0x4] sm:$0x3]  ;;  %v13304_v41 = vld [vmem:[%s14398_s8 + $0x1] ss:$0 sm:$0xff] }
 0x527   :  { %v12324_v21 = vpop.eup %12323  ;;  %v2803_v44 = vadd.f32 %v2802_v19, %v2574_v20 }
 0x528   :  { %v3030_v22 = vadd.f32 1.0, %v12324_v21  ;;  %v12326_v24 = vpop.eup %12325 }
 0x529   :  { %12329 = vtanh.f32 %v2803_v44  ;;  %v12328_v30 = vpop.eup %12327  ;;  %v3037_v3 = vadd.f32 1.0, %v12326_v24  ;;  %v3287_v44 = vld [vmem:[#allocation8 + $0x4] sm:$0x3] }
 0x52a   :  { %12331 = vrcp.f32 %v3030_v22  ;;  %v2805_v31 = vsub.f32 1.0, %v12328_v30  ;;  %v2807_v60 = vmul.f32 %v12328_v30, %v13162_v28 }
 0x52b   :  { %12333 = vrcp.f32 %v3037_v3 }
 0x533   :  { %v12330_v33 = vpop.eup %12329 }
 0x534   :  { %v12332_v36 = vpop.eup %12331  ;;  %v2806_v11 = vmul.f32 %v12330_v33, %v2805_v31 }
 0x535   :  { %v3040_v43 = vmul.f32 %v12332_v36, %v3023_v34  ;;  %v12334_v7 = vpop.eup %12333  ;;  %v13310_v34 = vld [vmem:[%s14425_s24 + $0x2] ss:$0 sm:$0xff] }
 0x536   :  { %v13226_v47 = vadd.f32 %v2807_v60, %v2806_v11  ;;  %v3043_v28 = vsub.f32 1.0, %v12334_v7  ;;  %v3045_v51 = vmul.f32 %v12334_v7, %v13190_v40 }
 0x537   :  { %v3041_v48 = vadd.f32 %v3040_v43, %v2812_v46  ;;  %v3050_v43 = vld [vmem:[#allocation6 + $0xa] sm:$0x3] }
 0x538   :  { %2809 = vst.msk [vmem:[#allocation2 + $0x8] sm:$0x3] %vm889_vm4, %v13226_v47  ;;  %10668 = vmatmul.mubr.msk.f32.vlgmr.msra.gmra.mrb[34].mxu0 %vm201_vm3, %v13226_v47  ;;  %10679 = vmatmul.mubr.msk.f32.vlgmr.msra.gmra.mrb[38].mxu1 %vm201_vm3, %v13226_v47 }
 0x539   :  { %12335 = vtanh.f32 %v3041_v48  ;;  %11730 = vmatpush3.bf16.msra.mxu0 %v12776_v18  ;;  %10689 = vmatprep.mubr.msk.f32.mxu0 %vm12596_vm2, %v12597_v17 }
 0x53a   :  { %11731 = vmatprep.subr.bf16.mxu0 %v12595_v12  ;;  %11736 = vmatpush3.bf16.msra.mxu1 %v12841_v35 }
 0x53b   :  { %11737 = vmatprep.subr.bf16.mxu1 %v12595_v12  ;;  %10700 = vmatprep.mubr.msk.f32.mxu1 %vm12596_vm2, %v12597_v17 }
 0x53d   :  { %11733 = vmatpush3.bf16.msra.mxu0 %v12807_v26 }
 0x53e   :  { %11740 = vmatprep.subr.bf16.mxu0 %v12595_v12  ;;  %11739 = vmatpush3.bf16.msra.mxu1 %v12859_v39 }
 0x53f   :  { %11746 = vmatprep.subr.bf16.mxu1 %v12595_v12 }
 0x540   :  { %10690 = vmatmul.mubr.msk.f32.vlgmr.msra.gmra.mrb[36].mxu0 %vm201_vm3, %v13226_v47 }
 0x541   :  { %11742 = vmatpush3.bf16.msra.mxu0 %v12831_v32  ;;  %10711 = vmatprep.mubr.msk.f32.mxu0 %vm12596_vm2, %v12597_v17 }
 0x542   :  { %11743 = vmatprep.subr.bf16.mxu0 %v12595_v12 }
 0x543   :  { %v12336_v49 = vpop.eup %12335 }
 0x544   :  { %v3044_v50 = vmul.f32 %v12336_v49, %v3043_v28 }
 0x545   :  { %11745 = vmatpush3.bf16.msra.mxu0 %v12852_v38 }
 0x546   :  { %v13254_v53 = vadd.f32 %v3045_v51, %v3044_v50  ;;  %11752 = vmatprep.subr.bf16.mxu0 %v12595_v12 }
 0x548   :  { %3047 = vst.msk [vmem:[#allocation3 + $0x6] sm:$0x3] %vm889_vm4, %v13254_v53  ;;  %10701 = vmatmul.mubr.msk.f32.vlgmr.msra.gmra.mrb[40].mxu1 %vm201_vm3, %v13254_v53  ;;  %10712 = vmatmul.mubr.msk.f32.vlgmr.msra.gmra.mrb[38].mxu0 %vm201_vm3, %v13254_v53 }
 0x549   :  { %11748 = vmatpush3.bf16.msra.mxu1 %v12874_v42  ;;  %10722 = vmatprep.mubr.msk.f32.mxu1 %vm12596_vm2, %v12597_v17 }
 0x54a   :  { %11749 = vmatprep.subr.bf16.mxu1 %v12595_v12  ;;  %11754 = vmatpush3.bf16.msra.mxu0 %v12751_v10 }
 0x54b   :  { %11755 = vmatprep.subr.bf16.mxu0 %v12595_v12  ;;  %10733 = vmatprep.mubr.msk.f32.mxu0 %vm12596_vm2, %v12597_v17 }
 0x54d   :  { %11751 = vmatpush3.bf16.msra.mxu1 %v12889_v45 }
 0x54e   :  { %11758 = vmatprep.subr.bf16.mxu1 %v12595_v12  ;;  %11757 = vmatpush3.bf16.msra.mxu0 %v12772_v16 }
 0x54f   :  { %11764 = vmatprep.subr.bf16.mxu0 %v12595_v12 }
 0x550   :  { %10723 = vmatmul.mubr.msk.f32.vlgmr.msra.gmra.mrb[42].mxu1 %vm201_vm3, %v13254_v53 }
 0x551   :  { %11760 = vmatpush3.bf16.msra.mxu1 %v12796_v23  ;;  %10744 = vmatprep.mubr.msk.f32.mxu1 %vm12596_vm2, %v12597_v17 }
 0x552   :  { %11761 = vmatprep.subr.bf16.mxu1 %v12595_v12 }
 0x555   :  { %11763 = vmatpush3.bf16.msra.mxu1 %v12819_v29 }
 0x556   :  { %11770 = vmatprep.subr.bf16.mxu1 %v12595_v12 }
 0x60b   :  { %v3120_v40 = vpop.f32.mrb[34].mxu0  ;;  %v3190_v25 = vpop.f32.mrb[38].mxu1 }
 0x60c   :  { %v3121_v55 = vadd.f32 %v13286_v54, %v3120_v40  ;;  %v10669_v56 = vpop.f32.mrb[35].mxu0  ;;  %v10680_v57 = vpop.f32.mrb[39].mxu1  ;;  %v3191_v61 = vadd.f32 %v13292_v59, %v3190_v25  ;;  %v13316_v25 = vld [vmem:[%s14398_s8 + $0x2] ss:$0 sm:$0xff] }
 0x60e   :  { %v3264_v62 = vadd.f32 %v3121_v55, %v3048_v37  ;;  %v3271_v0 = vadd.f32 %v3191_v61, %v3049_v63 }
 0x610   :  { %v9581_v13 = vmul.f32 -1.442695, %v3264_v62  ;;  %v9582_v2 = vmul.f32 -1.442695, %v3271_v0  ;;  %v3288_v62 = vld [vmem:[#allocation9 + $0x4] sm:$0x3] }
 0x612   :  { %12337 = vpow2.f32 %v9581_v13 }
 0x613   :  { %v3260_v1 = vpop.f32.mrb[36].mxu0  ;;  %12339 = vpow2.f32 %v9582_v2 }
 0x614   :  { %v10691_v27 = vpop.f32.mrb[37].mxu0  ;;  %v3261_v36 = vadd.f32 %v13310_v34, %v3260_v1 }
 0x61b   :  { %v3358_v4 = vpop.f32.mrb[40].mxu1  ;;  %v3428_v52 = vpop.f32.mrb[38].mxu0 }
 0x61c   :  { %v12338_v5 = vpop.eup %12337  ;;  %v3359_v8 = vadd.f32 %v13298_v6, %v3358_v4  ;;  %v10702_v9 = vpop.f32.mrb[41].mxu1  ;;  %v3429_v19 = vadd.f32 %v13304_v41, %v3428_v52 }
 0x61d   :  { %v10713_v58 = vpop.f32.mrb[39].mxu0  ;;  %v3268_v14 = vadd.f32 1.0, %v12338_v5  ;;  %v12340_v24 = vpop.eup %12339 }
 0x61e   :  { %v3502_v20 = vadd.f32 %v3359_v8, %v3286_v15  ;;  %v3509_v22 = vadd.f32 %v3429_v19, %v3287_v44  ;;  %v3275_v33 = vadd.f32 1.0, %v12340_v24  ;;  %v3524_v8 = vld [vmem:[#allocation4 + $0xc] sm:$0x3] }
 0x61f   :  { %12341 = vrcp.f32 %v3268_v14  ;;  %v3525_v14 = vld [vmem:[#allocation5 + $0xc] sm:$0x3] }
 0x620   :  { %v9586_v21 = vmul.f32 -1.442695, %v3502_v20  ;;  %v9587_v31 = vmul.f32 -1.442695, %v3509_v22 }
 0x622   :  { %12343 = vpow2.f32 %v9586_v21 }
 0x623   :  { %v3498_v30 = vpop.f32.mrb[42].mxu1  ;;  %12345 = vpow2.f32 %v9587_v31 }
 0x624   :  { %v10724_v3 = vpop.f32.mrb[43].mxu1  ;;  %12347 = vrcp.f32 %v3275_v33  ;;  %v3499_v55 = vadd.f32 %v13316_v25, %v3498_v30  ;;  %v3762_v33 = vld [vmem:[#allocation7 + $0x2] sm:$0x3] }
 0x629   :  { %v12342_v11 = vpop.eup %12341 }
 0x62a   :  { %v3278_v60 = vmul.f32 %v12342_v11, %v3261_v36 }
 0x62c   :  { %v12344_v46 = vpop.eup %12343  ;;  %v3279_v48 = vadd.f32 %v3278_v60, %v3050_v43  ;;  %v3763_v43 = vld [vmem:[#allocation8 + $0x2] sm:$0x3] }
 0x62d   :  { %v3506_v7 = vadd.f32 1.0, %v12344_v46  ;;  %v12346_v28 = vpop.eup %12345 }
 0x62e   :  { %12349 = vtanh.f32 %v3279_v48  ;;  %v12348_v49 = vpop.eup %12347  ;;  %v3513_v50 = vadd.f32 1.0, %v12346_v28 }
 0x62f   :  { %12351 = vrcp.f32 %v3506_v7  ;;  %v3281_v51 = vsub.f32 1.0, %v12348_v49  ;;  %v3283_v37 = vmul.f32 %v12348_v49, %v13226_v47 }
 0x630   :  { %12353 = vrcp.f32 %v3513_v50 }
 0x638   :  { %v12350_v40 = vpop.eup %12349 }
 0x639   :  { %v12352_v56 = vpop.eup %12351  ;;  %v3282_v57 = vmul.f32 %v12350_v40, %v3281_v51 }
 0x63a   :  { %v3516_v61 = vmul.f32 %v12352_v56, %v3499_v55  ;;  %v12354_v47 = vpop.eup %12353  ;;  %v3526_v56 = vld [vmem:[#allocation6 + $0xc] sm:$0x3] }
 0x63b   :  { %v13320_v13 = vadd.f32 %v3283_v37, %v3282_v57  ;;  %v3519_v0 = vsub.f32 1.0, %v12354_v47  ;;  %v3521_v2 = vmul.f32 %v12354_v47, %v13254_v53 }
 0x63c   :  { %v3517_v63 = vadd.f32 %v3516_v61, %v3288_v62 }
 0x63d   :  { %3285 = vst.msk [vmem:[#allocation2 + $0xa] sm:$0x3] %vm889_vm4, %v13320_v13  ;;  %10734 = vmatmul.mubr.msk.f32.vlgmr.msra.gmra.mrb[40].mxu0 %vm201_vm3, %v13320_v13  ;;  %10745 = vmatmul.mubr.msk.f32.vlgmr.msra.gmra.mrb[44].mxu1 %vm201_vm3, %v13320_v13 }
 0x63e   :  { %12355 = vtanh.f32 %v3517_v63  ;;  %11766 = vmatpush3.bf16.msra.mxu0 %v12776_v18  ;;  %10755 = vmatprep.mubr.msk.f32.mxu0 %vm12596_vm2, %v12597_v17 }
 0x63f   :  { %11767 = vmatprep.subr.bf16.mxu0 %v12595_v12  ;;  %11772 = vmatpush3.bf16.msra.mxu1 %v12841_v35 }
 0x640   :  { %11773 = vmatprep.subr.bf16.mxu1 %v12595_v12  ;;  %10766 = vmatprep.mubr.msk.f32.mxu1 %vm12596_vm2, %v12597_v17 }
 0x642   :  { %11769 = vmatpush3.bf16.msra.mxu0 %v12807_v26 }
 0x643   :  { %11776 = vmatprep.subr.bf16.mxu0 %v12595_v12  ;;  %11775 = vmatpush3.bf16.msra.mxu1 %v12859_v39 }
 0x644   :  { %11782 = vmatprep.subr.bf16.mxu1 %v12595_v12 }
 0x645   :  { %10756 = vmatmul.mubr.msk.f32.vlgmr.msra.gmra.mrb[42].mxu0 %vm201_vm3, %v13320_v13 }
 0x646   :  { %11778 = vmatpush3.bf16.msra.mxu0 %v12831_v32  ;;  %10777 = vmatprep.mubr.msk.f32.mxu0 %vm12596_vm2, %v12597_v17 }
 0x647   :  { %11779 = vmatprep.subr.bf16.mxu0 %v12595_v12 }
 0x648   :  { %v12356_v1 = vpop.eup %12355 }
 0x649   :  { %v3520_v27 = vmul.f32 %v12356_v1, %v3519_v0 }
 0x64a   :  { %11781 = vmatpush3.bf16.msra.mxu0 %v12852_v38 }
 0x64b   :  { %v13348_v4 = vadd.f32 %v3521_v2, %v3520_v27  ;;  %11788 = vmatprep.subr.bf16.mxu0 %v12595_v12 }
 0x64d   :  { %3523 = vst.msk [vmem:[#allocation3 + $0x4] sm:$0x3] %vm889_vm4, %v13348_v4  ;;  %10767 = vmatmul.mubr.msk.f32.vlgmr.msra.gmra.mrb[46].mxu1 %vm201_vm3, %v13348_v4  ;;  %10778 = vmatmul.mubr.msk.f32.vlgmr.msra.gmra.mrb[44].mxu0 %vm201_vm3, %v13348_v4 }
 0x64e   :  { %11784 = vmatpush3.bf16.msra.mxu1 %v12874_v42  ;;  %10788 = vmatprep.mubr.msk.f32.mxu1 %vm12596_vm2, %v12597_v17 }
 0x64f   :  { %11785 = vmatprep.subr.bf16.mxu1 %v12595_v12  ;;  %11790 = vmatpush3.bf16.msra.mxu0 %v12751_v10 }
 0x650   :  { %11791 = vmatprep.subr.bf16.mxu0 %v12595_v12  ;;  %10799 = vmatprep.mubr.msk.f32.mxu0 %vm12596_vm2, %v12597_v17 }
 0x652   :  { %11787 = vmatpush3.bf16.msra.mxu1 %v12889_v45 }
 0x653   :  { %11794 = vmatprep.subr.bf16.mxu1 %v12595_v12  ;;  %11793 = vmatpush3.bf16.msra.mxu0 %v12772_v16 }
 0x654   :  { %11800 = vmatprep.subr.bf16.mxu0 %v12595_v12 }
 0x655   :  { %10789 = vmatmul.mubr.msk.f32.vlgmr.msra.gmra.mrb[48].mxu1 %vm201_vm3, %v13348_v4 }
 0x656   :  { %11796 = vmatpush3.bf16.msra.mxu1 %v12796_v23  ;;  %10810 = vmatprep.mubr.msk.f32.mxu1 %vm12596_vm2, %v12597_v17 }
 0x657   :  { %11797 = vmatprep.subr.bf16.mxu1 %v12595_v12 }
 0x65a   :  { %11799 = vmatpush3.bf16.msra.mxu1 %v12819_v29 }
 0x65b   :  { %11806 = vmatprep.subr.bf16.mxu1 %v12595_v12 }
 0x710   :  { %v3596_v10 = vpop.f32.mrb[40].mxu0  ;;  %v3666_v53 = vpop.f32.mrb[44].mxu1 }
 0x711   :  { %v3597_v16 = vadd.f32 %v13286_v54, %v3596_v10  ;;  %v10735_v52 = vpop.f32.mrb[41].mxu0  ;;  %v10746_v5 = vpop.f32.mrb[45].mxu1  ;;  %v3667_v9 = vadd.f32 %v13292_v59, %v3666_v53 }
 0x712   :  { %v3764_v52 = vld [vmem:[#allocation9 + $0x2] sm:$0x3] }
 0x713   :  { %v3740_v58 = vadd.f32 %v3597_v16, %v3524_v8  ;;  %v3747_v15 = vadd.f32 %v3667_v9, %v3525_v14 }
 0x715   :  { %v9591_v23 = vmul.f32 -1.442695, %v3740_v58  ;;  %v9592_v21 = vmul.f32 -1.442695, %v3747_v15  ;;  %v4482_v58 = vld [vmem:[%s14399_s9 + $0x30] sm:$0xff] }
 0x717   :  { %12357 = vpow2.f32 %v9591_v23  ;;  %v4483_v23 = vld [vmem:[%s14399_s9 + $0x38] sm:$0xff] }
 0x718   :  { %v3736_v19 = vpop.f32.mrb[42].mxu0  ;;  %12359 = vpow2.f32 %v9592_v21  ;;  %v11828_v15 = vpack.c.bf16 %v4483_v23, %v4482_v58 }
 0x719   :  { %v10757_v20 = vpop.f32.mrb[43].mxu0  ;;  %v3737_v51 = vadd.f32 %v13310_v34, %v3736_v19  ;;  %v4490_v19 = vld [vmem:[%s14399_s9 + $0x70] sm:$0xff] }
 0x71a   :  { %v4491_v20 = vld [vmem:[%s14399_s9 + $0x78] sm:$0xff] }
 0x71b   :  { %v11844_v21 = vpack.c.bf16 %v4491_v20, %v4490_v19  ;;  %v4240_v19 = vld [vmem:[#allocation9] sm:$0x3] }
 0x720   :  { %v3834_v29 = vpop.f32.mrb[46].mxu1  ;;  %v3904_v44 = vpop.f32.mrb[44].mxu0 }
 0x721   :  { %v12358_v22 = vpop.eup %12357  ;;  %v3835_v24 = vadd.f32 %v13298_v6, %v3834_v29  ;;  %v10768_v30 = vpop.f32.mrb[47].mxu1  ;;  %v3905_v36 = vadd.f32 %v13304_v41, %v3904_v44  ;;  %v4476_v29 = vld [vmem:[%s14399_s9] sm:$0xff]  ;;  %v4477_v44 = vld [vmem:[%s14399_s9 + $0x8] sm:$0xff] }
 0x722   :  { %v10779_v3 = vpop.f32.mrb[45].mxu0  ;;  %v3744_v31 = vadd.f32 1.0, %v12358_v22  ;;  %v12360_v48 = vpop.eup %12359  ;;  %v4484_v22 = vld [vmem:[%s14399_s9 + $0x40] sm:$0xff]  ;;  %v4485_v30 = vld [vmem:[%s14399_s9 + $0x48] sm:$0xff] }
 0x723   :  { %v3978_v11 = vadd.f32 %v3835_v24, %v3762_v33  ;;  %v3985_v46 = vadd.f32 %v3905_v36, %v3763_v43  ;;  %v3751_v50 = vadd.f32 1.0, %v12360_v48  ;;  %v13460_v24 = vpack.c.bf16 %v4477_v44, %v4476_v29  ;;  %v4000_v43 = vld [vmem:[#allocation4 + $0xe] sm:$0x3] }
 0x724   :  { %12361 = vrcp.f32 %v3744_v31  ;;  %v13465_v3 = vpack.c.bf16 %v4485_v30, %v4484_v22 }
 0x725   :  { %v9596_v60 = vmul.f32 -1.442695, %v3978_v11  ;;  %v9597_v49 = vmul.f32 -1.442695, %v3985_v46 }
 0x727   :  { %12363 = vpow2.f32 %v9596_v60 }
 0x728   :  { %v3974_v7 = vpop.f32.mrb[48].mxu1  ;;  %12365 = vpow2.f32 %v9597_v49 }
 0x729   :  { %v10790_v28 = vpop.f32.mrb[49].mxu1  ;;  %12367 = vrcp.f32 %v3751_v50  ;;  %v3975_v27 = vadd.f32 %v13316_v25, %v3974_v7 }
 0x72a   :  { %v4001_v28 = vld [vmem:[#allocation5 + $0xe] sm:$0x3] }
 0x72e   :  { %v12362_v40 = vpop.eup %12361 }
 0x72f   :  { %v3754_v55 = vmul.f32 %v12362_v40, %v3737_v51 }
 0x731   :  { %v12364_v57 = vpop.eup %12363  ;;  %v3755_v37 = vadd.f32 %v3754_v55, %v3526_v56 }
 0x732   :  { %v3982_v61 = vadd.f32 1.0, %v12364_v57  ;;  %v12366_v62 = vpop.eup %12365 }
 0x733   :  { %12369 = vtanh.f32 %v3755_v37  ;;  %v12368_v63 = vpop.eup %12367  ;;  %v3989_v47 = vadd.f32 1.0, %v12366_v62 }
 0x734   :  { %12371 = vrcp.f32 %v3982_v61  ;;  %v3757_v0 = vsub.f32 1.0, %v12368_v63  ;;  %v3759_v53 = vmul.f32 %v12368_v63, %v13320_v13  ;;  %v4238_v63 = vld [vmem:[#allocation7] sm:$0x3] }
 0x735   :  { %12373 = vrcp.f32 %v3989_v47 }
 0x73d   :  { %v12370_v1 = vpop.eup %12369 }
 0x73e   :  { %v12372_v2 = vpop.eup %12371  ;;  %v3758_v10 = vmul.f32 %v12370_v1, %v3757_v0  ;;  %v4239_v1 = vld [vmem:[#allocation8] sm:$0x3] }
 0x73f   :  { %v3992_v16 = vmul.f32 %v12372_v2, %v3975_v27  ;;  %v12374_v13 = vpop.eup %12373 }
 0x740   :  { %v13384_v5 = vadd.f32 %v3759_v53, %v3758_v10  ;;  %v3997_v9 = vmul.f32 %v12374_v13, %v13348_v4 }
 0x741   :  { %v3993_v8 = vadd.f32 %v3992_v16, %v3764_v52 }
 0x742   :  { %3761 = vst.msk [vmem:[#allocation2 + $0xc] sm:$0x3] %vm889_vm4, %v13384_v5  ;;  %10800 = vmatmul.mubr.msk.f32.vlgmr.msra.gmra.mrb[46].mxu0 %vm201_vm3, %v13384_v5  ;;  %10811 = vmatmul.mubr.msk.f32.vlgmr.msra.gmra.mrb[50].mxu1 %vm201_vm3, %v13384_v5 }
 0x743   :  { %12375 = vtanh.f32 %v3993_v8  ;;  %11802 = vmatpush3.bf16.msra.mxu0 %v12776_v18  ;;  %10821 = vmatprep.mubr.msk.f32.mxu0 %vm12596_vm2, %v12597_v17  ;;  %v3995_v18 = vsub.f32 1.0, %v12374_v13 }
 0x744   :  { %11803 = vmatprep.subr.bf16.mxu0 %v12595_v12  ;;  %11808 = vmatpush3.bf16.msra.mxu1 %v12841_v35 }
 0x745   :  { %11809 = vmatprep.subr.bf16.mxu1 %v12595_v12  ;;  %10832 = vmatprep.mubr.msk.f32.mxu1 %vm12596_vm2, %v12597_v17 }
 0x747   :  { %11805 = vmatpush3.bf16.msra.mxu0 %v12807_v26 }
 0x748   :  { %11812 = vmatprep.subr.bf16.mxu0 %v12595_v12  ;;  %11811 = vmatpush3.bf16.msra.mxu1 %v12859_v39 }
 0x749   :  { %11818 = vmatprep.subr.bf16.mxu1 %v12595_v12 }
 0x74a   :  { %10822 = vmatmul.mubr.msk.f32.vlgmr.msra.gmra.mrb[48].mxu0 %vm201_vm3, %v13384_v5 }
 0x74b   :  { %11814 = vmatpush3.bf16.msra.mxu0 %v12831_v32  ;;  %10843 = vmatprep.mubr.msk.f32.mxu0 %vm12596_vm2, %v12597_v17  ;;  %v4480_v32 = vld [vmem:[%s14399_s9 + $0x20] sm:$0xff] }
 0x74c   :  { %11815 = vmatprep.subr.bf16.mxu0 %v12595_v12 }
 0x74d   :  { %v12376_v35 = vpop.eup %12375 }
 0x74e   :  { %v3996_v26 = vmul.f32 %v12376_v35, %v3995_v18  ;;  %v4002_v18 = vld [vmem:[#allocation6 + $0xe] sm:$0x3] }
 0x74f   :  { %11817 = vmatpush3.bf16.msra.mxu0 %v12852_v38  ;;  %v4481_v38 = vld [vmem:[%s14399_s9 + $0x28] sm:$0xff] }
 0x750   :  { %v13412_v39 = vadd.f32 %v3997_v9, %v3996_v26  ;;  %v11824_v4 = vpack.c.bf16 %v4481_v38, %v4480_v32 }
 0x752   :  { %3999 = vst.msk [vmem:[#allocation3 + $0x2] sm:$0x3] %vm889_vm4, %v13412_v39  ;;  %10833 = vmatmul.mubr.msk.f32.vlgmr.msra.gmra.mrb[52].mxu1 %vm201_vm3, %v13412_v39  ;;  %10844 = vmatmul.mubr.msk.f32.vlgmr.msra.gmra.mrb[50].mxu0 %vm201_vm3, %v13412_v39 }
 0x753   :  { %11820 = vmatpush3.bf16.msra.mxu1 %v12874_v42  ;;  %10854 = vmatprep.mubr.msk.f32.mxu1 %vm12596_vm2, %v12597_v17  ;;  %v4488_v42 = vld [vmem:[%s14399_s9 + $0x60] sm:$0xff] }
 0x754   :  { %11821 = vmatprep.subr.bf16.mxu1 %v12595_v12  ;;  %11825 = vmatprep.subr.bf16.mxu0 %v11824_v4 }
 0x755   :  { %11827 = vmatpush3.bf16.msra.mxu0 %v11824_v4 }
 0x756   :  { %11829 = vmatprep.subr.bf16.mxu0 %v11828_v15 }
 0x757   :  { %11823 = vmatpush3.bf16.msra.mxu1 %v12889_v45  ;;  %v4489_v45 = vld [vmem:[%s14399_s9 + $0x68] sm:$0xff] }
 0x758   :  { %v11840_v14 = vpack.c.bf16 %v4489_v45, %v4488_v42 }
 0x759   :  { %11831 = vmatpush3.bf16.msra.mxu0 %v11828_v15 }
 0x75a   :  { %10855 = vmatmul.mubr.msk.f32.vlgmr.msra.gmra.mrb[54].mxu1 %vm201_vm3, %v13412_v39  ;;  %11841 = vmatprep.subr.bf16.mxu1 %v11840_v14 }
 0x75b   :  { %11843 = vmatpush3.bf16.msra.mxu1 %v11840_v14  ;;  %11833 = vmatprep.subr.bf16.mxu0 %v13460_v24 }
 0x75c   :  { %11845 = vmatprep.subr.bf16.mxu1 %v11844_v21 }
 0x75f   :  { %11847 = vmatpush3.bf16.msra.mxu1 %v11844_v21 }
 0x760   :  { %11849 = vmatprep.subr.bf16.mxu1 %v13465_v3 }
 0x815   :  { %v4072_v31 = vpop.f32.mrb[46].mxu0  ;;  %v4142_v33 = vpop.f32.mrb[50].mxu1 }
 0x816   :  { %v4073_v36 = vadd.f32 %v13286_v54, %v4072_v31  ;;  %v10801_v11 = vpop.f32.mrb[47].mxu0  ;;  %v10812_v60 = vpop.f32.mrb[51].mxu1  ;;  %v4143_v46 = vadd.f32 %v13292_v59, %v4142_v33  ;;  %v4486_v33 = vld [vmem:[%s14399_s9 + $0x50] sm:$0xff] }
 0x817   :  { %v13493_v11 = vld [vmem:[#allocation3 + $0x8] sm:$0xff]  ;;  %v4496_v60 = vld [vmem:[%s14399_s9 + $0xa0] sm:$0xff] }
 0x818   :  { %v4216_v48 = vadd.f32 %v4073_v36, %v4000_v43  ;;  %v4223_v49 = vadd.f32 %v4143_v46, %v4001_v28  ;;  %v4523_v28 = vld [vmem:[%s14403_s13 + $0x28] sm:$0xff] }
 0x81a   :  { %v9601_v7 = vmul.f32 -1.442695, %v4216_v48  ;;  %v9602_v40 = vmul.f32 -1.442695, %v4223_v49  ;;  %v4497_v48 = vld [vmem:[%s14399_s9 + $0xa8] sm:$0xff]  ;;  %v13517_v49 = vld [vmem:[#allocation2] sm:$0xff] }
 0x81c   :  { %12377 = vpow2.f32 %v9601_v7  ;;  %v4522_v7 = vld [vmem:[%s14403_s13 + $0x20] sm:$0xff] }
 0x81d   :  { %v4212_v50 = vpop.f32.mrb[48].mxu0  ;;  %12379 = vpow2.f32 %v9602_v40  ;;  %v4498_v40 = vld [vmem:[%s14399_s9 + $0xb0] sm:$0xff] }
 0x81e   :  { %v10823_v51 = vpop.f32.mrb[49].mxu0  ;;  %v4213_v8 = vadd.f32 %v13310_v34, %v4212_v50  ;;  %v11856_v50 = vpack.c.bf16 %v4497_v48, %v4496_v60  ;;  %v4509_v48 = vld [vmem:[%s14400_s10 + $0x48] sm:$0xff] }
 0x81f   :  { %v11872_v51 = vpack.c.bf16 %v4523_v28, %v4522_v7  ;;  %v4542_v7 = vld [vmem:[%s14404_s14] sm:$0xff]  ;;  %v4543_v28 = vld [vmem:[%s14404_s14 + $0x8] sm:$0xff] }
 0x825   :  { %v4310_v55 = vpop.f32.mrb[52].mxu1  ;;  %v4380_v56 = vpop.f32.mrb[50].mxu0 }
 0x826   :  { %v12378_v57 = vpop.eup %12377  ;;  %v4311_v37 = vadd.f32 %v13298_v6, %v4310_v55  ;;  %v10834_v54 = vpop.f32.mrb[53].mxu1  ;;  %v4381_v59 = vadd.f32 %v13304_v41, %v4380_v56  ;;  %v4525_v55 = vld [vmem:[%s14403_s13 + $0x38] sm:$0xff]  ;;  %v4492_v56 = vld [vmem:[%s14399_s9 + $0x80] sm:$0xff] }
 0x827   :  { %v10845_v61 = vpop.f32.mrb[51].mxu0  ;;  %v4220_v62 = vadd.f32 1.0, %v12378_v57  ;;  %v12380_v2 = vpop.eup %12379  ;;  %v4493_v57 = vld [vmem:[%s14399_s9 + $0x88] sm:$0xff] }
 0x828   :  { %v4454_v47 = vadd.f32 %v4311_v37, %v4238_v63  ;;  %v4461_v27 = vadd.f32 %v4381_v59, %v4239_v1  ;;  %v4227_v52 = vadd.f32 1.0, %v12380_v2  ;;  %v4519_v63 = vld [vmem:[%s14403_s13 + $0x8] sm:$0xff]  ;;  %v11864_v59 = vpack.c.bf16 %v4493_v57, %v4492_v56  ;;  %v4495_v1 = vld [vmem:[%s14399_s9 + $0x98] sm:$0xff]  ;;  %v4546_v57 = vld [vmem:[%s14404_s14 + $0x20] sm:$0xff] }
 0x829   :  { %12381 = vrcp.f32 %v4220_v62  ;;  %v4518_v62 = vld [vmem:[%s14403_s13] sm:$0xff]  ;;  %v4521_v2 = vld [vmem:[%s14403_s13 + $0x18] sm:$0xff] }
 0x82a   :  { %v9606_v0 = vmul.f32 -1.442695, %v4454_v47  ;;  %v9607_v16 = vmul.f32 -1.442695, %v4461_v27  ;;  %v11880_v47 = vpack.c.bf16 %v4519_v63, %v4518_v62  ;;  %v4520_v27 = vld [vmem:[%s14403_s13 + $0x10] sm:$0xff] }
 0x82b   :  { %v4548_v63 = vld [vmem:[%s14404_s14 + $0x30] sm:$0xff] }
 0x82c   :  { %12383 = vpow2.f32 %v9606_v0  ;;  %v4494_v0 = vld [vmem:[%s14399_s9 + $0x90] sm:$0xff] }
 0x82d   :  { %v4450_v10 = vpop.f32.mrb[54].mxu1  ;;  %12385 = vpow2.f32 %v9607_v16  ;;  %v4530_v16 = vld [vmem:[%s14403_s13 + $0x60] sm:$0xff] }
 0x82e   :  { %v10856_v53 = vpop.f32.mrb[55].mxu1  ;;  %12387 = vrcp.f32 %v4227_v52  ;;  %v4451_v45 = vadd.f32 %v13316_v25, %v4450_v10  ;;  %v4478_v25 = vld [vmem:[%s14399_s9 + $0x10] sm:$0xff]  ;;  %v11868_v10 = vpack.c.bf16 %v4495_v1, %v4494_v0  ;;  %v4531_v52 = vld [vmem:[%s14403_s13 + $0x68] sm:$0xff]  ;;  %v4553_v1 = vld [vmem:[%s14404_s14 + $0x58] sm:$0xff] }
 0x82f   :  { %v11884_v53 = vpack.c.bf16 %v4521_v2, %v4520_v27  ;;  %v4552_v0 = vld [vmem:[%s14404_s14 + $0x50] sm:$0xff] }
 0x830   :  { %v13774_v2 = vpack.c.bf16 %v4553_v1, %v4552_v0 }
 0x833   :  { %v12382_v6 = vpop.eup %12381 }
 0x834   :  { %v4230_v13 = vmul.f32 %v12382_v6, %v4213_v8  ;;  %v4538_v8 = vld [vmem:[%s14403_s13 + $0xa0] sm:$0xff]  ;;  %v4539_v6 = vld [vmem:[%s14403_s13 + $0xa8] sm:$0xff] }
 0x836   :  { %v12384_v35 = vpop.eup %12383  ;;  %v4231_v41 = vadd.f32 %v4230_v13, %v4002_v18  ;;  %v11888_v13 = vpack.c.bf16 %v4531_v52, %v4530_v16  ;;  %v11904_v18 = vpack.c.bf16 %v4539_v6, %v4538_v8 }
 0x837   :  { %v4458_v26 = vadd.f32 1.0, %v12384_v35  ;;  %v12386_v9 = vpop.eup %12385  ;;  %v4532_v35 = vld [vmem:[%s14403_s13 + $0x70] sm:$0xff] }
 0x838   :  { %12389 = vtanh.f32 %v4231_v41  ;;  %v12388_v32 = vpop.eup %12387  ;;  %v4465_v38 = vadd.f32 1.0, %v12386_v9  ;;  %v4533_v41 = vld [vmem:[%s14403_s13 + $0x78] sm:$0xff] }
 0x839   :  { %12391 = vrcp.f32 %v4458_v26  ;;  %v4233_v42 = vsub.f32 1.0, %v12388_v32  ;;  %v4235_v34 = vmul.f32 %v12388_v32, %v13384_v5  ;;  %v4479_v5 = vld [vmem:[%s14399_s9 + $0x18] sm:$0xff]  ;;  %v4540_v26 = vld [vmem:[%s14403_s13 + $0xb0] sm:$0xff]  ;;  %v11892_v32 = vpack.c.bf16 %v4533_v41, %v4532_v35 }
 0x83a   :  { %12393 = vrcp.f32 %v4465_v38  ;;  %v11836_v43 = vpack.c.bf16 %v4479_v5, %v4478_v25  ;;  %v4541_v9 = vld [vmem:[%s14403_s13 + $0xb8] sm:$0xff]  ;;  %v4526_v38 = vld [vmem:[%s14403_s13 + $0x40] sm:$0xff] }
 0x842   :  { %v12390_v4 = vpop.eup %12389 }
 0x843   :  { %v12392_v58 = vpop.eup %12391  ;;  %v4234_v23 = vmul.f32 %v12390_v4, %v4233_v42  ;;  %v4527_v42 = vld [vmem:[%s14403_s13 + $0x48] sm:$0xff]  ;;  %v11908_v4 = vpack.c.bf16 %v4541_v9, %v4540_v26  ;;  %v9622_v26 = vld [vmem:[%s14401_s11 + $0x2] ss:$0 sm:$0xff]  ;;  %v9627_v9 = vld [vmem:[%s14405_s15] ss:$0 sm:$0xff] }
 0x844   :  { %v4468_v14 = vmul.f32 %v12392_v58, %v4451_v45  ;;  %v12394_v21 = vpop.eup %12393  ;;  %v4534_v45 = vld [vmem:[%s14403_s13 + $0x80] sm:$0xff]  ;;  %v4535_v58 = vld [vmem:[%s14403_s13 + $0x88] sm:$0xff] }
 0x845   :  { %v4236_v15 = vadd.f32 %v4235_v34, %v4234_v23  ;;  %v4471_v29 = vsub.f32 1.0, %v12394_v21  ;;  %v4473_v22 = vmul.f32 %v12394_v21, %v13412_v39  ;;  %v4487_v39 = vld [vmem:[%s14399_s9 + $0x58] sm:$0xff]  ;;  %v11896_v34 = vpack.c.bf16 %v4527_v42, %v4526_v38 }
 0x846   :  { %v4469_v20 = vadd.f32 %v4468_v14, %v4240_v19  ;;  %v11852_v46 = vpack.c.bf16 %v4487_v39, %v4486_v33  ;;  %v11912_v23 = vpack.c.bf16 %v4535_v58, %v4534_v45  ;;  %v4528_v14 = vld [vmem:[%s14403_s13 + $0x50] sm:$0xff]  ;;  %v4503_v39 = vld [vmem:[%s14400_s10 + $0x18] sm:$0xff] }
 0x847   :  { %4237 = vst.msk [vmem:[#allocation2 + $0xe] sm:$0x3] %vm889_vm4, %v4236_v15  ;;  %v4529_v15 = vld [vmem:[%s14403_s13 + $0x58] sm:$0xff]  ;;  %v4536_v19 = vld [vmem:[%s14403_s13 + $0x90] sm:$0xff] }
 0x848   :  { %12395 = vtanh.f32 %v4469_v20  ;;  %v4537_v20 = vld [vmem:[%s14403_s13 + $0x98] sm:$0xff]  ;;  %v11900_v21 = vpack.c.bf16 %v4529_v15, %v4528_v14  ;;  %v4502_v33 = vld [vmem:[%s14400_s10 + $0x10] sm:$0xff]  ;;  %v9632_v14 = vld [vmem:[%s14405_s15 + $0x1] ss:$0 sm:$0xff] }
 0x849   :  { %v13676_v60 = vpack.c.bf16 %v4503_v39, %v4502_v33  ;;  %v9637_v15 = vld [vmem:[%s14405_s15 + $0x2] ss:$0 sm:$0xff]  ;;  %v13830_v33 = vld [vmem:[%s14402_s12] ss:$0 sm:$0xff]  ;;  %v13835_v39 = vld [vmem:[%s14402_s12 + $0x1] ss:$0 sm:$0xff] }
 0x84e   :  { %v13541_v37 = vld [vmem:[#allocation2 + $0x8] sm:$0xff] }
 0x852   :  { %v12396_v44 = vpop.eup %12395 }
 0x853   :  { %v4472_v30 = vmul.f32 %v12396_v44, %v4471_v29  ;;  %v11916_v29 = vpack.c.bf16 %v4537_v20, %v4536_v19  ;;  %v4500_v44 = vld [vmem:[%s14400_s10] sm:$0xff] }
 0x855   :  { %v4474_v31 = vadd.f32 %v4473_v22, %v4472_v30  ;;  %v4501_v22 = vld [vmem:[%s14400_s10 + $0x8] sm:$0xff]  ;;  %v4504_v30 = vld [vmem:[%s14400_s10 + $0x20] sm:$0xff] }
 0x856   :  { %v13653_v25 = vpack.c.bf16 %v4501_v22, %v4500_v44 }
 0x857   :  { %4475 = vst.msk [vmem:[#allocation3] sm:$0x3] %vm889_vm4, %v4474_v31  ;;  %v4505_v31 = vld [vmem:[%s14400_s10 + $0x28] sm:$0xff] }
 0x858   :  { %v13656_v5 = vpack.c.bf16 %v4505_v31, %v4504_v30 }
 0x85e   :  { %v13491_v36 = vld [vmem:[#allocation3] sm:$0xff] }
 0x85f   :  { %10865 = vmatprep.mubr.msk.f32.mxu0 %vm201_vm3, %v13491_v36  ;;  %10887 = vmatprep.mubr.msk.f32.mxu1 %vm201_vm3, %v13491_v36 }
 0x860   :  { %10866 = vmatmul.mubr.msk.f32.vlgmr.msra.gmra.mrb[52].mxu0 %vm201_vm3, %v13493_v11  ;;  %10888 = vmatmul.mubr.msk.f32.vlgmr.msra.gmra.mrb[56].mxu1 %vm201_vm3, %v13493_v11 }
 0x861   :  { %11835 = vmatpush3.bf16.msra.mxu0 %v13460_v24  ;;  %11851 = vmatpush3.bf16.msra.mxu1 %v13465_v3  ;;  %v4499_v24 = vld [vmem:[%s14399_s9 + $0xb8] sm:$0xff]  ;;  %v4524_v3 = vld [vmem:[%s14403_s13 + $0x30] sm:$0xff] }
 0x862   :  { %10876 = vmatprep.mubr.msk.f32.mxu0 %vm201_vm3, %v13517_v49  ;;  %10898 = vmatprep.mubr.msk.f32.mxu1 %vm201_vm3, %v13517_v49  ;;  %v11860_v54 = vpack.c.bf16 %v4499_v24, %v4498_v40  ;;  %v11876_v61 = vpack.c.bf16 %v4525_v55, %v4524_v3  ;;  %v4511_v40 = vld [vmem:[%s14400_s10 + $0x58] sm:$0xff]  ;;  %v4544_v24 = vld [vmem:[%s14404_s14 + $0x10] sm:$0xff] }
 0x863   :  { %11837 = vmatprep.subr.bf16.mxu0 %v11836_v43  ;;  %11853 = vmatprep.subr.bf16.mxu1 %v11852_v46  ;;  %v4545_v3 = vld [vmem:[%s14404_s14 + $0x18] sm:$0xff] }
 0x864   :  { %v13726_v56 = vpack.c.bf16 %v4545_v3, %v4544_v24 }
 0x865   :  { %11839 = vmatpush3.bf16.msra.mxu0 %v11836_v43  ;;  %11855 = vmatpush3.bf16.msra.mxu1 %v11852_v46  ;;  %v4508_v46 = vld [vmem:[%s14400_s10 + $0x40] sm:$0xff] }
 0x866   :  { %11857 = vmatprep.subr.bf16.mxu0 %v11856_v50  ;;  %11873 = vmatprep.subr.bf16.mxu1 %v11872_v51 }
 0x868   :  { %10877 = vmatmul.mubr.msk.f32.vlgmr.msra.gmra.mrb[52].mxu0 %vm201_vm3, %v13541_v37  ;;  %10899 = vmatmul.mubr.msk.f32.vlgmr.msra.gmra.mrb[56].mxu1 %vm201_vm3, %v13541_v37 }
 0x869   :  { %11859 = vmatpush3.bf16.msra.mxu0 %v11856_v50  ;;  %11875 = vmatpush3.bf16.msra.mxu1 %v11872_v51  ;;  %v13704_v50 = vpack.c.bf16 %v4543_v28, %v4542_v7  ;;  %v4510_v51 = vld [vmem:[%s14400_s10 + $0x50] sm:$0xff] }
 0x86a   :  { %10909 = vmatprep.mubr.msk.f32.mxu0 %vm201_vm3, %v13491_v36  ;;  %10931 = vmatprep.mubr.msk.f32.mxu1 %vm201_vm3, %v13491_v36  ;;  %v13722_v55 = vpack.c.bf16 %v4511_v40, %v4510_v51 }
 0x86b   :  { %11861 = vmatprep.subr.bf16.mxu0 %v11860_v54  ;;  %11877 = vmatprep.subr.bf16.mxu1 %v11876_v61 }
 0x86d   :  { %11863 = vmatpush3.bf16.msra.mxu0 %v11860_v54  ;;  %11879 = vmatpush3.bf16.msra.mxu1 %v11876_v61  ;;  %v4550_v54 = vld [vmem:[%s14404_s14 + $0x40] sm:$0xff]  ;;  %v4551_v61 = vld [vmem:[%s14404_s14 + $0x48] sm:$0xff] }
 0x86e   :  { %11865 = vmatprep.subr.bf16.mxu0 %v11864_v59  ;;  %11881 = vmatprep.subr.bf16.mxu1 %v11880_v47 }
 0x870   :  { %10910 = vmatmul.mubr.msk.f32.vlgmr.msra.gmra.mrb[54].mxu0 %vm201_vm3, %v13493_v11  ;;  %10932 = vmatmul.mubr.msk.f32.vlgmr.msra.gmra.mrb[58].mxu1 %vm201_vm3, %v13493_v11 }
 0x871   :  { %11867 = vmatpush3.bf16.msra.mxu0 %v11864_v59  ;;  %10920 = vmatprep.mubr.msk.f32.mxu0 %vm201_vm3, %v13517_v49  ;;  %v4549_v59 = vld [vmem:[%s14404_s14 + $0x38] sm:$0xff] }
 0x872   :  { %11883 = vmatpush3.bf16.msra.mxu1 %v11880_v47  ;;  %10942 = vmatprep.mubr.msk.f32.mxu1 %vm201_vm3, %v13517_v49  ;;  %v13757_v47 = vpack.c.bf16 %v4551_v61, %v4550_v54  ;;  %v13768_v27 = vpack.c.bf16 %v4549_v59, %v4548_v63 }
 0x873   :  { %11869 = vmatprep.subr.bf16.mxu0 %v11868_v10  ;;  %11885 = vmatprep.subr.bf16.mxu1 %v11884_v53 }
 0x875   :  { %11871 = vmatpush3.bf16.msra.mxu0 %v11868_v10  ;;  %v9612_v10 = vld [vmem:[%s14401_s11] ss:$0 sm:$0xff] }
 0x876   :  { %11887 = vmatpush3.bf16.msra.mxu1 %v11884_v53  ;;  %11889 = vmatprep.subr.bf16.mxu0 %v11888_v13  ;;  %v9617_v53 = vld [vmem:[%s14401_s11 + $0x1] ss:$0 sm:$0xff] }
 0x877   :  { %11905 = vmatprep.subr.bf16.mxu1 %v11904_v18 }
 0x878   :  { %10921 = vmatmul.mubr.msk.f32.vlgmr.msra.gmra.mrb[54].mxu0 %vm201_vm3, %v13541_v37 }
 0x879   :  { %10943 = vmatmul.mubr.msk.f32.vlgmr.msra.gmra.mrb[58].mxu1 %vm201_vm3, %v13541_v37  ;;  %11891 = vmatpush3.bf16.msra.mxu0 %v11888_v13 }
 0x87a   :  { %10953 = vmatprep.mubr.msk.f32.mxu0 %vm201_vm3, %v13491_v36  ;;  %11907 = vmatpush3.bf16.msra.mxu1 %v11904_v18 }
 0x87b   :  { %10975 = vmatprep.mubr.msk.f32.mxu1 %vm201_vm3, %v13491_v36  ;;  %11893 = vmatprep.subr.bf16.mxu0 %v11892_v32  ;;  %v4506_v36 = vld [vmem:[%s14400_s10 + $0x30] sm:$0xff] }
 0x87c   :  { %11909 = vmatprep.subr.bf16.mxu1 %v11908_v4 }
 0x87d   :  { %11895 = vmatpush3.bf16.msra.mxu0 %v11892_v32 }
 0x87e   :  { %11911 = vmatpush3.bf16.msra.mxu1 %v11908_v4  ;;  %11897 = vmatprep.subr.bf16.mxu0 %v11896_v34 }
 0x87f   :  { %11913 = vmatprep.subr.bf16.mxu1 %v11912_v23 }
 0x880   :  { %10954 = vmatmul.mubr.msk.f32.vlgmr.msra.gmra.mrb[56].mxu0 %vm201_vm3, %v13493_v11 }
 0x881   :  { %10976 = vmatmul.mubr.msk.f32.vlgmr.msra.gmra.mrb[60].mxu1 %vm201_vm3, %v13493_v11  ;;  %11899 = vmatpush3.bf16.msra.mxu0 %v11896_v34  ;;  %v4507_v11 = vld [vmem:[%s14400_s10 + $0x38] sm:$0xff] }
 0x882   :  { %10964 = vmatprep.mubr.msk.f32.mxu0 %vm201_vm3, %v13517_v49  ;;  %11915 = vmatpush3.bf16.msra.mxu1 %v11912_v23  ;;  %v13680_v43 = vpack.c.bf16 %v4507_v11, %v4506_v36 }
 0x883   :  { %10986 = vmatprep.mubr.msk.f32.mxu1 %vm201_vm3, %v13517_v49  ;;  %11901 = vmatprep.subr.bf16.mxu0 %v11900_v21  ;;  %v13700_v49 = vpack.c.bf16 %v4509_v48, %v4508_v46 }
 0x884   :  { %11917 = vmatprep.subr.bf16.mxu1 %v11916_v29 }
 0x885   :  { %11903 = vmatpush3.bf16.msra.mxu0 %v11900_v21 }
 0x886   :  { %11919 = vmatpush3.bf16.msra.mxu1 %v11916_v29  ;;  %11920 = vmatprep.subr.bf16.mxu0 %v12595_v12 }
 0x887   :  { %11926 = vmatprep.subr.bf16.mxu1 %v12595_v12 }
 0x888   :  { %10965 = vmatmul.mubr.msk.f32.vlgmr.msra.gmra.mrb[56].mxu0 %vm201_vm3, %v13541_v37 }
 0x889   :  { %10987 = vmatmul.mubr.msk.f32.vlgmr.msra.gmra.mrb[60].mxu1 %vm201_vm3, %v13541_v37  ;;  %11922 = vmatpush3.bf16.msra.mxu0 %v13653_v25  ;;  %v4547_v37 = vld [vmem:[%s14404_s14 + $0x28] sm:$0xff] }
 0x88a   :  { %11928 = vmatpush3.bf16.msra.mxu1 %v13656_v5  ;;  %11923 = vmatprep.subr.bf16.mxu0 %v12595_v12  ;;  %v13746_v62 = vpack.c.bf16 %v4547_v37, %v4546_v57  ;;  %v13842_v37 = vld [vmem:[%s14406_s16] ss:$0 sm:$0xff] }
 0x88b   :  { %11929 = vmatprep.subr.bf16.mxu1 %v12595_v12  ;;  %10997 = vmatprep.mubr.msk.f32.mxu0 %vm12596_vm2, %v12597_v17 }
 0x88c   :  { %11008 = vmatprep.mubr.msk.f32.mxu1 %vm12596_vm2, %v12597_v17 }
 0x88d   :  { %11925 = vmatpush3.bf16.msra.mxu0 %v13676_v60 }
 0x88e   :  { %11931 = vmatpush3.bf16.msra.mxu1 %v13680_v43  ;;  %11932 = vmatprep.subr.bf16.mxu0 %v12595_v12 }
 0x88f   :  { %11938 = vmatprep.subr.bf16.mxu1 %v12595_v12 }
 0x890   :  { %10998 = vmatmul.mubr.f32.vlgmr.msra.gmra.mrb[58].mxu0 %v12597_v17 }
 0x891   :  { %11009 = vmatmul.mubr.f32.vlgmr.msra.gmra.mrb[62].mxu1 %v12597_v17  ;;  %11934 = vmatpush3.bf16.msra.mxu0 %v13700_v49 }
 0x892   :  { %11940 = vmatpush3.bf16.msra.mxu1 %v13704_v50  ;;  %11935 = vmatprep.subr.bf16.mxu0 %v12595_v12 }
 0x893   :  { %11941 = vmatprep.subr.bf16.mxu1 %v12595_v12  ;;  %11030 = vmatprep.mubr.msk.f32.mxu1 %vm12596_vm2, %v12597_v17 }
 0x894   :  { %11019 = vmatprep.mubr.msk.f32.mxu0 %vm12596_vm2, %v12597_v17 }
 0x895   :  { %11937 = vmatpush3.bf16.msra.mxu0 %v13722_v55 }
 0x896   :  { %11943 = vmatpush3.bf16.msra.mxu1 %v13726_v56  ;;  %11944 = vmatprep.subr.bf16.mxu0 %v12595_v12 }
 0x897   :  { %11950 = vmatprep.subr.bf16.mxu1 %v12595_v12 }
 0x898   :  { %11020 = vmatmul.mubr.f32.vlgmr.msra.gmra.mrb[60].mxu0 %v12597_v17 }
 0x899   :  { %11031 = vmatmul.mubr.f32.vlgmr.msra.gmra.mrb[64].mxu1 %v12597_v17  ;;  %11946 = vmatpush3.bf16.msra.mxu0 %v13746_v62 }
 0x89a   :  { %11947 = vmatprep.subr.bf16.mxu0 %v12595_v12  ;;  %11041 = vmatprep.mubr.msk.f32.mxu0 %vm12596_vm2, %v12597_v17 }
 0x89b   :  { %11952 = vmatpush3.bf16.msra.mxu1 %v13757_v47  ;;  %11052 = vmatprep.mubr.msk.f32.mxu1 %vm12596_vm2, %v12597_v17 }
 0x89c   :  { %11953 = vmatprep.subr.bf16.mxu1 %v12595_v12 }
 0x89d   :  { %11949 = vmatpush3.bf16.msra.mxu0 %v13768_v27 }
 0x89e   :  { %11956 = vmatprep.subr.bf16.mxu0 %v12595_v12 }
 0x89f   :  { %11955 = vmatpush3.bf16.msra.mxu1 %v13774_v2 }
 0x8a0   :  { %11042 = vmatmul.mubr.f32.vlgmr.msra.gmra.mrb[62].mxu0 %v12597_v17  ;;  %11962 = vmatprep.subr.bf16.mxu1 %v12595_v12 }
 0x8a1   :  { %11958 = vmatpush3.bf16.msra.mxu0 %v13653_v25  ;;  %11063 = vmatprep.mubr.msk.f32.mxu0 %vm12596_vm2, %v12597_v17 }
 0x8a2   :  { %11053 = vmatmul.mubr.f32.vlgmr.msra.gmra.mrb[66].mxu1 %v12597_v17  ;;  %11959 = vmatprep.subr.bf16.mxu0 %v12595_v12 }
 0x8a3   :  { %11964 = vmatpush3.bf16.msra.mxu1 %v13656_v5  ;;  %11074 = vmatprep.mubr.msk.f32.mxu1 %vm12596_vm2, %v12597_v17 }
 0x8a4   :  { %11965 = vmatprep.subr.bf16.mxu1 %v12595_v12 }
 0x8a5   :  { %11961 = vmatpush3.bf16.msra.mxu0 %v13676_v60 }
 0x8a6   :  { %11968 = vmatprep.subr.bf16.mxu0 %v12595_v12 }
 0x8a7   :  { %11967 = vmatpush3.bf16.msra.mxu1 %v13680_v43 }
 0x8a8   :  { %11974 = vmatprep.subr.bf16.mxu1 %v12595_v12 }
 0x93b   :  { %v10878_v16 = vpop.f32.mrb[52].mxu0  ;;  %v10900_v52 = vpop.f32.mrb[56].mxu1 }
 0x93c   :  { %v4733_v8 = vadd.f32 %v10878_v16, %v9612_v10  ;;  %v4893_v6 = vadd.f32 %v10900_v52, %v9617_v53  ;;  %v4717_v13 = vpop.f32.mrb[53].mxu0  ;;  %v4877_v18 = vpop.f32.mrb[57].mxu1  ;;  %v13848_v52 = vld [vmem:[%s14406_s16 + $0x1] ss:$0 sm:$0xff] }
 0x93d   :  { %v4732_v35 = vadd.f32 %v9612_v10, %v4717_v13  ;;  %v4892_v41 = vadd.f32 %v9617_v53, %v4877_v18 }
 0x93e   :  { %4735 = vst.msk [vmem:[#allocation4 + $0x8] sm:$0xff] %vm201_vm3, %v4733_v8  ;;  %4895 = vst.msk [vmem:[#allocation5 + $0x8] sm:$0xff] %vm201_vm3, %v4893_v6 }
 0x93f   :  { %4734 = vst.msk [vmem:[#allocation4] sm:$0xff] %vm201_vm3, %v4732_v35  ;;  %4894 = vst.msk [vmem:[#allocation5] sm:$0xff] %vm201_vm3, %v4892_v41 }
 0x946   :  { %v5536_v7 = vld [vmem:[#allocation4] sm:$0x3]  ;;  %v5537_v3 = vld [vmem:[#allocation5] sm:$0x3] }
 0x94b   :  { %v10922_v32 = vpop.f32.mrb[54].mxu0 }
 0x94c   :  { %v5053_v38 = vadd.f32 %v10922_v32, %v9622_v26  ;;  %v10944_v42 = vpop.f32.mrb[58].mxu1  ;;  %v5037_v4 = vpop.f32.mrb[55].mxu0 }
 0x94d   :  { %v5213_v45 = vadd.f32 %v10944_v42, %v9627_v9  ;;  %v5052_v58 = vadd.f32 %v9622_v26, %v5037_v4  ;;  %v5197_v34 = vpop.f32.mrb[59].mxu1 }
 0x94e   :  { %5055 = vst.msk [vmem:[#allocation6 + $0x8] sm:$0xff] %vm201_vm3, %v5053_v38  ;;  %v5212_v23 = vadd.f32 %v9627_v9, %v5197_v34 }
 0x94f   :  { %5215 = vst.msk [vmem:[#allocation7 + $0x8] sm:$0xff] %vm201_vm3, %v5213_v45  ;;  %5054 = vst.msk [vmem:[#allocation6] sm:$0xff] %vm201_vm3, %v5052_v58  ;;  %v13854_v45 = vld [vmem:[%s14402_s12 + $0x2] ss:$0 sm:$0xff] }
 0x950   :  { %5214 = vst.msk [vmem:[#allocation7] sm:$0xff] %vm201_vm3, %v5212_v23 }
 0x956   :  { %v5789_v10 = vld [vmem:[#allocation7 + $0xe] sm:$0x3] }
 0x95b   :  { %v10966_v19 = vpop.f32.mrb[56].mxu0 }
 0x95c   :  { %v5373_v20 = vadd.f32 %v10966_v19, %v9632_v14  ;;  %v10988_v21 = vpop.f32.mrb[60].mxu1  ;;  %v5357_v29 = vpop.f32.mrb[57].mxu0  ;;  %v5538_v19 = vld [vmem:[#allocation6] sm:$0x3] }
 0x95d   :  { %v5533_v44 = vadd.f32 %v10988_v21, %v9637_v15  ;;  %v5372_v22 = vadd.f32 %v9632_v14, %v5357_v29  ;;  %v5517_v30 = vpop.f32.mrb[61].mxu1  ;;  %v13860_v29 = vld [vmem:[%s14406_s16 + $0x2] ss:$0 sm:$0xff] }
 0x95e   :  { %5375 = vst.msk [vmem:[#allocation8 + $0x8] sm:$0xff] %vm201_vm3, %v5373_v20  ;;  %v5532_v31 = vadd.f32 %v9637_v15, %v5517_v30 }
 0x95f   :  { %5535 = vst.msk [vmem:[#allocation9 + $0x8] sm:$0xff] %vm201_vm3, %v5533_v44  ;;  %5374 = vst.msk [vmem:[#allocation8] sm:$0xff] %vm201_vm3, %v5372_v22 }
 0x960   :  { %5534 = vst.msk [vmem:[#allocation9] sm:$0xff] %vm201_vm3, %v5532_v31 }
 0x963   :  { %v5611_v36 = vpop.f32.mrb[58].mxu0 }
 0x964   :  { %v5612_v11 = vadd.f32 %v13830_v33, %v5611_v36  ;;  %v5687_v46 = vpop.f32.mrb[62].mxu1  ;;  %v10999_v48 = vpop.f32.mrb[59].mxu0 }
 0x965   :  { %v5688_v28 = vadd.f32 %v13835_v39, %v5687_v46  ;;  %v11010_v51 = vpop.f32.mrb[63].mxu1  ;;  %v5790_v41 = vld [vmem:[#allocation8 + $0xe] sm:$0x3] }
 0x966   :  { %v5767_v40 = vadd.f32 %v5612_v11, %v5536_v7  ;;  %v5791_v11 = vld [vmem:[#allocation9 + $0xe] sm:$0x3] }
 0x967   :  { %v5774_v57 = vadd.f32 %v5688_v28, %v5537_v3 }
 0x968   :  { %v9641_v24 = vmul.f32 -1.442695, %v5767_v40 }
 0x969   :  { %v9642_v59 = vmul.f32 -1.442695, %v5774_v57 }
 0x96a   :  { %12397 = vpow2.f32 %v9641_v24 }
 0x96b   :  { %v5763_v54 = vpop.f32.mrb[60].mxu0  ;;  %12399 = vpow2.f32 %v9642_v59 }
 0x96c   :  { %v5864_v61 = vpop.f32.mrb[64].mxu1  ;;  %v11021_v63 = vpop.f32.mrb[61].mxu0  ;;  %v5764_v23 = vadd.f32 %v13854_v45, %v5763_v54 }
 0x96d   :  { %v5865_v0 = vadd.f32 %v13842_v37, %v5864_v61  ;;  %v11032_v1 = vpop.f32.mrb[65].mxu1 }
 0x96f   :  { %v6020_v53 = vadd.f32 %v5865_v0, %v5789_v10 }
 0x971   :  { %v9646_v16 = vmul.f32 -1.442695, %v6020_v53 }
 0x973   :  { %12401 = vpow2.f32 %v9646_v16  ;;  %v5940_v8 = vpop.f32.mrb[62].mxu0  ;;  %v6042_v16 = vld [vmem:[#allocation4 + $0x2] sm:$0x3] }
 0x974   :  { %v12398_v6 = vpop.eup %12397  ;;  %v5941_v13 = vadd.f32 %v13848_v52, %v5940_v8  ;;  %v11043_v18 = vpop.f32.mrb[63].mxu0 }
 0x975   :  { %v5771_v35 = vadd.f32 1.0, %v12398_v6  ;;  %v6016_v26 = vpop.f32.mrb[66].mxu1  ;;  %v12400_v42 = vpop.eup %12399  ;;  %v6043_v18 = vld [vmem:[#allocation5 + $0x2] sm:$0x3] }
 0x976   :  { %v6027_v9 = vadd.f32 %v5941_v13, %v5790_v41  ;;  %v11054_v32 = vpop.f32.mrb[67].mxu1  ;;  %v5778_v58 = vadd.f32 1.0, %v12400_v42  ;;  %v6017_v22 = vadd.f32 %v13860_v29, %v6016_v26 }
 0x977   :  { %12403 = vrcp.f32 %v5771_v35 }
 0x978   :  { %v9647_v38 = vmul.f32 -1.442695, %v6027_v9 }
 0x97a   :  { %12405 = vpow2.f32 %v9647_v38 }
 0x97d   :  { %v12402_v4 = vpop.eup %12401 }
 0x97e   :  { %v6024_v34 = vadd.f32 1.0, %v12402_v4  ;;  %v6280_v4 = vld [vmem:[#allocation7 + $0xc] sm:$0x3] }
 0x980   :  { %12407 = vrcp.f32 %v6024_v34 }
 0x981   :  { %v12404_v14 = vpop.eup %12403  ;;  %12409 = vrcp.f32 %v5778_v58 }
 0x982   :  { %v5781_v15 = vmul.f32 %v12404_v14, %v5764_v23 }
 0x984   :  { %v12406_v20 = vpop.eup %12405  ;;  %v5782_v21 = vadd.f32 %v5781_v15, %v5538_v19 }
 0x985   :  { %v6031_v44 = vadd.f32 1.0, %v12406_v20 }
 0x986   :  { %12411 = vtanh.f32 %v5782_v21 }
 0x987   :  { %12413 = vrcp.f32 %v6031_v44  ;;  %v6281_v44 = vld [vmem:[#allocation8 + $0xc] sm:$0x3] }
 0x98a   :  { %v12408_v30 = vpop.eup %12407 }
 0x98b   :  { %v6034_v31 = vmul.f32 %v12408_v30, %v6017_v22  ;;  %v12410_v36 = vpop.eup %12409 }
 0x98c   :  { %v5784_v48 = vsub.f32 1.0, %v12410_v36  ;;  %v5786_v51 = vmul.f32 0.0, %v12410_v36 }
 0x98d   :  { %v6035_v46 = vadd.f32 %v6034_v31, %v5791_v11 }
 0x98f   :  { %12415 = vtanh.f32 %v6035_v46 }
 0x990   :  { %v12412_v7 = vpop.eup %12411 }
 0x991   :  { %v5785_v28 = vmul.f32 %v12412_v7, %v5784_v48  ;;  %v12414_v24 = vpop.eup %12413 }
 0x992   :  { %v6037_v3 = vsub.f32 1.0, %v12414_v24  ;;  %v6039_v61 = vmul.f32 0.0, %v12414_v24  ;;  %v6044_v24 = vld [vmem:[#allocation6 + $0x2] sm:$0x3] }
 0x993   :  { %v13863_v40 = vadd.f32 %v5786_v51, %v5785_v28 }
 0x995   :  { %5788 = vst.msk [vmem:[#allocation2] sm:$0x3] %vm889_vm4, %v13863_v40  ;;  %11064 = vmatmul.mubr.msk.f32.vlgmr.msra.gmra.mrb[64].mxu0 %vm201_vm3, %v13863_v40  ;;  %11075 = vmatmul.mubr.msk.f32.vlgmr.msra.gmra.mrb[68].mxu1 %vm201_vm3, %v13863_v40 }
 0x996   :  { %11970 = vmatpush3.bf16.msra.mxu0 %v13700_v49  ;;  %11976 = vmatpush3.bf16.msra.mxu1 %v13704_v50 }
 0x997   :  { %11971 = vmatprep.subr.bf16.mxu0 %v12595_v12  ;;  %11977 = vmatprep.subr.bf16.mxu1 %v12595_v12 }
 0x998   :  { %11085 = vmatprep.mubr.msk.f32.mxu0 %vm12596_vm2, %v12597_v17  ;;  %11096 = vmatprep.mubr.msk.f32.mxu1 %vm12596_vm2, %v12597_v17 }
 0x999   :  { %v12416_v57 = vpop.eup %12415 }
 0x99a   :  { %11973 = vmatpush3.bf16.msra.mxu0 %v13722_v55  ;;  %11979 = vmatpush3.bf16.msra.mxu1 %v13726_v56  ;;  %v6038_v54 = vmul.f32 %v12416_v57, %v6037_v3 }
 0x99b   :  { %11980 = vmatprep.subr.bf16.mxu0 %v12595_v12  ;;  %11986 = vmatprep.subr.bf16.mxu1 %v12595_v12 }
 0x99c   :  { %v13883_v63 = vadd.f32 %v6039_v61, %v6038_v54 }
 0x99d   :  { %11086 = vmatmul.mubr.msk.f32.vlgmr.msra.gmra.mrb[66].mxu0 %vm201_vm3, %v13863_v40 }
 0x99e   :  { %6041 = vst.msk [vmem:[#allocation3 + $0xe] sm:$0x3] %vm889_vm4, %v13883_v63  ;;  %11097 = vmatmul.mubr.msk.f32.vlgmr.msra.gmra.mrb[70].mxu1 %vm201_vm3, %v13883_v63  ;;  %11982 = vmatpush3.bf16.msra.mxu0 %v13746_v62 }
 0x99f   :  { %11988 = vmatpush3.bf16.msra.mxu1 %v13757_v47  ;;  %11983 = vmatprep.subr.bf16.mxu0 %v12595_v12 }
 0x9a0   :  { %11989 = vmatprep.subr.bf16.mxu1 %v12595_v12  ;;  %11107 = vmatprep.mubr.msk.f32.mxu0 %vm12596_vm2, %v12597_v17 }
 0x9a1   :  { %11118 = vmatprep.mubr.msk.f32.mxu1 %vm12596_vm2, %v12597_v17 }
 0x9a2   :  { %11985 = vmatpush3.bf16.msra.mxu0 %v13768_v27 }
 0x9a3   :  { %11991 = vmatpush3.bf16.msra.mxu1 %v13774_v2  ;;  %11992 = vmatprep.subr.bf16.mxu0 %v12595_v12 }
 0x9a4   :  { %11998 = vmatprep.subr.bf16.mxu1 %v12595_v12 }
 0x9a5   :  { %11108 = vmatmul.mubr.msk.f32.vlgmr.msra.gmra.mrb[68].mxu0 %vm201_vm3, %v13883_v63 }
 0x9a6   :  { %11119 = vmatmul.mubr.msk.f32.vlgmr.msra.gmra.mrb[72].mxu1 %vm201_vm3, %v13883_v63  ;;  %11994 = vmatpush3.bf16.msra.mxu0 %v13653_v25 }
 0x9a7   :  { %12000 = vmatpush3.bf16.msra.mxu1 %v13656_v5  ;;  %11995 = vmatprep.subr.bf16.mxu0 %v12595_v12 }
 0x9a8   :  { %12001 = vmatprep.subr.bf16.mxu1 %v12595_v12  ;;  %11129 = vmatprep.mubr.msk.f32.mxu0 %vm12596_vm2, %v12597_v17 }
 0x9a9   :  { %11140 = vmatprep.mubr.msk.f32.mxu1 %vm12596_vm2, %v12597_v17 }
 0x9aa   :  { %11997 = vmatpush3.bf16.msra.mxu0 %v13676_v60 }
 0x9ab   :  { %12003 = vmatpush3.bf16.msra.mxu1 %v13680_v43  ;;  %12004 = vmatprep.subr.bf16.mxu0 %v12595_v12 }
 0x9ac   :  { %12010 = vmatprep.subr.bf16.mxu1 %v12595_v12 }
 0xa68   :  { %v6114_v59 = vpop.f32.mrb[64].mxu0  ;;  %v6184_v0 = vpop.f32.mrb[68].mxu1 }
 0xa69   :  { %v6115_v1 = vadd.f32 %v13830_v33, %v6114_v59  ;;  %v11065_v10 = vpop.f32.mrb[65].mxu0  ;;  %v11076_v53 = vpop.f32.mrb[69].mxu1  ;;  %v6185_v8 = vadd.f32 %v13835_v39, %v6184_v0 }
 0xa6a   :  { %v6282_v10 = vld [vmem:[#allocation9 + $0xc] sm:$0x3] }
 0xa6b   :  { %v6258_v6 = vadd.f32 %v6115_v1, %v6042_v16  ;;  %v6265_v35 = vadd.f32 %v6185_v8, %v6043_v18 }
 0xa6d   :  { %v9651_v13 = vmul.f32 -1.442695, %v6258_v6  ;;  %v9652_v32 = vmul.f32 -1.442695, %v6265_v35 }
 0xa6f   :  { %12417 = vpow2.f32 %v9651_v13 }
 0xa70   :  { %v6254_v41 = vpop.f32.mrb[66].mxu0  ;;  %12419 = vpow2.f32 %v9652_v32 }
 0xa71   :  { %v11087_v26 = vpop.f32.mrb[67].mxu0  ;;  %v6352_v9 = vpop.f32.mrb[70].mxu1  ;;  %v6255_v7 = vadd.f32 %v13854_v45, %v6254_v41 }
 0xa72   :  { %v6353_v38 = vadd.f32 %v13842_v37, %v6352_v9  ;;  %v11098_v42 = vpop.f32.mrb[71].mxu1 }
 0xa74   :  { %v6496_v58 = vadd.f32 %v6353_v38, %v6280_v4 }
 0xa76   :  { %v9656_v34 = vmul.f32 -1.442695, %v6496_v58 }
 0xa78   :  { %12421 = vpow2.f32 %v9656_v34  ;;  %v6422_v23 = vpop.f32.mrb[68].mxu0  ;;  %v6518_v34 = vld [vmem:[#allocation4 + $0x4] sm:$0x3] }
 0xa79   :  { %v12418_v14 = vpop.eup %12417  ;;  %v6423_v15 = vadd.f32 %v13848_v52, %v6422_v23  ;;  %v6492_v19 = vpop.f32.mrb[72].mxu1 }
 0xa7a   :  { %v11109_v20 = vpop.f32.mrb[69].mxu0  ;;  %v6262_v21 = vadd.f32 1.0, %v12418_v14  ;;  %v11120_v22 = vpop.f32.mrb[73].mxu1  ;;  %v6493_v61 = vadd.f32 %v13860_v29, %v6492_v19  ;;  %v6519_v19 = vld [vmem:[#allocation5 + $0x4] sm:$0x3] }
 0xa7b   :  { %v6503_v30 = vadd.f32 %v6423_v15, %v6281_v44  ;;  %v12420_v36 = vpop.eup %12419 }
 0xa7c   :  { %12423 = vrcp.f32 %v6262_v21  ;;  %v6269_v46 = vadd.f32 1.0, %v12420_v36 }
 0xa7d   :  { %v9657_v31 = vmul.f32 -1.442695, %v6503_v30 }
 0xa7f   :  { %12425 = vpow2.f32 %v9657_v31 }
 0xa82   :  { %v12422_v11 = vpop.eup %12421 }
 0xa83   :  { %v6500_v48 = vadd.f32 1.0, %v12422_v11  ;;  %v6756_v11 = vld [vmem:[#allocation7 + $0xa] sm:$0x3] }
 0xa85   :  { %12427 = vrcp.f32 %v6500_v48 }
 0xa86   :  { %v12424_v28 = vpop.eup %12423  ;;  %12429 = vrcp.f32 %v6269_v46 }
 0xa87   :  { %v6272_v51 = vmul.f32 %v12424_v28, %v6255_v7 }
 0xa89   :  { %v12426_v3 = vpop.eup %12425  ;;  %v6273_v57 = vadd.f32 %v6272_v51, %v6044_v24 }
 0xa8a   :  { %v6507_v54 = vadd.f32 1.0, %v12426_v3 }
 0xa8b   :  { %12431 = vtanh.f32 %v6273_v57 }
 0xa8c   :  { %12433 = vrcp.f32 %v6507_v54  ;;  %v6757_v54 = vld [vmem:[#allocation8 + $0xa] sm:$0x3] }
 0xa8f   :  { %v12428_v59 = vpop.eup %12427 }
 0xa90   :  { %v6510_v0 = vmul.f32 %v12428_v59, %v6493_v61  ;;  %v12430_v1 = vpop.eup %12429 }
 0xa91   :  { %v6275_v16 = vsub.f32 1.0, %v12430_v1  ;;  %v6277_v13 = vmul.f32 %v12430_v1, %v13863_v40 }
 0xa92   :  { %v6511_v53 = vadd.f32 %v6510_v0, %v6282_v10 }
 0xa94   :  { %12435 = vtanh.f32 %v6511_v53 }
 0xa95   :  { %v12432_v8 = vpop.eup %12431 }
 0xa96   :  { %v6276_v6 = vmul.f32 %v12432_v8, %v6275_v16  ;;  %v12434_v35 = vpop.eup %12433 }
 0xa97   :  { %v6513_v40 = vsub.f32 1.0, %v12434_v35  ;;  %v6515_v9 = vmul.f32 %v12434_v35, %v13883_v63  ;;  %v6520_v35 = vld [vmem:[#allocation6 + $0x4] sm:$0x3] }
 0xa98   :  { %v13926_v18 = vadd.f32 %v6277_v13, %v6276_v6 }
 0xa9a   :  { %6279 = vst.msk [vmem:[#allocation2 + $0x2] sm:$0x3] %vm889_vm4, %v13926_v18  ;;  %11130 = vmatmul.mubr.msk.f32.vlgmr.msra.gmra.mrb[70].mxu0 %vm201_vm3, %v13926_v18  ;;  %11141 = vmatmul.mubr.msk.f32.vlgmr.msra.gmra.mrb[74].mxu1 %vm201_vm3, %v13926_v18 }
 0xa9b   :  { %12006 = vmatpush3.bf16.msra.mxu0 %v13700_v49  ;;  %12012 = vmatpush3.bf16.msra.mxu1 %v13704_v50 }
 0xa9c   :  { %12007 = vmatprep.subr.bf16.mxu0 %v12595_v12  ;;  %12013 = vmatprep.subr.bf16.mxu1 %v12595_v12 }
 0xa9d   :  { %11151 = vmatprep.mubr.msk.f32.mxu0 %vm12596_vm2, %v12597_v17  ;;  %11162 = vmatprep.mubr.msk.f32.mxu1 %vm12596_vm2, %v12597_v17 }
 0xa9e   :  { %v12436_v41 = vpop.eup %12435 }
 0xa9f   :  { %12009 = vmatpush3.bf16.msra.mxu0 %v13722_v55  ;;  %12015 = vmatpush3.bf16.msra.mxu1 %v13726_v56  ;;  %v6514_v26 = vmul.f32 %v12436_v41, %v6513_v40 }
 0xaa0   :  { %12016 = vmatprep.subr.bf16.mxu0 %v12595_v12  ;;  %12022 = vmatprep.subr.bf16.mxu1 %v12595_v12 }
 0xaa1   :  { %v13947_v32 = vadd.f32 %v6515_v9, %v6514_v26 }
 0xaa2   :  { %11152 = vmatmul.mubr.msk.f32.vlgmr.msra.gmra.mrb[72].mxu0 %vm201_vm3, %v13926_v18 }
 0xaa3   :  { %6517 = vst.msk [vmem:[#allocation3 + $0xc] sm:$0x3] %vm889_vm4, %v13947_v32  ;;  %11163 = vmatmul.mubr.msk.f32.vlgmr.msra.gmra.mrb[76].mxu1 %vm201_vm3, %v13947_v32  ;;  %12018 = vmatpush3.bf16.msra.mxu0 %v13746_v62 }
 0xaa4   :  { %12024 = vmatpush3.bf16.msra.mxu1 %v13757_v47  ;;  %12019 = vmatprep.subr.bf16.mxu0 %v12595_v12 }
 0xaa5   :  { %12025 = vmatprep.subr.bf16.mxu1 %v12595_v12  ;;  %11173 = vmatprep.mubr.msk.f32.mxu0 %vm12596_vm2, %v12597_v17 }
 0xaa6   :  { %11184 = vmatprep.mubr.msk.f32.mxu1 %vm12596_vm2, %v12597_v17 }
 0xaa7   :  { %12021 = vmatpush3.bf16.msra.mxu0 %v13768_v27 }
 0xaa8   :  { %12027 = vmatpush3.bf16.msra.mxu1 %v13774_v2  ;;  %12028 = vmatprep.subr.bf16.mxu0 %v12595_v12 }
 0xaa9   :  { %12034 = vmatprep.subr.bf16.mxu1 %v12595_v12 }
 0xaaa   :  { %11174 = vmatmul.mubr.msk.f32.vlgmr.msra.gmra.mrb[74].mxu0 %vm201_vm3, %v13947_v32 }
 0xaab   :  { %11185 = vmatmul.mubr.msk.f32.vlgmr.msra.gmra.mrb[78].mxu1 %vm201_vm3, %v13947_v32  ;;  %12030 = vmatpush3.bf16.msra.mxu0 %v13653_v25 }
 0xaac   :  { %12036 = vmatpush3.bf16.msra.mxu1 %v13656_v5  ;;  %12031 = vmatprep.subr.bf16.mxu0 %v12595_v12 }
 0xaad   :  { %12037 = vmatprep.subr.bf16.mxu1 %v12595_v12  ;;  %11195 = vmatprep.mubr.msk.f32.mxu0 %vm12596_vm2, %v12597_v17 }
 0xaae   :  { %11206 = vmatprep.mubr.msk.f32.mxu1 %vm12596_vm2, %v12597_v17 }
 0xaaf   :  { %12033 = vmatpush3.bf16.msra.mxu0 %v13676_v60 }
 0xab0   :  { %12039 = vmatpush3.bf16.msra.mxu1 %v13680_v43  ;;  %12040 = vmatprep.subr.bf16.mxu0 %v12595_v12 }
 0xab1   :  { %12046 = vmatprep.subr.bf16.mxu1 %v12595_v12 }
 0xb6d   :  { %v6590_v63 = vpop.f32.mrb[70].mxu0  ;;  %v6660_v38 = vpop.f32.mrb[74].mxu1 }
 0xb6e   :  { %v6591_v42 = vadd.f32 %v13830_v33, %v6590_v63  ;;  %v11131_v4 = vpop.f32.mrb[71].mxu0  ;;  %v11142_v58 = vpop.f32.mrb[75].mxu1  ;;  %v6661_v23 = vadd.f32 %v13835_v39, %v6660_v38 }
 0xb6f   :  { %v6758_v4 = vld [vmem:[#allocation9 + $0xa] sm:$0x3] }
 0xb70   :  { %v6734_v14 = vadd.f32 %v6591_v42, %v6518_v34  ;;  %v6741_v20 = vadd.f32 %v6661_v23, %v6519_v19 }
 0xb72   :  { %v9661_v15 = vmul.f32 -1.442695, %v6734_v14  ;;  %v9662_v30 = vmul.f32 -1.442695, %v6741_v20 }
 0xb74   :  { %12437 = vpow2.f32 %v9661_v15 }
 0xb75   :  { %v6730_v21 = vpop.f32.mrb[72].mxu0  ;;  %12439 = vpow2.f32 %v9662_v30 }
 0xb76   :  { %v11153_v44 = vpop.f32.mrb[73].mxu0  ;;  %v6828_v22 = vpop.f32.mrb[76].mxu1  ;;  %v6731_v8 = vadd.f32 %v13854_v45, %v6730_v21 }
 0xb77   :  { %v6829_v31 = vadd.f32 %v13842_v37, %v6828_v22  ;;  %v11164_v36 = vpop.f32.mrb[77].mxu1 }
 0xb79   :  { %v6972_v46 = vadd.f32 %v6829_v31, %v6756_v11 }
 0xb7b   :  { %v9666_v48 = vmul.f32 -1.442695, %v6972_v46 }
 0xb7d   :  { %12441 = vpow2.f32 %v9666_v48  ;;  %v6898_v7 = vpop.f32.mrb[74].mxu0  ;;  %v6994_v48 = vld [vmem:[#allocation4 + $0x6] sm:$0x3] }
 0xb7e   :  { %v12438_v28 = vpop.eup %12437  ;;  %v6899_v51 = vadd.f32 %v13848_v52, %v6898_v7  ;;  %v6968_v24 = vpop.f32.mrb[78].mxu1 }
 0xb7f   :  { %v11175_v3 = vpop.f32.mrb[75].mxu0  ;;  %v6738_v57 = vadd.f32 1.0, %v12438_v28  ;;  %v11186_v61 = vpop.f32.mrb[79].mxu1  ;;  %v6969_v9 = vadd.f32 %v13860_v29, %v6968_v24  ;;  %v6995_v24 = vld [vmem:[#allocation5 + $0x6] sm:$0x3] }
 0xb80   :  { %v6979_v59 = vadd.f32 %v6899_v51, %v6757_v54  ;;  %v12440_v1 = vpop.eup %12439 }
 0xb81   :  { %12443 = vrcp.f32 %v6738_v57  ;;  %v6745_v53 = vadd.f32 1.0, %v12440_v1 }
 0xb82   :  { %v9667_v0 = vmul.f32 -1.442695, %v6979_v59 }
 0xb84   :  { %12445 = vpow2.f32 %v9667_v0 }
 0xb87   :  { %v12442_v10 = vpop.eup %12441 }
 0xb88   :  { %v6976_v16 = vadd.f32 1.0, %v12442_v10  ;;  %v7232_v10 = vld [vmem:[#allocation7 + $0x8] sm:$0x3] }
 0xb8a   :  { %12447 = vrcp.f32 %v6976_v16 }
 0xb8b   :  { %v12444_v6 = vpop.eup %12443  ;;  %12449 = vrcp.f32 %v6745_v53 }
 0xb8c   :  { %v6748_v13 = vmul.f32 %v12444_v6, %v6731_v8 }
 0xb8e   :  { %v12446_v40 = vpop.eup %12445  ;;  %v6749_v41 = vadd.f32 %v6748_v13, %v6520_v35 }
 0xb8f   :  { %v6983_v26 = vadd.f32 1.0, %v12446_v40 }
 0xb90   :  { %12451 = vtanh.f32 %v6749_v41 }
 0xb91   :  { %12453 = vrcp.f32 %v6983_v26  ;;  %v7233_v26 = vld [vmem:[#allocation8 + $0x8] sm:$0x3] }
 0xb94   :  { %v12448_v63 = vpop.eup %12447 }
 0xb95   :  { %v6986_v38 = vmul.f32 %v12448_v63, %v6969_v9  ;;  %v12450_v42 = vpop.eup %12449 }
 0xb96   :  { %v6751_v34 = vsub.f32 1.0, %v12450_v42  ;;  %v6753_v15 = vmul.f32 %v12450_v42, %v13926_v18 }
 0xb97   :  { %v6987_v58 = vadd.f32 %v6986_v38, %v6758_v4 }
 0xb99   :  { %12455 = vtanh.f32 %v6987_v58 }
 0xb9a   :  { %v12452_v23 = vpop.eup %12451 }
 0xb9b   :  { %v6752_v14 = vmul.f32 %v12452_v23, %v6751_v34  ;;  %v12454_v20 = vpop.eup %12453 }
 0xb9c   :  { %v6989_v18 = vsub.f32 1.0, %v12454_v20  ;;  %v6991_v22 = vmul.f32 %v12454_v20, %v13947_v32  ;;  %v6996_v20 = vld [vmem:[#allocation6 + $0x6] sm:$0x3] }
 0xb9d   :  { %v13990_v19 = vadd.f32 %v6753_v15, %v6752_v14 }
 0xb9f   :  { %6755 = vst.msk [vmem:[#allocation2 + $0x4] sm:$0x3] %vm889_vm4, %v13990_v19  ;;  %11196 = vmatmul.mubr.msk.f32.vlgmr.msra.gmra.mrb[76].mxu0 %vm201_vm3, %v13990_v19  ;;  %11207 = vmatmul.mubr.msk.f32.vlgmr.msra.gmra.mrb[80].mxu1 %vm201_vm3, %v13990_v19 }
 0xba0   :  { %12042 = vmatpush3.bf16.msra.mxu0 %v13700_v49  ;;  %12048 = vmatpush3.bf16.msra.mxu1 %v13704_v50 }
 0xba1   :  { %12043 = vmatprep.subr.bf16.mxu0 %v12595_v12  ;;  %12049 = vmatprep.subr.bf16.mxu1 %v12595_v12 }
 0xba2   :  { %11217 = vmatprep.mubr.msk.f32.mxu0 %vm12596_vm2, %v12597_v17  ;;  %11228 = vmatprep.mubr.msk.f32.mxu1 %vm12596_vm2, %v12597_v17 }
 0xba3   :  { %v12456_v21 = vpop.eup %12455 }
 0xba4   :  { %12045 = vmatpush3.bf16.msra.mxu0 %v13722_v55  ;;  %12051 = vmatpush3.bf16.msra.mxu1 %v13726_v56  ;;  %v6990_v44 = vmul.f32 %v12456_v21, %v6989_v18 }
 0xba5   :  { %12052 = vmatprep.subr.bf16.mxu0 %v12595_v12  ;;  %12058 = vmatprep.subr.bf16.mxu1 %v12595_v12 }
 0xba6   :  { %v14011_v30 = vadd.f32 %v6991_v22, %v6990_v44 }
 0xba7   :  { %11218 = vmatmul.mubr.msk.f32.vlgmr.msra.gmra.mrb[78].mxu0 %vm201_vm3, %v13990_v19 }
 0xba8   :  { %6993 = vst.msk [vmem:[#allocation3 + $0xa] sm:$0x3] %vm889_vm4, %v14011_v30  ;;  %11229 = vmatmul.mubr.msk.f32.vlgmr.msra.gmra.mrb[82].mxu1 %vm201_vm3, %v14011_v30  ;;  %12054 = vmatpush3.bf16.msra.mxu0 %v13746_v62 }
 0xba9   :  { %12060 = vmatpush3.bf16.msra.mxu1 %v13757_v47  ;;  %12055 = vmatprep.subr.bf16.mxu0 %v12595_v12 }
 0xbaa   :  { %12061 = vmatprep.subr.bf16.mxu1 %v12595_v12  ;;  %11239 = vmatprep.mubr.msk.f32.mxu0 %vm12596_vm2, %v12597_v17 }
 0xbab   :  { %11250 = vmatprep.mubr.msk.f32.mxu1 %vm12596_vm2, %v12597_v17 }
 0xbac   :  { %12057 = vmatpush3.bf16.msra.mxu0 %v13768_v27 }
 0xbad   :  { %12063 = vmatpush3.bf16.msra.mxu1 %v13774_v2  ;;  %12064 = vmatprep.subr.bf16.mxu0 %v12595_v12 }
 0xbae   :  { %12070 = vmatprep.subr.bf16.mxu1 %v12595_v12 }
 0xbaf   :  { %11240 = vmatmul.mubr.msk.f32.vlgmr.msra.gmra.mrb[80].mxu0 %vm201_vm3, %v14011_v30 }
 0xbb0   :  { %11251 = vmatmul.mubr.msk.f32.vlgmr.msra.gmra.mrb[84].mxu1 %vm201_vm3, %v14011_v30  ;;  %12066 = vmatpush3.bf16.msra.mxu0 %v13653_v25 }
 0xbb1   :  { %12072 = vmatpush3.bf16.msra.mxu1 %v13656_v5  ;;  %12067 = vmatprep.subr.bf16.mxu0 %v12595_v12 }
 0xbb2   :  { %12073 = vmatprep.subr.bf16.mxu1 %v12595_v12  ;;  %11261 = vmatprep.mubr.msk.f32.mxu0 %vm12596_vm2, %v12597_v17 }
 0xbb3   :  { %11272 = vmatprep.mubr.msk.f32.mxu1 %vm12596_vm2, %v12597_v17 }
 0xbb4   :  { %12069 = vmatpush3.bf16.msra.mxu0 %v13676_v60 }
 0xbb5   :  { %12075 = vmatpush3.bf16.msra.mxu1 %v13680_v43  ;;  %12076 = vmatprep.subr.bf16.mxu0 %v12595_v12 }
 0xbb6   :  { %12082 = vmatprep.subr.bf16.mxu1 %v12595_v12 }
 0xc72   :  { %v7066_v32 = vpop.f32.mrb[76].mxu0  ;;  %v7136_v31 = vpop.f32.mrb[80].mxu1 }
 0xc73   :  { %v7067_v36 = vadd.f32 %v13830_v33, %v7066_v32  ;;  %v11197_v11 = vpop.f32.mrb[77].mxu0  ;;  %v11208_v46 = vpop.f32.mrb[81].mxu1  ;;  %v7137_v7 = vadd.f32 %v13835_v39, %v7136_v31 }
 0xc74   :  { %v7234_v11 = vld [vmem:[#allocation9 + $0x8] sm:$0x3] }
 0xc75   :  { %v7210_v28 = vadd.f32 %v7067_v36, %v6994_v48  ;;  %v7217_v3 = vadd.f32 %v7137_v7, %v6995_v24 }
 0xc77   :  { %v9671_v51 = vmul.f32 -1.442695, %v7210_v28  ;;  %v9672_v59 = vmul.f32 -1.442695, %v7217_v3 }
 0xc79   :  { %12457 = vpow2.f32 %v9671_v51 }
 0xc7a   :  { %v7206_v57 = vpop.f32.mrb[78].mxu0  ;;  %12459 = vpow2.f32 %v9672_v59 }
 0xc7b   :  { %v11219_v54 = vpop.f32.mrb[79].mxu0  ;;  %v7304_v61 = vpop.f32.mrb[82].mxu1  ;;  %v7207_v23 = vadd.f32 %v13854_v45, %v7206_v57 }
 0xc7c   :  { %v7305_v0 = vadd.f32 %v13842_v37, %v7304_v61  ;;  %v11230_v1 = vpop.f32.mrb[83].mxu1 }
 0xc7e   :  { %v7448_v53 = vadd.f32 %v7305_v0, %v7232_v10 }
 0xc80   :  { %v9676_v16 = vmul.f32 -1.442695, %v7448_v53 }
 0xc82   :  { %12461 = vpow2.f32 %v9676_v16  ;;  %v7374_v8 = vpop.f32.mrb[80].mxu0 }
 0xc83   :  { %v12458_v6 = vpop.eup %12457  ;;  %v7375_v13 = vadd.f32 %v13848_v52, %v7374_v8  ;;  %v7444_v35 = vpop.f32.mrb[84].mxu1  ;;  %v7470_v8 = vld [vmem:[#allocation4 + $0x8] sm:$0x3] }
 0xc84   :  { %v11241_v40 = vpop.f32.mrb[81].mxu0  ;;  %v7214_v41 = vadd.f32 1.0, %v12458_v6  ;;  %v11252_v9 = vpop.f32.mrb[85].mxu1  ;;  %v7445_v22 = vadd.f32 %v13860_v29, %v7444_v35 }
 0xc85   :  { %v7455_v63 = vadd.f32 %v7375_v13, %v7233_v26  ;;  %v12460_v42 = vpop.eup %12459  ;;  %v7471_v40 = vld [vmem:[#allocation5 + $0x8] sm:$0x3] }
 0xc86   :  { %12463 = vrcp.f32 %v7214_v41  ;;  %v7221_v58 = vadd.f32 1.0, %v12460_v42 }
 0xc87   :  { %v9677_v38 = vmul.f32 -1.442695, %v7455_v63 }
 0xc89   :  { %12465 = vpow2.f32 %v9677_v38 }
 0xc8c   :  { %v12462_v4 = vpop.eup %12461 }
 0xc8d   :  { %v7452_v34 = vadd.f32 1.0, %v12462_v4 }
 0xc8f   :  { %12467 = vrcp.f32 %v7452_v34 }
 0xc90   :  { %v12464_v14 = vpop.eup %12463  ;;  %12469 = vrcp.f32 %v7221_v58  ;;  %v7708_v58 = vld [vmem:[#allocation7 + $0x6] sm:$0x3] }
 0xc91   :  { %v7224_v15 = vmul.f32 %v12464_v14, %v7207_v23 }
 0xc93   :  { %v12466_v18 = vpop.eup %12465  ;;  %v7225_v21 = vadd.f32 %v7224_v15, %v6996_v20 }
 0xc94   :  { %v7459_v44 = vadd.f32 1.0, %v12466_v18 }
 0xc95   :  { %12471 = vtanh.f32 %v7225_v21  ;;  %v7709_v21 = vld [vmem:[#allocation8 + $0x6] sm:$0x3] }
 0xc96   :  { %12473 = vrcp.f32 %v7459_v44 }
 0xc99   :  { %v12468_v32 = vpop.eup %12467 }
 0xc9a   :  { %v7462_v31 = vmul.f32 %v12468_v32, %v7445_v22  ;;  %v12470_v36 = vpop.eup %12469 }
 0xc9b   :  { %v7227_v48 = vsub.f32 1.0, %v12470_v36  ;;  %v7229_v51 = vmul.f32 %v12470_v36, %v13990_v19 }
 0xc9c   :  { %v7463_v46 = vadd.f32 %v7462_v31, %v7234_v11 }
 0xc9e   :  { %12475 = vtanh.f32 %v7463_v46 }
 0xc9f   :  { %v12472_v7 = vpop.eup %12471 }
 0xca0   :  { %v7228_v28 = vmul.f32 %v12472_v7, %v7227_v48  ;;  %v12474_v3 = vpop.eup %12473 }
 0xca1   :  { %v7465_v19 = vsub.f32 1.0, %v12474_v3  ;;  %v7467_v61 = vmul.f32 %v12474_v3, %v14011_v30 }
 0xca2   :  { %v14054_v24 = vadd.f32 %v7229_v51, %v7228_v28 }
 0xca4   :  { %7231 = vst.msk [vmem:[#allocation2 + $0x6] sm:$0x3] %vm889_vm4, %v14054_v24  ;;  %11262 = vmatmul.mubr.msk.f32.vlgmr.msra.gmra.mrb[82].mxu0 %vm201_vm3, %v14054_v24  ;;  %11273 = vmatmul.mubr.msk.f32.vlgmr.msra.gmra.mrb[86].mxu1 %vm201_vm3, %v14054_v24 }
 0xca5   :  { %12078 = vmatpush3.bf16.msra.mxu0 %v13700_v49  ;;  %12084 = vmatpush3.bf16.msra.mxu1 %v13704_v50 }
 0xca6   :  { %12079 = vmatprep.subr.bf16.mxu0 %v12595_v12  ;;  %12085 = vmatprep.subr.bf16.mxu1 %v12595_v12 }
 0xca7   :  { %11283 = vmatprep.mubr.msk.f32.mxu0 %vm12596_vm2, %v12597_v17  ;;  %11294 = vmatprep.mubr.msk.f32.mxu1 %vm12596_vm2, %v12597_v17 }
 0xca8   :  { %v12476_v57 = vpop.eup %12475 }
 0xca9   :  { %12081 = vmatpush3.bf16.msra.mxu0 %v13722_v55  ;;  %12087 = vmatpush3.bf16.msra.mxu1 %v13726_v56  ;;  %v7466_v54 = vmul.f32 %v12476_v57, %v7465_v19 }
 0xcaa   :  { %12088 = vmatprep.subr.bf16.mxu0 %v12595_v12  ;;  %12094 = vmatprep.subr.bf16.mxu1 %v12595_v12 }
 0xcab   :  { %v14075_v59 = vadd.f32 %v7467_v61, %v7466_v54 }
 0xcac   :  { %11284 = vmatmul.mubr.msk.f32.vlgmr.msra.gmra.mrb[84].mxu0 %vm201_vm3, %v14054_v24 }
 0xcad   :  { %7469 = vst.msk [vmem:[#allocation3 + $0x8] sm:$0x3] %vm889_vm4, %v14075_v59  ;;  %11295 = vmatmul.mubr.msk.f32.vlgmr.msra.gmra.mrb[88].mxu1 %vm201_vm3, %v14075_v59  ;;  %12090 = vmatpush3.bf16.msra.mxu0 %v13746_v62 }
 0xcae   :  { %12096 = vmatpush3.bf16.msra.mxu1 %v13757_v47  ;;  %12091 = vmatprep.subr.bf16.mxu0 %v12595_v12 }
 0xcaf   :  { %12097 = vmatprep.subr.bf16.mxu1 %v12595_v12  ;;  %11305 = vmatprep.mubr.msk.f32.mxu0 %vm12596_vm2, %v12597_v17 }
 0xcb0   :  { %11316 = vmatprep.mubr.msk.f32.mxu1 %vm12596_vm2, %v12597_v17 }
 0xcb1   :  { %12093 = vmatpush3.bf16.msra.mxu0 %v13768_v27 }
 0xcb2   :  { %12099 = vmatpush3.bf16.msra.mxu1 %v13774_v2  ;;  %12100 = vmatprep.subr.bf16.mxu0 %v12595_v12 }
 0xcb3   :  { %12106 = vmatprep.subr.bf16.mxu1 %v12595_v12 }
 0xcb4   :  { %11306 = vmatmul.mubr.msk.f32.vlgmr.msra.gmra.mrb[86].mxu0 %vm201_vm3, %v14075_v59  ;;  %v9377_v30 = vld [vmem:[#allocation3 + $0x8] sm:$0xff] }
 0xcb5   :  { %11317 = vmatmul.mubr.msk.f32.vlgmr.msra.gmra.mrb[90].mxu1 %vm201_vm3, %v14075_v59  ;;  %9382 = vrot.lane.b32.xlu1 %v9377_v30, %s12598_s26  ;;  %v7710_v30 = vld [vmem:[#allocation9 + $0x6] sm:$0x3] }
 0xcb6   :  { %12102 = vmatpush3.bf16.msra.mxu0 %v13653_v25  ;;  %12108 = vmatpush3.bf16.msra.mxu1 %v13656_v5 }
 0xcb7   :  { %12103 = vmatprep.subr.bf16.mxu0 %v12595_v12  ;;  %12109 = vmatprep.subr.bf16.mxu1 %v12595_v12 }
 0xcb8   :  { %11327 = vmatprep.mubr.msk.f32.mxu0 %vm12596_vm2, %v12597_v17  ;;  %11338 = vmatprep.mubr.msk.f32.mxu1 %vm12596_vm2, %v12597_v17 }
 0xcba   :  { %12105 = vmatpush3.bf16.msra.mxu0 %v13676_v60  ;;  %12111 = vmatpush3.bf16.msra.mxu1 %v13680_v43 }
 0xcbb   :  { %12112 = vmatprep.subr.bf16.mxu0 %v12595_v12  ;;  %12118 = vmatprep.subr.bf16.mxu1 %v12595_v12 }
 0xd77   :  { %v7542_v0 = vpop.f32.mrb[82].mxu0  ;;  %v7612_v1 = vpop.f32.mrb[86].mxu1 }
 0xd78   :  { %v7543_v10 = vadd.f32 %v13830_v33, %v7542_v0  ;;  %v11263_v53 = vpop.f32.mrb[83].mxu0  ;;  %v11274_v16 = vpop.f32.mrb[87].mxu1  ;;  %v7613_v6 = vadd.f32 %v13835_v39, %v7612_v1 }
 0xd7a   :  { %v7686_v13 = vadd.f32 %v7543_v10, %v7470_v8  ;;  %v7693_v41 = vadd.f32 %v7613_v6, %v7471_v40 }
 0xd7c   :  { %v9681_v35 = vmul.f32 -1.442695, %v7686_v13  ;;  %v9682_v38 = vmul.f32 -1.442695, %v7693_v41  ;;  %v14179_v41 = vld [vmem:[%s14402_s12] ss:$0 sm:$0xff] }
 0xd7e   :  { %12477 = vpow2.f32 %v9681_v35 }
 0xd7f   :  { %v7682_v26 = vpop.f32.mrb[84].mxu0  ;;  %12479 = vpow2.f32 %v9682_v38  ;;  %v7946_v38 = vld [vmem:[#allocation4 + $0xa] sm:$0x3] }
 0xd80   :  { %v11285_v9 = vpop.f32.mrb[85].mxu0  ;;  %v7780_v63 = vpop.f32.mrb[88].mxu1  ;;  %v7683_v46 = vadd.f32 %v13854_v45, %v7682_v26 }
 0xd81   :  { %v7781_v42 = vadd.f32 %v13842_v37, %v7780_v63  ;;  %v11296_v4 = vpop.f32.mrb[89].mxu1 }
 0xd83   :  { %v7924_v34 = vadd.f32 %v7781_v42, %v7708_v58  ;;  %v14185_v42 = vld [vmem:[%s14402_s12 + $0x1] ss:$0 sm:$0xff] }
 0xd85   :  { %v9686_v33 = vmul.f32 -1.442695, %v7924_v34 }
 0xd87   :  { %12481 = vpow2.f32 %v9686_v33  ;;  %v7850_v23 = vpop.f32.mrb[86].mxu0  ;;  %v7947_v33 = vld [vmem:[#allocation5 + $0xa] sm:$0x3] }
 0xd88   :  { %v12478_v14 = vpop.eup %12477  ;;  %v7851_v39 = vadd.f32 %v13848_v52, %v7850_v23  ;;  %v7920_v15 = vpop.f32.mrb[90].mxu1  ;;  %v7472_v52 = vld [vmem:[#allocation6 + $0x8] sm:$0x3] }
 0xd89   :  { %v11307_v20 = vpop.f32.mrb[87].mxu0  ;;  %v7690_v18 = vadd.f32 1.0, %v12478_v14  ;;  %v11318_v44 = vpop.f32.mrb[91].mxu1  ;;  %v7921_v19 = vadd.f32 %v13860_v29, %v7920_v15 }
 0xd8a   :  { %v7931_v22 = vadd.f32 %v7851_v39, %v7709_v21  ;;  %v12480_v37 = vpop.eup %12479 }
 0xd8b   :  { %12483 = vrcp.f32 %v7690_v18  ;;  %v7697_v36 = vadd.f32 1.0, %v12480_v37  ;;  %v14191_v18 = vld [vmem:[%s14406_s16] ss:$0 sm:$0xff] }
 0xd8c   :  { %v9687_v32 = vmul.f32 -1.442695, %v7931_v22  ;;  %v8184_v22 = vld [vmem:[#allocation7 + $0x4] sm:$0x3] }
 0xd8e   :  { %12485 = vpow2.f32 %v9687_v32 }
 0xd91   :  { %v12482_v31 = vpop.eup %12481 }
 0xd92   :  { %v7928_v11 = vadd.f32 1.0, %v12482_v31 }
 0xd94   :  { %12487 = vrcp.f32 %v7928_v11  ;;  %v14197_v11 = vld [vmem:[%s14406_s16 + $0x1] ss:$0 sm:$0xff] }
 0xd95   :  { %v12484_v48 = vpop.eup %12483  ;;  %12489 = vrcp.f32 %v7697_v36 }
 0xd96   :  { %v7700_v7 = vmul.f32 %v12484_v48, %v7683_v46 }
 0xd98   :  { %v12486_v28 = vpop.eup %12485  ;;  %v7701_v51 = vadd.f32 %v7700_v7, %v7472_v52 }
 0xd99   :  { %v7935_v3 = vadd.f32 1.0, %v12486_v28  ;;  %v8185_v28 = vld [vmem:[#allocation8 + $0x4] sm:$0x3] }
 0xd9a   :  { %12491 = vtanh.f32 %v7701_v51 }
 0xd9b   :  { %12493 = vrcp.f32 %v7935_v3 }
 0xd9e   :  { %v12488_v57 = vpop.eup %12487 }
 0xd9f   :  { %v7938_v54 = vmul.f32 %v12488_v57, %v7921_v19  ;;  %v12490_v61 = vpop.eup %12489 }
 0xda0   :  { %v7703_v1 = vsub.f32 1.0, %v12490_v61  ;;  %v7705_v53 = vmul.f32 %v12490_v61, %v14054_v24 }
 0xda1   :  { %v7939_v0 = vadd.f32 %v7938_v54, %v7710_v30 }
 0xda3   :  { %12495 = vtanh.f32 %v7939_v0  ;;  %v14203_v0 = vld [vmem:[%s14402_s12 + $0x2] ss:$0 sm:$0xff] }
 0xda4   :  { %v12492_v45 = vpop.eup %12491 }
 0xda5   :  { %v7704_v10 = vmul.f32 %v12492_v45, %v7703_v1  ;;  %v12494_v8 = vpop.eup %12493 }
 0xda6   :  { %v7941_v29 = vsub.f32 1.0, %v12494_v8  ;;  %v7943_v13 = vmul.f32 %v12494_v8, %v14075_v59 }
 0xda7   :  { %v14119_v16 = vadd.f32 %v7705_v53, %v7704_v10  ;;  %v7948_v53 = vld [vmem:[#allocation6 + $0xa] sm:$0x3] }
 0xda9   :  { %7707 = vst.msk [vmem:[#allocation2 + $0x8] sm:$0x3] %vm889_vm4, %v14119_v16  ;;  %11328 = vmatmul.mubr.msk.f32.vlgmr.msra.gmra.mrb[88].mxu0 %vm201_vm3, %v14119_v16  ;;  %11339 = vmatmul.mubr.msk.f32.vlgmr.msra.gmra.mrb[92].mxu1 %vm201_vm3, %v14119_v16 }
 0xdaa   :  { %12114 = vmatpush3.bf16.msra.mxu0 %v13700_v49  ;;  %12120 = vmatpush3.bf16.msra.mxu1 %v13704_v50 }
 0xdab   :  { %12115 = vmatprep.subr.bf16.mxu0 %v12595_v12  ;;  %12121 = vmatprep.subr.bf16.mxu1 %v12595_v12 }
 0xdac   :  { %11349 = vmatprep.mubr.msk.f32.mxu0 %vm12596_vm2, %v12597_v17  ;;  %11360 = vmatprep.mubr.msk.f32.mxu1 %vm12596_vm2, %v12597_v17 }
 0xdad   :  { %v12496_v24 = vpop.eup %12495 }
 0xdae   :  { %12117 = vmatpush3.bf16.msra.mxu0 %v13722_v55  ;;  %12123 = vmatpush3.bf16.msra.mxu1 %v13726_v56  ;;  %v7942_v6 = vmul.f32 %v12496_v24, %v7941_v29 }
 0xdaf   :  { %12124 = vmatprep.subr.bf16.mxu0 %v12595_v12  ;;  %12130 = vmatprep.subr.bf16.mxu1 %v12595_v12 }
 0xdb0   :  { %v14140_v35 = vadd.f32 %v7943_v13, %v7942_v6  ;;  %v14209_v6 = vld [vmem:[%s14406_s16 + $0x2] ss:$0 sm:$0xff] }
 0xdb1   :  { %11350 = vmatmul.mubr.msk.f32.vlgmr.msra.gmra.mrb[90].mxu0 %vm201_vm3, %v14119_v16 }
 0xdb2   :  { %7945 = vst.msk [vmem:[#allocation3 + $0x6] sm:$0x3] %vm889_vm4, %v14140_v35  ;;  %11361 = vmatmul.mubr.msk.f32.vlgmr.msra.gmra.mrb[94].mxu1 %vm201_vm3, %v14140_v35  ;;  %12126 = vmatpush3.bf16.msra.mxu0 %v13746_v62 }
 0xdb3   :  { %12132 = vmatpush3.bf16.msra.mxu1 %v13757_v47  ;;  %12127 = vmatprep.subr.bf16.mxu0 %v12595_v12 }
 0xdb4   :  { %12133 = vmatprep.subr.bf16.mxu1 %v12595_v12  ;;  %11371 = vmatprep.mubr.msk.f32.mxu0 %vm12596_vm2, %v12597_v17 }
 0xdb5   :  { %11382 = vmatprep.mubr.msk.f32.mxu1 %vm12596_vm2, %v12597_v17 }
 0xdb6   :  { %12129 = vmatpush3.bf16.msra.mxu0 %v13768_v27 }
 0xdb7   :  { %12135 = vmatpush3.bf16.msra.mxu1 %v13774_v2  ;;  %12136 = vmatprep.subr.bf16.mxu0 %v12595_v12 }
 0xdb8   :  { %12142 = vmatprep.subr.bf16.mxu1 %v12595_v12 }
 0xdb9   :  { %11372 = vmatmul.mubr.msk.f32.vlgmr.msra.gmra.mrb[92].mxu0 %vm201_vm3, %v14140_v35 }
 0xdba   :  { %11383 = vmatmul.mubr.msk.f32.vlgmr.msra.gmra.mrb[96].mxu1 %vm201_vm3, %v14140_v35  ;;  %12138 = vmatpush3.bf16.msra.mxu0 %v13653_v25 }
 0xdbb   :  { %12144 = vmatpush3.bf16.msra.mxu1 %v13656_v5  ;;  %12139 = vmatprep.subr.bf16.mxu0 %v12595_v12 }
 0xdbc   :  { %12145 = vmatprep.subr.bf16.mxu1 %v12595_v12  ;;  %11393 = vmatprep.mubr.msk.f32.mxu0 %vm12596_vm2, %v12597_v17 }
 0xdbd   :  { %11404 = vmatprep.mubr.msk.f32.mxu1 %vm12596_vm2, %v12597_v17 }
 0xdbe   :  { %12141 = vmatpush3.bf16.msra.mxu0 %v13676_v60 }
 0xdbf   :  { %12147 = vmatpush3.bf16.msra.mxu1 %v13680_v43  ;;  %12148 = vmatprep.subr.bf16.mxu0 %v12595_v12 }
 0xdc0   :  { %12154 = vmatprep.subr.bf16.mxu1 %v12595_v12 }
 0xe7c   :  { %v8018_v59 = vpop.f32.mrb[88].mxu0  ;;  %v8088_v40 = vpop.f32.mrb[92].mxu1 }
 0xe7d   :  { %v8019_v26 = vadd.f32 %v14179_v41, %v8018_v59  ;;  %v11329_v9 = vpop.f32.mrb[89].mxu0  ;;  %v11340_v63 = vpop.f32.mrb[93].mxu1  ;;  %v8089_v4 = vadd.f32 %v14185_v42, %v8088_v40 }
 0xe7e   :  { %v8186_v9 = vld [vmem:[#allocation9 + $0x4] sm:$0x3] }
 0xe7f   :  { %v8162_v58 = vadd.f32 %v8019_v26, %v7946_v38  ;;  %v8169_v23 = vadd.f32 %v8089_v4, %v7947_v33 }
 0xe81   :  { %v9691_v34 = vmul.f32 -1.442695, %v8162_v58  ;;  %v9692_v20 = vmul.f32 -1.442695, %v8169_v23 }
 0xe83   :  { %12497 = vpow2.f32 %v9691_v34 }
 0xe84   :  { %v8158_v14 = vpop.f32.mrb[90].mxu0  ;;  %12499 = vpow2.f32 %v9692_v20 }
 0xe85   :  { %v11351_v39 = vpop.f32.mrb[91].mxu0  ;;  %v8256_v15 = vpop.f32.mrb[94].mxu1  ;;  %v8159_v1 = vadd.f32 %v14203_v0, %v8158_v14 }
 0xe86   :  { %v8257_v21 = vadd.f32 %v14191_v18, %v8256_v15  ;;  %v11362_v44 = vpop.f32.mrb[95].mxu1 }
 0xe88   :  { %v8400_v32 = vadd.f32 %v8257_v21, %v8184_v22  ;;  %v8422_v22 = vld [vmem:[#allocation4 + $0xc] sm:$0x3] }
 0xe8a   :  { %v9696_v37 = vmul.f32 -1.442695, %v8400_v32 }
 0xe8c   :  { %12501 = vpow2.f32 %v9696_v37  ;;  %v8326_v31 = vpop.f32.mrb[92].mxu0 }
 0xe8d   :  { %v12498_v36 = vpop.eup %12497  ;;  %v8327_v46 = vadd.f32 %v14197_v11, %v8326_v31  ;;  %v8396_v48 = vpop.f32.mrb[96].mxu1 }
 0xe8e   :  { %v11373_v7 = vpop.f32.mrb[93].mxu0  ;;  %v8166_v52 = vadd.f32 1.0, %v12498_v36  ;;  %v11384_v51 = vpop.f32.mrb[97].mxu1  ;;  %v8397_v13 = vadd.f32 %v14209_v6, %v8396_v48  ;;  %v8423_v36 = vld [vmem:[#allocation5 + $0xc] sm:$0x3] }
 0xe8f   :  { %v8407_v3 = vadd.f32 %v8327_v46, %v8185_v28  ;;  %v12500_v57 = vpop.eup %12499  ;;  %v8660_v51 = vld [vmem:[#allocation7 + $0x2] sm:$0x3] }
 0xe90   :  { %12503 = vrcp.f32 %v8166_v52  ;;  %v8173_v61 = vadd.f32 1.0, %v12500_v57 }
 0xe91   :  { %v9697_v19 = vmul.f32 -1.442695, %v8407_v3 }
 0xe93   :  { %12505 = vpow2.f32 %v9697_v19 }
 0xe96   :  { %v12502_v54 = vpop.eup %12501 }
 0xe97   :  { %v8404_v30 = vadd.f32 1.0, %v12502_v54 }
 0xe99   :  { %12507 = vrcp.f32 %v8404_v30 }
 0xe9a   :  { %v12504_v45 = vpop.eup %12503  ;;  %12509 = vrcp.f32 %v8173_v61 }
 0xe9b   :  { %v8176_v10 = vmul.f32 %v12504_v45, %v8159_v1 }
 0xe9d   :  { %v12506_v8 = vpop.eup %12505  ;;  %v8177_v29 = vadd.f32 %v8176_v10, %v7948_v53  ;;  %v8661_v10 = vld [vmem:[#allocation8 + $0x2] sm:$0x3] }
 0xe9e   :  { %v8411_v24 = vadd.f32 1.0, %v12506_v8 }
 0xe9f   :  { %12511 = vtanh.f32 %v8177_v29 }
 0xea0   :  { %12513 = vrcp.f32 %v8411_v24 }
 0xea3   :  { %v12508_v59 = vpop.eup %12507 }
 0xea4   :  { %v8414_v40 = vmul.f32 %v12508_v59, %v8397_v13  ;;  %v12510_v26 = vpop.eup %12509 }
 0xea5   :  { %v8179_v38 = vsub.f32 1.0, %v12510_v26  ;;  %v8181_v34 = vmul.f32 %v12510_v26, %v14119_v16 }
 0xea6   :  { %v8415_v63 = vadd.f32 %v8414_v40, %v8186_v9 }
 0xea8   :  { %12515 = vtanh.f32 %v8415_v63 }
 0xea9   :  { %v12512_v4 = vpop.eup %12511 }
 0xeaa   :  { %v8180_v58 = vmul.f32 %v12512_v4, %v8179_v38  ;;  %v12514_v23 = vpop.eup %12513  ;;  %v8424_v38 = vld [vmem:[#allocation6 + $0xc] sm:$0x3] }
 0xeab   :  { %v8417_v16 = vsub.f32 1.0, %v12514_v23  ;;  %v8419_v15 = vmul.f32 %v12514_v23, %v14140_v35 }
 0xeac   :  { %v14213_v33 = vadd.f32 %v8181_v34, %v8180_v58 }
 0xeae   :  { %8183 = vst.msk [vmem:[#allocation2 + $0xa] sm:$0x3] %vm889_vm4, %v14213_v33  ;;  %11394 = vmatmul.mubr.msk.f32.vlgmr.msra.gmra.mrb[94].mxu0 %vm201_vm3, %v14213_v33  ;;  %11405 = vmatmul.mubr.msk.f32.vlgmr.msra.gmra.mrb[98].mxu1 %vm201_vm3, %v14213_v33 }
 0xeaf   :  { %12150 = vmatpush3.bf16.msra.mxu0 %v13700_v49  ;;  %12156 = vmatpush3.bf16.msra.mxu1 %v13704_v50 }
 0xeb0   :  { %12151 = vmatprep.subr.bf16.mxu0 %v12595_v12  ;;  %12157 = vmatprep.subr.bf16.mxu1 %v12595_v12 }
 0xeb1   :  { %11415 = vmatprep.mubr.msk.f32.mxu0 %vm12596_vm2, %v12597_v17  ;;  %11426 = vmatprep.mubr.msk.f32.mxu1 %vm12596_vm2, %v12597_v17 }
 0xeb2   :  { %v12516_v14 = vpop.eup %12515 }
 0xeb3   :  { %12153 = vmatpush3.bf16.msra.mxu0 %v13722_v55  ;;  %12159 = vmatpush3.bf16.msra.mxu1 %v13726_v56  ;;  %v8418_v39 = vmul.f32 %v12516_v14, %v8417_v16 }
 0xeb4   :  { %12160 = vmatprep.subr.bf16.mxu0 %v12595_v12  ;;  %12166 = vmatprep.subr.bf16.mxu1 %v12595_v12 }
 0xeb5   :  { %v14234_v20 = vadd.f32 %v8419_v15, %v8418_v39  ;;  %v8662_v15 = vld [vmem:[#allocation9 + $0x2] sm:$0x3] }
 0xeb6   :  { %11416 = vmatmul.mubr.msk.f32.vlgmr.msra.gmra.mrb[96].mxu0 %vm201_vm3, %v14213_v33 }
 0xeb7   :  { %8421 = vst.msk [vmem:[#allocation3 + $0x4] sm:$0x3] %vm889_vm4, %v14234_v20  ;;  %11427 = vmatmul.mubr.msk.f32.vlgmr.msra.gmra.mrb[100].mxu1 %vm201_vm3, %v14234_v20  ;;  %12162 = vmatpush3.bf16.msra.mxu0 %v13746_v62 }
 0xeb8   :  { %12168 = vmatpush3.bf16.msra.mxu1 %v13757_v47  ;;  %12163 = vmatprep.subr.bf16.mxu0 %v12595_v12 }
 0xeb9   :  { %12169 = vmatprep.subr.bf16.mxu1 %v12595_v12  ;;  %11437 = vmatprep.mubr.msk.f32.mxu0 %vm12596_vm2, %v12597_v17 }
 0xeba   :  { %11448 = vmatprep.mubr.msk.f32.mxu1 %vm12596_vm2, %v12597_v17 }
 0xebb   :  { %12165 = vmatpush3.bf16.msra.mxu0 %v13768_v27 }
 0xebc   :  { %12171 = vmatpush3.bf16.msra.mxu1 %v13774_v2  ;;  %12172 = vmatprep.subr.bf16.mxu0 %v12595_v12 }
 0xebd   :  { %12178 = vmatprep.subr.bf16.mxu1 %v12595_v12 }
 0xebe   :  { %11438 = vmatmul.mubr.msk.f32.vlgmr.msra.gmra.mrb[98].mxu0 %vm201_vm3, %v14234_v20 }
 0xebf   :  { %11449 = vmatmul.mubr.msk.f32.vlgmr.msra.gmra.mrb[102].mxu1 %vm201_vm3, %v14234_v20  ;;  %12174 = vmatpush3.bf16.msra.mxu0 %v13653_v25 }
 0xec0   :  { %12180 = vmatpush3.bf16.msra.mxu1 %v13656_v5  ;;  %12175 = vmatprep.subr.bf16.mxu0 %v12595_v12 }
 0xec1   :  { %12181 = vmatprep.subr.bf16.mxu1 %v12595_v12  ;;  %11459 = vmatprep.mubr.msk.f32.mxu0 %vm12596_vm2, %v12597_v17 }
 0xec2   :  { %11470 = vmatprep.mubr.msk.f32.mxu1 %vm12596_vm2, %v12597_v17 }
 0xec3   :  { %12177 = vmatpush3.bf16.msra.mxu0 %v13676_v60 }
 0xec4   :  { %12183 = vmatpush3.bf16.msra.mxu1 %v13680_v43  ;;  %12184 = vmatprep.subr.bf16.mxu0 %v12595_v12 }
 0xec5   :  { %12190 = vmatprep.subr.bf16.mxu1 %v12595_v12 }
 0xf81   :  { %v8494_v25 = vpop.f32.mrb[94].mxu0  ;;  %v8564_v5 = vpop.f32.mrb[98].mxu1 }
 0xf82   :  { %v8495_v35 = vadd.f32 %v14179_v41, %v8494_v25  ;;  %v11395_v21 = vpop.f32.mrb[95].mxu0  ;;  %v11406_v44 = vpop.f32.mrb[99].mxu1  ;;  %v8565_v32 = vadd.f32 %v14185_v42, %v8564_v5 }
 0xf84   :  { %v8638_v37 = vadd.f32 %v8495_v35, %v8422_v22  ;;  %v8645_v46 = vadd.f32 %v8565_v32, %v8423_v36 }
 0xf86   :  { %v9701_v31 = vmul.f32 -1.442695, %v8638_v37  ;;  %v9702_v7 = vmul.f32 -1.442695, %v8645_v46  ;;  %v9402_v46 = vld [vmem:[%s14407_s17 + $0x30] sm:$0xff] }
 0xf88   :  { %12517 = vpow2.f32 %v9701_v31 }
 0xf89   :  { %v8634_v60 = vpop.f32.mrb[96].mxu0  ;;  %12519 = vpow2.f32 %v9702_v7 }
 0xf8a   :  { %v11417_v43 = vpop.f32.mrb[97].mxu0  ;;  %v8732_v48 = vpop.f32.mrb[100].mxu1  ;;  %v8635_v26 = vadd.f32 %v14203_v0, %v8634_v60  ;;  %v9403_v60 = vld [vmem:[%s14407_s17 + $0x38] sm:$0xff] }
 0xf8b   :  { %v8733_v52 = vadd.f32 %v14191_v18, %v8732_v48  ;;  %v11428_v28 = vpop.f32.mrb[101].mxu1  ;;  %v12218_v43 = vpack.c.bf16 %v9403_v60, %v9402_v46 }
 0xf8d   :  { %v8876_v3 = vadd.f32 %v8733_v52, %v8660_v51 }
 0xf8f   :  { %v9706_v19 = vmul.f32 -1.442695, %v8876_v3  ;;  %v8898_v3 = vld [vmem:[#allocation4 + $0xe] sm:$0x3] }
 0xf91   :  { %12521 = vpow2.f32 %v9706_v19  ;;  %v8802_v57 = vpop.f32.mrb[98].mxu0 }
 0xf92   :  { %v12518_v54 = vpop.eup %12517  ;;  %v8803_v61 = vadd.f32 %v14197_v11, %v8802_v57  ;;  %v8872_v30 = vpop.f32.mrb[102].mxu1 }
 0xf93   :  { %v11439_v1 = vpop.f32.mrb[99].mxu0  ;;  %v8642_v45 = vadd.f32 1.0, %v12518_v54  ;;  %v11450_v53 = vpop.f32.mrb[103].mxu1  ;;  %v8873_v23 = vadd.f32 %v14209_v6, %v8872_v30 }
 0xf94   :  { %v8883_v8 = vadd.f32 %v8803_v61, %v8661_v10  ;;  %v12520_v24 = vpop.eup %12519  ;;  %v8899_v61 = vld [vmem:[#allocation5 + $0xe] sm:$0x3] }
 0xf95   :  { %12523 = vrcp.f32 %v8642_v45  ;;  %v8649_v59 = vadd.f32 1.0, %v12520_v24 }
 0xf96   :  { %v9707_v29 = vmul.f32 -1.442695, %v8883_v8 }
 0xf98   :  { %12525 = vpow2.f32 %v9707_v29  ;;  %v9136_v29 = vld [vmem:[#allocation7] sm:$0x3] }
 0xf9b   :  { %v12522_v13 = vpop.eup %12521 }
 0xf9c   :  { %v8880_v40 = vadd.f32 1.0, %v12522_v13 }
 0xf9e   :  { %12527 = vrcp.f32 %v8880_v40 }
 0xf9f   :  { %v12524_v9 = vpop.eup %12523  ;;  %12529 = vrcp.f32 %v8649_v59 }
 0xfa0   :  { %v8652_v63 = vmul.f32 %v12524_v9, %v8635_v26 }
 0xfa2   :  { %v12526_v4 = vpop.eup %12525  ;;  %v8653_v58 = vadd.f32 %v8652_v63, %v8424_v38  ;;  %v9137_v63 = vld [vmem:[#allocation8] sm:$0x3] }
 0xfa3   :  { %v8887_v34 = vadd.f32 1.0, %v12526_v4 }
 0xfa4   :  { %12531 = vtanh.f32 %v8653_v58 }
 0xfa5   :  { %12533 = vrcp.f32 %v8887_v34 }
 0xfa8   :  { %v12528_v16 = vpop.eup %12527 }
 0xfa9   :  { %v8890_v14 = vmul.f32 %v12528_v16, %v8873_v23  ;;  %v12530_v39 = vpop.eup %12529 }
 0xfaa   :  { %v8655_v5 = vsub.f32 1.0, %v12530_v39  ;;  %v8657_v44 = vmul.f32 %v12530_v39, %v14213_v33 }
 0xfab   :  { %v8891_v25 = vadd.f32 %v8890_v14, %v8662_v15 }
 0xfad   :  { %12535 = vtanh.f32 %v8891_v25 }
 0xfae   :  { %v12532_v35 = vpop.eup %12531 }
 0xfaf   :  { %v8656_v21 = vmul.f32 %v12532_v35, %v8655_v5  ;;  %v12534_v32 = vpop.eup %12533 }
 0xfb0   :  { %v8893_v33 = vsub.f32 1.0, %v12534_v32 }
 0xfb1   :  { %v14277_v22 = vadd.f32 %v8657_v44, %v8656_v21 }
 0xfb3   :  { %8659 = vst.msk [vmem:[#allocation2 + $0xc] sm:$0x3] %vm889_vm4, %v14277_v22  ;;  %11460 = vmatmul.mubr.msk.f32.vlgmr.msra.gmra.mrb[100].mxu0 %vm201_vm3, %v14277_v22  ;;  %11471 = vmatmul.mubr.msk.f32.vlgmr.msra.gmra.mrb[104].mxu1 %vm201_vm3, %v14277_v22 }
 0xfb4   :  { %12186 = vmatpush3.bf16.msra.mxu0 %v13700_v49  ;;  %12192 = vmatpush3.bf16.msra.mxu1 %v13704_v50  ;;  %v8895_v49 = vmul.f32 %v12534_v32, %v14234_v20  ;;  %v9401_v20 = vld [vmem:[%s14407_s17 + $0x28] sm:$0xff] }
 0xfb5   :  { %12187 = vmatprep.subr.bf16.mxu0 %v12595_v12  ;;  %12193 = vmatprep.subr.bf16.mxu1 %v12595_v12 }
 0xfb6   :  { %11481 = vmatprep.mubr.msk.f32.mxu0 %vm12596_vm2, %v12597_v17  ;;  %11492 = vmatprep.mubr.msk.f32.mxu1 %vm12596_vm2, %v12597_v17 }
 0xfb7   :  { %v12536_v37 = vpop.eup %12535 }
 0xfb8   :  { %12189 = vmatpush3.bf16.msra.mxu0 %v13722_v55  ;;  %12195 = vmatpush3.bf16.msra.mxu1 %v13726_v56  ;;  %v8894_v31 = vmul.f32 %v12536_v37, %v8893_v33  ;;  %v9396_v55 = vld [vmem:[%s14407_s17] sm:$0xff]  ;;  %v9397_v56 = vld [vmem:[%s14407_s17 + $0x8] sm:$0xff]  ;;  %v9138_v37 = vld [vmem:[#allocation9] sm:$0x3] }
 0xfb9   :  { %12196 = vmatprep.subr.bf16.mxu0 %v12595_v12  ;;  %12202 = vmatprep.subr.bf16.mxu1 %v12595_v12 }
 0xfba   :  { %v14298_v50 = vadd.f32 %v8895_v49, %v8894_v31 }
 0xfbb   :  { %11482 = vmatmul.mubr.msk.f32.vlgmr.msra.gmra.mrb[102].mxu0 %vm201_vm3, %v14277_v22 }
 0xfbc   :  { %8897 = vst.msk [vmem:[#allocation3 + $0x2] sm:$0x3] %vm889_vm4, %v14298_v50  ;;  %11493 = vmatmul.mubr.msk.f32.vlgmr.msra.gmra.mrb[106].mxu1 %vm201_vm3, %v14298_v50  ;;  %12198 = vmatpush3.bf16.msra.mxu0 %v13746_v62  ;;  %v9398_v62 = vld [vmem:[%s14407_s17 + $0x10] sm:$0xff] }
 0xfbd   :  { %12204 = vmatpush3.bf16.msra.mxu1 %v13757_v47  ;;  %12199 = vmatprep.subr.bf16.mxu0 %v12595_v12  ;;  %v12209_v47 = vpack.c.bf16 %v9397_v56, %v9396_v55 }
 0xfbe   :  { %12205 = vmatprep.subr.bf16.mxu1 %v12595_v12  ;;  %11503 = vmatprep.mubr.msk.f32.mxu0 %vm12596_vm2, %v12597_v17 }
 0xfbf   :  { %11514 = vmatprep.mubr.msk.f32.mxu1 %vm12596_vm2, %v12597_v17 }
 0xfc0   :  { %12201 = vmatpush3.bf16.msra.mxu0 %v13768_v27  ;;  %v9399_v27 = vld [vmem:[%s14407_s17 + $0x18] sm:$0xff] }
 0xfc1   :  { %12207 = vmatpush3.bf16.msra.mxu1 %v13774_v2  ;;  %12208 = vmatprep.subr.bf16.mxu0 %v12595_v12  ;;  %v12212_v2 = vpack.c.bf16 %v9399_v27, %v9398_v62 }
 0xfc3   :  { %11504 = vmatmul.mubr.msk.f32.vlgmr.msra.gmra.mrb[104].mxu0 %vm201_vm3, %v14298_v50 }
 0xfc4   :  { %11515 = vmatmul.mubr.msk.f32.vlgmr.msra.gmra.mrb[108].mxu1 %vm201_vm3, %v14298_v50  ;;  %11533 = vmatprep.mubr.msk.f32.mxu0 %vm12596_vm2, %v12597_v17  ;;  %v9400_v17 = vld [vmem:[%s14407_s17 + $0x20] sm:$0xff] }
 0xfc5   :  { %12210 = vmatpush3.bf16.msra.mxu0 %v12209_v47  ;;  %v12215_v36 = vpack.c.bf16 %v9401_v20, %v9400_v17  ;;  %v9383_v20 = vpop.permute.xlu1 %9382 }
 0xfc6   :  { %12211 = vmatprep.subr.bf16.mxu0 %v12595_v12 }
 0xfc9   :  { %12213 = vmatpush3.bf16.msra.mxu0 %v12212_v2 }
 0xfca   :  { %12214 = vmatprep.subr.bf16.mxu0 %v12595_v12 }
 0xfcd   :  { %12216 = vmatpush3.bf16.msra.mxu0 %v12215_v36 }
 0xfce   :  { %12217 = vmatprep.subr.bf16.mxu0 %v12595_v12 }
 0xfd1   :  { %12219 = vmatpush3.bf16.msra.mxu0 %v12218_v43 }
0x1086   :  { %v8970_v48 = vpop.f32.mrb[100].mxu0  ;;  %v9040_v7 = vpop.f32.mrb[104].mxu1 }
0x1087   :  { %v8971_v52 = vadd.f32 %v14179_v41, %v8970_v48  ;;  %v11461_v28 = vpop.f32.mrb[101].mxu0  ;;  %v11472_v51 = vpop.f32.mrb[105].mxu1  ;;  %v9041_v19 = vadd.f32 %v14185_v42, %v9040_v7  ;;  %v9374_v7 = vld [vmem:[#allocation2] sm:$0xff] }
0x1088   :  { %v9718_v28 = vld [vmem:[%s14408_s18] ss:$0 sm:$0xff] }
0x1089   :  { %v9114_v57 = vadd.f32 %v8971_v52, %v8898_v3  ;;  %v9121_v30 = vadd.f32 %v9041_v19, %v8899_v61 }
0x108b   :  { %v9711_v54 = vmul.f32 -1.442695, %v9114_v57  ;;  %v9712_v53 = vmul.f32 -1.442695, %v9121_v30 }
0x108d   :  { %12537 = vpow2.f32 %v9711_v54 }
0x108e   :  { %v9110_v1 = vpop.f32.mrb[102].mxu0  ;;  %12539 = vpow2.f32 %v9712_v53 }
0x108f   :  { %v11483_v45 = vpop.f32.mrb[103].mxu0  ;;  %v9208_v10 = vpop.f32.mrb[106].mxu1  ;;  %v9111_v14 = vadd.f32 %v14203_v0, %v9110_v1 }
0x1090   :  { %v9209_v12 = vadd.f32 %v14191_v18, %v9208_v10  ;;  %v11494_v8 = vpop.f32.mrb[107].mxu1 }
0x1092   :  { %v9352_v24 = vadd.f32 %v9209_v12, %v9136_v29 }
0x1094   :  { %v9716_v41 = vmul.f32 -1.442695, %v9352_v24 }
0x1096   :  { %12541 = vpow2.f32 %v9716_v41  ;;  %v9278_v13 = vpop.f32.mrb[104].mxu0 }
0x1097   :  { %v12538_v59 = vpop.eup %12537  ;;  %v9279_v42 = vadd.f32 %v14197_v11, %v9278_v13  ;;  %v9348_v40 = vpop.f32.mrb[108].mxu1  ;;  %v8900_v11 = vld [vmem:[#allocation6 + $0xe] sm:$0x3] }
0x1098   :  { %v11505_v26 = vpop.f32.mrb[105].mxu0  ;;  %v9118_v9 = vadd.f32 1.0, %v12538_v59  ;;  %v11516_v38 = vpop.f32.mrb[109].mxu1  ;;  %v9349_v21 = vadd.f32 %v14209_v6, %v9348_v40 }
0x1099   :  { %v9359_v4 = vadd.f32 %v9279_v42, %v9137_v63  ;;  %v12540_v18 = vpop.eup %12539 }
0x109a   :  { %12543 = vrcp.f32 %v9118_v9  ;;  %v9125_v23 = vadd.f32 1.0, %v12540_v18 }
0x109b   :  { %v9717_v58 = vmul.f32 -1.442695, %v9359_v4 }
0x109d   :  { %12545 = vpow2.f32 %v9717_v58 }
0x10a0   :  { %v12542_v34 = vpop.eup %12541 }
0x10a1   :  { %v9356_v16 = vadd.f32 1.0, %v12542_v34 }
0x10a3   :  { %12547 = vrcp.f32 %v9356_v16 }
0x10a4   :  { %v12544_v39 = vpop.eup %12543  ;;  %12549 = vrcp.f32 %v9125_v23 }
0x10a5   :  { %v9128_v15 = vmul.f32 %v12544_v39, %v9111_v14 }
0x10a7   :  { %v12546_v25 = vpop.eup %12545  ;;  %v9129_v5 = vadd.f32 %v9128_v15, %v8900_v11 }
0x10a8   :  { %v9363_v35 = vadd.f32 1.0, %v12546_v25 }
0x10a9   :  { %12551 = vtanh.f32 %v9129_v5 }
0x10aa   :  { %12553 = vrcp.f32 %v9363_v35 }
0x10ad   :  { %v12548_v44 = vpop.eup %12547 }
0x10ae   :  { %v9366_v32 = vmul.f32 %v12548_v44, %v9349_v21  ;;  %v12550_v33 = vpop.eup %12549 }
0x10af   :  { %v9131_v49 = vsub.f32 1.0, %v12550_v33  ;;  %v9133_v56 = vmul.f32 %v12550_v33, %v14277_v22 }
0x10b0   :  { %v9367_v31 = vadd.f32 %v9366_v32, %v9138_v37 }
0x10b2   :  { %12555 = vtanh.f32 %v9367_v31 }
0x10b3   :  { %v12552_v0 = vpop.eup %12551 }
0x10b4   :  { %v9132_v55 = vmul.f32 %v12552_v0, %v9131_v49  ;;  %v12554_v47 = vpop.eup %12553 }
0x10b5   :  { %v9369_v27 = vsub.f32 1.0, %v12554_v47  ;;  %v9371_v6 = vmul.f32 %v12554_v47, %v14298_v50 }
0x10b6   :  { %v9134_v62 = vadd.f32 %v9133_v56, %v9132_v55 }
0x10b8   :  { %9135 = vst.msk [vmem:[#allocation2 + $0xe] sm:$0x3] %vm889_vm4, %v9134_v62 }
0x10bc   :  { %v12556_v2 = vpop.eup %12555 }
0x10bd   :  { %v9370_v17 = vmul.f32 %v12556_v2, %v9369_v27 }
0x10bf   :  { %v9372_v36 = vadd.f32 %v9371_v6, %v9370_v17  ;;  %v9375_v46 = vld [vmem:[#allocation2 + $0x8] sm:$0xff] }
0x10c0   :  { %v9387_v60 = vsel %vm201_vm3, %v9375_v46, %v9383_v20 }
0x10c1   :  { %9392 = vrot.lane.b32.xlu0 %v9372_v36, %s12598_s26  ;;  %9373 = vst.msk [vmem:[#allocation3] sm:$0x3] %vm889_vm4, %v9372_v36 }
0x10c2   :  { %9390 = vst.msk [vmem:[%s14409_s19 + $0x8] sm:$0xff] %vm9388_vm5, %v9387_v60 }
0x10c8   :  { %v9376_v22 = vld [vmem:[#allocation3] sm:$0xff] }
0x10c9   :  { %9380 = vrot.lane.b32.xlu0 %v9376_v22, %s12598_s26  ;;  %s12599_s26 = smov [#allocation10]  }
0x10ca   :  { %s9494_s10 = sshll.u32 %s12599_s26, 4  ;;  %s9495_s10 = int_to_ptr.vmem [resolvable:$true] %s9494_s10 }
0x10cb   :  { %s12571_s11 = scalar_lea.vmem %s9495_s10, 32  ;;  %p12576_p1 = scmp.lt.s32.totalorder %s9495_s10, %s9495_s10 }
0x10cc   :  { %p12572_p0 = scmp.ne.s32.totalorder %s9495_s10, %s12571_s11  ;;  %p12577_p2 = scmp.lt.s32.totalorder %s12571_s11, %s12571_s11 }
0x10ce   :  { %p12578_p3 = por %p12577_p2, %p12576_p1 }
0x10d0   :  { %p12579_p4 = pnand %p12578_p3, %p12572_p0 }
0x1133   :  { %v9393_v43 = vpop.permute.xlu0 %9392 }
0x1134   :  { %v9395_v50 = vsel %vm201_vm3, %v9134_v62, %v9393_v43 }
0x1135   :  { %11534 = vmatmul.mubr.msk.f32.vlgmr.msra.gmra.mrb[106].mxu0 %vm9388_vm5, %v9395_v50 }
0x113b   :  { %v9381_v48 = vpop.permute.xlu0 %9380 }
0x113c   :  { %v9386_v52 = vsel %vm201_vm3, %v9374_v7, %v9381_v48 }
0x113d   :  { %9389 = vst.msk [vmem:[%s14409_s19] sm:$0xff] %vm9388_vm5, %v9386_v52 }
0x1208   :  { %v9480_v51 = vpop.f32.mrb[106].mxu0 }
0x1209   :  { %v9481_v3 = vadd.f32 %v9718_v28, %v9480_v51  ;;  %v11535_v19 = vpop.f32.mrb[107].mxu0 }
0x120b   :  { %12557 = vtanh.f32 %v9481_v3 }
0x1215   :  { %v12558_v57 = vpop.eup %12557 }
0x1216   :  { %9485 = vst.msk [vmem:[#allocation10] sm:$0x3] %vm889_vm4, %v12558_v57 }
0x1217   :  { %12582 = shalt.err (!%p12579_p4)
}
0x1218   :  { %s12583_s18 = scalar_lea.hbm %s14410_s20, 32 }
0x1219   :  { %p12584_p5 = scmp.ne.s32.totalorder %s14410_s20, %s12583_s18  ;;  %p12587_p6 = scmp.lt.u32.totalorder %s12583_s18, %s14410_s20 }
0x121b   :  { %p12589_p7 = pnand %p12587_p6, %p12584_p5 }
0x121d   :  { %12592 = shalt.err (!%p12589_p7)
}
0x121e   :  { %9497 = dma.vmem_to_hbm [thread:$0]  %s9495_s10, 32, %s14410_s20, [#allocation11]  }
0x121f   :  { %12593 = dma.done.wait [#allocation11], 32  }
0x1220   :  { %12594 = vsyncadd [#allocation11], 4294967264 }
0x1221   :  { %9503 = vsyncpa [#allocation11], 1 }

</bundles_post_ra>
